<compile_context>
chip_gen: v5e
topology: v5e:2x2
jax: 0.10.0
libtpu: 0.0.40
codegen_flags: <defaults>
</compile_context>

<pallas_src>
import functools

import jax
import jax.numpy as jnp
from jax.experimental import pallas as pl
from jax.experimental.pallas import tpu as pltpu

BN_EPS = 1e-5
LANES = 128                 # Cout padded to a lane multiple (lane-dense stores)
CIN_ALIGN = 8               # pad Cin for friendly matmul / sublane alignment
DEFAULT_TILE_M = 512        # flattened rows per grid step (multiple of 8)
VMEM_LIMIT = 32 * 1024 * 1024      # generation-safe (v7x physical VMEM = 64 MiB)
FUSED_VMEM_BUDGET = 8 * 1024 * 1024  # use the single fused call below this


def _round_up(x, m):
    return (x + m - 1) // m * m


# ----------------------------- Pallas kernels ------------------------------ #
def _conv_taps(x_ref, w3_ref, *, n_rows, wp2, halo):
    """3x3 / pad-1 conv on `n_rows` flattened padded positions.

    x_ref: (1, n_rows + 2*halo, cin_p) bf16 rows of the zero-padded NHWC
    activation (flattened over (n, h+2, w+2)), with `halo` rows of context on
    each side.  Tap (dh, dw) of output row r reads input row
    r + halo + (dh-1)*wp2 + (dw-1).  Returns f32 (n_rows, c_pad).
    """
    c_pad = w3_ref.shape[-1]
    acc = jnp.zeros((n_rows, c_pad), jnp.float32)
    for dh in range(3):
        for dw in range(3):
            off = halo + (dh - 1) * wp2 + (dw - 1)        # static Python int
            patch = x_ref[0, off:off + n_rows, :]          # (n_rows, cin_p) bf16
            acc = acc + jnp.dot(patch, w3_ref[dh * 3 + dw],
                                preferred_element_type=jnp.float32)
    return acc


def _stats_kernel(x_ref, w3_ref, mask_ref, psum_ref, psumsq_ref,
                  *, n_rows, wp2, halo):
    """Pass 1 (tiled path): per-tile channel sum / sum-of-squares of the conv."""
    acc = _conv_taps(x_ref, w3_ref, n_rows=n_rows, wp2=wp2, halo=halo)
    acc = acc * mask_ref[...].astype(jnp.float32)   # zero out pad / tail rows
    psum_ref[0] = jnp.sum(acc, axis=0, keepdims=True)
    psumsq_ref[0] = jnp.sum(acc * acc, axis=0, keepdims=True)


def _apply_kernel_plain(x_ref, w3_ref, scale_ref, shift_ref, out_ref,
                        *, n_rows, wp2, halo):
    """Pass 2: out = relu(conv*scale + shift)   (BN folded into one FMA)."""
    acc = _conv_taps(x_ref, w3_ref, n_rows=n_rows, wp2=wp2, halo=halo)
    out_ref[...] = jnp.maximum(acc * scale_ref[...] + shift_ref[...],
                               0.0).astype(out_ref.dtype)


def _apply_kernel_res(x_ref, w3_ref, w1_ref, scale_ref, shift_ref, out_ref,
                      *, n_rows, wp2, halo):
    """Pass 2 (+skip): skip = centre-tap rows @ w1 (Cin-wide matmul only)."""
    acc = _conv_taps(x_ref, w3_ref, n_rows=n_rows, wp2=wp2, halo=halo)
    z = jnp.maximum(acc * scale_ref[...] + shift_ref[...], 0.0)
    skip = jnp.dot(x_ref[0, halo:halo + n_rows, :], w1_ref[...],
                   preferred_element_type=jnp.float32)
    out_ref[...] = (z + skip).astype(out_ref.dtype)


def _fused_body(x_ref, w3_ref, w1_ref, gamma_ref, beta_ref, mask_ref, out_ref,
                *, n_rows, wp2, halo, inv_m):
    """Fused single-call path: conv -> exact batch stats -> BN -> ReLU (+skip)."""
    acc = _conv_taps(x_ref, w3_ref, n_rows=n_rows, wp2=wp2, halo=halo)
    mask = mask_ref[...].astype(jnp.float32)
    mean = jnp.sum(acc * mask, axis=0, keepdims=True) * inv_m
    diff = (acc - mean) * mask                       # centered -> no cancellation
    var = jnp.sum(diff * diff, axis=0, keepdims=True) * inv_m
    scale = gamma_ref[...] * jax.lax.rsqrt(var + BN_EPS)
    shift = beta_ref[...] - mean * scale
    z = jnp.maximum(acc * scale + shift, 0.0)
    if w1_ref is not None:
        z = z + jnp.dot(x_ref[0, halo:halo + n_rows, :], w1_ref[...],
                        preferred_element_type=jnp.float32)
    out_ref[...] = z.astype(out_ref.dtype)


def _fused_kernel_res(x_ref, w3_ref, w1_ref, gamma_ref, beta_ref, mask_ref,
                      out_ref, **kw):
    _fused_body(x_ref, w3_ref, w1_ref, gamma_ref, beta_ref, mask_ref, out_ref, **kw)


def _fused_kernel_plain(x_ref, w3_ref, gamma_ref, beta_ref, mask_ref,
                        out_ref, **kw):
    _fused_body(x_ref, w3_ref, None, gamma_ref, beta_ref, mask_ref, out_ref, **kw)


# ------------------------------- JAX wrapper -------------------------------- #
@functools.partial(jax.jit,
                   static_argnames=("residual", "tile_m", "max_fused_bytes"))
def block_forward(x_nchw, w3_oihw, w1_oihw, gamma, beta, *, residual=True,
                  tile_m=DEFAULT_TILE_M, max_fused_bytes=FUSED_VMEM_BUDGET):
    """Forward pass of Block.  x_nchw: (N, Cin, H, W) -> (N, Cout, H, W) f32."""
    n, cin, h, w = x_nchw.shape
    cout = w3_oihw.shape[0]
    wp2 = w + 2                      # padded width
    f_img = (h + 2) * wp2            # flattened padded positions per image
    m_out = n * f_img                # rows the kernels compute
    m_true = n * h * w               # rows that are real conv outputs (for BN)

    cin_p = _round_up(cin, CIN_ALIGN)
    c_pad = _round_up(cout, LANES)
    halo = wp2 + 1                   # max |tap offset| in flat row indexing

    # ---------------- wrapper-side layout prep (plain XLA) ------------------ #
    x_nhwc = jnp.transpose(x_nchw, (0, 2, 3, 1)).astype(jnp.bfloat16)
    xp = jnp.pad(x_nhwc, ((0, 0), (1, 1), (1, 1), (0, cin_p - cin)))
    xflat = xp.reshape(m_out, cin_p)                                 # bf16 rows

    # OIHW -> per-tap (cin, cout) matrices stacked as (9, cin_p, c_pad), bf16.
    w3_taps = jnp.transpose(w3_oihw, (2, 3, 1, 0)).reshape(9, cin, cout)
    w3_taps = jnp.pad(w3_taps, ((0, 0), (0, cin_p - cin), (0, c_pad - cout)))
    w3_taps = w3_taps.astype(jnp.bfloat16)

    gamma_p = jnp.pad(gamma.astype(jnp.float32), (0, c_pad - cout)).reshape(1, c_pad)
    beta_p = jnp.pad(beta.astype(jnp.float32), (0, c_pad - cout)).reshape(1, c_pad)

    w1_mat = None
    if residual:
        w1_mat = jnp.pad(w1_oihw.reshape(cout, cin).T,
                         ((0, cin_p - cin), (0, c_pad - cout))).astype(jnp.bfloat16)

    # ----------------------- choose execution path -------------------------- #
    m_pad_fused = _round_up(m_out, 8)
    est_bytes = ((m_pad_fused + 2 * halo) * max(cin_p, LANES) * 2   # activation
                 + 3 * m_pad_fused * c_pad * 4                      # f32 acc + temps
                 + 2 * m_pad_fused * c_pad * 2                      # bf16 output
                 + m_pad_fused * LANES * 2                          # row mask
                 + 10 * cin_p * c_pad * 2)                          # weights
    use_fused = est_bytes <= max_fused_bytes

    if use_fused:
        m_pad = m_pad_fused
        num_tiles = 1
    else:
        assert tile_m % 8 == 0, "tile_m must be a multiple of 8"
        num_tiles = pl.cdiv(m_out, tile_m)
        m_pad = num_tiles * tile_m

    # Validity mask over flattened rows (1 = real conv output, 0 = pad frame /
    # tail padding).  Used for BN statistics only; garbage rows are cropped
    # from the output in the wrapper.
    f_idx = jnp.arange(m_pad, dtype=jnp.int32)
    fi = f_idx % f_img
    hp = fi // wp2
    wq = fi % wp2
    valid = (f_idx < m_out) & (hp >= 1) & (hp <= h) & (wq >= 1) & (wq <= w)
    mask = valid.astype(jnp.bfloat16).reshape(m_pad, 1)

    # Flattened activation rows with `halo` zero rows of context front/back.
    xg = jnp.concatenate(
        [jnp.zeros((halo, cin_p), jnp.bfloat16),
         xflat,
         jnp.zeros((m_pad - m_out + halo, cin_p), jnp.bfloat16)], axis=0)

    w3_spec = pl.BlockSpec((9, cin_p, c_pad), lambda i: (0, 0, 0))
    w1_spec = pl.BlockSpec((cin_p, c_pad), lambda i: (0, 0))
    vec_spec = pl.BlockSpec((1, c_pad), lambda i: (0, 0))

    if use_fused:
        # --------------- single fused call (small problems) ----------------- #
        x_in = xg.reshape(1, xg.shape[0], cin_p)
        x_spec = pl.BlockSpec((1, x_in.shape[1], cin_p), lambda i: (0, 0, 0))
        mask_spec = pl.BlockSpec((m_pad, 1), lambda i: (0, 0))

        kw = dict(n_rows=m_pad, wp2=wp2, halo=halo, inv_m=1.0 / m_true)
        if residual:
            kernel = functools.partial(_fused_kernel_res, **kw)
            in_specs = [x_spec, w3_spec, w1_spec, vec_spec, vec_spec, mask_spec]
            args = (x_in, w3_taps, w1_mat, gamma_p, beta_p, mask)
        else:
            kernel = functools.partial(_fused_kernel_plain, **kw)
            in_specs = [x_spec, w3_spec, vec_spec, vec_spec, mask_spec]
            args = (x_in, w3_taps, gamma_p, beta_p, mask)

        out_flat = pl.pallas_call(
            kernel,
            grid=(1,),
            in_specs=in_specs,
            out_specs=pl.BlockSpec((m_pad, c_pad), lambda i: (0, 0)),
            out_shape=jax.ShapeDtypeStruct((m_pad, c_pad), jnp.bfloat16),
            compiler_params=pltpu.CompilerParams(vmem_limit_bytes=VMEM_LIMIT),
        )(*args)
    else:
        # ------------------- tiled two-pass path ---------------------------- #
        l_tile = tile_m + 2 * halo
        row_idx = (jnp.arange(num_tiles, dtype=jnp.int32)[:, None] * tile_m
                   + jnp.arange(l_tile, dtype=jnp.int32)[None, :])
        x_tiles = jnp.take(xg, row_idx, axis=0)          # (T, l_tile, cin_p)

        x_spec = pl.BlockSpec((1, l_tile, cin_p), lambda i: (i, 0, 0))
        mask_spec = pl.BlockSpec((tile_m, 1), lambda i: (i, 0))
        stat_spec = pl.BlockSpec((1, 1, c_pad), lambda i: (i, 0, 0))

        # Pass 1: per-tile partial channel sums (megacore-parallel on v7x).
        psum, psumsq = pl.pallas_call(
            functools.partial(_stats_kernel, n_rows=tile_m, wp2=wp2, halo=halo),
            grid=(num_tiles,),
            in_specs=[x_spec, w3_spec, mask_spec],
            out_specs=[stat_spec, stat_spec],
            out_shape=[jax.ShapeDtypeStruct((num_tiles, 1, c_pad), jnp.float32),
                       jax.ShapeDtypeStruct((num_tiles, 1, c_pad), jnp.float32)],
            compiler_params=pltpu.CompilerParams(
                dimension_semantics=("parallel",),
                vmem_limit_bytes=VMEM_LIMIT),
        )(x_tiles, w3_taps, mask)

        ch_sum = jnp.sum(psum[:, 0, :], axis=0, keepdims=True)
        ch_sumsq = jnp.sum(psumsq[:, 0, :], axis=0, keepdims=True)
        mean = ch_sum / m_true
        var = jnp.maximum(ch_sumsq / m_true - mean * mean, 0.0)
        scale = gamma_p * jax.lax.rsqrt(var + BN_EPS)
        shift = beta_p - mean * scale

        # Pass 2: conv (recomputed from the cheap raw rows) + BN FMA + ReLU
        # (+ centre-tap skip), lane-dense bf16 output.
        kw = dict(n_rows=tile_m, wp2=wp2, halo=halo)
        if residual:
            kernel2 = functools.partial(_apply_kernel_res, **kw)
            in_specs = [x_spec, w3_spec, w1_spec, vec_spec, vec_spec]
            args = (x_tiles, w3_taps, w1_mat, scale, shift)
        else:
            kernel2 = functools.partial(_apply_kernel_plain, **kw)
            in_specs = [x_spec, w3_spec, vec_spec, vec_spec]
            args = (x_tiles, w3_taps, scale, shift)

        out_flat = pl.pallas_call(
            kernel2,
            grid=(num_tiles,),
            in_specs=in_specs,
            out_specs=pl.BlockSpec((tile_m, c_pad), lambda i: (i, 0)),
            out_shape=jax.ShapeDtypeStruct((m_pad, c_pad), jnp.bfloat16),
            compiler_params=pltpu.CompilerParams(
                dimension_semantics=("parallel",),
                vmem_limit_bytes=VMEM_LIMIT),
        )(*args)

    # Crop padding frame + channel padding, back to NCHW f32 (module contract).
    out = out_flat[:m_out, :cout].reshape(n, h + 2, wp2, cout)
    out = out[:, 1:h + 1, 1:w + 1, :]
    return jnp.transpose(out, (0, 3, 1, 2)).astype(jnp.float32)


# ------------------------------ pure-JAX reference --------------------------- #
def _reference(x_nchw, w3, w1, gamma, beta, residual):
    dn = ("NCHW", "OIHW", "NCHW")
    y = jax.lax.conv_general_dilated(x_nchw, w3, (1, 1), "SAME",
                                     dimension_numbers=dn)
    mean = y.mean(axis=(0, 2, 3), keepdims=True)
    var = ((y - mean) ** 2).mean(axis=(0, 2, 3), keepdims=True)
    z = (y - mean) * jax.lax.rsqrt(var + BN_EPS)
    z = z * gamma.reshape(1, -1, 1, 1) + beta.reshape(1, -1, 1, 1)
    z = jnp.maximum(z, 0.0)
    if residual:
        z = z + jax.lax.conv_general_dilated(x_nchw, w1, (1, 1), "VALID",
                                             dimension_numbers=dn)
    return z


# ----------------------------------- main ----------------------------------- #
if __name__ == "__main__":
    def run_case(n, cin, cout, h, w, residual, **kw):
        key = jax.random.PRNGKey(0)
        kx, kw3, kw1 = jax.random.split(key, 3)
        x = jax.random.normal(kx, (n, cin, h, w), dtype=jnp.float32)
        w3 = jax.random.normal(kw3, (cout, cin, 3, 3), dtype=jnp.float32) * 0.1
        w1 = jax.random.normal(kw1, (cout, cin, 1, 1), dtype=jnp.float32) * 0.1
        gamma = jnp.linspace(0.5, 1.5, cout, dtype=jnp.float32)
        beta = jnp.linspace(-0.2, 0.2, cout, dtype=jnp.float32)

        out = jax.block_until_ready(
            block_forward(x, w3, w1, gamma, beta, residual=residual, **kw))
        ref = _reference(x, w3, w1, gamma, beta, residual)
        assert out.shape == ref.shape, (out.shape, ref.shape)
        err = float(jnp.max(jnp.abs(out - ref)))
        # bf16 MXU operands (f32 accumulation) + bf16 writeback -> relaxed tol.
        assert jnp.allclose(out, ref, atol=5e-2, rtol=5e-2), \
            f"cfg={(n, cin, cout, h, w, residual)}: max abs err = {err}"

    # Small demo shape -> fused single-call path.
    run_case(2, 4, 8, 16, 16, residual=True)
    run_case(2, 4, 8, 16, 16, residual=False)
    # Larger shape forced onto the tiled two-pass path (multi-tile grid,
    # halo tiles, per-tile partial stats + masking).
    run_case(2, 16, 32, 20, 24, residual=True, tile_m=256, max_fused_bytes=0)
    run_case(2, 16, 32, 20, 24, residual=False, tile_m=256, max_fused_bytes=0)

    print("KERNEL_OK")
</pallas_src>

<mosaic_0001>
module attributes {stable_mosaic.version = 11 : i64} {
  func.func @_fused_kernel_res(%arg0: i32, %arg1: memref<1x686x8xbf16, #tpu.memory_space<vmem>>, %arg2: memref<9x8x128xbf16, #tpu.memory_space<vmem>>, %arg3: memref<8x128xbf16, #tpu.memory_space<vmem>>, %arg4: memref<1x128xf32, #tpu.memory_space<vmem>>, %arg5: memref<1x128xf32, #tpu.memory_space<vmem>>, %arg6: memref<648x1xbf16, #tpu.memory_space<vmem>>, %arg7: memref<648x128xbf16, #tpu.memory_space<vmem>>) attributes {dimension_semantics = [#tpu.dimension_semantics<arbitrary>], iteration_bounds = array<i64: 1>, scalar_prefetch = 0 : i64, scratch_operands = 0 : i64, tpu.core_type = #tpu.core_type<tc>, window_params = [{pipeline_mode = #tpu.pipeline_mode<synchronous>, transform_indices = @transform_0, window_bounds = array<i64: 1, 686, 8>}, {pipeline_mode = #tpu.pipeline_mode<synchronous>, transform_indices = @transform_1, window_bounds = array<i64: 9, 8, 128>}, {pipeline_mode = #tpu.pipeline_mode<synchronous>, transform_indices = @transform_2, window_bounds = array<i64: 8, 128>}, {pipeline_mode = #tpu.pipeline_mode<synchronous>, transform_indices = @transform_3, window_bounds = array<i64: 1, 128>}, {pipeline_mode = #tpu.pipeline_mode<synchronous>, transform_indices = @transform_4, window_bounds = array<i64: 1, 128>}, {pipeline_mode = #tpu.pipeline_mode<synchronous>, transform_indices = @transform_5, window_bounds = array<i64: 648, 1>}, {pipeline_mode = #tpu.pipeline_mode<synchronous>, transform_indices = @transform_6, window_bounds = array<i64: 648, 128>}]} {
    %cst = arith.constant 0.000000e+00 : f32
    %0 = vector.broadcast %cst : f32 to vector<648x128xf32>
    %c0 = arith.constant 0 : index
    %c0_0 = arith.constant 0 : index
    %c0_1 = arith.constant 0 : index
    %1 = vector.load %arg1[%c0, %c0_0, %c0_1] : memref<1x686x8xbf16, #tpu.memory_space<vmem>>, vector<1x648x8xbf16>
    %2 = vector.shape_cast %1 : vector<1x648x8xbf16> to vector<648x8xbf16>
    %c0_2 = arith.constant 0 : index
    %c0_3 = arith.constant 0 : index
    %c0_4 = arith.constant 0 : index
    %3 = vector.load %arg2[%c0_2, %c0_3, %c0_4] : memref<9x8x128xbf16, #tpu.memory_space<vmem>>, vector<1x8x128xbf16>
    %4 = vector.shape_cast %3 : vector<1x8x128xbf16> to vector<8x128xbf16>
    %cst_5 = arith.constant dense<0.000000e+00> : vector<648x128xf32>
    %5 = tpu.matmul %2, %4, %cst_5 {dimension_numbers = #tpu.dot_dimension_numbers<[1], [0], [0], [1], [0, 0, 1, 1], [], []>} : vector<648x8xbf16>, vector<8x128xbf16>, vector<648x128xf32> -> vector<648x128xf32>
    %6 = arith.addf %0, %5 : vector<648x128xf32>
    %c0_6 = arith.constant 0 : index
    %c1 = arith.constant 1 : index
    %c0_7 = arith.constant 0 : index
    %7 = vector.load %arg1[%c0_6, %c1, %c0_7] : memref<1x686x8xbf16, #tpu.memory_space<vmem>>, vector<1x648x8xbf16>
    %8 = vector.shape_cast %7 : vector<1x648x8xbf16> to vector<648x8xbf16>
    %c1_8 = arith.constant 1 : index
    %c0_9 = arith.constant 0 : index
    %c0_10 = arith.constant 0 : index
    %9 = vector.load %arg2[%c1_8, %c0_9, %c0_10] : memref<9x8x128xbf16, #tpu.memory_space<vmem>>, vector<1x8x128xbf16>
    %10 = vector.shape_cast %9 : vector<1x8x128xbf16> to vector<8x128xbf16>
    %cst_11 = arith.constant dense<0.000000e+00> : vector<648x128xf32>
    %11 = tpu.matmul %8, %10, %cst_11 {dimension_numbers = #tpu.dot_dimension_numbers<[1], [0], [0], [1], [0, 0, 1, 1], [], []>} : vector<648x8xbf16>, vector<8x128xbf16>, vector<648x128xf32> -> vector<648x128xf32>
    %12 = arith.addf %6, %11 : vector<648x128xf32>
    %c0_12 = arith.constant 0 : index
    %c2 = arith.constant 2 : index
    %c0_13 = arith.constant 0 : index
    %13 = vector.load %arg1[%c0_12, %c2, %c0_13] : memref<1x686x8xbf16, #tpu.memory_space<vmem>>, vector<1x648x8xbf16>
    %14 = vector.shape_cast %13 : vector<1x648x8xbf16> to vector<648x8xbf16>
    %c2_14 = arith.constant 2 : index
    %c0_15 = arith.constant 0 : index
    %c0_16 = arith.constant 0 : index
    %15 = vector.load %arg2[%c2_14, %c0_15, %c0_16] : memref<9x8x128xbf16, #tpu.memory_space<vmem>>, vector<1x8x128xbf16>
    %16 = vector.shape_cast %15 : vector<1x8x128xbf16> to vector<8x128xbf16>
    %cst_17 = arith.constant dense<0.000000e+00> : vector<648x128xf32>
    %17 = tpu.matmul %14, %16, %cst_17 {dimension_numbers = #tpu.dot_dimension_numbers<[1], [0], [0], [1], [0, 0, 1, 1], [], []>} : vector<648x8xbf16>, vector<8x128xbf16>, vector<648x128xf32> -> vector<648x128xf32>
    %18 = arith.addf %12, %17 : vector<648x128xf32>
    %c0_18 = arith.constant 0 : index
    %c18 = arith.constant 18 : index
    %c0_19 = arith.constant 0 : index
    %19 = vector.load %arg1[%c0_18, %c18, %c0_19] : memref<1x686x8xbf16, #tpu.memory_space<vmem>>, vector<1x648x8xbf16>
    %20 = vector.shape_cast %19 : vector<1x648x8xbf16> to vector<648x8xbf16>
    %c3 = arith.constant 3 : index
    %c0_20 = arith.constant 0 : index
    %c0_21 = arith.constant 0 : index
    %21 = vector.load %arg2[%c3, %c0_20, %c0_21] : memref<9x8x128xbf16, #tpu.memory_space<vmem>>, vector<1x8x128xbf16>
    %22 = vector.shape_cast %21 : vector<1x8x128xbf16> to vector<8x128xbf16>
    %cst_22 = arith.constant dense<0.000000e+00> : vector<648x128xf32>
    %23 = tpu.matmul %20, %22, %cst_22 {dimension_numbers = #tpu.dot_dimension_numbers<[1], [0], [0], [1], [0, 0, 1, 1], [], []>} : vector<648x8xbf16>, vector<8x128xbf16>, vector<648x128xf32> -> vector<648x128xf32>
    %24 = arith.addf %18, %23 : vector<648x128xf32>
    %c0_23 = arith.constant 0 : index
    %c19 = arith.constant 19 : index
    %c0_24 = arith.constant 0 : index
    %25 = vector.load %arg1[%c0_23, %c19, %c0_24] : memref<1x686x8xbf16, #tpu.memory_space<vmem>>, vector<1x648x8xbf16>
    %26 = vector.shape_cast %25 : vector<1x648x8xbf16> to vector<648x8xbf16>
    %c4 = arith.constant 4 : index
    %c0_25 = arith.constant 0 : index
    %c0_26 = arith.constant 0 : index
    %27 = vector.load %arg2[%c4, %c0_25, %c0_26] : memref<9x8x128xbf16, #tpu.memory_space<vmem>>, vector<1x8x128xbf16>
    %28 = vector.shape_cast %27 : vector<1x8x128xbf16> to vector<8x128xbf16>
    %cst_27 = arith.constant dense<0.000000e+00> : vector<648x128xf32>
    %29 = tpu.matmul %26, %28, %cst_27 {dimension_numbers = #tpu.dot_dimension_numbers<[1], [0], [0], [1], [0, 0, 1, 1], [], []>} : vector<648x8xbf16>, vector<8x128xbf16>, vector<648x128xf32> -> vector<648x128xf32>
    %30 = arith.addf %24, %29 : vector<648x128xf32>
    %c0_28 = arith.constant 0 : index
    %c20 = arith.constant 20 : index
    %c0_29 = arith.constant 0 : index
    %31 = vector.load %arg1[%c0_28, %c20, %c0_29] : memref<1x686x8xbf16, #tpu.memory_space<vmem>>, vector<1x648x8xbf16>
    %32 = vector.shape_cast %31 : vector<1x648x8xbf16> to vector<648x8xbf16>
    %c5 = arith.constant 5 : index
    %c0_30 = arith.constant 0 : index
    %c0_31 = arith.constant 0 : index
    %33 = vector.load %arg2[%c5, %c0_30, %c0_31] : memref<9x8x128xbf16, #tpu.memory_space<vmem>>, vector<1x8x128xbf16>
    %34 = vector.shape_cast %33 : vector<1x8x128xbf16> to vector<8x128xbf16>
    %cst_32 = arith.constant dense<0.000000e+00> : vector<648x128xf32>
    %35 = tpu.matmul %32, %34, %cst_32 {dimension_numbers = #tpu.dot_dimension_numbers<[1], [0], [0], [1], [0, 0, 1, 1], [], []>} : vector<648x8xbf16>, vector<8x128xbf16>, vector<648x128xf32> -> vector<648x128xf32>
    %36 = arith.addf %30, %35 : vector<648x128xf32>
    %c0_33 = arith.constant 0 : index
    %c36 = arith.constant 36 : index
    %c0_34 = arith.constant 0 : index
    %37 = vector.load %arg1[%c0_33, %c36, %c0_34] : memref<1x686x8xbf16, #tpu.memory_space<vmem>>, vector<1x648x8xbf16>
    %38 = vector.shape_cast %37 : vector<1x648x8xbf16> to vector<648x8xbf16>
    %c6 = arith.constant 6 : index
    %c0_35 = arith.constant 0 : index
    %c0_36 = arith.constant 0 : index
    %39 = vector.load %arg2[%c6, %c0_35, %c0_36] : memref<9x8x128xbf16, #tpu.memory_space<vmem>>, vector<1x8x128xbf16>
    %40 = vector.shape_cast %39 : vector<1x8x128xbf16> to vector<8x128xbf16>
    %cst_37 = arith.constant dense<0.000000e+00> : vector<648x128xf32>
    %41 = tpu.matmul %38, %40, %cst_37 {dimension_numbers = #tpu.dot_dimension_numbers<[1], [0], [0], [1], [0, 0, 1, 1], [], []>} : vector<648x8xbf16>, vector<8x128xbf16>, vector<648x128xf32> -> vector<648x128xf32>
    %42 = arith.addf %36, %41 : vector<648x128xf32>
    %c0_38 = arith.constant 0 : index
    %c37 = arith.constant 37 : index
    %c0_39 = arith.constant 0 : index
    %43 = vector.load %arg1[%c0_38, %c37, %c0_39] : memref<1x686x8xbf16, #tpu.memory_space<vmem>>, vector<1x648x8xbf16>
    %44 = vector.shape_cast %43 : vector<1x648x8xbf16> to vector<648x8xbf16>
    %c7 = arith.constant 7 : index
    %c0_40 = arith.constant 0 : index
    %c0_41 = arith.constant 0 : index
    %45 = vector.load %arg2[%c7, %c0_40, %c0_41] : memref<9x8x128xbf16, #tpu.memory_space<vmem>>, vector<1x8x128xbf16>
    %46 = vector.shape_cast %45 : vector<1x8x128xbf16> to vector<8x128xbf16>
    %cst_42 = arith.constant dense<0.000000e+00> : vector<648x128xf32>
    %47 = tpu.matmul %44, %46, %cst_42 {dimension_numbers = #tpu.dot_dimension_numbers<[1], [0], [0], [1], [0, 0, 1, 1], [], []>} : vector<648x8xbf16>, vector<8x128xbf16>, vector<648x128xf32> -> vector<648x128xf32>
    %48 = arith.addf %42, %47 : vector<648x128xf32>
    %c0_43 = arith.constant 0 : index
    %c38 = arith.constant 38 : index
    %c0_44 = arith.constant 0 : index
    %49 = vector.load %arg1[%c0_43, %c38, %c0_44] : memref<1x686x8xbf16, #tpu.memory_space<vmem>>, vector<1x648x8xbf16>
    %50 = vector.shape_cast %49 : vector<1x648x8xbf16> to vector<648x8xbf16>
    %c8 = arith.constant 8 : index
    %c0_45 = arith.constant 0 : index
    %c0_46 = arith.constant 0 : index
    %51 = vector.load %arg2[%c8, %c0_45, %c0_46] : memref<9x8x128xbf16, #tpu.memory_space<vmem>>, vector<1x8x128xbf16>
    %52 = vector.shape_cast %51 : vector<1x8x128xbf16> to vector<8x128xbf16>
    %cst_47 = arith.constant dense<0.000000e+00> : vector<648x128xf32>
    %53 = tpu.matmul %50, %52, %cst_47 {dimension_numbers = #tpu.dot_dimension_numbers<[1], [0], [0], [1], [0, 0, 1, 1], [], []>} : vector<648x8xbf16>, vector<8x128xbf16>, vector<648x128xf32> -> vector<648x128xf32>
    %54 = arith.addf %48, %53 : vector<648x128xf32>
    %c0_48 = arith.constant 0 : index
    %c0_49 = arith.constant 0 : index
    %55 = vector.load %arg6[%c0_48, %c0_49] : memref<648x1xbf16, #tpu.memory_space<vmem>>, vector<648x1xbf16>
    %56 = arith.extf %55 : vector<648x1xbf16> to vector<648x1xf32>
    %57 = vector.broadcast %56 : vector<648x1xf32> to vector<648x128xf32>
    %58 = arith.mulf %54, %57 : vector<648x128xf32>
    %cst_50 = arith.constant dense<0.000000e+00> : vector<128xf32>
    %59 = vector.multi_reduction <add>, %58, %cst_50 [0] : vector<648x128xf32> to vector<128xf32>
    %60 = vector.shape_cast %59 : vector<128xf32> to vector<1x128xf32>
    %cst_51 = arith.constant 0.001953125 : f32
    %61 = vector.broadcast %cst_51 : f32 to vector<1x128xf32>
    %62 = arith.mulf %60, %61 : vector<1x128xf32>
    %63 = vector.broadcast %62 : vector<1x128xf32> to vector<648x128xf32>
    %64 = arith.subf %54, %63 : vector<648x128xf32>
    %65 = vector.broadcast %56 : vector<648x1xf32> to vector<648x128xf32>
    %66 = arith.mulf %64, %65 : vector<648x128xf32>
    %67 = arith.mulf %66, %66 : vector<648x128xf32>
    %cst_52 = arith.constant dense<0.000000e+00> : vector<128xf32>
    %68 = vector.multi_reduction <add>, %67, %cst_52 [0] : vector<648x128xf32> to vector<128xf32>
    %69 = vector.shape_cast %68 : vector<128xf32> to vector<1x128xf32>
    %cst_53 = arith.constant 0.001953125 : f32
    %70 = vector.broadcast %cst_53 : f32 to vector<1x128xf32>
    %71 = arith.mulf %69, %70 : vector<1x128xf32>
    %c0_54 = arith.constant 0 : index
    %c0_55 = arith.constant 0 : index
    %72 = vector.load %arg4[%c0_54, %c0_55] : memref<1x128xf32, #tpu.memory_space<vmem>>, vector<1x128xf32>
    %cst_56 = arith.constant 9.99999974E-6 : f32
    %73 = vector.broadcast %cst_56 : f32 to vector<1x128xf32>
    %74 = arith.addf %71, %73 : vector<1x128xf32>
    %75 = math.rsqrt %74 : vector<1x128xf32>
    %76 = arith.mulf %72, %75 : vector<1x128xf32>
    %c0_57 = arith.constant 0 : index
    %c0_58 = arith.constant 0 : index
    %77 = vector.load %arg5[%c0_57, %c0_58] : memref<1x128xf32, #tpu.memory_space<vmem>>, vector<1x128xf32>
    %78 = arith.mulf %62, %76 : vector<1x128xf32>
    %79 = arith.subf %77, %78 : vector<1x128xf32>
    %80 = vector.broadcast %76 : vector<1x128xf32> to vector<648x128xf32>
    %81 = arith.mulf %54, %80 : vector<648x128xf32>
    %82 = vector.broadcast %79 : vector<1x128xf32> to vector<648x128xf32>
    %83 = arith.addf %81, %82 : vector<648x128xf32>
    %cst_59 = arith.constant 0.000000e+00 : f32
    %84 = vector.broadcast %cst_59 : f32 to vector<648x128xf32>
    %85 = arith.maximumf %83, %84 : vector<648x128xf32>
    %c0_60 = arith.constant 0 : index
    %c19_61 = arith.constant 19 : index
    %c0_62 = arith.constant 0 : index
    %86 = vector.load %arg1[%c0_60, %c19_61, %c0_62] : memref<1x686x8xbf16, #tpu.memory_space<vmem>>, vector<1x648x8xbf16>
    %87 = vector.shape_cast %86 : vector<1x648x8xbf16> to vector<648x8xbf16>
    %c0_63 = arith.constant 0 : index
    %c0_64 = arith.constant 0 : index
    %88 = vector.load %arg3[%c0_63, %c0_64] : memref<8x128xbf16, #tpu.memory_space<vmem>>, vector<8x128xbf16>
    %cst_65 = arith.constant dense<0.000000e+00> : vector<648x128xf32>
    %89 = tpu.matmul %87, %88, %cst_65 {dimension_numbers = #tpu.dot_dimension_numbers<[1], [0], [0], [1], [0, 0, 1, 1], [], []>} : vector<648x8xbf16>, vector<8x128xbf16>, vector<648x128xf32> -> vector<648x128xf32>
    %90 = arith.addf %85, %89 : vector<648x128xf32>
    %91 = arith.truncf %90 : vector<648x128xf32> to vector<648x128xbf16>
    %c0_66 = arith.constant 0 : index
    %c0_67 = arith.constant 0 : index
    %92 = vector.load %arg7[%c0_66, %c0_67] : memref<648x128xbf16, #tpu.memory_space<vmem>>, vector<648x128xbf16>
    tpu.vector_store %arg7[%c0_66, %c0_67], %91 {strides = array<i32>} : memref<648x128xbf16, #tpu.memory_space<vmem>>, vector<648x128xbf16>,
    return
  }
  func.func @transform_0(%arg0: i32) -> (i32, i32, i32) {
    %c0_i32 = arith.constant 0 : i32
    %c0_i32_0 = arith.constant 0 : i32
    %c0_i32_1 = arith.constant 0 : i32
    %c0_i32_2 = arith.constant 0 : i32
    return %c0_i32, %c0_i32_0, %c0_i32_1 : i32, i32, i32
  }
  func.func @transform_1(%arg0: i32) -> (i32, i32, i32) {
    %c0_i32 = arith.constant 0 : i32
    %c0_i32_0 = arith.constant 0 : i32
    %c0_i32_1 = arith.constant 0 : i32
    %c0_i32_2 = arith.constant 0 : i32
    return %c0_i32, %c0_i32_0, %c0_i32_1 : i32, i32, i32
  }
  func.func @transform_2(%arg0: i32) -> (i32, i32) {
    %c0_i32 = arith.constant 0 : i32
    %c0_i32_0 = arith.constant 0 : i32
    %c0_i32_1 = arith.constant 0 : i32
    return %c0_i32, %c0_i32_0 : i32, i32
  }
  func.func @transform_3(%arg0: i32) -> (i32, i32) {
    %c0_i32 = arith.constant 0 : i32
    %c0_i32_0 = arith.constant 0 : i32
    %c0_i32_1 = arith.constant 0 : i32
    return %c0_i32, %c0_i32_0 : i32, i32
  }
  func.func @transform_4(%arg0: i32) -> (i32, i32) {
    %c0_i32 = arith.constant 0 : i32
    %c0_i32_0 = arith.constant 0 : i32
    %c0_i32_1 = arith.constant 0 : i32
    return %c0_i32, %c0_i32_0 : i32, i32
  }
  func.func @transform_5(%arg0: i32) -> (i32, i32) {
    %c0_i32 = arith.constant 0 : i32
    %c0_i32_0 = arith.constant 0 : i32
    %c0_i32_1 = arith.constant 0 : i32
    return %c0_i32, %c0_i32_0 : i32, i32
  }
  func.func @transform_6(%arg0: i32) -> (i32, i32) {
    %c0_i32 = arith.constant 0 : i32
    %c0_i32_0 = arith.constant 0 : i32
    %c0_i32_1 = arith.constant 0 : i32
    return %c0_i32, %c0_i32_0 : i32, i32
  }
}

</mosaic_0001>

<bundles_post_ra>
// kernel: block_forward.1
= control target key start
LH: loop header
LB: loop body
LE: loop exit
PB: predicated region body
PF: predicated region fallthrough
CT: control target
= control target key end

     0   :  { %vm766_vm0 = vcmask 1043456   ;;  %vm314_vm1 = vsmask.f32 7424  ;;  %vm642_vm2 = vcmask 64512   ;;  %vm1289_vm3 = vcmask 1046528   ;;  %s13964_s1 = inlined_call_operand.vmem [shape: bf16[9,8,128], index: 1, kind: input, shape index: {}]   ;;  %s13965_s0 = inlined_call_operand.vmem [shape: bf16[1,686,8], index: 0, kind: input, shape index: {}]   ;;  %s13966_s2 = inlined_call_operand.vmem [shape: bf16[8,128], index: 2, kind: input, shape index: {}]   ;;  %s13967_s5 = inlined_call_operand.vmem [shape: bf16[648,1], index: 5, kind: input, shape index: {}]   ;;  %s13968_s3 = inlined_call_operand.vmem [shape: f32[1,128], index: 3, kind: input, shape index: {}]   ;;  %s13969_s4 = inlined_call_operand.vmem [shape: f32[1,128], index: 4, kind: input, shape index: {}]   ;;  %s13970_s6 = inlined_call_operand.vmem [shape: bf16[648,128], index: 6, kind: output, shape index: {}]  }
   0x1   :  { %v7771_v0 = vld [vmem:[%s13964_s1 + $0x4] sm:$0xf]  ;;  %v105_v1 = vld [vmem:[%s13964_s1] sm:$0xf]  ;;  %v9515_v5 = vld [vmem:[%s13965_s0 + $0x8] sm:$0xff]  ;;  %vm3382_vm4 = vcmask 1045504  }
   0x2   :  { %v8775_v2 = vld [vmem:[%s13965_s0] sm:$0xff]   ;;  %v768_v3 = vsel %vm766_vm0, %v7771_v0, 0  ;;  %v1068_v4 = vsel %vm766_vm0, %v105_v1, 0  ;;  %v8677_v8 = vld [vmem:[%s13965_s0 + $0xa8] sm:$0xff]  ;;  %v8250_v9 = vld [vmem:[%s13964_s1 + $0x10] sm:$0xf] }
   0x3   :  { %v316_v6 = vshrl.u32 %v8775_v2, 16  ;;  %v318_v7 = vshll.u32 %v8775_v2, 16  ;;  %777 = vmatpush.bf16.msra.mxu0 %v768_v3  ;;  %1077 = vmatpush.bf16.msra.mxu1 %v1068_v4  ;;  %v8678_v10 = vld [vmem:[%s13965_s0 + $0xb0] sm:$0xff]  ;;  %v8010_v11 = vld [vmem:[%s13964_s1 + $0x8] sm:$0xf]  ;;  %v323_v13 = vshll.u32 %v9515_v5, 16 }
   0x4   :  { %9220 = vmatpush.bf16.msra.mxu3 %v1068_v4  ;;  %9219 = vmatpush.bf16.msra.mxu2 %v768_v3  ;;  %v3080_v14 = vsel %vm766_vm0, %v8250_v9, 0  ;;  %v483_v15 = vshll.u32 %v8677_v8, 16  ;;  %v8052_v16 = vld [vmem:[%s13964_s1 + $0xc] sm:$0xf]  ;;  %v487_v17 = vshrl.u32 %v8677_v8, 16  ;;  %v491_v18 = vshll.u32 %v8678_v10, 16 }
   0x5   :  { %v320_v12 = vrot.slane %v318_v7, 1  ;;  %v1495_v19 = vsel %vm766_vm0, %v8010_v11, 0  ;;  %v2285_v20 = vsel %vm766_vm0, %v8052_v16, 0  ;;  %v325_v22 = vrot.slane %v323_v13, 1  ;;  %v8658_v28 = vld [vmem:[%s13965_s0 + $0x10] sm:$0xff]  ;;  %v8679_v29 = vld [vmem:[%s13965_s0 + $0xb8] sm:$0xff] }
   0x6   :  { %7969 = vmatmul.msk.bf16.vlgmr.msra.gmra.mxu1 %vm642_vm2, %v8775_v2  ;;  %v9537_v23 = vrot.slane %v483_v15, 1  ;;  %v493_v24 = vrot.slane %v491_v18, 1  ;;  %v327_v30 = vshrl.u32 %v9515_v5, 16  ;;  %v331_v31 = vshll.u32 %v8658_v28, 16  ;;  %v8659_v40 = vld [vmem:[%s13965_s0 + $0x18] sm:$0xff]  ;;  %v8680_v41 = vld [vmem:[%s13965_s0 + $0xc0] sm:$0xff] }
   0x7   :  { %3089 = vmatpush.bf16.msrb.mxu0 %v3080_v14  ;;  %v321_v21 = vor.u32 %v320_v12, %v316_v6  ;;  %7990 = vmatmul.msk.bf16.vlgmr.msra.gmra.mxu3 %vm642_vm2, %v8677_v8  ;;  %v495_v32 = vshrl.u32 %v8678_v10, 16  ;;  %v499_v33 = vshll.u32 %v8679_v29, 16  ;;  %v335_v42 = vshrl.u32 %v8658_v28, 16  ;;  %v8660_v52 = vld [vmem:[%s13965_s0 + $0x20] sm:$0xff]  ;;  %v8681_v53 = vld [vmem:[%s13965_s0 + $0xc8] sm:$0xff]  ;;  %v8682_v1 = vld [vmem:[%s13965_s0 + $0xd0] sm:$0xff] }
   0x8   :  { %1504 = vmatpush.bf16.msrb.mxu2 %v1495_v19  ;;  %v489_v26 = vor.u32 %v487_v17, %v9537_v23  ;;  %2294 = vmatpush.bf16.msrb.mxu3 %v2285_v20  ;;  %v329_v34 = vor.u32 %v327_v30, %v325_v22  ;;  %v333_v35 = vrot.slane %v331_v31, 1  ;;  %v339_v43 = vshll.u32 %v8659_v40, 16  ;;  %v8661_v0 = vld [vmem:[%s13965_s0 + $0x28] sm:$0xff]  ;;  %v8662_v13 = vld [vmem:[%s13965_s0 + $0x30] sm:$0xff]  ;;  %v8683_v14 = vld [vmem:[%s13965_s0 + $0xd8] sm:$0xff] }
   0x9   :  { %v326_v25 = vsel %vm314_vm1, %v321_v21, %v325_v22  ;;  %v497_v36 = vor.u32 %v495_v32, %v493_v24  ;;  %v501_v37 = vrot.slane %v499_v33, 1  ;;  %v503_v44 = vshrl.u32 %v8679_v29, 16 }
   0xa   :  { %7928 = vmatmul.msk.bf16.vlgmr.msra.gmra.mxu0 %vm642_vm2, %v326_v25  ;;  %v494_v27 = vsel %vm314_vm1, %v489_v26, %v493_v24  ;;  %v334_v38 = vsel %vm314_vm1, %v329_v34, %v333_v35  ;;  %v507_v45 = vshll.u32 %v8680_v41, 16  ;;  %v337_v46 = vor.u32 %v335_v42, %v333_v35  ;;  %v8663_v26 = vld [vmem:[%s13965_s0 + $0x38] sm:$0xff] }
   0xb   :  { %7949 = vmatmul.msk.bf16.vlgmr.msra.gmra.mxu2 %vm642_vm2, %v494_v27  ;;  %v502_v39 = vsel %vm314_vm1, %v497_v36, %v501_v37  ;;  %v341_v47 = vrot.slane %v339_v43, 1  ;;  %v505_v48 = vor.u32 %v503_v44, %v501_v37  ;;  %v343_v54 = vshrl.u32 %v8659_v40, 16  ;;  %v8684_v27 = vld [vmem:[%s13965_s0 + $0xe0] sm:$0xff] }
   0xc   :  { %v509_v49 = vrot.slane %v507_v45, 1  ;;  %v347_v55 = vshll.u32 %v8660_v52, 16  ;;  %v511_v56 = vshrl.u32 %v8680_v41, 16  ;;  %v515_v57 = vshll.u32 %v8681_v53, 16 }
   0xd   :  { %v342_v50 = vsel %vm314_vm1, %v337_v46, %v341_v47  ;;  %v345_v58 = vor.u32 %v343_v54, %v341_v47  ;;  %v351_v2 = vshrl.u32 %v8660_v52, 16  ;;  %v355_v3 = vshll.u32 %v8661_v0, 16 }
   0xe   :  { %v510_v51 = vsel %vm314_vm1, %v505_v48, %v509_v49  ;;  %v349_v59 = vrot.slane %v347_v55, 1  ;;  %v513_v60 = vor.u32 %v511_v56, %v509_v49  ;;  %v517_v61 = vrot.slane %v515_v57, 1 }
   0xf   :  { %v519_v4 = vshrl.u32 %v8681_v53, 16  ;;  %v523_v6 = vshll.u32 %v8682_v1, 16  ;;  %v357_v8 = vrot.slane %v355_v3, 1  ;;  %v359_v15 = vshrl.u32 %v8661_v0, 16 }
  0x10   :  { %v350_v62 = vsel %vm314_vm1, %v345_v58, %v349_v59  ;;  %v518_v63 = vsel %vm314_vm1, %v513_v60, %v517_v61  ;;  %v353_v7 = vor.u32 %v351_v2, %v349_v59  ;;  %v363_v16 = vshll.u32 %v8662_v13, 16  ;;  %v8666_v2 = vld [vmem:[%s13965_s0 + $0x50] sm:$0xff] }
  0x11   :  { %v521_v9 = vor.u32 %v519_v4, %v517_v61  ;;  %v527_v17 = vshrl.u32 %v8682_v1, 16  ;;  %v531_v18 = vshll.u32 %v8683_v14, 16  ;;  %v361_v19 = vor.u32 %v359_v15, %v357_v8  ;;  %v8687_v4 = vld [vmem:[%s13965_s0 + $0xf8] sm:$0xff] }
  0x12   :  { %v358_v11 = vsel %vm314_vm1, %v353_v7, %v357_v8  ;;  %v365_v20 = vrot.slane %v363_v16, 1  ;;  %v535_v30 = vshrl.u32 %v8683_v14, 16  ;;  %v539_v31 = vshll.u32 %v8684_v27, 16 }
  0x13   :  { %v533_v22 = vrot.slane %v531_v18, 1  ;;  %v543_v42 = vshrl.u32 %v8684_v27, 16  ;;  %vm2587_vm5 = vsmask.f32 6400  ;;  %vm4680_vm6 = vsmask.f32 5376 }
  0x14   :  { %v366_v24 = vsel %vm314_vm1, %v361_v19, %v365_v20  ;;  %v541_v35 = vrot.slane %v539_v31, 1  ;;  %vm5475_vm7 = vcmask 1044480  }
  0x15   :  { %v537_v34 = vor.u32 %v535_v30, %v533_v22  ;;  %v8688_v30 = vld [vmem:[%s13965_s0 + $0x100] sm:$0xff] }
  0x16   :  { %7970 = vmatmul.msk.bf16.gmra.mxu1 %vm642_vm2, %v9515_v5  ;;  %v545_v46 = vor.u32 %v543_v42, %v541_v35 }
  0x17   :  { %7991 = vmatmul.msk.bf16.gmra.mxu3 %vm642_vm2, %v8678_v10  ;;  %v525_v10 = vrot.slane %v523_v6, 1  ;;  %v542_v37 = vsel %vm314_vm1, %v537_v34, %v541_v35 }
  0x19   :  { %v526_v12 = vsel %vm314_vm1, %v521_v9, %v525_v10  ;;  %v529_v21 = vor.u32 %v527_v17, %v525_v10  ;;  %v395_v9 = vshll.u32 %v8666_v2, 16 }
  0x1a   :  { %7929 = vmatmul.msk.bf16.gmra.mxu0 %vm642_vm2, %v334_v38  ;;  %v8664_v38 = vld [vmem:[%s13965_s0 + $0x40] sm:$0xff] }
  0x1b   :  { %7950 = vmatmul.msk.bf16.gmra.mxu2 %vm642_vm2, %v502_v39  ;;  %v534_v25 = vsel %vm314_vm1, %v529_v21, %v533_v22  ;;  %v8685_v39 = vld [vmem:[%s13965_s0 + $0xe8] sm:$0xff]  ;;  %v397_v16 = vrot.slane %v395_v9, 1 }
  0x1c   :  { %v547_v43 = vshll.u32 %v8685_v39, 16  ;;  %v551_v54 = vshrl.u32 %v8685_v39, 16 }
  0x1e   :  { %v549_v47 = vrot.slane %v547_v43, 1 }
  0x20   :  { %v550_v49 = vsel %vm314_vm1, %v545_v46, %v549_v47  ;;  %v553_v59 = vor.u32 %v551_v54, %v549_v47  ;;  %v8689_v54 = vld [vmem:[%s13965_s0 + $0x108] sm:$0xff] }
  0x26   :  { %7971 = vmatmul.msk.bf16.gmra.mxu1 %vm642_vm2, %v8658_v28  ;;  %v367_v28 = vshrl.u32 %v8662_v13, 16 }
  0x27   :  { %7992 = vmatmul.msk.bf16.gmra.mxu3 %vm642_vm2, %v8679_v29  ;;  %v371_v29 = vshll.u32 %v8663_v26, 16 }
  0x28   :  { %v369_v32 = vor.u32 %v367_v28, %v365_v20  ;;  %v8667_v28 = vld [vmem:[%s13965_s0 + $0x58] sm:$0xff] }
  0x29   :  { %v373_v33 = vrot.slane %v371_v29, 1  ;;  %v403_v34 = vshll.u32 %v8667_v28, 16 }
  0x2a   :  { %7930 = vmatmul.msk.bf16.gmra.mxu0 %vm642_vm2, %v342_v50  ;;  %v8665_v50 = vld [vmem:[%s13965_s0 + $0x48] sm:$0xff] }
  0x2b   :  { %7951 = vmatmul.msk.bf16.gmra.mxu2 %vm642_vm2, %v510_v51  ;;  %v374_v36 = vsel %vm314_vm1, %v369_v32, %v373_v33  ;;  %v8686_v51 = vld [vmem:[%s13965_s0 + $0xf0] sm:$0xff]  ;;  %v391_v8 = vshrl.u32 %v8665_v50, 16 }
  0x2c   :  { %v555_v55 = vshll.u32 %v8686_v51, 16 }
  0x2e   :  { %v557_v60 = vrot.slane %v555_v55, 1 }
  0x36   :  { %7972 = vmatmul.msk.bf16.gmra.mxu1 %vm642_vm2, %v8659_v40  ;;  %v375_v40 = vshrl.u32 %v8663_v26, 16 }
  0x37   :  { %7993 = vmatmul.msk.bf16.gmra.mxu3 %vm642_vm2, %v8680_v41  ;;  %v379_v41 = vshll.u32 %v8664_v38, 16 }
  0x38   :  { %v377_v44 = vor.u32 %v375_v40, %v373_v33  ;;  %v399_v33 = vshrl.u32 %v8666_v2, 16 }
  0x39   :  { %v381_v45 = vrot.slane %v379_v41, 1  ;;  %v405_v41 = vrot.slane %v403_v34, 1 }
  0x3a   :  { %7931 = vmatmul.msk.bf16.gmra.mxu0 %vm642_vm2, %v350_v62  ;;  %v401_v40 = vor.u32 %v399_v33, %v397_v16 }
  0x3b   :  { %7952 = vmatmul.msk.bf16.gmra.mxu2 %vm642_vm2, %v518_v63  ;;  %v382_v48 = vsel %vm314_vm1, %v377_v44, %v381_v45 }
  0x3c   :  { %v406_v47 = vsel %vm314_vm1, %v401_v40, %v405_v41 }
  0x46   :  { %7973 = vmatmul.msk.bf16.gmra.mxu1 %vm642_vm2, %v8660_v52  ;;  %v383_v52 = vshrl.u32 %v8664_v38, 16 }
  0x47   :  { %7994 = vmatmul.msk.bf16.gmra.mxu3 %vm642_vm2, %v8681_v53  ;;  %v387_v53 = vshll.u32 %v8665_v50, 16 }
  0x48   :  { %v385_v56 = vor.u32 %v383_v52, %v381_v45  ;;  %v8668_v52 = vld [vmem:[%s13965_s0 + $0x60] sm:$0xff] }
  0x49   :  { %v389_v57 = vrot.slane %v387_v53, 1 }
  0x4a   :  { %7932 = vmatmul.msk.bf16.gmra.mxu0 %vm642_vm2, %v358_v11 }
  0x4b   :  { %7953 = vmatmul.msk.bf16.gmra.mxu2 %vm642_vm2, %v526_v12  ;;  %v390_v62 = vsel %vm314_vm1, %v385_v56, %v389_v57  ;;  %v559_v12 = vshrl.u32 %v8686_v51, 16  ;;  %v393_v15 = vor.u32 %v391_v8, %v389_v57  ;;  %v407_v57 = vshrl.u32 %v8667_v28, 16 }
  0x4d   :  { %v561_v18 = vor.u32 %v559_v12, %v557_v60  ;;  %v398_v22 = vsel %vm314_vm1, %v393_v15, %v397_v16  ;;  %v8669_v16 = vld [vmem:[%s13965_s0 + $0x68] sm:$0xff] }
  0x56   :  { %7974 = vmatmul.msk.bf16.gmra.mxu1 %vm642_vm2, %v8661_v0  ;;  %v558_v0 = vsel %vm314_vm1, %v553_v59, %v557_v60 }
  0x57   :  { %7995 = vmatmul.msk.bf16.gmra.mxu3 %vm642_vm2, %v8682_v1 }
  0x5a   :  { %7933 = vmatmul.msk.bf16.gmra.mxu0 %vm642_vm2, %v366_v24 }
  0x5b   :  { %7954 = vmatmul.msk.bf16.gmra.mxu2 %vm642_vm2, %v534_v25 }
  0x66   :  { %7975 = vmatmul.msk.bf16.gmra.mxu1 %vm642_vm2, %v8662_v13  ;;  %v563_v13 = vshll.u32 %v8687_v4, 16 }
  0x67   :  { %7996 = vmatmul.msk.bf16.gmra.mxu3 %vm642_vm2, %v8683_v14 }
  0x68   :  { %v565_v19 = vrot.slane %v563_v13, 1 }
  0x6a   :  { %7934 = vmatmul.msk.bf16.gmra.mxu0 %vm642_vm2, %v374_v36 }
  0x6b   :  { %7955 = vmatmul.msk.bf16.gmra.mxu2 %vm642_vm2, %v542_v37  ;;  %v567_v37 = vshrl.u32 %v8687_v4, 16 }
  0x6d   :  { %v569_v43 = vor.u32 %v567_v37, %v565_v19 }
  0x76   :  { %7976 = vmatmul.msk.bf16.gmra.mxu1 %vm642_vm2, %v8663_v26  ;;  %v566_v26 = vsel %vm314_vm1, %v561_v18, %v565_v19  ;;  %v8690_v18 = vld [vmem:[%s13965_s0 + $0x110] sm:$0xff] }
  0x77   :  { %7997 = vmatmul.msk.bf16.gmra.mxu3 %vm642_vm2, %v8684_v27 }
  0x7a   :  { %7935 = vmatmul.msk.bf16.gmra.mxu0 %vm642_vm2, %v382_v48 }
  0x7b   :  { %7956 = vmatmul.msk.bf16.gmra.mxu2 %vm642_vm2, %v550_v49 }
  0x83   :  { %v1079_v58 = vpop.f32.mrf.mxu1 }
  0x86   :  { %7977 = vmatmul.msk.bf16.gmra.mxu1 %vm642_vm2, %v8664_v38  ;;  %v571_v38 = vshll.u32 %v8688_v30, 16 }
  0x87   :  { %v779_v61 = vpop.f32.mrf.mxu0  ;;  %7998 = vmatmul.msk.bf16.gmra.mxu3 %vm642_vm2, %v8685_v39 }
  0x88   :  { %v9639_v63 = vadd.f32 %v1079_v58, %v779_v61  ;;  %v573_v44 = vrot.slane %v571_v38, 1  ;;  %v411_v58 = vshll.u32 %v8668_v52, 16  ;;  %v575_v61 = vshrl.u32 %v8688_v30, 16 }
  0x8a   :  { %7936 = vmatmul.msk.bf16.gmra.mxu0 %vm642_vm2, %v390_v62  ;;  %v1184_v1 = vpop.f32.mrf.mxu3  ;;  %v579_v62 = vshll.u32 %v8689_v54, 16 }
  0x8b   :  { %7957 = vmatmul.msk.bf16.gmra.mxu2 %vm642_vm2, %v558_v0  ;;  %v1081_v3 = vpop.f32.mrf.mxu1 }
  0x8e   :  { %v884_v7 = vpop.f32.mrf.mxu2 }
  0x8f   :  { %v781_v6 = vpop.f32.mrf.mxu0  ;;  %v9651_v10 = vadd.f32 %v1184_v1, %v884_v7  ;;  %v409_v1 = vor.u32 %v407_v57, %v405_v41  ;;  %v591_v57 = vshrl.u32 %v8690_v18, 16 }
  0x90   :  { %v9653_v11 = vadd.f32 %v1081_v3, %v781_v6  ;;  %v581_v6 = vrot.slane %v579_v62, 1 }
  0x91   :  { %14248 = vst [vmem:[#allocation2_spill] sm:$0xff] %v9651_v10 }
  0x92   :  { %v1186_v14 = vpop.f32.mrf.mxu3 }
  0x93   :  { %v1084_v17 = vpop.f32.mrf.mxu1 }
  0x96   :  { %v886_v21 = vpop.f32.mrf.mxu2  ;;  %7978 = vmatmul.msk.bf16.gmra.mxu1 %vm642_vm2, %v8665_v50  ;;  %v574_v50 = vsel %vm314_vm1, %v569_v43, %v573_v44 }
  0x97   :  { %v784_v20 = vpop.f32.mrf.mxu0  ;;  %v9657_v24 = vadd.f32 %v1186_v14, %v886_v21  ;;  %7999 = vmatmul.msk.bf16.gmra.mxu3 %vm642_vm2, %v8686_v51  ;;  %v415_v21 = vshrl.u32 %v8668_v52, 16 }
  0x98   :  { %v9659_v25 = vadd.f32 %v1084_v17, %v784_v20 }
  0x99   :  { %14249 = vst [vmem:[#allocation3_spill] sm:$0xff] %v9657_v24 }
  0x9a   :  { %7937 = vmatmul.msk.bf16.gmra.mxu0 %vm642_vm2, %v398_v22  ;;  %v1189_v27 = vpop.f32.mrf.mxu3  ;;  %v419_v22 = vshll.u32 %v8669_v16, 16 }
  0x9b   :  { %7958 = vmatmul.msk.bf16.gmra.mxu2 %vm642_vm2, %v566_v26  ;;  %v1086_v29 = vpop.f32.mrf.mxu1 }
  0x9e   :  { %v889_v32 = vpop.f32.mrf.mxu2 }
  0x9f   :  { %v786_v31 = vpop.f32.mrf.mxu0  ;;  %v9671_v35 = vadd.f32 %v1189_v27, %v889_v32  ;;  %v421_v32 = vrot.slane %v419_v22, 1 }
  0xa0   :  { %v9673_v36 = vadd.f32 %v1086_v29, %v786_v31  ;;  %v587_v29 = vshll.u32 %v8690_v18, 16 }
  0xa1   :  { %14250 = vst [vmem:[#allocation4_spill] sm:$0xff] %v9671_v35 }
  0xa2   :  { %v1191_v39 = vpop.f32.mrf.mxu3  ;;  %v589_v37 = vrot.slane %v587_v29, 1 }
  0xa3   :  { %v1089_v42 = vpop.f32.mrf.mxu1 }
  0xa6   :  { %v891_v46 = vpop.f32.mrf.mxu2  ;;  %7979 = vmatmul.msk.bf16.gmra.mxu1 %vm642_vm2, %v8666_v2  ;;  %v413_v2 = vrot.slane %v411_v58, 1 }
  0xa7   :  { %v789_v45 = vpop.f32.mrf.mxu0  ;;  %v9677_v48 = vadd.f32 %v1191_v39, %v891_v46  ;;  %8000 = vmatmul.msk.bf16.gmra.mxu3 %vm642_vm2, %v8687_v4  ;;  %v577_v4 = vor.u32 %v575_v61, %v573_v44 }
  0xa8   :  { %v9679_v49 = vadd.f32 %v1089_v42, %v789_v45  ;;  %v414_v9 = vsel %vm314_vm1, %v409_v1, %v413_v2  ;;  %v417_v31 = vor.u32 %v415_v21, %v413_v2  ;;  %v8670_v45 = vld [vmem:[%s13965_s0 + $0x70] sm:$0xff] }
  0xa9   :  { %14251 = vst [vmem:[#allocation5_spill] sm:$0xff] %v9677_v48  ;;  %v582_v14 = vsel %vm314_vm1, %v577_v4, %v581_v6 }
  0xaa   :  { %7938 = vmatmul.msk.bf16.gmra.mxu0 %vm642_vm2, %v406_v47  ;;  %v1194_v51 = vpop.f32.mrf.mxu3  ;;  %v422_v40 = vsel %vm314_vm1, %v417_v31, %v421_v32  ;;  %v8691_v47 = vld [vmem:[%s13965_s0 + $0x118] sm:$0xff] }
  0xab   :  { %7959 = vmatmul.msk.bf16.gmra.mxu2 %vm642_vm2, %v574_v50  ;;  %v1091_v53 = vpop.f32.mrf.mxu1  ;;  %v595_v58 = vshll.u32 %v8691_v47, 16  ;;  %v599_v31 = vshrl.u32 %v8691_v47, 16 }
  0xad   :  { %v597_v4 = vrot.slane %v595_v58, 1 }
  0xae   :  { %v894_v56 = vpop.f32.mrf.mxu2 }
  0xaf   :  { %v791_v55 = vpop.f32.mrf.mxu0  ;;  %v9691_v59 = vadd.f32 %v1194_v51, %v894_v56  ;;  %v8292_v56 = vld [vmem:[%s13964_s1 + $0x14] sm:$0xf] }
  0xb0   :  { %v9693_v60 = vadd.f32 %v1091_v53, %v791_v55  ;;  %v427_v53 = vshll.u32 %v8670_v45, 16  ;;  %v3588_v61 = vsel %vm766_vm0, %v8292_v56, 0  ;;  %v8672_v56 = vld [vmem:[%s13965_s0 + $0x80] sm:$0xff] }
  0xb1   :  { %14252 = vst [vmem:[#allocation6_spill] sm:$0xff] %v9691_v59  ;;  %3597 = vmatpush.bf16.msrb.mxu1 %v3588_v61 }
  0xb2   :  { %v1196_v0 = vpop.f32.mrf.mxu3  ;;  %v429_v1 = vrot.slane %v427_v53, 1 }
  0xb3   :  { %v1094_v3 = vpop.f32.mrf.mxu1 }
  0xb6   :  { %v896_v8 = vpop.f32.mrf.mxu2  ;;  %7980 = vmatmul.msk.bf16.gmra.mxu1 %vm642_vm2, %v8667_v28  ;;  %v583_v28 = vshrl.u32 %v8689_v54, 16 }
  0xb7   :  { %v794_v7 = vpop.f32.mrf.mxu0  ;;  %v9697_v12 = vadd.f32 %v1196_v0, %v896_v8  ;;  %8001 = vmatmul.msk.bf16.gmra.mxu3 %vm642_vm2, %v8688_v30 }
  0xb8   :  { %v9699_v13 = vadd.f32 %v1094_v3, %v794_v7  ;;  %v585_v34 = vor.u32 %v583_v28, %v581_v6  ;;  %v593_v3 = vor.u32 %v591_v57, %v589_v37  ;;  %v431_v28 = vshrl.u32 %v8670_v45, 16 }
  0xb9   :  { %14253 = vst [vmem:[#allocation7_spill] sm:$0xff] %v9697_v12 }
  0xba   :  { %7939 = vmatmul.msk.bf16.gmra.mxu0 %vm642_vm2, %v414_v9  ;;  %v1199_v15 = vpop.f32.mrf.mxu3  ;;  %v590_v43 = vsel %vm314_vm1, %v585_v34, %v589_v37  ;;  %v433_v34 = vor.u32 %v431_v28, %v429_v1 }
  0xbb   :  { %7960 = vmatmul.msk.bf16.gmra.mxu2 %vm642_vm2, %v582_v14  ;;  %v1096_v17 = vpop.f32.mrf.mxu1 }
  0xbe   :  { %v899_v20 = vpop.f32.mrf.mxu2 }
  0xbf   :  { %v796_v19 = vpop.f32.mrf.mxu0  ;;  %v9711_v26 = vadd.f32 %v1199_v15, %v899_v20  ;;  %v598_v15 = vsel %vm314_vm1, %v593_v3, %v597_v4 }
  0xc0   :  { %v9713_v27 = vadd.f32 %v1096_v17, %v796_v19  ;;  %v8671_v19 = vld [vmem:[%s13965_s0 + $0x78] sm:$0xff] }
  0xc1   :  { %14254 = vst [vmem:[#allocation8_spill] sm:$0xff] %v9711_v26 }
  0xc2   :  { %v1201_v30 = vpop.f32.mrf.mxu3 }
  0xc3   :  { %v1099_v33 = vpop.f32.mrf.mxu1 }
  0xc6   :  { %v901_v39 = vpop.f32.mrf.mxu2  ;;  %7981 = vmatmul.msk.bf16.gmra.mxu1 %vm642_vm2, %v8668_v52  ;;  %v423_v52 = vshrl.u32 %v8669_v16, 16 }
  0xc7   :  { %v799_v38 = vpop.f32.mrf.mxu0  ;;  %v9717_v41 = vadd.f32 %v1201_v30, %v901_v39  ;;  %8002 = vmatmul.msk.bf16.gmra.mxu3 %vm642_vm2, %v8689_v54  ;;  %v601_v39 = vor.u32 %v599_v31, %v597_v4 }
  0xc8   :  { %v9719_v42 = vadd.f32 %v1099_v33, %v799_v38  ;;  %v425_v0 = vor.u32 %v423_v52, %v421_v32 }
  0xc9   :  { %14255 = vst [vmem:[#allocation9_spill] sm:$0xff] %v9717_v41 }
  0xca   :  { %7940 = vmatmul.msk.bf16.gmra.mxu0 %vm642_vm2, %v422_v40  ;;  %v1204_v44 = vpop.f32.mrf.mxu3  ;;  %v430_v8 = vsel %vm314_vm1, %v425_v0, %v429_v1 }
  0xcb   :  { %7961 = vmatmul.msk.bf16.gmra.mxu2 %vm642_vm2, %v590_v43  ;;  %v1101_v46 = vpop.f32.mrf.mxu1 }
  0xce   :  { %v904_v51 = vpop.f32.mrf.mxu2 }
  0xcf   :  { %v801_v50 = vpop.f32.mrf.mxu0  ;;  %v9731_v54 = vadd.f32 %v1204_v44, %v904_v51 }
  0xd0   :  { %v9733_v55 = vadd.f32 %v1101_v46, %v801_v50 }
  0xd1   :  { %14256 = vst [vmem:[#allocation10_spill] sm:$0xff] %v9731_v54 }
  0xd2   :  { %v1206_v62 = vpop.f32.mrf.mxu3 }
  0xd3   :  { %v1104_v2 = vpop.f32.mrf.mxu1 }
  0xd6   :  { %v906_v7 = vpop.f32.mrf.mxu2  ;;  %7982 = vmatmul.msk.bf16.gmra.mxu1 %vm642_vm2, %v8669_v16  ;;  %v8692_v16 = vld [vmem:[%s13965_s0 + $0x120] sm:$0xff] }
  0xd7   :  { %v804_v6 = vpop.f32.mrf.mxu0  ;;  %v9741_v9 = vadd.f32 %v1206_v62, %v906_v7  ;;  %8003 = vmatmul.msk.bf16.gmra.mxu3 %vm642_vm2, %v8690_v18  ;;  %v435_v18 = vshll.u32 %v8671_v19, 16  ;;  %v603_v32 = vshll.u32 %v8692_v16, 16  ;;  %v439_v62 = vshrl.u32 %v8671_v19, 16 }
  0xd8   :  { %v9743_v14 = vadd.f32 %v1104_v2, %v804_v6  ;;  %v607_v2 = vshrl.u32 %v8692_v16, 16 }
  0xd9   :  { %14257 = vst [vmem:[#allocation11_spill] sm:$0xff] %v9741_v9  ;;  %v437_v37 = vrot.slane %v435_v18, 1  ;;  %v605_v40 = vrot.slane %v603_v32, 1 }
  0xda   :  { %7941 = vmatmul.msk.bf16.gmra.mxu0 %vm642_vm2, %v430_v8  ;;  %v1209_v17 = vpop.f32.mrf.mxu3 }
  0xdb   :  { %7962 = vmatmul.msk.bf16.gmra.mxu2 %vm642_vm2, %v598_v15  ;;  %v1106_v20 = vpop.f32.mrf.mxu1  ;;  %v438_v46 = vsel %vm314_vm1, %v433_v34, %v437_v37  ;;  %v606_v52 = vsel %vm314_vm1, %v601_v39, %v605_v40  ;;  %v441_v6 = vor.u32 %v439_v62, %v437_v37  ;;  %v609_v15 = vor.u32 %v607_v2, %v605_v40 }
  0xdc   :  { %v447_v39 = vshrl.u32 %v8672_v56, 16 }
  0xde   :  { %v909_v22 = vpop.f32.mrf.mxu2 }
  0xdf   :  { %v806_v21 = vpop.f32.mrf.mxu0  ;;  %v9755_v29 = vadd.f32 %v1209_v17, %v909_v22 }
  0xe0   :  { %v9757_v30 = vadd.f32 %v1106_v20, %v806_v21 }
  0xe1   :  { %14258 = vst [vmem:[#allocation12_spill] sm:$0xff] %v9755_v29 }
  0xe2   :  { %v1211_v33 = vpop.f32.mrf.mxu3 }
  0xe3   :  { %v1109_v38 = vpop.f32.mrf.mxu1 }
  0xe6   :  { %v911_v44 = vpop.f32.mrf.mxu2  ;;  %7983 = vmatmul.msk.bf16.gmra.mxu1 %vm642_vm2, %v8670_v45  ;;  %v8693_v45 = vld [vmem:[%s13965_s0 + $0x128] sm:$0xff] }
  0xe7   :  { %v809_v43 = vpop.f32.mrf.mxu0  ;;  %v9761_v50 = vadd.f32 %v1211_v33, %v911_v44  ;;  %8004 = vmatmul.msk.bf16.gmra.mxu3 %vm642_vm2, %v8691_v47  ;;  %v443_v47 = vshll.u32 %v8672_v56, 16  ;;  %v611_v3 = vshll.u32 %v8693_v45, 16  ;;  %v8673_v33 = vld [vmem:[%s13965_s0 + $0x88] sm:$0xff]  ;;  %v615_v44 = vshrl.u32 %v8693_v45, 16 }
  0xe8   :  { %v9763_v51 = vadd.f32 %v1109_v38, %v809_v43 }
  0xe9   :  { %14259 = vst [vmem:[#allocation13_spill] sm:$0xff] %v9761_v50  ;;  %v445_v7 = vrot.slane %v443_v47, 1  ;;  %v613_v17 = vrot.slane %v611_v3, 1 }
  0xea   :  { %7942 = vmatmul.msk.bf16.gmra.mxu0 %vm642_vm2, %v438_v46  ;;  %v1214_v53 = vpop.f32.mrf.mxu3 }
  0xeb   :  { %7963 = vmatmul.msk.bf16.gmra.mxu2 %vm642_vm2, %v606_v52  ;;  %v1111_v57 = vpop.f32.mrf.mxu1  ;;  %v446_v22 = vsel %vm314_vm1, %v441_v6, %v445_v7  ;;  %v614_v31 = vsel %vm314_vm1, %v609_v15, %v613_v17  ;;  %v8674_v15 = vld [vmem:[%s13965_s0 + $0x90] sm:$0xff] }
  0xee   :  { %v914_v61 = vpop.f32.mrf.mxu2 }
  0xef   :  { %v811_v58 = vpop.f32.mrf.mxu0  ;;  %v9775_v0 = vadd.f32 %v1214_v53, %v914_v61  ;;  %v449_v53 = vor.u32 %v447_v39, %v445_v7  ;;  %v617_v61 = vor.u32 %v615_v44, %v613_v17 }
  0xf0   :  { %v9777_v1 = vadd.f32 %v1111_v57, %v811_v58 }
  0xf1   :  { %14260 = vst [vmem:[#allocation14_spill] sm:$0xff] %v9775_v0 }
  0xf2   :  { %v1216_v4 = vpop.f32.mrf.mxu3 }
  0xf3   :  { %v1114_v8 = vpop.f32.mrf.mxu1 }
  0xf6   :  { %v916_v21 = vpop.f32.mrf.mxu2  ;;  %7984 = vmatmul.msk.bf16.gmra.mxu1 %vm642_vm2, %v8671_v19  ;;  %v8694_v19 = vld [vmem:[%s13965_s0 + $0x130] sm:$0xff] }
  0xf7   :  { %v814_v20 = vpop.f32.mrf.mxu0  ;;  %v9781_v28 = vadd.f32 %v1216_v4, %v916_v21  ;;  %8005 = vmatmul.msk.bf16.gmra.mxu3 %vm642_vm2, %v8692_v16  ;;  %v451_v16 = vshll.u32 %v8673_v33, 16  ;;  %v619_v46 = vshll.u32 %v8694_v19, 16 }
  0xf8   :  { %v9783_v18 = vadd.f32 %v1114_v8, %v814_v20 }
  0xf9   :  { %14261 = vst [vmem:[#allocation15_spill] sm:$0xff] %v9781_v28  ;;  %v453_v57 = vrot.slane %v451_v16, 1  ;;  %v621_v62 = vrot.slane %v619_v46, 1 }
  0xfa   :  { %7943 = vmatmul.msk.bf16.gmra.mxu0 %vm642_vm2, %v446_v22  ;;  %v1219_v32 = vpop.f32.mrf.mxu3  ;;  %v455_v22 = vshrl.u32 %v8673_v33, 16 }
  0xfb   :  { %7964 = vmatmul.msk.bf16.gmra.mxu2 %vm642_vm2, %v614_v31  ;;  %v1116_v34 = vpop.f32.mrf.mxu1  ;;  %v454_v3 = vsel %vm314_vm1, %v449_v53, %v453_v57  ;;  %v622_v8 = vsel %vm314_vm1, %v617_v61, %v621_v62  ;;  %v104_v53 = vld [vmem:[%s13965_s0 + $0x140] sm:$0xf] }
  0xfc   :  { %v457_v39 = vor.u32 %v455_v22, %v453_v57 }
  0xfe   :  { %v919_v38 = vpop.f32.mrf.mxu2 }
  0xff   :  { %v816_v37 = vpop.f32.mrf.mxu0  ;;  %v9795_v40 = vadd.f32 %v1219_v32, %v919_v38 }
 0x100   :  { %v9797_v43 = vadd.f32 %v1116_v34, %v816_v37  ;;  %v623_v34 = vshrl.u32 %v8694_v19, 16 }
 0x101   :  { %14262 = vst [vmem:[#allocation16_spill] sm:$0xff] %v9795_v40 }
 0x102   :  { %v1221_v52 = vpop.f32.mrf.mxu3  ;;  %v625_v46 = vor.u32 %v623_v34, %v621_v62  ;;  %v463_v34 = vshrl.u32 %v8674_v15, 16 }
 0x103   :  { %v1119_v58 = vpop.f32.mrf.mxu1 }
 0x106   :  { %v921_v2 = vpop.f32.mrf.mxu2  ;;  %7985 = vmatmul.msk.bf16.gmra.mxu1 %vm642_vm2, %v8672_v56  ;;  %v8695_v56 = vld [vmem:[%s13965_s0 + $0x138] sm:$0xff] }
 0x107   :  { %v819_v47 = vpop.f32.mrf.mxu0  ;;  %v9801_v4 = vadd.f32 %v1221_v52, %v921_v2  ;;  %8006 = vmatmul.msk.bf16.gmra.mxu3 %vm642_vm2, %v8693_v45  ;;  %v459_v45 = vshll.u32 %v8674_v15, 16  ;;  %v627_v37 = vshll.u32 %v8695_v56, 16 }
 0x108   :  { %v9803_v6 = vadd.f32 %v1119_v58, %v819_v47  ;;  %v106_v58 = vld [vmem:[%s13965_s0 + $0x144] sm:$0x1] }
 0x109   :  { %14263 = vst [vmem:[#allocation17_spill] sm:$0xff] %v9801_v4  ;;  %v461_v16 = vrot.slane %v459_v45, 1  ;;  %v629_v52 = vrot.slane %v627_v37, 1 }
 0x10a   :  { %7944 = vmatmul.msk.bf16.gmra.mxu0 %vm642_vm2, %v454_v3  ;;  %v1224_v7 = vpop.f32.mrf.mxu3 }
 0x10b   :  { %7965 = vmatmul.msk.bf16.gmra.mxu2 %vm642_vm2, %v622_v8  ;;  %v1121_v17 = vpop.f32.mrf.mxu1  ;;  %v462_v2 = vsel %vm314_vm1, %v457_v39, %v461_v16  ;;  %v630_v62 = vsel %vm314_vm1, %v625_v46, %v629_v52  ;;  %v271_v8 = vunpack.c.l.b16 %v104_v53  ;;  %v631_v39 = vshrl.u32 %v8695_v56, 16 }
 0x10c   :  { %v465_v53 = vor.u32 %v463_v34, %v461_v16 }
 0x10e   :  { %v924_v21 = vpop.f32.mrf.mxu2 }
 0x10f   :  { %v821_v20 = vpop.f32.mrf.mxu0  ;;  %v9815_v31 = vadd.f32 %v1224_v7, %v924_v21  ;;  %v272_v7 = vunpack.c.l.b16 %v106_v58 }
 0x110   :  { %v9817_v32 = vadd.f32 %v1121_v17, %v821_v20  ;;  %v8675_v20 = vld [vmem:[%s13965_s0 + $0x98] sm:$0xff] }
 0x111   :  { %14264 = vst [vmem:[#allocation18_spill] sm:$0xff] %v9815_v31  ;;  %v9838_v21 = vpack.c.b16 %v272_v7, %v271_v8  ;;  %v471_v34 = vshrl.u32 %v8675_v20, 16 }
 0x112   :  { %v1226_v38 = vpop.f32.mrf.mxu3 }
 0x113   :  { %v1124_v44 = vpop.f32.mrf.mxu1  ;;  %14266 = vst [vmem:[#allocation20_spill] sm:$0xff] %v9838_v21 }
 0x116   :  { %v926_v47 = vpop.f32.mrf.mxu2  ;;  %7986 = vmatmul.msk.bf16.gmra.mxu1 %vm642_vm2, %v8673_v33 }
 0x117   :  { %v824_v61 = vpop.f32.mrf.mxu0  ;;  %v9827_v3 = vadd.f32 %v1226_v38, %v926_v47  ;;  %8007 = vmatmul.msk.bf16.gmra.mxu3 %vm642_vm2, %v8694_v19  ;;  %v467_v19 = vshll.u32 %v8675_v20, 16  ;;  %v633_v47 = vor.u32 %v631_v39, %v629_v52  ;;  %v9857_v52 = vld [vmem:[%s13965_s0 + $0xa0] sm:$0xff] }
 0x118   :  { %v9829_v57 = vadd.f32 %v1124_v44, %v824_v61  ;;  %v635_v44 = vshll.u32 %v9838_v21, 16 }
 0x119   :  { %14265 = vst [vmem:[#allocation19_spill] sm:$0xff] %v9827_v3  ;;  %v469_v58 = vrot.slane %v467_v19, 1  ;;  %v475_v19 = vshll.u32 %v9857_v52, 16 }
 0x11a   :  { %7945 = vmatmul.msk.bf16.gmra.mxu0 %vm642_vm2, %v462_v2  ;;  %v1229_v17 = vpop.f32.mrf.mxu3  ;;  %v637_v2 = vrot.slane %v635_v44, 1  ;;  %v8532_v44 = vld [vmem:[%s13964_s1 + $0x1c] sm:$0xf] }
 0x11b   :  { %7966 = vmatmul.msk.bf16.gmra.mxu2 %vm642_vm2, %v630_v62  ;;  %v1126_v33 = vpop.f32.mrf.mxu1  ;;  %v470_v3 = vsel %vm314_vm1, %v465_v53, %v469_v58  ;;  %v5173_v53 = vsel %vm766_vm0, %v8532_v44, 0 }
 0x11c   :  { %5182 = vmatpush.bf16.msra.mxu3 %v5173_v53  ;;  %v8574_v53 = vld [vmem:[%s13964_s1 + $0x20] sm:$0xf] }
 0x11e   :  { %v929_v45 = vpop.f32.mrf.mxu2 }
 0x11f   :  { %v826_v22 = vpop.f32.mrf.mxu0  ;;  %v9840_v37 = vadd.f32 %v1229_v17, %v929_v45 }
 0x120   :  { %v9842_v38 = vadd.f32 %v1126_v33, %v826_v22  ;;  %v638_v33 = vsel %vm314_vm1, %v633_v47, %v637_v2  ;;  %v473_v47 = vor.u32 %v471_v34, %v469_v58 }
 0x121   :  { %14267 = vst [vmem:[#allocation21_spill] sm:$0xff] %v9840_v37  ;;  %v1291_v37 = vrot.slane %v9515_v5, 1 }
 0x122   :  { %v1231_v46 = vpop.f32.mrf.mxu3 }
 0x123   :  { %v1129_v61 = vpop.f32.mrf.mxu1 }
 0x126   :  { %v931_v7 = vpop.f32.mrf.mxu2  ;;  %7987 = vmatmul.msk.bf16.gmra.mxu1 %vm642_vm2, %v8674_v15 }
 0x127   :  { %v829_v62 = vpop.f32.mrf.mxu0  ;;  %v9847_v31 = vadd.f32 %v1231_v46, %v931_v7  ;;  %8008 = vmatmul.msk.bf16.gmra.mxu3 %vm642_vm2, %v8695_v56 }
 0x128   :  { %v9849_v17 = vadd.f32 %v1129_v61, %v829_v62  ;;  %v477_v62 = vrot.slane %v475_v19, 1 }
 0x129   :  { %14268 = vst [vmem:[#allocation22_spill] sm:$0xff] %v9847_v31 }
 0x12a   :  { %7946 = vmatmul.msk.bf16.gmra.mxu0 %vm642_vm2, %v470_v3  ;;  %v1234_v16 = vpop.f32.mrf.mxu3  ;;  %v8334_v3 = vld [vmem:[%s13964_s1 + $0x18] sm:$0xf]  ;;  %v478_v44 = vsel %vm314_vm1, %v473_v47, %v477_v62  ;;  %v5681_v47 = vsel %vm766_vm0, %v8574_v53, 0 }
 0x12b   :  { %7967 = vmatmul.msk.bf16.gmra.mxu2 %vm642_vm2, %v638_v33  ;;  %v1131_v22 = vpop.f32.mrf.mxu1  ;;  %v4378_v46 = vsel %vm766_vm0, %v8334_v3, 0  ;;  %v983_v33 = vpack.c.b16 %v271_v8, %v271_v8  ;;  %5690 = vmatpush.bf16.msra.mxu0 %v5681_v47 }
 0x12c   :  { %4387 = vmatpush.bf16.msra.mxu2 %v4378_v46 }
 0x12e   :  { %v934_v45 = vpop.f32.mrf.mxu2 }
 0x12f   :  { %v831_v15 = vpop.f32.mrf.mxu0  ;;  %v9861_v39 = vadd.f32 %v1234_v16, %v934_v45  ;;  %v639_v16 = vshrl.u32 %v9838_v21, 16 }
 0x130   :  { %v9863_v56 = vadd.f32 %v1131_v22, %v831_v15  ;;  %v1791_v22 = vld [vmem:[%s13965_s0 + $0x8] sm:$0xe]  ;;  %v1792_v15 = vld [vmem:[%s13965_s0 + $0xc] sm:$0xf] }
 0x131   :  { %14269 = vst [vmem:[#allocation23_spill] sm:$0xff] %v9861_v39  ;;  %v641_v8 = vor.u32 %v639_v16, %v637_v2  ;;  %v1957_v19 = vunpack.c.l.b16 %v1791_v22  ;;  %v1958_v46 = vunpack.c.l.b16 %v1792_v15  ;;  %v479_v15 = vshrl.u32 %v9857_v52, 16 }
 0x132   :  { %v1236_v61 = vpop.f32.mrf.mxu3 }
 0x133   :  { %v1134_v7 = vpop.f32.mrf.mxu1  ;;  %v2039_v2 = vpack.c.b16 %v1958_v46, %v1957_v19  ;;  %v481_v47 = vor.u32 %v479_v15, %v477_v62 }
 0x136   :  { %v936_v3 = vpop.f32.mrf.mxu2  ;;  %7988 = vmatmul.msk.bf16.gmra.mxu1 %vm642_vm2, %v8675_v20 }
 0x137   :  { %v834_v45 = vpop.f32.mrf.mxu0  ;;  %v9882_v58 = vadd.f32 %v1236_v61, %v936_v3  ;;  %8009 = vmatmul.msk.bf16.gmra.mxu3 %vm642_vm2, %v983_v33  ;;  %v9896_v61 = vld [vmem:[%s13965_s0 + $0x10] sm:$0xff]  ;;  %v9139_v33 = vld [vmem:[%s13965_s0] sm:$0xe] }
 0x138   :  { %v9884_v34 = vadd.f32 %v1134_v7, %v834_v45  ;;  %v9138_v7 = vld [vmem:[%s13965_s0] sm:$0xf0] }
 0x139   :  { %14270 = vst [vmem:[#allocation24_spill] sm:$0xff] %v9882_v58  ;;  %v9140_v19 = vor.u32 %v9139_v33, %v9138_v7 }
 0x13a   :  { %7947 = vmatmul.msk.bf16.gmra.mxu0 %vm642_vm2, %v478_v44  ;;  %v1239_v39 = vpop.f32.mrf.mxu3  ;;  %v2080_v44 = vrot.slane %v2039_v2, 1 }
 0x13b   :  { %7968 = vmatmul.msk.bf16.gmra.mxu2 %vm642_vm2, %v641_v8  ;;  %v1136_v20 = vpop.f32.mrf.mxu1  ;;  %v2081_v8 = vrot.slane %v9896_v61, 1  ;;  %v1290_v21 = vrot.slane %v9140_v19, 1  ;;  %v2592_v19 = vshll.u32 %v2039_v2, 16 }
 0x13d   :  { %v2082_v31 = vsel %vm1289_vm3, %v2080_v44, %v2081_v8  ;;  %v1292_v5 = vsel %vm1289_vm3, %v1290_v21, %v1291_v37  ;;  %v2589_v44 = vshrl.u32 %v2039_v2, 16 }
 0x13e   :  { %v939_v22 = vpop.f32.mrf.mxu2 }
 0x13f   :  { %v836_v16 = vpop.f32.mrf.mxu0  ;;  %v9905_v45 = vadd.f32 %v1239_v39, %v939_v22  ;;  %v3376_v39 = vld [vmem:[%s13965_s0 + $0x8] sm:$0xc] }
 0x140   :  { %v9907_v3 = vadd.f32 %v1136_v20, %v836_v16  ;;  %v486_v16 = vsel %vm314_vm1, %v481_v47, %v9537_v23  ;;  %v3380_v33 = vunpack.c.l.b16 %v3376_v39  ;;  %v2600_v23 = vshll.u32 %v9896_v61, 16 }
 0x141   :  { %14271 = vst [vmem:[#allocation25_spill] sm:$0xff] %v9905_v45  ;;  %v2597_v45 = vshrl.u32 %v9896_v61, 16  ;;  %v2591_v47 = vrot.slane %v2589_v44, 1  ;;  %v2594_v39 = vrot.slane %v2592_v19, 2 }
 0x142   :  { %v1241_v53 = vpop.f32.mrf.mxu3 }
 0x143   :  { %v1139_v58 = vpop.f32.mrf.mxu1  ;;  %v2595_v4 = vor.u32 %v2594_v39, %v2591_v47 }
 0x146   :  { %v941_v20 = vpop.f32.mrf.mxu2  ;;  %7989 = vmatmul.msk.bf16.gmra.mxu1 %vm642_vm2, %v9857_v52 }
 0x147   :  { %v839_v22 = vpop.f32.mrf.mxu0  ;;  %v9919_v7 = vadd.f32 %v1241_v53, %v941_v20  ;;  %8209 = vmatmul.msk.bf16.vlgmr.msrb.gmra.mxu3 %vm642_vm2, %v2082_v31  ;;  %v3381_v53 = vpack.c.b16 %v1958_v46, %v3380_v33  ;;  %v9932_v31 = vld [vmem:[%s13965_s0 + $0x18] sm:$0xff]  ;;  %v2602_v20 = vrot.slane %v2600_v23, 2 }
 0x148   :  { %v9921_v62 = vadd.f32 %v1139_v58, %v839_v22  ;;  %v2599_v22 = vrot.slane %v2597_v45, 1  ;;  %v2083_v46 = vrot.slane %v9932_v31, 1  ;;  %v2609_v47 = vshll.u32 %v9932_v31, 16 }
 0x149   :  { %14272 = vst [vmem:[#allocation26_spill] sm:$0xff] %v9919_v7  ;;  %v3383_v7 = vrot.slane %v3381_v53, 2 }
 0x14a   :  { %7948 = vmatmul.msk.bf16.gmra.mxu0 %vm642_vm2, %v486_v16  ;;  %v1244_v15 = vpop.f32.mrf.mxu3  ;;  %v2603_v40 = vor.u32 %v2602_v20, %v2599_v22  ;;  %v2084_v45 = vsel %vm1289_vm3, %v2081_v8, %v2083_v46 }
 0x14b   :  { %8011 = vmatmul.msk.bf16.vlgmr.msrb.gmra.mxu2 %vm642_vm2, %v1292_v5  ;;  %v1141_v52 = vpop.f32.mrf.mxu1  ;;  %v3384_v5 = vrot.slane %v9896_v61, 2 }
 0x14c   :  { %v9946_v61 = vsel %vm2587_vm5, %v2595_v4, %v2603_v40 }
 0x14d   :  { %v3385_v44 = vsel %vm3382_vm4, %v3383_v7, %v3384_v5  ;;  %14274 = vst [vmem:[#allocation28_spill] sm:$0xff] %v9946_v61 }
 0x14e   :  { %v944_v21 = vpop.f32.mrf.mxu2 }
 0x14f   :  { %v841_v58 = vpop.f32.mrf.mxu0  ;;  %v9934_v2 = vadd.f32 %v1244_v15, %v944_v21  ;;  %v9427_v15 = vld [vmem:[%s13965_s0 + $0x10] sm:$0xff]  ;;  %v2606_v21 = vshrl.u32 %v9932_v31, 16 }
 0x150   :  { %v9936_v16 = vadd.f32 %v1141_v52, %v841_v58  ;;  %v1293_v19 = vrot.slane %v9427_v15, 1 }
 0x151   :  { %14273 = vst [vmem:[#allocation27_spill] sm:$0xff] %v9934_v2  ;;  %v2608_v20 = vrot.slane %v2606_v21, 1  ;;  %v9428_v21 = vld [vmem:[%s13965_s0 + $0x18] sm:$0xff] }
 0x152   :  { %v1246_v33 = vpop.f32.mrf.mxu3  ;;  %v1294_v8 = vsel %vm1289_vm3, %v1291_v37, %v1293_v19  ;;  %v2611_v37 = vrot.slane %v2609_v47, 2  ;;  %v1295_v47 = vrot.slane %v9428_v21, 1 }
 0x153   :  { %v1144_v28 = vpop.f32.mrf.mxu1 }
 0x156   :  { %v946_v52 = vpop.f32.mrf.mxu2  ;;  %8293 = vmatmul.msk.bf16.vlgmr.msrb.gmra.mxu1 %vm642_vm2, %v3385_v44 }
 0x157   :  { %v844_v23 = vpop.f32.mrf.mxu0  ;;  %v9949_v53 = vadd.f32 %v1246_v33, %v946_v52  ;;  %8210 = vmatmul.msk.bf16.gmra.mxu3 %vm642_vm2, %v2084_v45  ;;  %v3386_v45 = vrot.slane %v9932_v31, 2  ;;  %v2612_v52 = vor.u32 %v2611_v37, %v2608_v20 }
 0x158   :  { %v9951_v58 = vadd.f32 %v1144_v28, %v844_v23  ;;  %v9963_v28 = vld [vmem:[%s13965_s0 + $0x20] sm:$0xff] }
 0x159   :  { %14275 = vst [vmem:[#allocation29_spill] sm:$0xff] %v9949_v53  ;;  %v2085_v15 = vrot.slane %v9963_v28, 1  ;;  %v3387_v53 = vsel %vm3382_vm4, %v3384_v5, %v3386_v45  ;;  %v1296_v5 = vsel %vm1289_vm3, %v1293_v19, %v1295_v47  ;;  %v2615_v20 = vshrl.u32 %v9963_v28, 16 }
 0x15a   :  { %8251 = vmatmul.msk.bf16.vlgmr.msrb.gmra.mxu0 %vm642_vm2, %v9946_v61  ;;  %v1249_v7 = vpop.f32.mrf.mxu3  ;;  %v2618_v37 = vshll.u32 %v9963_v28, 16 }
 0x15b   :  { %8012 = vmatmul.msk.bf16.gmra.mxu2 %vm642_vm2, %v1294_v8  ;;  %v1146_v4 = vpop.f32.mrf.mxu1  ;;  %v2086_v61 = vsel %vm1289_vm3, %v2083_v46, %v2085_v15 }
 0x15c   :  { %v2620_v19 = vrot.slane %v2618_v37, 2 }
 0x15e   :  { %v949_v22 = vpop.f32.mrf.mxu2 }
 0x15f   :  { %v846_v39 = vpop.f32.mrf.mxu0  ;;  %v9965_v33 = vadd.f32 %v1249_v7, %v949_v22 }
 0x160   :  { %v9967_v44 = vadd.f32 %v1146_v4, %v846_v39  ;;  %v9977_v4 = vsel %vm2587_vm5, %v2603_v40, %v2612_v52 }
 0x161   :  { %14276 = vst [vmem:[#allocation30_spill] sm:$0xff] %v9965_v33 }
 0x162   :  { %v1251_v23 = vpop.f32.mrf.mxu3  ;;  %14277 = vst [vmem:[#allocation31_spill] sm:$0xff] %v9977_v4 }
 0x163   :  { %v1149_v8 = vpop.f32.mrf.mxu1 }
 0x166   :  { %v951_v22 = vpop.f32.mrf.mxu2  ;;  %8294 = vmatmul.msk.bf16.gmra.mxu1 %vm642_vm2, %v3387_v53  ;;  %v9994_v53 = vld [vmem:[%s13965_s0 + $0x28] sm:$0xff] }
 0x167   :  { %v849_v7 = vpop.f32.mrf.mxu0  ;;  %v9980_v31 = vadd.f32 %v1251_v23, %v951_v22  ;;  %8211 = vmatmul.msk.bf16.gmra.mxu3 %vm642_vm2, %v2086_v61  ;;  %v3388_v22 = vrot.slane %v9963_v28, 2 }
 0x168   :  { %v9982_v39 = vadd.f32 %v1149_v8, %v849_v7  ;;  %v2617_v8 = vrot.slane %v2615_v20, 1  ;;  %v9429_v20 = vld [vmem:[%s13965_s0 + $0x20] sm:$0xff] }
 0x169   :  { %14278 = vst [vmem:[#allocation32_spill] sm:$0xff] %v9980_v31  ;;  %v2087_v31 = vrot.slane %v9994_v53, 1  ;;  %v3389_v2 = vsel %vm3382_vm4, %v3386_v45, %v3388_v22  ;;  %v1297_v37 = vrot.slane %v9429_v20, 1 }
 0x16a   :  { %8252 = vmatmul.msk.bf16.gmra.mxu0 %vm642_vm2, %v9977_v4  ;;  %v1254_v46 = vpop.f32.mrf.mxu3 }
 0x16b   :  { %8013 = vmatmul.msk.bf16.gmra.mxu2 %vm642_vm2, %v1296_v5  ;;  %v1151_v40 = vpop.f32.mrf.mxu1  ;;  %v2621_v5 = vor.u32 %v2620_v19, %v2617_v8  ;;  %v2088_v0 = vsel %vm1289_vm3, %v2085_v15, %v2087_v31  ;;  %v1298_v45 = vsel %vm1289_vm3, %v1295_v47, %v1297_v37  ;;  %v2624_v8 = vshrl.u32 %v9994_v53, 16 }
 0x16c   :  { %v2627_v19 = vshll.u32 %v9994_v53, 16 }
 0x16e   :  { %v954_v61 = vpop.f32.mrf.mxu2  ;;  %v2629_v47 = vrot.slane %v2627_v19, 2 }
 0x16f   :  { %v851_v23 = vpop.f32.mrf.mxu0  ;;  %v9996_v21 = vadd.f32 %v1254_v46, %v954_v61 }
 0x170   :  { %v9998_v7 = vadd.f32 %v1151_v40, %v851_v23  ;;  %v10008_v40 = vsel %vm2587_vm5, %v2612_v52, %v2621_v5 }
 0x171   :  { %14279 = vst [vmem:[#allocation33_spill] sm:$0xff] %v9996_v21 }
 0x172   :  { %v1256_v4 = vpop.f32.mrf.mxu3  ;;  %14280 = vst [vmem:[#allocation34_spill] sm:$0xff] %v10008_v40 }
 0x173   :  { %v1154_v33 = vpop.f32.mrf.mxu1 }
 0x176   :  { %v956_v61 = vpop.f32.mrf.mxu2  ;;  %8295 = vmatmul.msk.bf16.gmra.mxu1 %vm642_vm2, %v3389_v2  ;;  %v10025_v2 = vld [vmem:[%s13965_s0 + $0x30] sm:$0xff] }
 0x177   :  { %v854_v46 = vpop.f32.mrf.mxu0  ;;  %v10011_v28 = vadd.f32 %v1256_v4, %v956_v61  ;;  %8212 = vmatmul.msk.bf16.gmra.mxu3 %vm642_vm2, %v2088_v0  ;;  %v2626_v4 = vrot.slane %v2624_v8, 1  ;;  %v3390_v61 = vrot.slane %v9994_v53, 2  ;;  %v9430_v8 = vld [vmem:[%s13965_s0 + $0x28] sm:$0xff] }
 0x178   :  { %v10013_v23 = vadd.f32 %v1154_v33, %v854_v46  ;;  %v1299_v19 = vrot.slane %v9430_v8, 1 }
 0x179   :  { %14281 = vst [vmem:[#allocation35_spill] sm:$0xff] %v10011_v28  ;;  %v2089_v28 = vrot.slane %v10025_v2, 1  ;;  %v3391_v50 = vsel %vm3382_vm4, %v3388_v22, %v3390_v61 }
 0x17a   :  { %8253 = vmatmul.msk.bf16.gmra.mxu0 %vm642_vm2, %v10008_v40  ;;  %v1259_v15 = vpop.f32.mrf.mxu3 }
 0x17b   :  { %8014 = vmatmul.msk.bf16.gmra.mxu2 %vm642_vm2, %v1298_v45  ;;  %v1156_v52 = vpop.f32.mrf.mxu1  ;;  %v2630_v45 = vor.u32 %v2629_v47, %v2626_v4  ;;  %v2090_v29 = vsel %vm1289_vm3, %v2087_v31, %v2089_v28  ;;  %v1300_v31 = vsel %vm1289_vm3, %v1297_v37, %v1299_v19  ;;  %v2633_v4 = vshrl.u32 %v10025_v2, 16 }
 0x17c   :  { %v2636_v47 = vshll.u32 %v10025_v2, 16 }
 0x17e   :  { %v959_v0 = vpop.f32.mrf.mxu2  ;;  %v2638_v37 = vrot.slane %v2636_v47, 2 }
 0x17f   :  { %v856_v33 = vpop.f32.mrf.mxu0  ;;  %v10027_v20 = vadd.f32 %v1259_v15, %v959_v0 }
 0x180   :  { %v10029_v46 = vadd.f32 %v1156_v52, %v856_v33  ;;  %v10039_v52 = vsel %vm2587_vm5, %v2621_v5, %v2630_v45 }
 0x181   :  { %14282 = vst [vmem:[#allocation36_spill] sm:$0xff] %v10027_v20 }
 0x182   :  { %v1261_v40 = vpop.f32.mrf.mxu3  ;;  %14283 = vst [vmem:[#allocation37_spill] sm:$0xff] %v10039_v52 }
 0x183   :  { %v1159_v21 = vpop.f32.mrf.mxu1 }
 0x186   :  { %v961_v0 = vpop.f32.mrf.mxu2  ;;  %8296 = vmatmul.msk.bf16.gmra.mxu1 %vm642_vm2, %v3391_v50  ;;  %v10056_v50 = vld [vmem:[%s13965_s0 + $0x38] sm:$0xff] }
 0x187   :  { %v859_v15 = vpop.f32.mrf.mxu0  ;;  %v10042_v53 = vadd.f32 %v1261_v40, %v961_v0  ;;  %8213 = vmatmul.msk.bf16.gmra.mxu3 %vm642_vm2, %v2090_v29  ;;  %v2635_v40 = vrot.slane %v2633_v4, 1  ;;  %v3392_v0 = vrot.slane %v10025_v2, 2  ;;  %v9431_v4 = vld [vmem:[%s13965_s0 + $0x30] sm:$0xff] }
 0x188   :  { %v10044_v33 = vadd.f32 %v1159_v21, %v859_v15  ;;  %v1301_v47 = vrot.slane %v9431_v4, 1 }
 0x189   :  { %14284 = vst [vmem:[#allocation38_spill] sm:$0xff] %v10042_v53  ;;  %v2091_v53 = vrot.slane %v10056_v50, 1  ;;  %v3393_v9 = vsel %vm3382_vm4, %v3390_v61, %v3392_v0 }
 0x18a   :  { %8254 = vmatmul.msk.bf16.gmra.mxu0 %vm642_vm2, %v10039_v52  ;;  %v1264_v22 = vpop.f32.mrf.mxu3 }
 0x18b   :  { %8015 = vmatmul.msk.bf16.gmra.mxu2 %vm642_vm2, %v1300_v31  ;;  %v1161_v5 = vpop.f32.mrf.mxu1  ;;  %v2639_v31 = vor.u32 %v2638_v37, %v2635_v40  ;;  %v2092_v54 = vsel %vm1289_vm3, %v2089_v28, %v2091_v53  ;;  %v1302_v28 = vsel %vm1289_vm3, %v1299_v19, %v1301_v47  ;;  %v2642_v40 = vshrl.u32 %v10056_v50, 16 }
 0x18c   :  { %v2645_v37 = vshll.u32 %v10056_v50, 16 }
 0x18e   :  { %v964_v29 = vpop.f32.mrf.mxu2  ;;  %v2647_v19 = vrot.slane %v2645_v37, 2 }
 0x18f   :  { %v861_v21 = vpop.f32.mrf.mxu0  ;;  %v10058_v8 = vadd.f32 %v1264_v22, %v964_v29 }
 0x190   :  { %v10060_v15 = vadd.f32 %v1161_v5, %v861_v21  ;;  %v10070_v5 = vsel %vm2587_vm5, %v2630_v45, %v2639_v31 }
 0x191   :  { %14285 = vst [vmem:[#allocation39_spill] sm:$0xff] %v10058_v8 }
 0x192   :  { %v1266_v52 = vpop.f32.mrf.mxu3  ;;  %14286 = vst [vmem:[#allocation40_spill] sm:$0xff] %v10070_v5 }
 0x193   :  { %v1164_v20 = vpop.f32.mrf.mxu1 }
 0x196   :  { %v966_v29 = vpop.f32.mrf.mxu2  ;;  %8297 = vmatmul.msk.bf16.gmra.mxu1 %vm642_vm2, %v3393_v9  ;;  %v10087_v9 = vld [vmem:[%s13965_s0 + $0x40] sm:$0xff] }
 0x197   :  { %v864_v22 = vpop.f32.mrf.mxu0  ;;  %v10073_v2 = vadd.f32 %v1266_v52, %v966_v29  ;;  %8214 = vmatmul.msk.bf16.gmra.mxu3 %vm642_vm2, %v2092_v54  ;;  %v2644_v52 = vrot.slane %v2642_v40, 1  ;;  %v3394_v29 = vrot.slane %v10056_v50, 2  ;;  %v9432_v40 = vld [vmem:[%s13965_s0 + $0x38] sm:$0xff] }
 0x198   :  { %v10075_v21 = vadd.f32 %v1164_v20, %v864_v22  ;;  %v1303_v37 = vrot.slane %v9432_v40, 1 }
 0x199   :  { %14287 = vst [vmem:[#allocation41_spill] sm:$0xff] %v10073_v2  ;;  %v2093_v2 = vrot.slane %v10087_v9, 1  ;;  %v3395_v41 = vsel %vm3382_vm4, %v3392_v0, %v3394_v29 }
 0x19a   :  { %8255 = vmatmul.msk.bf16.gmra.mxu0 %vm642_vm2, %v10070_v5  ;;  %v1269_v61 = vpop.f32.mrf.mxu3 }
 0x19b   :  { %8016 = vmatmul.msk.bf16.gmra.mxu2 %vm642_vm2, %v1302_v28  ;;  %v1166_v45 = vpop.f32.mrf.mxu1  ;;  %v2648_v28 = vor.u32 %v2647_v19, %v2644_v52  ;;  %v2094_v26 = vsel %vm1289_vm3, %v2091_v53, %v2093_v2  ;;  %v1304_v53 = vsel %vm1289_vm3, %v1301_v47, %v1303_v37  ;;  %v2651_v52 = vshrl.u32 %v10087_v9, 16 }
 0x19c   :  { %v2654_v19 = vshll.u32 %v10087_v9, 16 }
 0x19e   :  { %v969_v54 = vpop.f32.mrf.mxu2  ;;  %v2656_v47 = vrot.slane %v2654_v19, 2 }
 0x19f   :  { %v866_v20 = vpop.f32.mrf.mxu0  ;;  %v10089_v4 = vadd.f32 %v1269_v61, %v969_v54 }
 0x1a0   :  { %v10091_v22 = vadd.f32 %v1166_v45, %v866_v20  ;;  %v10101_v45 = vsel %vm2587_vm5, %v2639_v31, %v2648_v28 }
 0x1a1   :  { %14288 = vst [vmem:[#allocation42_spill] sm:$0xff] %v10089_v4 }
 0x1a2   :  { %v1271_v5 = vpop.f32.mrf.mxu3  ;;  %14289 = vst [vmem:[#allocation43_spill] sm:$0xff] %v10101_v45 }
 0x1a3   :  { %v1169_v8 = vpop.f32.mrf.mxu1 }
 0x1a6   :  { %v971_v54 = vpop.f32.mrf.mxu2  ;;  %8298 = vmatmul.msk.bf16.gmra.mxu1 %vm642_vm2, %v3395_v41  ;;  %v10118_v41 = vld [vmem:[%s13965_s0 + $0x48] sm:$0xff] }
 0x1a7   :  { %v869_v61 = vpop.f32.mrf.mxu0  ;;  %v10104_v50 = vadd.f32 %v1271_v5, %v971_v54  ;;  %8215 = vmatmul.msk.bf16.gmra.mxu3 %vm642_vm2, %v2094_v26  ;;  %v2653_v5 = vrot.slane %v2651_v52, 1  ;;  %v3396_v54 = vrot.slane %v10087_v9, 2  ;;  %v9433_v52 = vld [vmem:[%s13965_s0 + $0x40] sm:$0xff] }
 0x1a8   :  { %v10106_v20 = vadd.f32 %v1169_v8, %v869_v61  ;;  %v1305_v19 = vrot.slane %v9433_v52, 1 }
 0x1a9   :  { %14290 = vst [vmem:[#allocation44_spill] sm:$0xff] %v10104_v50  ;;  %v2095_v50 = vrot.slane %v10118_v41, 1  ;;  %v3397_v12 = vsel %vm3382_vm4, %v3394_v29, %v3396_v54 }
 0x1aa   :  { %8256 = vmatmul.msk.bf16.gmra.mxu0 %vm642_vm2, %v10101_v45  ;;  %v1274_v0 = vpop.f32.mrf.mxu3 }
 0x1ab   :  { %8017 = vmatmul.msk.bf16.gmra.mxu2 %vm642_vm2, %v1304_v53  ;;  %v1171_v31 = vpop.f32.mrf.mxu1  ;;  %v2657_v53 = vor.u32 %v2656_v47, %v2653_v5  ;;  %v2096_v59 = vsel %vm1289_vm3, %v2093_v2, %v2095_v50  ;;  %v1306_v2 = vsel %vm1289_vm3, %v1303_v37, %v1305_v19  ;;  %v2660_v5 = vshrl.u32 %v10118_v41, 16 }
 0x1ac   :  { %v2663_v47 = vshll.u32 %v10118_v41, 16 }
 0x1ae   :  { %v974_v26 = vpop.f32.mrf.mxu2  ;;  %v2665_v37 = vrot.slane %v2663_v47, 2 }
 0x1af   :  { %v871_v8 = vpop.f32.mrf.mxu0  ;;  %v10120_v40 = vadd.f32 %v1274_v0, %v974_v26 }
 0x1b0   :  { %v10122_v61 = vadd.f32 %v1171_v31, %v871_v8  ;;  %v10132_v31 = vsel %vm2587_vm5, %v2648_v28, %v2657_v53 }
 0x1b1   :  { %14291 = vst [vmem:[#allocation45_spill] sm:$0xff] %v10120_v40 }
 0x1b2   :  { %v1276_v45 = vpop.f32.mrf.mxu3  ;;  %14292 = vst [vmem:[#allocation46_spill] sm:$0xff] %v10132_v31 }
 0x1b3   :  { %v1174_v4 = vpop.f32.mrf.mxu1 }
 0x1b6   :  { %v976_v26 = vpop.f32.mrf.mxu2  ;;  %8299 = vmatmul.msk.bf16.gmra.mxu1 %vm642_vm2, %v3397_v12  ;;  %v10149_v12 = vld [vmem:[%s13965_s0 + $0x50] sm:$0xff] }
 0x1b7   :  { %v874_v0 = vpop.f32.mrf.mxu0  ;;  %v10135_v9 = vadd.f32 %v1276_v45, %v976_v26  ;;  %8216 = vmatmul.msk.bf16.gmra.mxu3 %vm642_vm2, %v2096_v59  ;;  %v2662_v45 = vrot.slane %v2660_v5, 1  ;;  %v3398_v26 = vrot.slane %v10118_v41, 2  ;;  %v9434_v5 = vld [vmem:[%s13965_s0 + $0x48] sm:$0xff] }
 0x1b8   :  { %v10137_v8 = vadd.f32 %v1174_v4, %v874_v0  ;;  %v1307_v47 = vrot.slane %v9434_v5, 1 }
 0x1b9   :  { %14293 = vst [vmem:[#allocation47_spill] sm:$0xff] %v10135_v9  ;;  %v2097_v9 = vrot.slane %v10149_v12, 1  ;;  %v3399_v48 = vsel %vm3382_vm4, %v3396_v54, %v3398_v26 }
 0x1ba   :  { %8257 = vmatmul.msk.bf16.gmra.mxu0 %vm642_vm2, %v10132_v31  ;;  %v1279_v29 = vpop.f32.mrf.mxu3  ;;  %v1308_v54 = vsel %vm1289_vm3, %v1305_v19, %v1307_v47 }
 0x1bb   :  { %8018 = vmatmul.msk.bf16.gmra.mxu2 %vm642_vm2, %v1306_v2  ;;  %v1176_v28 = vpop.f32.mrf.mxu1  ;;  %v2666_v2 = vor.u32 %v2665_v37, %v2662_v45  ;;  %v2098_v35 = vsel %vm1289_vm3, %v2095_v50, %v2097_v9 }
 0x1be   :  { %v979_v59 = vpop.f32.mrf.mxu2 }
 0x1bf   :  { %v876_v4 = vpop.f32.mrf.mxu0  ;;  %v10151_v52 = vadd.f32 %v1279_v29, %v979_v59 }
 0x1c0   :  { %v10153_v0 = vadd.f32 %v1176_v28, %v876_v4  ;;  %v10163_v28 = vsel %vm2587_vm5, %v2657_v53, %v2666_v2  ;;  %v2672_v4 = vshll.u32 %v10149_v12, 16 }
 0x1c1   :  { %14294 = vst [vmem:[#allocation48_spill] sm:$0xff] %v10151_v52 }
 0x1c2   :  { %v1281_v31 = vpop.f32.mrf.mxu3  ;;  %14295 = vst [vmem:[#allocation49_spill] sm:$0xff] %v10163_v28  ;;  %v2674_v19 = vrot.slane %v2672_v4, 2 }
 0x1c3   :  { %v1179_v40 = vpop.f32.mrf.mxu1  ;;  %v2669_v31 = vshrl.u32 %v10149_v12, 16 }
 0x1c5   :  { %v2671_v45 = vrot.slane %v2669_v31, 1  ;;  %v9435_v31 = vld [vmem:[%s13965_s0 + $0x50] sm:$0xff] }
 0x1c6   :  { %v981_v59 = vpop.f32.mrf.mxu2  ;;  %8300 = vmatmul.msk.bf16.gmra.mxu1 %vm642_vm2, %v3399_v48  ;;  %v10178_v48 = vld [vmem:[%s13965_s0 + $0x58] sm:$0xff]  ;;  %v1309_v4 = vrot.slane %v9435_v31, 1 }
 0x1c7   :  { %v879_v29 = vpop.f32.mrf.mxu0  ;;  %8217 = vmatmul.msk.bf16.gmra.mxu3 %vm642_vm2, %v2098_v35  ;;  %v2099_v59 = vrot.slane %v10178_v48, 1  ;;  %v2675_v52 = vor.u32 %v2674_v19, %v2671_v45  ;;  %v2678_v19 = vshrl.u32 %v10178_v48, 16  ;;  %v3402_v31 = vrot.slane %v10178_v48, 2 }
 0x1c8   :  { %v10166_v41 = vadd.f32 %v1179_v40, %v879_v29  ;;  %v3400_v29 = vrot.slane %v10149_v12, 2 }
 0x1ca   :  { %14296 = vst [vmem:[#allocation50_spill] sm:$0xff] %v10166_v41  ;;  %8258 = vmatmul.msk.bf16.gmra.mxu0 %vm642_vm2, %v10163_v28  ;;  %v2296_v50 = vpop.f32.mrf.mxu3  ;;  %v3401_v10 = vsel %vm3382_vm4, %v3398_v26, %v3400_v29  ;;  %v2100_v41 = vsel %vm1289_vm3, %v2097_v9, %v2099_v59  ;;  %v1310_v26 = vsel %vm1289_vm3, %v1307_v47, %v1309_v4 }
 0x1cb   :  { %8019 = vmatmul.msk.bf16.gmra.mxu2 %vm642_vm2, %v1308_v54  ;;  %v1181_v53 = vpop.f32.mrf.mxu1 }
 0x1ce   :  { %v1506_v35 = vpop.f32.mrf.mxu2 }
 0x1cf   :  { %v881_v40 = vpop.f32.mrf.mxu0  ;;  %v1710_v5 = vadd.f32 %v1506_v35, %v9639_v63  ;;  %v10191_v63 = vsel %vm2587_vm5, %v2666_v2, %v2675_v52  ;;  %v2681_v2 = vshll.u32 %v10178_v48, 16 }
 0x1d0   :  { %v10180_v37 = vadd.f32 %v1181_v53, %v881_v40  ;;  %14298 = vst [vmem:[#allocation52_spill] sm:$0xff] %v10191_v63 }
 0x1d1   :  { %v2500_v28 = vadd.f32 %v2296_v50, %v1710_v5 }
 0x1d2   :  { %14297 = vst [vmem:[#allocation51_spill] sm:$0xff] %v10180_v37  ;;  %v2298_v54 = vpop.f32.mrf.mxu3 }
 0x1d3   :  { %v3599_v24 = vpop.f32.mrf.mxu1 }
 0x1d6   :  { %v1508_v53 = vpop.f32.mrf.mxu2  ;;  %8301 = vmatmul.msk.bf16.gmra.mxu1 %vm642_vm2, %v3401_v10 }
 0x1d7   :  { %v3091_v40 = vpop.f32.mrf.mxu0  ;;  %v1711_v12 = vadd.f32 %v1508_v53, %v9653_v11  ;;  %8218 = vmatmul.msk.bf16.gmra.mxu3 %vm642_vm2, %v2100_v41  ;;  %v10207_v11 = vld [vmem:[%s13965_s0 + $0x60] sm:$0xff]  ;;  %v2683_v41 = vrot.slane %v2681_v2, 2 }
 0x1d8   :  { %v3295_v50 = vadd.f32 %v3091_v40, %v2500_v28  ;;  %v2680_v28 = vrot.slane %v2678_v19, 1  ;;  %v2101_v53 = vrot.slane %v10207_v11, 1  ;;  %v9436_v19 = vld [vmem:[%s13965_s0 + $0x58] sm:$0xff] }
 0x1d9   :  { %v2501_v35 = vadd.f32 %v2298_v54, %v1711_v12 }
 0x1da   :  { %v10197_v9 = vadd.f32 %v3599_v24, %v3295_v50  ;;  %8259 = vmatmul.msk.bf16.gmra.mxu0 %vm642_vm2, %v10191_v63  ;;  %v2301_v45 = vpop.f32.mrf.mxu3  ;;  %v2102_v37 = vsel %vm1289_vm3, %v2099_v59, %v2101_v53 }
 0x1db   :  { %8020 = vmatmul.msk.bf16.gmra.mxu2 %vm642_vm2, %v1310_v26  ;;  %v3601_v10 = vpop.f32.mrf.mxu1  ;;  %v2684_v26 = vor.u32 %v2683_v41, %v2680_v28  ;;  %v2687_v28 = vshrl.u32 %v10207_v11, 16 }
 0x1dc   :  { %14299 = vst [vmem:[#allocation53_spill] sm:$0xff] %v10197_v9  ;;  %v3403_v9 = vsel %vm3382_vm4, %v3400_v29, %v3402_v31 }
 0x1dd   :  { %v10220_v48 = vsel %vm2587_vm5, %v2675_v52, %v2684_v26  ;;  %v2690_v52 = vshll.u32 %v10207_v11, 16 }
 0x1de   :  { %v1511_v47 = vpop.f32.mrf.mxu2  ;;  %14300 = vst [vmem:[#allocation54_spill] sm:$0xff] %v10220_v48 }
 0x1df   :  { %v3093_v24 = vpop.f32.mrf.mxu0  ;;  %v1712_v5 = vadd.f32 %v1511_v47, %v9659_v25  ;;  %v1311_v25 = vrot.slane %v9436_v19, 1  ;;  %v2692_v41 = vrot.slane %v2690_v52, 2 }
 0x1e0   :  { %v3296_v54 = vadd.f32 %v3093_v24, %v2501_v35 }
 0x1e1   :  { %v2502_v12 = vadd.f32 %v2301_v45, %v1712_v5  ;;  %v1312_v29 = vsel %vm1289_vm3, %v1309_v4, %v1311_v25 }
 0x1e2   :  { %v10212_v40 = vadd.f32 %v3601_v10, %v3296_v54  ;;  %v2303_v50 = vpop.f32.mrf.mxu3 }
 0x1e3   :  { %v3604_v63 = vpop.f32.mrf.mxu1 }
 0x1e6   :  { %v1513_v35 = vpop.f32.mrf.mxu2  ;;  %8302 = vmatmul.msk.bf16.gmra.mxu1 %vm642_vm2, %v3403_v9 }
 0x1e7   :  { %v3096_v2 = vpop.f32.mrf.mxu0  ;;  %v1713_v45 = vadd.f32 %v1513_v35, %v9673_v36  ;;  %8219 = vmatmul.msk.bf16.gmra.mxu3 %vm642_vm2, %v2102_v37  ;;  %v10236_v36 = vld [vmem:[%s13965_s0 + $0x68] sm:$0xff] }
 0x1e8   :  { %v3297_v10 = vadd.f32 %v3096_v2, %v2502_v12  ;;  %v3404_v12 = vrot.slane %v10207_v11, 2 }
 0x1e9   :  { %v2503_v47 = vadd.f32 %v2303_v50, %v1713_v45  ;;  %v2103_v50 = vrot.slane %v10236_v36, 1 }
 0x1ea   :  { %v10226_v59 = vadd.f32 %v3604_v63, %v3297_v10  ;;  %8260 = vmatmul.msk.bf16.gmra.mxu0 %vm642_vm2, %v10220_v48  ;;  %v2306_v24 = vpop.f32.mrf.mxu3  ;;  %v2689_v63 = vrot.slane %v2687_v28, 1  ;;  %v9437_v28 = vld [vmem:[%s13965_s0 + $0x60] sm:$0xff] }
 0x1eb   :  { %8021 = vmatmul.msk.bf16.gmra.mxu2 %vm642_vm2, %v1312_v29  ;;  %v3606_v9 = vpop.f32.mrf.mxu1  ;;  %v3405_v29 = vsel %vm3382_vm4, %v3402_v31, %v3404_v12  ;;  %v2104_v48 = vsel %vm1289_vm3, %v2101_v53, %v2103_v50 }
 0x1ec   :  { %v2693_v45 = vor.u32 %v2692_v41, %v2689_v63  ;;  %v2696_v63 = vshrl.u32 %v10236_v36, 16 }
 0x1ee   :  { %v1516_v37 = vpop.f32.mrf.mxu2  ;;  %v10249_v11 = vsel %vm2587_vm5, %v2684_v26, %v2693_v45  ;;  %v2699_v26 = vshll.u32 %v10236_v36, 16 }
 0x1ef   :  { %v3098_v4 = vpop.f32.mrf.mxu0  ;;  %v1714_v5 = vadd.f32 %v1516_v37, %v9679_v49  ;;  %v1313_v49 = vrot.slane %v9437_v28, 1  ;;  %14301 = vst [vmem:[#allocation55_spill] sm:$0xff] %v10249_v11 }
 0x1f0   :  { %v3298_v54 = vadd.f32 %v3098_v4, %v2503_v47 }
 0x1f1   :  { %v2504_v35 = vadd.f32 %v2306_v24, %v1714_v5  ;;  %v1314_v31 = vsel %vm1289_vm3, %v1311_v25, %v1313_v49  ;;  %v2698_v5 = vrot.slane %v2696_v63, 1  ;;  %v9438_v63 = vld [vmem:[%s13965_s0 + $0x68] sm:$0xff] }
 0x1f2   :  { %v10241_v19 = vadd.f32 %v3606_v9, %v3298_v54  ;;  %v2308_v2 = vpop.f32.mrf.mxu3  ;;  %v2701_v54 = vrot.slane %v2699_v26, 2 }
 0x1f3   :  { %v3609_v10 = vpop.f32.mrf.mxu1 }
 0x1f6   :  { %v1518_v47 = vpop.f32.mrf.mxu2  ;;  %8303 = vmatmul.msk.bf16.gmra.mxu1 %vm642_vm2, %v3405_v29 }
 0x1f7   :  { %v3101_v52 = vpop.f32.mrf.mxu0  ;;  %v1715_v24 = vadd.f32 %v1518_v47, %v9693_v60  ;;  %8220 = vmatmul.msk.bf16.gmra.mxu3 %vm642_vm2, %v2104_v48  ;;  %v10265_v60 = vld [vmem:[%s13965_s0 + $0x70] sm:$0xff] }
 0x1f8   :  { %v3299_v9 = vadd.f32 %v3101_v52, %v2504_v35  ;;  %v2105_v29 = vrot.slane %v10265_v60, 1 }
 0x1f9   :  { %v2505_v37 = vadd.f32 %v2308_v2, %v1715_v24  ;;  %v2702_v24 = vor.u32 %v2701_v54, %v2698_v5  ;;  %v2705_v5 = vshrl.u32 %v10265_v60, 16 }
 0x1fa   :  { %v10255_v53 = vadd.f32 %v3609_v10, %v3299_v9  ;;  %8261 = vmatmul.msk.bf16.gmra.mxu0 %vm642_vm2, %v10249_v11  ;;  %v2311_v4 = vpop.f32.mrf.mxu3  ;;  %v3406_v10 = vrot.slane %v10236_v36, 2  ;;  %v2106_v11 = vsel %vm1289_vm3, %v2103_v50, %v2105_v29 }
 0x1fb   :  { %8022 = vmatmul.msk.bf16.gmra.mxu2 %vm642_vm2, %v1314_v31  ;;  %v3611_v41 = vpop.f32.mrf.mxu1  ;;  %v10278_v36 = vsel %vm2587_vm5, %v2693_v45, %v2702_v24  ;;  %v2708_v45 = vshll.u32 %v10265_v60, 16 }
 0x1fc   :  { %v3407_v31 = vsel %vm3382_vm4, %v3404_v12, %v3406_v10  ;;  %14302 = vst [vmem:[#allocation56_spill] sm:$0xff] %v10278_v36 }
 0x1fe   :  { %v1521_v25 = vpop.f32.mrf.mxu2 }
 0x1ff   :  { %v3103_v48 = vpop.f32.mrf.mxu0  ;;  %v1716_v35 = vadd.f32 %v1521_v25, %v9699_v13  ;;  %v1315_v13 = vrot.slane %v9438_v63, 1 }
 0x200   :  { %v3300_v2 = vadd.f32 %v3103_v48, %v2505_v37 }
 0x201   :  { %v2506_v47 = vadd.f32 %v2311_v4, %v1716_v35  ;;  %v1316_v12 = vsel %vm1289_vm3, %v1313_v49, %v1315_v13  ;;  %v2707_v35 = vrot.slane %v2705_v5, 1  ;;  %v9439_v5 = vld [vmem:[%s13965_s0 + $0x70] sm:$0xff] }
 0x202   :  { %v10270_v28 = vadd.f32 %v3611_v41, %v3300_v2  ;;  %v2313_v52 = vpop.f32.mrf.mxu3  ;;  %v2710_v2 = vrot.slane %v2708_v45, 2 }
 0x203   :  { %v3614_v9 = vpop.f32.mrf.mxu1 }
 0x206   :  { %v1523_v37 = vpop.f32.mrf.mxu2  ;;  %8304 = vmatmul.msk.bf16.gmra.mxu1 %vm642_vm2, %v3407_v31 }
 0x207   :  { %v3106_v26 = vpop.f32.mrf.mxu0  ;;  %v1717_v4 = vadd.f32 %v1523_v37, %v9713_v27  ;;  %8221 = vmatmul.msk.bf16.gmra.mxu3 %vm642_vm2, %v2106_v11  ;;  %v10294_v27 = vld [vmem:[%s13965_s0 + $0x78] sm:$0xff] }
 0x208   :  { %v3301_v41 = vadd.f32 %v3106_v26, %v2506_v47  ;;  %v2107_v31 = vrot.slane %v10294_v27, 1 }
 0x209   :  { %v2507_v25 = vadd.f32 %v2313_v52, %v1717_v4  ;;  %v2711_v4 = vor.u32 %v2710_v2, %v2707_v35  ;;  %v2714_v35 = vshrl.u32 %v10294_v27, 16 }
 0x20a   :  { %v10284_v50 = vadd.f32 %v3614_v9, %v3301_v41  ;;  %8262 = vmatmul.msk.bf16.gmra.mxu0 %vm642_vm2, %v10278_v36  ;;  %v2316_v48 = vpop.f32.mrf.mxu3  ;;  %v3408_v9 = vrot.slane %v10265_v60, 2  ;;  %v2108_v36 = vsel %vm1289_vm3, %v2105_v29, %v2107_v31 }
 0x20b   :  { %8023 = vmatmul.msk.bf16.gmra.mxu2 %vm642_vm2, %v1316_v12  ;;  %v3616_v54 = vpop.f32.mrf.mxu1  ;;  %v10307_v60 = vsel %vm2587_vm5, %v2702_v24, %v2711_v4  ;;  %v2717_v24 = vshll.u32 %v10294_v27, 16 }
 0x20c   :  { %v3409_v12 = vsel %vm3382_vm4, %v3406_v10, %v3408_v9  ;;  %14303 = vst [vmem:[#allocation57_spill] sm:$0xff] %v10307_v60 }
 0x20e   :  { %v1526_v49 = vpop.f32.mrf.mxu2 }
 0x20f   :  { %v3108_v11 = vpop.f32.mrf.mxu0  ;;  %v1718_v47 = vadd.f32 %v1526_v49, %v9719_v42  ;;  %v1317_v42 = vrot.slane %v9439_v5, 1 }
 0x210   :  { %v3302_v52 = vadd.f32 %v3108_v11, %v2507_v25 }
 0x211   :  { %v2508_v37 = vadd.f32 %v2316_v48, %v1718_v47  ;;  %v1318_v10 = vsel %vm1289_vm3, %v1315_v13, %v1317_v42  ;;  %v2716_v47 = vrot.slane %v2714_v35, 1 }
 0x212   :  { %v10299_v63 = vadd.f32 %v3616_v54, %v3302_v52  ;;  %v2318_v26 = vpop.f32.mrf.mxu3  ;;  %v2719_v52 = vrot.slane %v2717_v24, 2 }
 0x213   :  { %v3619_v41 = vpop.f32.mrf.mxu1 }
 0x216   :  { %v1528_v25 = vpop.f32.mrf.mxu2  ;;  %8305 = vmatmul.msk.bf16.gmra.mxu1 %vm642_vm2, %v3409_v12  ;;  %v7307_v12 = vld [vmem:[%s13966_s2] sm:$0xf] }
 0x217   :  { %v3111_v45 = vpop.f32.mrf.mxu0  ;;  %v1719_v48 = vadd.f32 %v1528_v25, %v9733_v55  ;;  %8222 = vmatmul.msk.bf16.gmra.mxu3 %vm642_vm2, %v2108_v36  ;;  %v10323_v55 = vld [vmem:[%s13965_s0 + $0x80] sm:$0xff]  ;;  %v7309_v25 = vsel %vm766_vm0, %v7307_v12, 0 }
 0x218   :  { %v3303_v54 = vadd.f32 %v3111_v45, %v2508_v37  ;;  %v2109_v5 = vrot.slane %v10323_v55, 1  ;;  %7318 = vmatpush.bf16.msra.mxu1 %v7309_v25 }
 0x219   :  { %v2509_v49 = vadd.f32 %v2318_v26, %v1719_v48 }
 0x21a   :  { %v10313_v29 = vadd.f32 %v3619_v41, %v3303_v54  ;;  %8263 = vmatmul.msk.bf16.gmra.mxu0 %vm642_vm2, %v10307_v60  ;;  %v2321_v11 = vpop.f32.mrf.mxu3  ;;  %v3410_v41 = vrot.slane %v10294_v27, 2  ;;  %v9440_v27 = vld [vmem:[%s13965_s0 + $0x78] sm:$0xff] }
 0x21b   :  { %8024 = vmatmul.msk.bf16.gmra.mxu2 %vm642_vm2, %v1318_v10  ;;  %v3621_v2 = vpop.f32.mrf.mxu1  ;;  %v2720_v10 = vor.u32 %v2719_v52, %v2716_v47  ;;  %v1319_v24 = vrot.slane %v9440_v27, 1 }
 0x21d   :  { %v10340_v12 = vsel %vm2587_vm5, %v2711_v4, %v2720_v10  ;;  %v2726_v4 = vshll.u32 %v10323_v55, 16 }
 0x21e   :  { %v1531_v13 = vpop.f32.mrf.mxu2  ;;  %14304 = vst [vmem:[#allocation58_spill] sm:$0xff] %v10340_v12 }
 0x21f   :  { %v3113_v36 = vpop.f32.mrf.mxu0  ;;  %v1720_v37 = vadd.f32 %v1531_v13, %v9743_v14  ;;  %v3411_v14 = vsel %vm3382_vm4, %v3408_v9, %v3410_v41  ;;  %v1320_v9 = vsel %vm1289_vm3, %v1317_v42, %v1319_v24 }
 0x220   :  { %v3304_v26 = vadd.f32 %v3113_v36, %v2509_v49  ;;  %v2110_v49 = vsel %vm1289_vm3, %v2107_v31, %v2109_v5 }
 0x221   :  { %v2510_v48 = vadd.f32 %v2321_v11, %v1720_v37  ;;  %v2723_v37 = vshrl.u32 %v10323_v55, 16 }
 0x222   :  { %v10332_v45 = vadd.f32 %v3621_v2, %v3304_v26  ;;  %v2323_v54 = vpop.f32.mrf.mxu3 }
 0x223   :  { %v3624_v35 = vpop.f32.mrf.mxu1 }
 0x226   :  { %v1533_v13 = vpop.f32.mrf.mxu2  ;;  %8306 = vmatmul.msk.bf16.gmra.mxu1 %vm642_vm2, %v3411_v14 }
 0x227   :  { %v3116_v36 = vpop.f32.mrf.mxu0  ;;  %v1721_v11 = vadd.f32 %v1533_v13, %v9757_v30  ;;  %8223 = vmatmul.msk.bf16.gmra.mxu3 %vm642_vm2, %v2110_v49  ;;  %v10356_v30 = vld [vmem:[%s13965_s0 + $0x88] sm:$0xff]  ;;  %v3412_v49 = vrot.slane %v10323_v55, 2 }
 0x228   :  { %v3305_v2 = vadd.f32 %v3116_v36, %v2510_v48  ;;  %v2725_v48 = vrot.slane %v2723_v37, 1  ;;  %v2111_v27 = vrot.slane %v10356_v30, 1  ;;  %v9441_v37 = vld [vmem:[%s13965_s0 + $0x80] sm:$0xff] }
 0x229   :  { %v2511_v47 = vadd.f32 %v2323_v54, %v1721_v11 }
 0x22a   :  { %v10346_v31 = vadd.f32 %v3624_v35, %v3305_v2  ;;  %8264 = vmatmul.msk.bf16.gmra.mxu0 %vm642_vm2, %v10340_v12  ;;  %v2326_v52 = vpop.f32.mrf.mxu3  ;;  %v2728_v35 = vrot.slane %v2726_v4, 2  ;;  %v3413_v12 = vsel %vm3382_vm4, %v3410_v41, %v3412_v49  ;;  %v2112_v60 = vsel %vm1289_vm3, %v2109_v5, %v2111_v27 }
 0x22b   :  { %8025 = vmatmul.msk.bf16.gmra.mxu2 %vm642_vm2, %v1320_v9  ;;  %v3626_v26 = vpop.f32.mrf.mxu1 }
 0x22c   :  { %v2729_v2 = vor.u32 %v2728_v35, %v2725_v48  ;;  %v2732_v48 = vshrl.u32 %v10356_v30, 16 }
 0x22e   :  { %v1536_v42 = vpop.f32.mrf.mxu2  ;;  %v10369_v55 = vsel %vm2587_vm5, %v2720_v10, %v2729_v2  ;;  %v2735_v10 = vshll.u32 %v10356_v30, 16  ;;  %v2734_v35 = vrot.slane %v2732_v48, 1  ;;  %v9442_v48 = vld [vmem:[%s13965_s0 + $0x88] sm:$0xff] }
 0x22f   :  { %v3118_v25 = vpop.f32.mrf.mxu0  ;;  %v1722_v14 = vadd.f32 %v1536_v42, %v9763_v51  ;;  %v1321_v51 = vrot.slane %v9441_v37, 1  ;;  %14305 = vst [vmem:[#allocation59_spill] sm:$0xff] %v10369_v55 }
 0x230   :  { %v3306_v54 = vadd.f32 %v3118_v25, %v2511_v47 }
 0x231   :  { %v2512_v36 = vadd.f32 %v2326_v52, %v1722_v14  ;;  %v1322_v41 = vsel %vm1289_vm3, %v1319_v24, %v1321_v51  ;;  %v2737_v14 = vrot.slane %v2735_v10, 2 }
 0x232   :  { %v10361_v13 = vadd.f32 %v3626_v26, %v3306_v54  ;;  %v2328_v11 = vpop.f32.mrf.mxu3 }
 0x233   :  { %v3629_v9 = vpop.f32.mrf.mxu1 }
 0x236   :  { %v1538_v47 = vpop.f32.mrf.mxu2  ;;  %8307 = vmatmul.msk.bf16.gmra.mxu1 %vm642_vm2, %v3413_v12 }
 0x237   :  { %v3121_v4 = vpop.f32.mrf.mxu0  ;;  %v1723_v52 = vadd.f32 %v1538_v47, %v9777_v1  ;;  %8224 = vmatmul.msk.bf16.gmra.mxu3 %vm642_vm2, %v2112_v60  ;;  %v10385_v1 = vld [vmem:[%s13965_s0 + $0x90] sm:$0xff] }
 0x238   :  { %v3307_v26 = vadd.f32 %v3121_v4, %v2512_v36 }
 0x239   :  { %v2513_v42 = vadd.f32 %v2328_v11, %v1723_v52  ;;  %v3414_v11 = vrot.slane %v10356_v30, 2  ;;  %v2738_v52 = vor.u32 %v2737_v14, %v2734_v35  ;;  %v2741_v35 = vshrl.u32 %v10385_v1, 16 }
 0x23a   :  { %v10375_v5 = vadd.f32 %v3629_v9, %v3307_v26  ;;  %8265 = vmatmul.msk.bf16.gmra.mxu0 %vm642_vm2, %v10369_v55  ;;  %v2331_v25 = vpop.f32.mrf.mxu3  ;;  %v2113_v9 = vrot.slane %v10385_v1, 1 }
 0x23b   :  { %8026 = vmatmul.msk.bf16.gmra.mxu2 %vm642_vm2, %v1322_v41  ;;  %v3631_v12 = vpop.f32.mrf.mxu1  ;;  %v3415_v41 = vsel %vm3382_vm4, %v3412_v49, %v3414_v11  ;;  %v10398_v30 = vsel %vm2587_vm5, %v2729_v2, %v2738_v52  ;;  %v2744_v2 = vshll.u32 %v10385_v1, 16 }
 0x23c   :  { %v2114_v55 = vsel %vm1289_vm3, %v2111_v27, %v2113_v9  ;;  %14306 = vst [vmem:[#allocation60_spill] sm:$0xff] %v10398_v30 }
 0x23e   :  { %v1541_v60 = vpop.f32.mrf.mxu2 }
 0x23f   :  { %v3123_v24 = vpop.f32.mrf.mxu0  ;;  %v1724_v54 = vadd.f32 %v1541_v60, %v9783_v18  ;;  %v1323_v18 = vrot.slane %v9442_v48, 1 }
 0x240   :  { %v3308_v36 = vadd.f32 %v3123_v24, %v2513_v42 }
 0x241   :  { %v2514_v47 = vadd.f32 %v2331_v25, %v1724_v54  ;;  %v1324_v49 = vsel %vm1289_vm3, %v1321_v51, %v1323_v18  ;;  %v2743_v54 = vrot.slane %v2741_v35, 1  ;;  %v9443_v35 = vld [vmem:[%s13965_s0 + $0x90] sm:$0xff] }
 0x242   :  { %v10390_v37 = vadd.f32 %v3631_v12, %v3308_v36  ;;  %v2333_v4 = vpop.f32.mrf.mxu3  ;;  %v2746_v36 = vrot.slane %v2744_v2, 2 }
 0x243   :  { %v3634_v26 = vpop.f32.mrf.mxu1 }
 0x246   :  { %v1543_v42 = vpop.f32.mrf.mxu2  ;;  %8308 = vmatmul.msk.bf16.gmra.mxu1 %vm642_vm2, %v3415_v41 }
 0x247   :  { %v3126_v10 = vpop.f32.mrf.mxu0  ;;  %v1725_v25 = vadd.f32 %v1543_v42, %v9797_v43  ;;  %8225 = vmatmul.msk.bf16.gmra.mxu3 %vm642_vm2, %v2114_v55  ;;  %v10414_v43 = vld [vmem:[%s13965_s0 + $0x98] sm:$0xff] }
 0x248   :  { %v3309_v12 = vadd.f32 %v3126_v10, %v2514_v47  ;;  %v2115_v41 = vrot.slane %v10414_v43, 1 }
 0x249   :  { %v2515_v60 = vadd.f32 %v2333_v4, %v1725_v25  ;;  %v2747_v25 = vor.u32 %v2746_v36, %v2743_v54  ;;  %v2750_v54 = vshrl.u32 %v10414_v43, 16 }
 0x24a   :  { %v10404_v27 = vadd.f32 %v3634_v26, %v3309_v12  ;;  %8266 = vmatmul.msk.bf16.gmra.mxu0 %vm642_vm2, %v10398_v30  ;;  %v2336_v24 = vpop.f32.mrf.mxu3  ;;  %v3416_v26 = vrot.slane %v10385_v1, 2  ;;  %v2116_v30 = vsel %vm1289_vm3, %v2113_v9, %v2115_v41 }
 0x24b   :  { %8027 = vmatmul.msk.bf16.gmra.mxu2 %vm642_vm2, %v1324_v49  ;;  %v3636_v14 = vpop.f32.mrf.mxu1  ;;  %v10427_v1 = vsel %vm2587_vm5, %v2738_v52, %v2747_v25  ;;  %v2753_v52 = vshll.u32 %v10414_v43, 16 }
 0x24c   :  { %v3417_v49 = vsel %vm3382_vm4, %v3414_v11, %v3416_v26  ;;  %14307 = vst [vmem:[#allocation61_spill] sm:$0xff] %v10427_v1 }
 0x24e   :  { %v1546_v51 = vpop.f32.mrf.mxu2 }
 0x24f   :  { %v3128_v55 = vpop.f32.mrf.mxu0  ;;  %v1726_v47 = vadd.f32 %v1546_v51, %v9803_v6  ;;  %v1325_v6 = vrot.slane %v9443_v35, 1 }
 0x250   :  { %v3310_v4 = vadd.f32 %v3128_v55, %v2515_v60 }
 0x251   :  { %v2516_v42 = vadd.f32 %v2336_v24, %v1726_v47  ;;  %v1326_v11 = vsel %vm1289_vm3, %v1323_v18, %v1325_v6  ;;  %v2752_v47 = vrot.slane %v2750_v54, 1  ;;  %v9444_v54 = vld [vmem:[%s13965_s0 + $0x98] sm:$0xff] }
 0x252   :  { %v10419_v48 = vadd.f32 %v3636_v14, %v3310_v4  ;;  %v2338_v10 = vpop.f32.mrf.mxu3  ;;  %v2755_v4 = vrot.slane %v2753_v52, 2 }
 0x253   :  { %v3639_v12 = vpop.f32.mrf.mxu1 }
 0x256   :  { %v1548_v60 = vpop.f32.mrf.mxu2  ;;  %8309 = vmatmul.msk.bf16.gmra.mxu1 %vm642_vm2, %v3417_v49 }
 0x257   :  { %v3131_v2 = vpop.f32.mrf.mxu0  ;;  %v1727_v24 = vadd.f32 %v1548_v60, %v9817_v32  ;;  %8226 = vmatmul.msk.bf16.gmra.mxu3 %vm642_vm2, %v2116_v30  ;;  %v10443_v32 = vld [vmem:[%s13965_s0 + $0xa0] sm:$0xff] }
 0x258   :  { %v3311_v14 = vadd.f32 %v3131_v2, %v2516_v42  ;;  %v2117_v49 = vrot.slane %v10443_v32, 1 }
 0x259   :  { %v2517_v51 = vadd.f32 %v2338_v10, %v1727_v24  ;;  %v2756_v24 = vor.u32 %v2755_v4, %v2752_v47  ;;  %v2759_v47 = vshrl.u32 %v10443_v32, 16 }
 0x25a   :  { %v10433_v9 = vadd.f32 %v3639_v12, %v3311_v14  ;;  %8267 = vmatmul.msk.bf16.gmra.mxu0 %vm642_vm2, %v10427_v1  ;;  %v2341_v55 = vpop.f32.mrf.mxu3  ;;  %v3418_v12 = vrot.slane %v10414_v43, 2  ;;  %v2118_v1 = vsel %vm1289_vm3, %v2115_v41, %v2117_v49 }
 0x25b   :  { %8028 = vmatmul.msk.bf16.gmra.mxu2 %vm642_vm2, %v1326_v11  ;;  %v3641_v36 = vpop.f32.mrf.mxu1  ;;  %v10456_v43 = vsel %vm2587_vm5, %v2747_v25, %v2756_v24  ;;  %v2762_v25 = vshll.u32 %v10443_v32, 16 }
 0x25c   :  { %v3419_v11 = vsel %vm3382_vm4, %v3416_v26, %v3418_v12  ;;  %14308 = vst [vmem:[#allocation62_spill] sm:$0xff] %v10456_v43 }
 0x25e   :  { %v1551_v18 = vpop.f32.mrf.mxu2 }
 0x25f   :  { %v3133_v30 = vpop.f32.mrf.mxu0  ;;  %v1728_v42 = vadd.f32 %v1551_v18, %v9829_v57  ;;  %v1327_v57 = vrot.slane %v9444_v54, 1 }
 0x260   :  { %v3312_v10 = vadd.f32 %v3133_v30, %v2517_v51 }
 0x261   :  { %v2518_v60 = vadd.f32 %v2341_v55, %v1728_v42  ;;  %v1328_v26 = vsel %vm1289_vm3, %v1325_v6, %v1327_v57  ;;  %v2761_v42 = vrot.slane %v2759_v47, 1  ;;  %v9445_v47 = vld [vmem:[%s13965_s0 + $0xa0] sm:$0xff] }
 0x262   :  { %v10448_v35 = vadd.f32 %v3641_v36, %v3312_v10  ;;  %v2343_v2 = vpop.f32.mrf.mxu3  ;;  %v2764_v10 = vrot.slane %v2762_v25, 2 }
 0x263   :  { %v3644_v14 = vpop.f32.mrf.mxu1 }
 0x266   :  { %v1553_v51 = vpop.f32.mrf.mxu2  ;;  %8310 = vmatmul.msk.bf16.gmra.mxu1 %vm642_vm2, %v3419_v11 }
 0x267   :  { %v3136_v52 = vpop.f32.mrf.mxu0  ;;  %v1729_v55 = vadd.f32 %v1553_v51, %v9842_v38  ;;  %8227 = vmatmul.msk.bf16.gmra.mxu3 %vm642_vm2, %v2118_v1  ;;  %v10472_v38 = vld [vmem:[%s13965_s0 + $0xa8] sm:$0xff] }
 0x268   :  { %v3313_v36 = vadd.f32 %v3136_v52, %v2518_v60  ;;  %v2119_v11 = vrot.slane %v10472_v38, 1 }
 0x269   :  { %v2519_v18 = vadd.f32 %v2343_v2, %v1729_v55  ;;  %v2765_v55 = vor.u32 %v2764_v10, %v2761_v42  ;;  %v2768_v42 = vshrl.u32 %v10472_v38, 16 }
 0x26a   :  { %v10462_v41 = vadd.f32 %v3644_v14, %v3313_v36  ;;  %8268 = vmatmul.msk.bf16.gmra.mxu0 %vm642_vm2, %v10456_v43  ;;  %v2346_v30 = vpop.f32.mrf.mxu3  ;;  %v3420_v14 = vrot.slane %v10443_v32, 2  ;;  %v2120_v43 = vsel %vm1289_vm3, %v2117_v49, %v2119_v11 }
 0x26b   :  { %8029 = vmatmul.msk.bf16.gmra.mxu2 %vm642_vm2, %v1328_v26  ;;  %v3646_v4 = vpop.f32.mrf.mxu1  ;;  %v10485_v32 = vsel %vm2587_vm5, %v2756_v24, %v2765_v55  ;;  %v2771_v24 = vshll.u32 %v10472_v38, 16 }
 0x26c   :  { %v3421_v26 = vsel %vm3382_vm4, %v3418_v12, %v3420_v14  ;;  %14309 = vst [vmem:[#allocation63_spill] sm:$0xff] %v10485_v32 }
 0x26e   :  { %v1556_v6 = vpop.f32.mrf.mxu2 }
 0x26f   :  { %v3138_v1 = vpop.f32.mrf.mxu0  ;;  %v1730_v60 = vadd.f32 %v1556_v6, %v9849_v17  ;;  %v1329_v17 = vrot.slane %v9445_v47, 1 }
 0x270   :  { %v3314_v2 = vadd.f32 %v3138_v1, %v2519_v18 }
 0x271   :  { %v2520_v51 = vadd.f32 %v2346_v30, %v1730_v60  ;;  %v1330_v12 = vsel %vm1289_vm3, %v1327_v57, %v1329_v17  ;;  %v2770_v60 = vrot.slane %v2768_v42, 1  ;;  %v9446_v42 = vld [vmem:[%s13965_s0 + $0xa8] sm:$0xff] }
 0x272   :  { %v10477_v54 = vadd.f32 %v3646_v4, %v3314_v2  ;;  %v2348_v52 = vpop.f32.mrf.mxu3  ;;  %v2773_v2 = vrot.slane %v2771_v24, 2 }
 0x273   :  { %v3649_v36 = vpop.f32.mrf.mxu1 }
 0x276   :  { %v1558_v18 = vpop.f32.mrf.mxu2  ;;  %8311 = vmatmul.msk.bf16.gmra.mxu1 %vm642_vm2, %v3421_v26 }
 0x277   :  { %v3141_v25 = vpop.f32.mrf.mxu0  ;;  %v1731_v30 = vadd.f32 %v1558_v18, %v9863_v56  ;;  %8228 = vmatmul.msk.bf16.gmra.mxu3 %vm642_vm2, %v2120_v43  ;;  %v10501_v56 = vld [vmem:[%s13965_s0 + $0xb0] sm:$0xff] }
 0x278   :  { %v3315_v4 = vadd.f32 %v3141_v25, %v2520_v51  ;;  %v2121_v26 = vrot.slane %v10501_v56, 1 }
 0x279   :  { %v2521_v6 = vadd.f32 %v2348_v52, %v1731_v30  ;;  %v2774_v30 = vor.u32 %v2773_v2, %v2770_v60  ;;  %v2777_v60 = vshrl.u32 %v10501_v56, 16 }
 0x27a   :  { %v10491_v49 = vadd.f32 %v3649_v36, %v3315_v4  ;;  %8269 = vmatmul.msk.bf16.gmra.mxu0 %vm642_vm2, %v10485_v32  ;;  %v2351_v1 = vpop.f32.mrf.mxu3  ;;  %v3422_v36 = vrot.slane %v10472_v38, 2  ;;  %v2122_v32 = vsel %vm1289_vm3, %v2119_v11, %v2121_v26 }
 0x27b   :  { %8030 = vmatmul.msk.bf16.gmra.mxu2 %vm642_vm2, %v1330_v12  ;;  %v3651_v10 = vpop.f32.mrf.mxu1  ;;  %v10514_v38 = vsel %vm2587_vm5, %v2765_v55, %v2774_v30  ;;  %v2780_v55 = vshll.u32 %v10501_v56, 16 }
 0x27c   :  { %v3423_v12 = vsel %vm3382_vm4, %v3420_v14, %v3422_v36  ;;  %14310 = vst [vmem:[#allocation64_spill] sm:$0xff] %v10514_v38 }
 0x27e   :  { %v1561_v57 = vpop.f32.mrf.mxu2 }
 0x27f   :  { %v3143_v43 = vpop.f32.mrf.mxu0  ;;  %v1732_v51 = vadd.f32 %v1561_v57, %v9884_v34  ;;  %v1331_v34 = vrot.slane %v9446_v42, 1 }
 0x280   :  { %v3316_v52 = vadd.f32 %v3143_v43, %v2521_v6 }
 0x281   :  { %v2522_v18 = vadd.f32 %v2351_v1, %v1732_v51  ;;  %v1332_v14 = vsel %vm1289_vm3, %v1329_v17, %v1331_v34  ;;  %v2779_v51 = vrot.slane %v2777_v60, 1  ;;  %v9447_v60 = vld [vmem:[%s13965_s0 + $0xb0] sm:$0xff] }
 0x282   :  { %v10506_v47 = vadd.f32 %v3651_v10, %v3316_v52  ;;  %v2353_v25 = vpop.f32.mrf.mxu3  ;;  %v2782_v52 = vrot.slane %v2780_v55, 2 }
 0x283   :  { %v3654_v4 = vpop.f32.mrf.mxu1 }
 0x286   :  { %v1563_v6 = vpop.f32.mrf.mxu2  ;;  %8312 = vmatmul.msk.bf16.gmra.mxu1 %vm642_vm2, %v3423_v12 }
 0x287   :  { %v3146_v24 = vpop.f32.mrf.mxu0  ;;  %v1733_v1 = vadd.f32 %v1563_v6, %v9907_v3  ;;  %8229 = vmatmul.msk.bf16.gmra.mxu3 %vm642_vm2, %v2122_v32  ;;  %v10530_v3 = vld [vmem:[%s13965_s0 + $0xb8] sm:$0xff] }
 0x288   :  { %v3317_v10 = vadd.f32 %v3146_v24, %v2522_v18  ;;  %v2123_v12 = vrot.slane %v10530_v3, 1 }
 0x289   :  { %v2523_v57 = vadd.f32 %v2353_v25, %v1733_v1  ;;  %v2783_v1 = vor.u32 %v2782_v52, %v2779_v51  ;;  %v2786_v51 = vshrl.u32 %v10530_v3, 16 }
 0x28a   :  { %v10520_v11 = vadd.f32 %v3654_v4, %v3317_v10  ;;  %8270 = vmatmul.msk.bf16.gmra.mxu0 %vm642_vm2, %v10514_v38  ;;  %v2356_v43 = vpop.f32.mrf.mxu3  ;;  %v3424_v4 = vrot.slane %v10501_v56, 2  ;;  %v2124_v38 = vsel %vm1289_vm3, %v2121_v26, %v2123_v12 }
 0x28b   :  { %8031 = vmatmul.msk.bf16.gmra.mxu2 %vm642_vm2, %v1332_v14  ;;  %v3656_v2 = vpop.f32.mrf.mxu1  ;;  %v10543_v56 = vsel %vm2587_vm5, %v2774_v30, %v2783_v1  ;;  %v2789_v30 = vshll.u32 %v10530_v3, 16 }
 0x28c   :  { %v3425_v14 = vsel %vm3382_vm4, %v3422_v36, %v3424_v4  ;;  %14311 = vst [vmem:[#allocation65_spill] sm:$0xff] %v10543_v56 }
 0x28e   :  { %v1566_v17 = vpop.f32.mrf.mxu2 }
 0x28f   :  { %v3148_v32 = vpop.f32.mrf.mxu0  ;;  %v1734_v18 = vadd.f32 %v1566_v17, %v9921_v62  ;;  %v1333_v62 = vrot.slane %v9447_v60, 1 }
 0x290   :  { %v3318_v25 = vadd.f32 %v3148_v32, %v2523_v57 }
 0x291   :  { %v2524_v6 = vadd.f32 %v2356_v43, %v1734_v18  ;;  %v1334_v36 = vsel %vm1289_vm3, %v1331_v34, %v1333_v62  ;;  %v2788_v18 = vrot.slane %v2786_v51, 1  ;;  %v9448_v51 = vld [vmem:[%s13965_s0 + $0xb8] sm:$0xff] }
 0x292   :  { %v10535_v42 = vadd.f32 %v3656_v2, %v3318_v25  ;;  %v2358_v24 = vpop.f32.mrf.mxu3  ;;  %v2791_v25 = vrot.slane %v2789_v30, 2 }
 0x293   :  { %v3659_v10 = vpop.f32.mrf.mxu1 }
 0x296   :  { %v1568_v57 = vpop.f32.mrf.mxu2  ;;  %8313 = vmatmul.msk.bf16.gmra.mxu1 %vm642_vm2, %v3425_v14 }
 0x297   :  { %v3151_v55 = vpop.f32.mrf.mxu0  ;;  %v1735_v43 = vadd.f32 %v1568_v57, %v9936_v16  ;;  %8230 = vmatmul.msk.bf16.gmra.mxu3 %vm642_vm2, %v2124_v38  ;;  %v10559_v16 = vld [vmem:[%s13965_s0 + $0xc0] sm:$0xff] }
 0x298   :  { %v3319_v2 = vadd.f32 %v3151_v55, %v2524_v6  ;;  %v2125_v14 = vrot.slane %v10559_v16, 1 }
 0x299   :  { %v2525_v17 = vadd.f32 %v2358_v24, %v1735_v43  ;;  %v2792_v43 = vor.u32 %v2791_v25, %v2788_v18  ;;  %v2795_v18 = vshrl.u32 %v10559_v16, 16 }
 0x29a   :  { %v10549_v26 = vadd.f32 %v3659_v10, %v3319_v2  ;;  %8271 = vmatmul.msk.bf16.gmra.mxu0 %vm642_vm2, %v10543_v56  ;;  %v2361_v32 = vpop.f32.mrf.mxu3  ;;  %v3426_v10 = vrot.slane %v10530_v3, 2  ;;  %v2126_v56 = vsel %vm1289_vm3, %v2123_v12, %v2125_v14 }
 0x29b   :  { %8032 = vmatmul.msk.bf16.gmra.mxu2 %vm642_vm2, %v1334_v36  ;;  %v3661_v52 = vpop.f32.mrf.mxu1  ;;  %v10572_v3 = vsel %vm2587_vm5, %v2783_v1, %v2792_v43  ;;  %v2798_v1 = vshll.u32 %v10559_v16, 16 }
 0x29c   :  { %v3427_v36 = vsel %vm3382_vm4, %v3424_v4, %v3426_v10  ;;  %14312 = vst [vmem:[#allocation66_spill] sm:$0xff] %v10572_v3 }
 0x29e   :  { %v1571_v34 = vpop.f32.mrf.mxu2 }
 0x29f   :  { %v3153_v38 = vpop.f32.mrf.mxu0  ;;  %v1736_v6 = vadd.f32 %v1571_v34, %v9951_v58  ;;  %v1335_v58 = vrot.slane %v9448_v51, 1 }
 0x2a0   :  { %v3320_v24 = vadd.f32 %v3153_v38, %v2525_v17 }
 0x2a1   :  { %v2526_v57 = vadd.f32 %v2361_v32, %v1736_v6  ;;  %v1336_v4 = vsel %vm1289_vm3, %v1333_v62, %v1335_v58  ;;  %v2797_v6 = vrot.slane %v2795_v18, 1  ;;  %v9449_v18 = vld [vmem:[%s13965_s0 + $0xc0] sm:$0xff] }
 0x2a2   :  { %v10564_v60 = vadd.f32 %v3661_v52, %v3320_v24  ;;  %v2363_v55 = vpop.f32.mrf.mxu3  ;;  %v2800_v24 = vrot.slane %v2798_v1, 2 }
 0x2a3   :  { %v3664_v2 = vpop.f32.mrf.mxu1 }
 0x2a6   :  { %v1573_v17 = vpop.f32.mrf.mxu2  ;;  %8314 = vmatmul.msk.bf16.gmra.mxu1 %vm642_vm2, %v3427_v36 }
 0x2a7   :  { %v3156_v30 = vpop.f32.mrf.mxu0  ;;  %v1737_v32 = vadd.f32 %v1573_v17, %v9967_v44  ;;  %8231 = vmatmul.msk.bf16.gmra.mxu3 %vm642_vm2, %v2126_v56  ;;  %v10588_v44 = vld [vmem:[%s13965_s0 + $0xc8] sm:$0xff] }
 0x2a8   :  { %v3321_v52 = vadd.f32 %v3156_v30, %v2526_v57  ;;  %v2127_v36 = vrot.slane %v10588_v44, 1 }
 0x2a9   :  { %v2527_v34 = vadd.f32 %v2363_v55, %v1737_v32  ;;  %v2801_v32 = vor.u32 %v2800_v24, %v2797_v6  ;;  %v2804_v6 = vshrl.u32 %v10588_v44, 16 }
 0x2aa   :  { %v10578_v12 = vadd.f32 %v3664_v2, %v3321_v52  ;;  %8272 = vmatmul.msk.bf16.gmra.mxu0 %vm642_vm2, %v10572_v3  ;;  %v2366_v38 = vpop.f32.mrf.mxu3  ;;  %v3428_v2 = vrot.slane %v10559_v16, 2  ;;  %v2128_v3 = vsel %vm1289_vm3, %v2125_v14, %v2127_v36 }
 0x2ab   :  { %8033 = vmatmul.msk.bf16.gmra.mxu2 %vm642_vm2, %v1336_v4  ;;  %v3666_v25 = vpop.f32.mrf.mxu1  ;;  %v10601_v16 = vsel %vm2587_vm5, %v2792_v43, %v2801_v32  ;;  %v2807_v43 = vshll.u32 %v10588_v44, 16 }
 0x2ac   :  { %v3429_v4 = vsel %vm3382_vm4, %v3426_v10, %v3428_v2  ;;  %14313 = vst [vmem:[#allocation67_spill] sm:$0xff] %v10601_v16 }
 0x2ae   :  { %v1576_v62 = vpop.f32.mrf.mxu2 }
 0x2af   :  { %v3158_v56 = vpop.f32.mrf.mxu0  ;;  %v1738_v57 = vadd.f32 %v1576_v62, %v9982_v39  ;;  %v1337_v39 = vrot.slane %v9449_v18, 1 }
 0x2b0   :  { %v3322_v55 = vadd.f32 %v3158_v56, %v2527_v34 }
 0x2b1   :  { %v2528_v17 = vadd.f32 %v2366_v38, %v1738_v57  ;;  %v1338_v10 = vsel %vm1289_vm3, %v1335_v58, %v1337_v39  ;;  %v2806_v57 = vrot.slane %v2804_v6, 1  ;;  %v9450_v6 = vld [vmem:[%s13965_s0 + $0xc8] sm:$0xff] }
 0x2b2   :  { %v10593_v51 = vadd.f32 %v3666_v25, %v3322_v55  ;;  %v2368_v30 = vpop.f32.mrf.mxu3  ;;  %v2809_v55 = vrot.slane %v2807_v43, 2 }
 0x2b3   :  { %v3669_v52 = vpop.f32.mrf.mxu1 }
 0x2b6   :  { %v1578_v34 = vpop.f32.mrf.mxu2  ;;  %8315 = vmatmul.msk.bf16.gmra.mxu1 %vm642_vm2, %v3429_v4 }
 0x2b7   :  { %v3161_v1 = vpop.f32.mrf.mxu0  ;;  %v1739_v38 = vadd.f32 %v1578_v34, %v9998_v7  ;;  %8232 = vmatmul.msk.bf16.gmra.mxu3 %vm642_vm2, %v2128_v3  ;;  %v10617_v7 = vld [vmem:[%s13965_s0 + $0xd0] sm:$0xff] }
 0x2b8   :  { %v3323_v25 = vadd.f32 %v3161_v1, %v2528_v17  ;;  %v2129_v4 = vrot.slane %v10617_v7, 1 }
 0x2b9   :  { %v2529_v62 = vadd.f32 %v2368_v30, %v1739_v38  ;;  %v2810_v38 = vor.u32 %v2809_v55, %v2806_v57  ;;  %v2813_v57 = vshrl.u32 %v10617_v7, 16 }
 0x2ba   :  { %v10607_v14 = vadd.f32 %v3669_v52, %v3323_v25  ;;  %8273 = vmatmul.msk.bf16.gmra.mxu0 %vm642_vm2, %v10601_v16  ;;  %v2371_v56 = vpop.f32.mrf.mxu3  ;;  %v3430_v52 = vrot.slane %v10588_v44, 2  ;;  %v2130_v16 = vsel %vm1289_vm3, %v2127_v36, %v2129_v4 }
 0x2bb   :  { %8034 = vmatmul.msk.bf16.gmra.mxu2 %vm642_vm2, %v1338_v10  ;;  %v3671_v24 = vpop.f32.mrf.mxu1  ;;  %v10630_v44 = vsel %vm2587_vm5, %v2801_v32, %v2810_v38  ;;  %v2816_v32 = vshll.u32 %v10617_v7, 16 }
 0x2bc   :  { %v3431_v10 = vsel %vm3382_vm4, %v3428_v2, %v3430_v52  ;;  %14314 = vst [vmem:[#allocation68_spill] sm:$0xff] %v10630_v44 }
 0x2be   :  { %v1581_v58 = vpop.f32.mrf.mxu2 }
 0x2bf   :  { %v3163_v3 = vpop.f32.mrf.mxu0  ;;  %v1740_v17 = vadd.f32 %v1581_v58, %v10013_v23  ;;  %v1339_v23 = vrot.slane %v9450_v6, 1 }
 0x2c0   :  { %v3324_v30 = vadd.f32 %v3163_v3, %v2529_v62 }
 0x2c1   :  { %v2530_v34 = vadd.f32 %v2371_v56, %v1740_v17  ;;  %v1340_v2 = vsel %vm1289_vm3, %v1337_v39, %v1339_v23  ;;  %v2815_v17 = vrot.slane %v2813_v57, 1  ;;  %v9451_v57 = vld [vmem:[%s13965_s0 + $0xd0] sm:$0xff] }
 0x2c2   :  { %v10622_v18 = vadd.f32 %v3671_v24, %v3324_v30  ;;  %v2373_v1 = vpop.f32.mrf.mxu3  ;;  %v2818_v30 = vrot.slane %v2816_v32, 2 }
 0x2c3   :  { %v3674_v25 = vpop.f32.mrf.mxu1 }
 0x2c6   :  { %v1583_v62 = vpop.f32.mrf.mxu2  ;;  %8316 = vmatmul.msk.bf16.gmra.mxu1 %vm642_vm2, %v3431_v10 }
 0x2c7   :  { %v3166_v43 = vpop.f32.mrf.mxu0  ;;  %v1741_v56 = vadd.f32 %v1583_v62, %v10029_v46  ;;  %8233 = vmatmul.msk.bf16.gmra.mxu3 %vm642_vm2, %v2130_v16  ;;  %v10646_v46 = vld [vmem:[%s13965_s0 + $0xd8] sm:$0xff] }
 0x2c8   :  { %v3325_v24 = vadd.f32 %v3166_v43, %v2530_v34  ;;  %v2131_v10 = vrot.slane %v10646_v46, 1 }
 0x2c9   :  { %v2531_v58 = vadd.f32 %v2373_v1, %v1741_v56  ;;  %v2819_v56 = vor.u32 %v2818_v30, %v2815_v17  ;;  %v2822_v17 = vshrl.u32 %v10646_v46, 16 }
 0x2ca   :  { %v10636_v36 = vadd.f32 %v3674_v25, %v3325_v24  ;;  %8274 = vmatmul.msk.bf16.gmra.mxu0 %vm642_vm2, %v10630_v44  ;;  %v2376_v3 = vpop.f32.mrf.mxu3  ;;  %v3432_v25 = vrot.slane %v10617_v7, 2  ;;  %v2132_v44 = vsel %vm1289_vm3, %v2129_v4, %v2131_v10 }
 0x2cb   :  { %8035 = vmatmul.msk.bf16.gmra.mxu2 %vm642_vm2, %v1340_v2  ;;  %v3676_v55 = vpop.f32.mrf.mxu1  ;;  %v10659_v7 = vsel %vm2587_vm5, %v2810_v38, %v2819_v56  ;;  %v2825_v38 = vshll.u32 %v10646_v46, 16 }
 0x2cc   :  { %v3433_v2 = vsel %vm3382_vm4, %v3430_v52, %v3432_v25  ;;  %14315 = vst [vmem:[#allocation69_spill] sm:$0xff] %v10659_v7 }
 0x2ce   :  { %v1586_v39 = vpop.f32.mrf.mxu2 }
 0x2cf   :  { %v3168_v16 = vpop.f32.mrf.mxu0  ;;  %v1742_v34 = vadd.f32 %v1586_v39, %v10044_v33  ;;  %v1341_v33 = vrot.slane %v9451_v57, 1 }
 0x2d0   :  { %v3326_v1 = vadd.f32 %v3168_v16, %v2531_v58 }
 0x2d1   :  { %v2532_v62 = vadd.f32 %v2376_v3, %v1742_v34  ;;  %v1342_v52 = vsel %vm1289_vm3, %v1339_v23, %v1341_v33  ;;  %v2824_v34 = vrot.slane %v2822_v17, 1  ;;  %v9452_v17 = vld [vmem:[%s13965_s0 + $0xd8] sm:$0xff] }
 0x2d2   :  { %v10651_v6 = vadd.f32 %v3676_v55, %v3326_v1  ;;  %v2378_v43 = vpop.f32.mrf.mxu3  ;;  %v2827_v1 = vrot.slane %v2825_v38, 2 }
 0x2d3   :  { %v3679_v24 = vpop.f32.mrf.mxu1 }
 0x2d6   :  { %v1588_v58 = vpop.f32.mrf.mxu2  ;;  %8317 = vmatmul.msk.bf16.gmra.mxu1 %vm642_vm2, %v3433_v2 }
 0x2d7   :  { %v3171_v32 = vpop.f32.mrf.mxu0  ;;  %v1743_v3 = vadd.f32 %v1588_v58, %v10060_v15  ;;  %8234 = vmatmul.msk.bf16.gmra.mxu3 %vm642_vm2, %v2132_v44  ;;  %v10675_v15 = vld [vmem:[%s13965_s0 + $0xe0] sm:$0xff] }
 0x2d8   :  { %v3327_v55 = vadd.f32 %v3171_v32, %v2532_v62  ;;  %v2133_v2 = vrot.slane %v10675_v15, 1 }
 0x2d9   :  { %v2533_v39 = vadd.f32 %v2378_v43, %v1743_v3  ;;  %v2828_v3 = vor.u32 %v2827_v1, %v2824_v34  ;;  %v2831_v34 = vshrl.u32 %v10675_v15, 16 }
 0x2da   :  { %v10665_v4 = vadd.f32 %v3679_v24, %v3327_v55  ;;  %8275 = vmatmul.msk.bf16.gmra.mxu0 %vm642_vm2, %v10659_v7  ;;  %v2381_v16 = vpop.f32.mrf.mxu3  ;;  %v3434_v24 = vrot.slane %v10646_v46, 2  ;;  %v2134_v7 = vsel %vm1289_vm3, %v2131_v10, %v2133_v2 }
 0x2db   :  { %8036 = vmatmul.msk.bf16.gmra.mxu2 %vm642_vm2, %v1342_v52  ;;  %v3681_v30 = vpop.f32.mrf.mxu1  ;;  %v10688_v46 = vsel %vm2587_vm5, %v2819_v56, %v2828_v3  ;;  %v2834_v56 = vshll.u32 %v10675_v15, 16 }
 0x2dc   :  { %v3435_v52 = vsel %vm3382_vm4, %v3432_v25, %v3434_v24  ;;  %14316 = vst [vmem:[#allocation70_spill] sm:$0xff] %v10688_v46 }
 0x2de   :  { %v1591_v23 = vpop.f32.mrf.mxu2 }
 0x2df   :  { %v3173_v44 = vpop.f32.mrf.mxu0  ;;  %v1744_v62 = vadd.f32 %v1591_v23, %v10075_v21  ;;  %v1343_v21 = vrot.slane %v9452_v17, 1 }
 0x2e0   :  { %v3328_v43 = vadd.f32 %v3173_v44, %v2533_v39 }
 0x2e1   :  { %v2534_v58 = vadd.f32 %v2381_v16, %v1744_v62  ;;  %v1344_v25 = vsel %vm1289_vm3, %v1341_v33, %v1343_v21  ;;  %v2833_v62 = vrot.slane %v2831_v34, 1  ;;  %v9453_v34 = vld [vmem:[%s13965_s0 + $0xe0] sm:$0xff] }
 0x2e2   :  { %v10680_v57 = vadd.f32 %v3681_v30, %v3328_v43  ;;  %v2383_v32 = vpop.f32.mrf.mxu3  ;;  %v2836_v43 = vrot.slane %v2834_v56, 2 }
 0x2e3   :  { %v3684_v55 = vpop.f32.mrf.mxu1 }
 0x2e6   :  { %v1593_v39 = vpop.f32.mrf.mxu2  ;;  %8318 = vmatmul.msk.bf16.gmra.mxu1 %vm642_vm2, %v3435_v52 }
 0x2e7   :  { %v3176_v38 = vpop.f32.mrf.mxu0  ;;  %v1745_v16 = vadd.f32 %v1593_v39, %v10091_v22  ;;  %8235 = vmatmul.msk.bf16.gmra.mxu3 %vm642_vm2, %v2134_v7  ;;  %v10704_v22 = vld [vmem:[%s13965_s0 + $0xe8] sm:$0xff] }
 0x2e8   :  { %v3329_v30 = vadd.f32 %v3176_v38, %v2534_v58  ;;  %v2135_v52 = vrot.slane %v10704_v22, 1 }
 0x2e9   :  { %v2535_v23 = vadd.f32 %v2383_v32, %v1745_v16  ;;  %v2837_v16 = vor.u32 %v2836_v43, %v2833_v62  ;;  %v2840_v62 = vshrl.u32 %v10704_v22, 16 }
 0x2ea   :  { %v10694_v10 = vadd.f32 %v3684_v55, %v3329_v30  ;;  %8276 = vmatmul.msk.bf16.gmra.mxu0 %vm642_vm2, %v10688_v46  ;;  %v2386_v44 = vpop.f32.mrf.mxu3  ;;  %v3436_v55 = vrot.slane %v10675_v15, 2  ;;  %v2136_v46 = vsel %vm1289_vm3, %v2133_v2, %v2135_v52 }
 0x2eb   :  { %8037 = vmatmul.msk.bf16.gmra.mxu2 %vm642_vm2, %v1344_v25  ;;  %v3686_v1 = vpop.f32.mrf.mxu1  ;;  %v10717_v15 = vsel %vm2587_vm5, %v2828_v3, %v2837_v16  ;;  %v2843_v3 = vshll.u32 %v10704_v22, 16 }
 0x2ec   :  { %v3437_v25 = vsel %vm3382_vm4, %v3434_v24, %v3436_v55  ;;  %14317 = vst [vmem:[#allocation71_spill] sm:$0xff] %v10717_v15 }
 0x2ee   :  { %v1596_v33 = vpop.f32.mrf.mxu2 }
 0x2ef   :  { %v3178_v7 = vpop.f32.mrf.mxu0  ;;  %v1746_v58 = vadd.f32 %v1596_v33, %v10106_v20  ;;  %v1345_v20 = vrot.slane %v9453_v34, 1 }
 0x2f0   :  { %v3330_v32 = vadd.f32 %v3178_v7, %v2535_v23 }
 0x2f1   :  { %v2536_v39 = vadd.f32 %v2386_v44, %v1746_v58  ;;  %v1346_v24 = vsel %vm1289_vm3, %v1343_v21, %v1345_v20  ;;  %v2842_v58 = vrot.slane %v2840_v62, 1  ;;  %v9454_v62 = vld [vmem:[%s13965_s0 + $0xe8] sm:$0xff] }
 0x2f2   :  { %v10709_v17 = vadd.f32 %v3686_v1, %v3330_v32  ;;  %v2388_v38 = vpop.f32.mrf.mxu3  ;;  %v2845_v32 = vrot.slane %v2843_v3, 2 }
 0x2f3   :  { %v3689_v30 = vpop.f32.mrf.mxu1 }
 0x2f6   :  { %v1598_v23 = vpop.f32.mrf.mxu2  ;;  %8319 = vmatmul.msk.bf16.gmra.mxu1 %vm642_vm2, %v3437_v25 }
 0x2f7   :  { %v3181_v56 = vpop.f32.mrf.mxu0  ;;  %v1747_v44 = vadd.f32 %v1598_v23, %v10122_v61  ;;  %8236 = vmatmul.msk.bf16.gmra.mxu3 %vm642_vm2, %v2136_v46  ;;  %v10733_v61 = vld [vmem:[%s13965_s0 + $0xf0] sm:$0xff] }
 0x2f8   :  { %v3331_v1 = vadd.f32 %v3181_v56, %v2536_v39  ;;  %v2137_v25 = vrot.slane %v10733_v61, 1 }
 0x2f9   :  { %v2537_v33 = vadd.f32 %v2388_v38, %v1747_v44  ;;  %v2846_v44 = vor.u32 %v2845_v32, %v2842_v58  ;;  %v2849_v58 = vshrl.u32 %v10733_v61, 16 }
 0x2fa   :  { %v10723_v2 = vadd.f32 %v3689_v30, %v3331_v1  ;;  %8277 = vmatmul.msk.bf16.gmra.mxu0 %vm642_vm2, %v10717_v15  ;;  %v2391_v7 = vpop.f32.mrf.mxu3  ;;  %v3438_v30 = vrot.slane %v10704_v22, 2  ;;  %v2138_v15 = vsel %vm1289_vm3, %v2135_v52, %v2137_v25 }
 0x2fb   :  { %8038 = vmatmul.msk.bf16.gmra.mxu2 %vm642_vm2, %v1346_v24  ;;  %v3691_v43 = vpop.f32.mrf.mxu1  ;;  %v10746_v22 = vsel %vm2587_vm5, %v2837_v16, %v2846_v44  ;;  %v2852_v16 = vshll.u32 %v10733_v61, 16 }
 0x2fc   :  { %14318 = vst [vmem:[#allocation72_spill] sm:$0xff] %v10723_v2  ;;  %v3439_v24 = vsel %vm3382_vm4, %v3436_v55, %v3438_v30 }
 0x2fd   :  { %14320 = vst [vmem:[#allocation74_spill] sm:$0xff] %v10746_v22 }
 0x2fe   :  { %v1601_v21 = vpop.f32.mrf.mxu2 }
 0x2ff   :  { %v3183_v46 = vpop.f32.mrf.mxu0  ;;  %v1748_v39 = vadd.f32 %v1601_v21, %v10137_v8  ;;  %v1347_v8 = vrot.slane %v9454_v62, 1 }
 0x300   :  { %v3332_v38 = vadd.f32 %v3183_v46, %v2537_v33 }
 0x301   :  { %v2538_v23 = vadd.f32 %v2391_v7, %v1748_v39  ;;  %v1348_v55 = vsel %vm1289_vm3, %v1345_v20, %v1347_v8  ;;  %v2851_v39 = vrot.slane %v2849_v58, 1  ;;  %v9455_v58 = vld [vmem:[%s13965_s0 + $0xf0] sm:$0xff] }
 0x302   :  { %v10738_v34 = vadd.f32 %v3691_v43, %v3332_v38  ;;  %v2393_v56 = vpop.f32.mrf.mxu3  ;;  %v2854_v38 = vrot.slane %v2852_v16, 2  ;;  %v1349_v16 = vrot.slane %v9455_v58, 1 }
 0x303   :  { %v3694_v1 = vpop.f32.mrf.mxu1 }
 0x304   :  { %14319 = vst [vmem:[#allocation73_spill] sm:$0xff] %v10738_v34 }
 0x306   :  { %v1603_v33 = vpop.f32.mrf.mxu2  ;;  %8320 = vmatmul.msk.bf16.gmra.mxu1 %vm642_vm2, %v3439_v24  ;;  %v3440_v24 = vrot.slane %v10733_v61, 2 }
 0x307   :  { %v3186_v3 = vpop.f32.mrf.mxu0  ;;  %v1749_v7 = vadd.f32 %v1603_v33, %v10153_v0  ;;  %8237 = vmatmul.msk.bf16.gmra.mxu3 %vm642_vm2, %v2138_v15  ;;  %v10762_v0 = vld [vmem:[%s13965_s0 + $0xf8] sm:$0xff] }
 0x308   :  { %v3333_v43 = vadd.f32 %v3186_v3, %v2538_v23  ;;  %v14322_v23 = vld [vmem:[#allocation50_spill] sm:$0xff]  ;;  %v2139_v62 = vrot.slane %v10762_v0, 1 }
 0x309   :  { %v2539_v21 = vadd.f32 %v2393_v56, %v1749_v7 }
 0x30a   :  { %v10752_v52 = vadd.f32 %v3694_v1, %v3333_v43  ;;  %8278 = vmatmul.msk.bf16.gmra.mxu0 %vm642_vm2, %v10746_v22  ;;  %v2396_v46 = vpop.f32.mrf.mxu3  ;;  %v2855_v43 = vor.u32 %v2854_v38, %v2851_v39  ;;  %v3441_v22 = vsel %vm3382_vm4, %v3438_v30, %v3440_v24  ;;  %v1350_v30 = vsel %vm1289_vm3, %v1347_v8, %v1349_v16 }
 0x30b   :  { %8039 = vmatmul.msk.bf16.gmra.mxu2 %vm642_vm2, %v1348_v55  ;;  %v3696_v32 = vpop.f32.mrf.mxu1 }
 0x30c   :  { %14321 = vst [vmem:[#allocation75_spill] sm:$0xff] %v10752_v52  ;;  %v2140_v52 = vsel %vm1289_vm3, %v2137_v25, %v2139_v62  ;;  %v10775_v61 = vsel %vm2587_vm5, %v2846_v44, %v2855_v43  ;;  %v2861_v44 = vshll.u32 %v10762_v0, 16 }
 0x30d   :  { %14324 = vst [vmem:[#allocation76_spill] sm:$0xff] %v10775_v61 }
 0x30e   :  { %v1606_v20 = vpop.f32.mrf.mxu2 }
 0x30f   :  { %v3188_v15 = vpop.f32.mrf.mxu0  ;;  %v1750_v1 = vadd.f32 %v1606_v20, %v14322_v23  ;;  %v2858_v23 = vshrl.u32 %v10762_v0, 16 }
 0x310   :  { %v3334_v56 = vadd.f32 %v3188_v15, %v2539_v21 }
 0x311   :  { %v2540_v3 = vadd.f32 %v2396_v46, %v1750_v1  ;;  %v14325_v46 = vld [vmem:[#allocation51_spill] sm:$0xff] }
 0x312   :  { %v10767_v33 = vadd.f32 %v3696_v32, %v3334_v56  ;;  %v2398_v7 = vpop.f32.mrf.mxu3  ;;  %v2860_v56 = vrot.slane %v2858_v23, 1  ;;  %v9456_v23 = vld [vmem:[%s13965_s0 + $0xf8] sm:$0xff] }
 0x313   :  { %v3699_v55 = vpop.f32.mrf.mxu1 }
 0x314   :  { %14323 = vst [vmem:[#allocation50_spill] sm:$0xff] %v10767_v33 }
 0x316   :  { %v1608_v21 = vpop.f32.mrf.mxu2  ;;  %8321 = vmatmul.msk.bf16.gmra.mxu1 %vm642_vm2, %v3441_v22 }
 0x317   :  { %v3191_v20 = vpop.f32.mrf.mxu0  ;;  %v1751_v32 = vadd.f32 %v1608_v21, %v14325_v46  ;;  %8238 = vmatmul.msk.bf16.gmra.mxu3 %vm642_vm2, %v2140_v52  ;;  %v10791_v52 = vld [vmem:[%s13965_s0 + $0x100] sm:$0xff]  ;;  %v3442_v21 = vrot.slane %v10762_v0, 2 }
 0x318   :  { %v3335_v15 = vadd.f32 %v3191_v20, %v2540_v3  ;;  %v2863_v3 = vrot.slane %v2861_v44, 2  ;;  %v2141_v20 = vrot.slane %v10791_v52, 1  ;;  %v1351_v44 = vrot.slane %v9456_v23, 1 }
 0x319   :  { %v2541_v39 = vadd.f32 %v2398_v7, %v1751_v32 }
 0x31a   :  { %v10781_v25 = vadd.f32 %v3699_v55, %v3335_v15  ;;  %8279 = vmatmul.msk.bf16.gmra.mxu0 %vm642_vm2, %v10775_v61  ;;  %v2401_v38 = vpop.f32.mrf.mxu3  ;;  %v14327_v55 = vld [vmem:[#allocation2_spill] sm:$0xff]  ;;  %v2142_v33 = vsel %vm1289_vm3, %v2139_v62, %v2141_v20 }
 0x31b   :  { %8040 = vmatmul.msk.bf16.gmra.mxu2 %vm642_vm2, %v1350_v30  ;;  %v3701_v22 = vpop.f32.mrf.mxu1  ;;  %v2864_v30 = vor.u32 %v2863_v3, %v2860_v56 }
 0x31c   :  { %14326 = vst [vmem:[#allocation51_spill] sm:$0xff] %v10781_v25  ;;  %v3443_v25 = vsel %vm3382_vm4, %v3440_v24, %v3442_v21  ;;  %v1352_v24 = vsel %vm1289_vm3, %v1349_v16, %v1351_v44 }
 0x31d   :  { %v10804_v0 = vsel %vm2587_vm5, %v2855_v43, %v2864_v30  ;;  %v2870_v43 = vshll.u32 %v10791_v52, 16 }
 0x31e   :  { %v1611_v8 = vpop.f32.mrf.mxu2  ;;  %14329 = vst [vmem:[#allocation77_spill] sm:$0xff] %v10804_v0 }
 0x31f   :  { %v3193_v1 = vpop.f32.mrf.mxu0  ;;  %v1752_v58 = vadd.f32 %v1611_v8, %v14327_v55  ;;  %v2867_v55 = vshrl.u32 %v10791_v52, 16 }
 0x320   :  { %v3336_v7 = vadd.f32 %v3193_v1, %v2541_v39 }
 0x321   :  { %v2542_v32 = vadd.f32 %v2401_v38, %v1752_v58  ;;  %v14330_v38 = vld [vmem:[#allocation3_spill] sm:$0xff]  ;;  %v2869_v58 = vrot.slane %v2867_v55, 1  ;;  %v9457_v55 = vld [vmem:[%s13965_s0 + $0x100] sm:$0xff] }
 0x322   :  { %v10796_v46 = vadd.f32 %v3701_v22, %v3336_v7  ;;  %v2403_v15 = vpop.f32.mrf.mxu3  ;;  %v2872_v7 = vrot.slane %v2870_v43, 2  ;;  %v1353_v43 = vrot.slane %v9457_v55, 1 }
 0x323   :  { %v3704_v61 = vpop.f32.mrf.mxu1 }
 0x324   :  { %14328 = vst [vmem:[#allocation2_spill] sm:$0xff] %v10796_v46 }
 0x326   :  { %v1613_v39 = vpop.f32.mrf.mxu2  ;;  %8322 = vmatmul.msk.bf16.gmra.mxu1 %vm642_vm2, %v3443_v25 }
 0x327   :  { %v3196_v8 = vpop.f32.mrf.mxu0  ;;  %v1753_v22 = vadd.f32 %v1613_v39, %v14330_v38  ;;  %8239 = vmatmul.msk.bf16.gmra.mxu3 %vm642_vm2, %v2142_v33  ;;  %v10820_v33 = vld [vmem:[%s13965_s0 + $0x108] sm:$0xff]  ;;  %v3444_v39 = vrot.slane %v10791_v52, 2 }
 0x328   :  { %v3337_v1 = vadd.f32 %v3196_v8, %v2542_v32  ;;  %v14332_v32 = vld [vmem:[#allocation4_spill] sm:$0xff]  ;;  %v2143_v8 = vrot.slane %v10820_v33, 1 }
 0x329   :  { %v2543_v56 = vadd.f32 %v2403_v15, %v1753_v22 }
 0x32a   :  { %v10810_v62 = vadd.f32 %v3704_v61, %v3337_v1  ;;  %8280 = vmatmul.msk.bf16.gmra.mxu0 %vm642_vm2, %v10804_v0  ;;  %v2406_v3 = vpop.f32.mrf.mxu3  ;;  %v2144_v46 = vsel %vm1289_vm3, %v2141_v20, %v2143_v8 }
 0x32b   :  { %8041 = vmatmul.msk.bf16.gmra.mxu2 %vm642_vm2, %v1352_v24  ;;  %v3706_v25 = vpop.f32.mrf.mxu1  ;;  %v2873_v24 = vor.u32 %v2872_v7, %v2869_v58 }
 0x32c   :  { %14331 = vst [vmem:[#allocation3_spill] sm:$0xff] %v10810_v62  ;;  %v3445_v62 = vsel %vm3382_vm4, %v3442_v21, %v3444_v39  ;;  %v1354_v21 = vsel %vm1289_vm3, %v1351_v44, %v1353_v43 }
 0x32d   :  { %v10833_v52 = vsel %vm2587_vm5, %v2864_v30, %v2873_v24  ;;  %v2879_v30 = vshll.u32 %v10820_v33, 16 }
 0x32e   :  { %v1616_v16 = vpop.f32.mrf.mxu2  ;;  %14334 = vst [vmem:[#allocation78_spill] sm:$0xff] %v10833_v52 }
 0x32f   :  { %v3198_v61 = vpop.f32.mrf.mxu0  ;;  %v1754_v23 = vadd.f32 %v1616_v16, %v14332_v32  ;;  %v2876_v32 = vshrl.u32 %v10820_v33, 16 }
 0x330   :  { %v3338_v15 = vadd.f32 %v3198_v61, %v2543_v56 }
 0x331   :  { %v2544_v22 = vadd.f32 %v2406_v3, %v1754_v23  ;;  %v14335_v3 = vld [vmem:[#allocation5_spill] sm:$0xff]  ;;  %v2878_v23 = vrot.slane %v2876_v32, 1  ;;  %v9458_v32 = vld [vmem:[%s13965_s0 + $0x108] sm:$0xff] }
 0x332   :  { %v10825_v38 = vadd.f32 %v3706_v25, %v3338_v15  ;;  %v2408_v1 = vpop.f32.mrf.mxu3  ;;  %v2881_v15 = vrot.slane %v2879_v30, 2  ;;  %v1355_v30 = vrot.slane %v9458_v32, 1 }
 0x333   :  { %v3709_v0 = vpop.f32.mrf.mxu1 }
 0x334   :  { %14333 = vst [vmem:[#allocation4_spill] sm:$0xff] %v10825_v38 }
 0x336   :  { %v1618_v56 = vpop.f32.mrf.mxu2  ;;  %8323 = vmatmul.msk.bf16.gmra.mxu1 %vm642_vm2, %v3445_v62 }
 0x337   :  { %v3201_v16 = vpop.f32.mrf.mxu0  ;;  %v1755_v25 = vadd.f32 %v1618_v56, %v14335_v3  ;;  %8240 = vmatmul.msk.bf16.gmra.mxu3 %vm642_vm2, %v2144_v46  ;;  %v10849_v46 = vld [vmem:[%s13965_s0 + $0x110] sm:$0xff]  ;;  %v3446_v56 = vrot.slane %v10820_v33, 2 }
 0x338   :  { %v3339_v61 = vadd.f32 %v3201_v16, %v2544_v22  ;;  %v14337_v22 = vld [vmem:[#allocation6_spill] sm:$0xff]  ;;  %v2145_v16 = vrot.slane %v10849_v46, 1 }
 0x339   :  { %v2545_v58 = vadd.f32 %v2408_v1, %v1755_v25 }
 0x33a   :  { %v10839_v20 = vadd.f32 %v3709_v0, %v3339_v61  ;;  %8281 = vmatmul.msk.bf16.gmra.mxu0 %vm642_vm2, %v10833_v52  ;;  %v2411_v7 = vpop.f32.mrf.mxu3  ;;  %v2146_v38 = vsel %vm1289_vm3, %v2143_v8, %v2145_v16 }
 0x33b   :  { %8042 = vmatmul.msk.bf16.gmra.mxu2 %vm642_vm2, %v1354_v21  ;;  %v3711_v62 = vpop.f32.mrf.mxu1  ;;  %v2882_v21 = vor.u32 %v2881_v15, %v2878_v23 }
 0x33c   :  { %14336 = vst [vmem:[#allocation5_spill] sm:$0xff] %v10839_v20  ;;  %v3447_v20 = vsel %vm3382_vm4, %v3444_v39, %v3446_v56  ;;  %v1356_v39 = vsel %vm1289_vm3, %v1353_v43, %v1355_v30 }
 0x33d   :  { %v10862_v33 = vsel %vm2587_vm5, %v2873_v24, %v2882_v21  ;;  %v2888_v24 = vshll.u32 %v10849_v46, 16 }
 0x33e   :  { %v1621_v44 = vpop.f32.mrf.mxu2  ;;  %14339 = vst [vmem:[#allocation79_spill] sm:$0xff] %v10862_v33 }
 0x33f   :  { %v3203_v0 = vpop.f32.mrf.mxu0  ;;  %v1756_v55 = vadd.f32 %v1621_v44, %v14337_v22  ;;  %v2885_v22 = vshrl.u32 %v10849_v46, 16 }
 0x340   :  { %v3340_v1 = vadd.f32 %v3203_v0, %v2545_v58 }
 0x341   :  { %v2546_v25 = vadd.f32 %v2411_v7, %v1756_v55  ;;  %v14340_v7 = vld [vmem:[#allocation7_spill] sm:$0xff]  ;;  %v2887_v55 = vrot.slane %v2885_v22, 1  ;;  %v9459_v22 = vld [vmem:[%s13965_s0 + $0x110] sm:$0xff] }
 0x342   :  { %v10854_v3 = vadd.f32 %v3711_v62, %v3340_v1  ;;  %v2413_v61 = vpop.f32.mrf.mxu3  ;;  %v2890_v1 = vrot.slane %v2888_v24, 2  ;;  %v1357_v24 = vrot.slane %v9459_v22, 1 }
 0x343   :  { %v3714_v52 = vpop.f32.mrf.mxu1 }
 0x344   :  { %14338 = vst [vmem:[#allocation6_spill] sm:$0xff] %v10854_v3 }
 0x346   :  { %v1623_v58 = vpop.f32.mrf.mxu2  ;;  %8324 = vmatmul.msk.bf16.gmra.mxu1 %vm642_vm2, %v3447_v20 }
 0x347   :  { %v3206_v44 = vpop.f32.mrf.mxu0  ;;  %v1757_v62 = vadd.f32 %v1623_v58, %v14340_v7  ;;  %8241 = vmatmul.msk.bf16.gmra.mxu3 %vm642_vm2, %v2146_v38  ;;  %v10878_v38 = vld [vmem:[%s13965_s0 + $0x118] sm:$0xff]  ;;  %v3448_v58 = vrot.slane %v10849_v46, 2 }
 0x348   :  { %v3341_v0 = vadd.f32 %v3206_v44, %v2546_v25  ;;  %v14342_v25 = vld [vmem:[#allocation8_spill] sm:$0xff]  ;;  %v2147_v44 = vrot.slane %v10878_v38, 1 }
 0x349   :  { %v2547_v23 = vadd.f32 %v2413_v61, %v1757_v62 }
 0x34a   :  { %v10868_v8 = vadd.f32 %v3714_v52, %v3341_v0  ;;  %8282 = vmatmul.msk.bf16.gmra.mxu0 %vm642_vm2, %v10862_v33  ;;  %v2416_v15 = vpop.f32.mrf.mxu3  ;;  %v2148_v3 = vsel %vm1289_vm3, %v2145_v16, %v2147_v44 }
 0x34b   :  { %8043 = vmatmul.msk.bf16.gmra.mxu2 %vm642_vm2, %v1356_v39  ;;  %v3716_v20 = vpop.f32.mrf.mxu1  ;;  %v2891_v39 = vor.u32 %v2890_v1, %v2887_v55 }
 0x34c   :  { %14341 = vst [vmem:[#allocation7_spill] sm:$0xff] %v10868_v8  ;;  %v3449_v8 = vsel %vm3382_vm4, %v3446_v56, %v3448_v58  ;;  %v1358_v56 = vsel %vm1289_vm3, %v1355_v30, %v1357_v24 }
 0x34d   :  { %v10891_v46 = vsel %vm2587_vm5, %v2882_v21, %v2891_v39  ;;  %v2897_v21 = vshll.u32 %v10878_v38, 16 }
 0x34e   :  { %v1626_v43 = vpop.f32.mrf.mxu2  ;;  %14344 = vst [vmem:[#allocation80_spill] sm:$0xff] %v10891_v46 }
 0x34f   :  { %v3208_v52 = vpop.f32.mrf.mxu0  ;;  %v1758_v32 = vadd.f32 %v1626_v43, %v14342_v25  ;;  %v2894_v25 = vshrl.u32 %v10878_v38, 16 }
 0x350   :  { %v3342_v61 = vadd.f32 %v3208_v52, %v2547_v23 }
 0x351   :  { %v2548_v62 = vadd.f32 %v2416_v15, %v1758_v32  ;;  %v14345_v15 = vld [vmem:[#allocation9_spill] sm:$0xff]  ;;  %v2896_v32 = vrot.slane %v2894_v25, 1 }
 0x352   :  { %v10883_v7 = vadd.f32 %v3716_v20, %v3342_v61  ;;  %v2418_v0 = vpop.f32.mrf.mxu3  ;;  %v2899_v61 = vrot.slane %v2897_v21, 2  ;;  %v9460_v25 = vld [vmem:[%s13965_s0 + $0x118] sm:$0xff] }
 0x353   :  { %v3719_v33 = vpop.f32.mrf.mxu1  ;;  %v1359_v21 = vrot.slane %v9460_v25, 1 }
 0x354   :  { %14343 = vst [vmem:[#allocation8_spill] sm:$0xff] %v10883_v7 }
 0x356   :  { %v1628_v23 = vpop.f32.mrf.mxu2  ;;  %8325 = vmatmul.msk.bf16.gmra.mxu1 %vm642_vm2, %v3449_v8 }
 0x357   :  { %v3211_v43 = vpop.f32.mrf.mxu0  ;;  %v1759_v20 = vadd.f32 %v1628_v23, %v14345_v15  ;;  %8242 = vmatmul.msk.bf16.gmra.mxu3 %vm642_vm2, %v2148_v3  ;;  %v10907_v3 = vld [vmem:[%s13965_s0 + $0x120] sm:$0xff]  ;;  %v3450_v23 = vrot.slane %v10878_v38, 2 }
 0x358   :  { %v3343_v52 = vadd.f32 %v3211_v43, %v2548_v62  ;;  %v14347_v62 = vld [vmem:[#allocation10_spill] sm:$0xff]  ;;  %v2149_v43 = vrot.slane %v10907_v3, 1 }
 0x359   :  { %v2549_v55 = vadd.f32 %v2418_v0, %v1759_v20 }
 0x35a   :  { %v10897_v16 = vadd.f32 %v3719_v33, %v3343_v52  ;;  %8283 = vmatmul.msk.bf16.gmra.mxu0 %vm642_vm2, %v10891_v46  ;;  %v2421_v1 = vpop.f32.mrf.mxu3  ;;  %v2150_v7 = vsel %vm1289_vm3, %v2147_v44, %v2149_v43 }
 0x35b   :  { %8044 = vmatmul.msk.bf16.gmra.mxu2 %vm642_vm2, %v1358_v56  ;;  %v3721_v8 = vpop.f32.mrf.mxu1  ;;  %v2900_v56 = vor.u32 %v2899_v61, %v2896_v32 }
 0x35c   :  { %14346 = vst [vmem:[#allocation9_spill] sm:$0xff] %v10897_v16  ;;  %v3451_v16 = vsel %vm3382_vm4, %v3448_v58, %v3450_v23  ;;  %v1360_v58 = vsel %vm1289_vm3, %v1357_v24, %v1359_v21 }
 0x35d   :  { %v10920_v38 = vsel %vm2587_vm5, %v2891_v39, %v2900_v56  ;;  %v2906_v39 = vshll.u32 %v10907_v3, 16 }
 0x35e   :  { %v1631_v30 = vpop.f32.mrf.mxu2  ;;  %14349 = vst [vmem:[#allocation81_spill] sm:$0xff] %v10920_v38 }
 0x35f   :  { %v3213_v33 = vpop.f32.mrf.mxu0  ;;  %v1760_v22 = vadd.f32 %v1631_v30, %v14347_v62  ;;  %v2903_v62 = vshrl.u32 %v10907_v3, 16 }
 0x360   :  { %v3344_v0 = vadd.f32 %v3213_v33, %v2549_v55 }
 0x361   :  { %v2550_v20 = vadd.f32 %v2421_v1, %v1760_v22  ;;  %v14350_v1 = vld [vmem:[#allocation11_spill] sm:$0xff]  ;;  %v2905_v22 = vrot.slane %v2903_v62, 1  ;;  %v9461_v62 = vld [vmem:[%s13965_s0 + $0x120] sm:$0xff] }
 0x362   :  { %v10912_v15 = vadd.f32 %v3721_v8, %v3344_v0  ;;  %v2423_v52 = vpop.f32.mrf.mxu3  ;;  %v2908_v0 = vrot.slane %v2906_v39, 2  ;;  %v1361_v39 = vrot.slane %v9461_v62, 1 }
 0x363   :  { %v3724_v46 = vpop.f32.mrf.mxu1 }
 0x364   :  { %14348 = vst [vmem:[#allocation10_spill] sm:$0xff] %v10912_v15 }
 0x366   :  { %v1633_v55 = vpop.f32.mrf.mxu2  ;;  %8326 = vmatmul.msk.bf16.gmra.mxu1 %vm642_vm2, %v3451_v16 }
 0x367   :  { %v3216_v30 = vpop.f32.mrf.mxu0  ;;  %v1761_v8 = vadd.f32 %v1633_v55, %v14350_v1  ;;  %8243 = vmatmul.msk.bf16.gmra.mxu3 %vm642_vm2, %v2150_v7  ;;  %v10936_v7 = vld [vmem:[%s13965_s0 + $0x128] sm:$0xff]  ;;  %v3452_v55 = vrot.slane %v10907_v3, 2 }
 0x368   :  { %v3345_v33 = vadd.f32 %v3216_v30, %v2550_v20  ;;  %v14352_v20 = vld [vmem:[#allocation12_spill] sm:$0xff]  ;;  %v2151_v30 = vrot.slane %v10936_v7, 1 }
 0x369   :  { %v2551_v32 = vadd.f32 %v2423_v52, %v1761_v8 }
 0x36a   :  { %v10926_v44 = vadd.f32 %v3724_v46, %v3345_v33  ;;  %8284 = vmatmul.msk.bf16.gmra.mxu0 %vm642_vm2, %v10920_v38  ;;  %v2426_v61 = vpop.f32.mrf.mxu3  ;;  %v2152_v15 = vsel %vm1289_vm3, %v2149_v43, %v2151_v30 }
 0x36b   :  { %8045 = vmatmul.msk.bf16.gmra.mxu2 %vm642_vm2, %v1360_v58  ;;  %v3726_v16 = vpop.f32.mrf.mxu1  ;;  %v2909_v58 = vor.u32 %v2908_v0, %v2905_v22 }
 0x36c   :  { %14351 = vst [vmem:[#allocation11_spill] sm:$0xff] %v10926_v44  ;;  %v3453_v44 = vsel %vm3382_vm4, %v3450_v23, %v3452_v55  ;;  %v1362_v23 = vsel %vm1289_vm3, %v1359_v21, %v1361_v39 }
 0x36d   :  { %v10949_v3 = vsel %vm2587_vm5, %v2900_v56, %v2909_v58  ;;  %v2915_v56 = vshll.u32 %v10936_v7, 16 }
 0x36e   :  { %v1636_v24 = vpop.f32.mrf.mxu2  ;;  %14354 = vst [vmem:[#allocation82_spill] sm:$0xff] %v10949_v3 }
 0x36f   :  { %v3218_v46 = vpop.f32.mrf.mxu0  ;;  %v1762_v25 = vadd.f32 %v1636_v24, %v14352_v20  ;;  %v2912_v20 = vshrl.u32 %v10936_v7, 16 }
 0x370   :  { %v3346_v52 = vadd.f32 %v3218_v46, %v2551_v32 }
 0x371   :  { %v2552_v8 = vadd.f32 %v2426_v61, %v1762_v25  ;;  %v14355_v61 = vld [vmem:[#allocation13_spill] sm:$0xff]  ;;  %v2914_v25 = vrot.slane %v2912_v20, 1  ;;  %v9462_v20 = vld [vmem:[%s13965_s0 + $0x128] sm:$0xff] }
 0x372   :  { %v10941_v1 = vadd.f32 %v3726_v16, %v3346_v52  ;;  %v2428_v33 = vpop.f32.mrf.mxu3  ;;  %v2917_v52 = vrot.slane %v2915_v56, 2  ;;  %v1363_v56 = vrot.slane %v9462_v20, 1 }
 0x373   :  { %v3729_v38 = vpop.f32.mrf.mxu1 }
 0x374   :  { %14353 = vst [vmem:[#allocation12_spill] sm:$0xff] %v10941_v1 }
 0x376   :  { %v1638_v32 = vpop.f32.mrf.mxu2  ;;  %8327 = vmatmul.msk.bf16.gmra.mxu1 %vm642_vm2, %v3453_v44 }
 0x377   :  { %v3221_v24 = vpop.f32.mrf.mxu0  ;;  %v1763_v16 = vadd.f32 %v1638_v32, %v14355_v61  ;;  %8244 = vmatmul.msk.bf16.gmra.mxu3 %vm642_vm2, %v2152_v15  ;;  %v10965_v15 = vld [vmem:[%s13965_s0 + $0x130] sm:$0xff]  ;;  %v3454_v32 = vrot.slane %v10936_v7, 2 }
 0x378   :  { %v3347_v46 = vadd.f32 %v3221_v24, %v2552_v8  ;;  %v14357_v8 = vld [vmem:[#allocation14_spill] sm:$0xff]  ;;  %v2153_v24 = vrot.slane %v10965_v15, 1 }
 0x379   :  { %v2553_v22 = vadd.f32 %v2428_v33, %v1763_v16 }
 0x37a   :  { %v10955_v43 = vadd.f32 %v3729_v38, %v3347_v46  ;;  %8285 = vmatmul.msk.bf16.gmra.mxu0 %vm642_vm2, %v10949_v3  ;;  %v2431_v0 = vpop.f32.mrf.mxu3  ;;  %v2154_v1 = vsel %vm1289_vm3, %v2151_v30, %v2153_v24 }
 0x37b   :  { %8046 = vmatmul.msk.bf16.gmra.mxu2 %vm642_vm2, %v1362_v23  ;;  %v3731_v44 = vpop.f32.mrf.mxu1  ;;  %v2918_v23 = vor.u32 %v2917_v52, %v2914_v25 }
 0x37c   :  { %14356 = vst [vmem:[#allocation13_spill] sm:$0xff] %v10955_v43  ;;  %v3455_v43 = vsel %vm3382_vm4, %v3452_v55, %v3454_v32  ;;  %v1364_v55 = vsel %vm1289_vm3, %v1361_v39, %v1363_v56 }
 0x37d   :  { %v10978_v7 = vsel %vm2587_vm5, %v2909_v58, %v2918_v23  ;;  %v2924_v58 = vshll.u32 %v10965_v15, 16 }
 0x37e   :  { %v1641_v21 = vpop.f32.mrf.mxu2  ;;  %14359 = vst [vmem:[#allocation83_spill] sm:$0xff] %v10978_v7 }
 0x37f   :  { %v3223_v38 = vpop.f32.mrf.mxu0  ;;  %v1764_v62 = vadd.f32 %v1641_v21, %v14357_v8  ;;  %v2921_v8 = vshrl.u32 %v10965_v15, 16 }
 0x380   :  { %v3348_v33 = vadd.f32 %v3223_v38, %v2553_v22 }
 0x381   :  { %v2554_v16 = vadd.f32 %v2431_v0, %v1764_v62  ;;  %v14360_v0 = vld [vmem:[#allocation15_spill] sm:$0xff]  ;;  %v2923_v62 = vrot.slane %v2921_v8, 1  ;;  %v9463_v8 = vld [vmem:[%s13965_s0 + $0x130] sm:$0xff] }
 0x382   :  { %v10970_v61 = vadd.f32 %v3731_v44, %v3348_v33  ;;  %v2433_v46 = vpop.f32.mrf.mxu3  ;;  %v2926_v33 = vrot.slane %v2924_v58, 2  ;;  %v1365_v58 = vrot.slane %v9463_v8, 1 }
 0x383   :  { %v3734_v3 = vpop.f32.mrf.mxu1 }
 0x384   :  { %14358 = vst [vmem:[#allocation14_spill] sm:$0xff] %v10970_v61 }
 0x386   :  { %v1643_v22 = vpop.f32.mrf.mxu2  ;;  %8328 = vmatmul.msk.bf16.gmra.mxu1 %vm642_vm2, %v3455_v43 }
 0x387   :  { %v3226_v21 = vpop.f32.mrf.mxu0  ;;  %v1765_v44 = vadd.f32 %v1643_v22, %v14360_v0  ;;  %8245 = vmatmul.msk.bf16.gmra.mxu3 %vm642_vm2, %v2154_v1  ;;  %v10994_v1 = vld [vmem:[%s13965_s0 + $0x138] sm:$0xff]  ;;  %v3456_v22 = vrot.slane %v10965_v15, 2 }
 0x388   :  { %v3349_v38 = vadd.f32 %v3226_v21, %v2554_v16  ;;  %v14362_v16 = vld [vmem:[#allocation16_spill] sm:$0xff]  ;;  %v2155_v21 = vrot.slane %v10994_v1, 1 }
 0x389   :  { %v2555_v25 = vadd.f32 %v2433_v46, %v1765_v44 }
 0x38a   :  { %v10984_v30 = vadd.f32 %v3734_v3, %v3349_v38  ;;  %8286 = vmatmul.msk.bf16.gmra.mxu0 %vm642_vm2, %v10978_v7  ;;  %v2436_v52 = vpop.f32.mrf.mxu3  ;;  %v2156_v61 = vsel %vm1289_vm3, %v2153_v24, %v2155_v21 }
 0x38b   :  { %8047 = vmatmul.msk.bf16.gmra.mxu2 %vm642_vm2, %v1364_v55  ;;  %v3736_v43 = vpop.f32.mrf.mxu1  ;;  %v2927_v55 = vor.u32 %v2926_v33, %v2923_v62 }
 0x38c   :  { %14361 = vst [vmem:[#allocation15_spill] sm:$0xff] %v10984_v30  ;;  %v3457_v30 = vsel %vm3382_vm4, %v3454_v32, %v3456_v22  ;;  %v1366_v32 = vsel %vm1289_vm3, %v1363_v56, %v1365_v58 }
 0x38d   :  { %v11007_v15 = vsel %vm2587_vm5, %v2918_v23, %v2927_v55  ;;  %v2933_v23 = vshll.u32 %v10994_v1, 16 }
 0x38e   :  { %v1646_v39 = vpop.f32.mrf.mxu2  ;;  %14364 = vst [vmem:[#allocation84_spill] sm:$0xff] %v11007_v15 }
 0x38f   :  { %v3228_v3 = vpop.f32.mrf.mxu0  ;;  %v1766_v20 = vadd.f32 %v1646_v39, %v14362_v16  ;;  %v2930_v16 = vshrl.u32 %v10994_v1, 16 }
 0x390   :  { %v3350_v46 = vadd.f32 %v3228_v3, %v2555_v25 }
 0x391   :  { %v2556_v44 = vadd.f32 %v2436_v52, %v1766_v20  ;;  %v14365_v52 = vld [vmem:[#allocation17_spill] sm:$0xff]  ;;  %v2932_v20 = vrot.slane %v2930_v16, 1 }
 0x392   :  { %v10999_v0 = vadd.f32 %v3736_v43, %v3350_v46  ;;  %v2438_v38 = vpop.f32.mrf.mxu3  ;;  %v2935_v46 = vrot.slane %v2933_v23, 2  ;;  %v9464_v16 = vld [vmem:[%s13965_s0 + $0x138] sm:$0xff] }
 0x393   :  { %v3739_v7 = vpop.f32.mrf.mxu1  ;;  %v1367_v23 = vrot.slane %v9464_v16, 1 }
 0x394   :  { %14363 = vst [vmem:[#allocation16_spill] sm:$0xff] %v10999_v0 }
 0x396   :  { %v1648_v25 = vpop.f32.mrf.mxu2  ;;  %8329 = vmatmul.msk.bf16.gmra.mxu1 %vm642_vm2, %v3457_v30 }
 0x397   :  { %v3231_v39 = vpop.f32.mrf.mxu0  ;;  %v1767_v43 = vadd.f32 %v1648_v25, %v14365_v52  ;;  %8246 = vmatmul.msk.bf16.gmra.mxu3 %vm642_vm2, %v2156_v61  ;;  %v11023_v61 = vld [vmem:[%s13965_s0 + $0x140] sm:$0xff]  ;;  %v3458_v25 = vrot.slane %v10994_v1, 2  ;;  %v1871_v1 = vld [vmem:[%s13965_s0 + $0x148] sm:$0xf] }
 0x398   :  { %v3351_v3 = vadd.f32 %v3231_v39, %v2556_v44  ;;  %v14367_v44 = vld [vmem:[#allocation18_spill] sm:$0xff]  ;;  %v2157_v39 = vrot.slane %v11023_v61, 1 }
 0x399   :  { %v2557_v62 = vadd.f32 %v2438_v38, %v1767_v43 }
 0x39a   :  { %v11013_v24 = vadd.f32 %v3739_v7, %v3351_v3  ;;  %8287 = vmatmul.msk.bf16.gmra.mxu0 %vm642_vm2, %v11007_v15  ;;  %v2441_v33 = vpop.f32.mrf.mxu3  ;;  %v2158_v0 = vsel %vm1289_vm3, %v2155_v21, %v2157_v39 }
 0x39b   :  { %8048 = vmatmul.msk.bf16.gmra.mxu2 %vm642_vm2, %v1366_v32  ;;  %v3741_v30 = vpop.f32.mrf.mxu1  ;;  %v2936_v32 = vor.u32 %v2935_v46, %v2932_v20  ;;  %v1368_v20 = vsel %vm1289_vm3, %v1365_v58, %v1367_v23  ;;  %v2037_v46 = vunpack.c.l.b16 %v1871_v1 }
 0x39c   :  { %14366 = vst [vmem:[#allocation17_spill] sm:$0xff] %v11013_v24  ;;  %v3459_v24 = vsel %vm3382_vm4, %v3456_v22, %v3458_v25  ;;  %v14370_v22 = vld [vmem:[#allocation19_spill] sm:$0xff] }
 0x39e   :  { %v1651_v56 = vpop.f32.mrf.mxu2 }
 0x39f   :  { %v3233_v7 = vpop.f32.mrf.mxu0  ;;  %v1768_v8 = vadd.f32 %v1651_v56, %v14367_v44  ;;  %v11042_v56 = vsel %vm2587_vm5, %v2927_v55, %v2936_v32  ;;  %v2939_v55 = vshrl.u32 %v11023_v61, 16 }
 0x3a0   :  { %v3352_v38 = vadd.f32 %v3233_v7, %v2557_v62  ;;  %v1872_v62 = vld [vmem:[%s13965_s0 + $0x14c] sm:$0x1]  ;;  %14369 = vst [vmem:[#allocation85_spill] sm:$0xff] %v11042_v56 }
 0x3a1   :  { %v2558_v43 = vadd.f32 %v2441_v33, %v1768_v8  ;;  %v2038_v44 = vunpack.c.l.b16 %v1872_v62  ;;  %v2941_v58 = vrot.slane %v2939_v55, 1  ;;  %v14372_v62 = vld [vmem:[#allocation21_spill] sm:$0xff] }
 0x3a2   :  { %v11028_v52 = vadd.f32 %v3741_v30, %v3352_v38  ;;  %v2443_v3 = vpop.f32.mrf.mxu3 }
 0x3a3   :  { %v3744_v15 = vpop.f32.mrf.mxu1 }
 0x3a4   :  { %14368 = vst [vmem:[#allocation18_spill] sm:$0xff] %v11028_v52 }
 0x3a6   :  { %v1653_v33 = vpop.f32.mrf.mxu2  ;;  %8330 = vmatmul.msk.bf16.gmra.mxu1 %vm642_vm2, %v3459_v24  ;;  %v2942_v24 = vshll.u32 %v11023_v61, 16 }
 0x3a7   :  { %v3236_v30 = vpop.f32.mrf.mxu0  ;;  %v1769_v21 = vadd.f32 %v1653_v33, %v14370_v22  ;;  %8247 = vmatmul.msk.bf16.gmra.mxu3 %vm642_vm2, %v2158_v0  ;;  %v2079_v33 = vpack.c.b16 %v2038_v44, %v2037_v46 }
 0x3a8   :  { %v3353_v7 = vadd.f32 %v3236_v30, %v2558_v43  ;;  %v2944_v1 = vrot.slane %v2942_v24, 2 }
 0x3a9   :  { %v2559_v38 = vadd.f32 %v2443_v3, %v1769_v21  ;;  %v2581_v3 = vld [vmem:[%s13965_s0 + $0x14c] sm:$0x3]  ;;  %v3460_v21 = vrot.slane %v11023_v61, 2 }
 0x3aa   :  { %v11048_v8 = vadd.f32 %v3744_v15, %v3353_v7  ;;  %8288 = vmatmul.msk.bf16.gmra.mxu0 %vm642_vm2, %v11042_v56  ;;  %v2446_v16 = vpop.f32.mrf.mxu3  ;;  %v2159_v7 = vrot.slane %v2079_v33, 1  ;;  %v2585_v52 = vunpack.c.l.b16 %v2581_v3  ;;  %v2945_v44 = vor.u32 %v2944_v1, %v2941_v58 }
 0x3ab   :  { %8049 = vmatmul.msk.bf16.gmra.mxu2 %vm642_vm2, %v1368_v20  ;;  %v3746_v43 = vpop.f32.mrf.mxu1  ;;  %v3461_v55 = vsel %vm3382_vm4, %v3458_v25, %v3460_v21 }
 0x3ac   :  { %14371 = vst [vmem:[#allocation19_spill] sm:$0xff] %v11048_v8  ;;  %v2160_v24 = vsel %vm1289_vm3, %v2157_v39, %v2159_v7  ;;  %v11065_v2 = vpack.c.b16 %v2585_v52, %v2037_v46  ;;  %v11068_v61 = vsel %vm2587_vm5, %v2936_v32, %v2945_v44 }
 0x3ad   :  { %14374 = vst [vmem:[#allocation21_spill] sm:$0xff] %v11068_v61 }
 0x3ae   :  { %v1656_v0 = vpop.f32.mrf.mxu2  ;;  %v2948_v46 = vshrl.u32 %v11065_v2, 16  ;;  %v2951_v32 = vshll.u32 %v11065_v2, 16 }
 0x3af   :  { %v3238_v30 = vpop.f32.mrf.mxu0  ;;  %v1770_v15 = vadd.f32 %v1656_v0, %v14372_v62  ;;  %v14373_v0 = vld [vmem:[#allocation20_spill] sm:$0xff] }
 0x3b0   :  { %v3354_v22 = vadd.f32 %v3238_v30, %v2559_v38  ;;  %v1369_v38 = vrot.slane %v14373_v0, 1  ;;  %v2953_v3 = vrot.slane %v2951_v32, 2  ;;  %v3462_v0 = vrot.slane %v11065_v2, 2 }
 0x3b1   :  { %v2560_v8 = vadd.f32 %v2446_v16, %v1770_v15  ;;  %v14375_v16 = vld [vmem:[#allocation22_spill] sm:$0xff] }
 0x3b2   :  { %v11060_v56 = vadd.f32 %v3746_v43, %v3354_v22  ;;  %v2448_v20 = vpop.f32.mrf.mxu3  ;;  %v1370_v25 = vsel %vm1289_vm3, %v1367_v23, %v1369_v38  ;;  %v2950_v22 = vrot.slane %v2948_v46, 1  ;;  %v11100_v46 = vld [vmem:[%s13965_s0 + $0x18] sm:$0xff] }
 0x3b3   :  { %v3749_v34 = vpop.f32.mrf.mxu1 }
 0x3b6   :  { %v1658_v30 = vpop.f32.mrf.mxu2  ;;  %8331 = vmatmul.msk.bf16.gmra.mxu1 %vm642_vm2, %v3461_v55 }
 0x3b7   :  { %v3241_v62 = vpop.f32.mrf.mxu0  ;;  %v1771_v43 = vadd.f32 %v1658_v30, %v14375_v16  ;;  %8248 = vmatmul.msk.bf16.gmra.mxu3 %vm642_vm2, %v2160_v24 }
 0x3b8   :  { %v3355_v33 = vadd.f32 %v3241_v62, %v2560_v8  ;;  %v3884_v8 = vld [vmem:[%s13965_s0 + $0x10] sm:$0xc] }
 0x3b9   :  { %v2561_v39 = vadd.f32 %v2448_v20, %v1771_v43  ;;  %v14377_v20 = vld [vmem:[#allocation23_spill] sm:$0xff]  ;;  %v4050_v30 = vunpack.c.l.b16 %v3884_v8 }
 0x3ba   :  { %v11074_v58 = vadd.f32 %v3749_v34, %v3355_v33  ;;  %8289 = vmatmul.msk.bf16.gmra.mxu0 %vm642_vm2, %v11068_v61  ;;  %v2451_v52 = vpop.f32.mrf.mxu3  ;;  %v11087_v34 = vld [vmem:[%s13965_s0 + $0x14] sm:$0xf] }
 0x3bb   :  { %8050 = vmatmul.msk.bf16.gmra.mxu2 %vm642_vm2, %v1370_v25  ;;  %v3751_v1 = vpop.f32.mrf.mxu1  ;;  %v14011_v62 = vunpack.c.l.b16 %v11087_v34  ;;  %v11094_v25 = vor.u32 %v2953_v3, %v2950_v22  ;;  %v4690_v22 = vshrl.u32 %v11100_v46, 16  ;;  %v4693_v3 = vshll.u32 %v11100_v46, 16 }
 0x3bc   :  { %14376 = vst [vmem:[#allocation20_spill] sm:$0xff] %v11074_v58  ;;  %v3463_v58 = vsel %vm3382_vm4, %v3460_v21, %v3462_v0 }
 0x3bd   :  { %14379 = vst [vmem:[#allocation23_spill] sm:$0xff] %v11094_v25  ;;  %v4132_v2 = vpack.c.b16 %v14011_v62, %v4050_v30 }
 0x3be   :  { %v1661_v23 = vpop.f32.mrf.mxu2 }
 0x3bf   :  { %v3243_v15 = vpop.f32.mrf.mxu0  ;;  %v1772_v55 = vadd.f32 %v1661_v23, %v14377_v20  ;;  %v4682_v21 = vshrl.u32 %v4132_v2, 16 }
 0x3c0   :  { %v3356_v24 = vadd.f32 %v3243_v15, %v2561_v39  ;;  %v4685_v15 = vshll.u32 %v4132_v2, 16 }
 0x3c1   :  { %v2562_v43 = vadd.f32 %v2451_v52, %v1772_v55  ;;  %v14381_v52 = vld [vmem:[#allocation24_spill] sm:$0xff] }
 0x3c2   :  { %v11092_v16 = vadd.f32 %v3751_v1, %v3356_v24  ;;  %v2453_v33 = vpop.f32.mrf.mxu3  ;;  %v11106_v1 = vsel %vm2587_vm5, %v2945_v44, %v11094_v25  ;;  %v4684_v24 = vrot.slane %v4682_v21, 2  ;;  %v4687_v30 = vrot.slane %v4685_v15, 3 }
 0x3c3   :  { %v3754_v61 = vpop.f32.mrf.mxu1  ;;  %14380 = vst [vmem:[#allocation86_spill] sm:$0xff] %v11106_v1  ;;  %v9465_v15 = vmov 0  }
 0x3c4   :  { %14378 = vst [vmem:[#allocation22_spill] sm:$0xff] %v11092_v16  ;;  %9222 = vset.pattern.permute.xlu0 %v9465_v15  ;;  %9233 = vset.pattern.permute.xlu1 %v9465_v15 }
 0x3c5   :  { %9244 = vset.pattern.permute.xlu2 %v9465_v15 }
 0x3c6   :  { %v1663_v39 = vpop.f32.mrf.mxu2  ;;  %8332 = vmatmul.msk.bf16.gmra.mxu1 %vm642_vm2, %v3463_v58 }
 0x3c7   :  { %v3246_v32 = vpop.f32.mrf.mxu0  ;;  %v1773_v8 = vadd.f32 %v1663_v39, %v14381_v52  ;;  %8249 = vmatmul.msk.bf16.gmra.mxu3 %vm642_vm2, %v2159_v7  ;;  %v4695_v7 = vrot.slane %v4693_v3, 3  ;;  %v14383_v52 = vld [vmem:[#allocation25_spill] sm:$0xff] }
 0x3c8   :  { %v3357_v23 = vadd.f32 %v3246_v32, %v2562_v43  ;;  %v4692_v43 = vrot.slane %v4690_v22, 2 }
 0x3c9   :  { %v2563_v44 = vadd.f32 %v2453_v33, %v1773_v8  ;;  %v8779_v33 = vld [vmem:[%s13967_s5] sm:$0xff]  }
 0x3ca   :  { %v11113_v20 = vadd.f32 %v3754_v61, %v3357_v23  ;;  %8290 = vmatmul.msk.bf16.gmra.mxu0 %vm642_vm2, %v11106_v1  ;;  %v2456_v55 = vpop.f32.mrf.mxu3  ;;  %v4688_v61 = vor.u32 %v4687_v30, %v4684_v24  ;;  %v4696_v23 = vor.u32 %v4695_v7, %v4692_v43  ;;  %v8780_v1 = vunpack.c.l.bf16 %v8779_v33  ;;  %v11129_v30 = vld [vmem:[%s13965_s0 + $0x20] sm:$0xff] }
 0x3cb   :  { %8051 = vmatmul.msk.bf16.gmra.mxu2 %vm642_vm2, %v1369_v38  ;;  %v3756_v58 = vpop.f32.mrf.mxu1  ;;  %v8781_v22 = vunpack.c.h.bf16 %v8779_v33  ;;  %v4174_v24 = vrot.slane %v11100_v46, 2 }
 0x3cc   :  { %14382 = vst [vmem:[#allocation24_spill] sm:$0xff] %v11113_v20 }
 0x3ce   :  { %v1666_v39 = vpop.f32.mrf.mxu2 }
 0x3cf   :  { %v3248_v32 = vpop.f32.mrf.mxu0  ;;  %v1774_v62 = vadd.f32 %v1666_v39, %v14383_v52  ;;  %v4173_v39 = vrot.slane %v4132_v2, 2  ;;  %v5469_v2 = vld [vmem:[%s13965_s0 + $0x10] sm:$0x8]  ;;  %v4699_v52 = vshrl.u32 %v11129_v30, 16 }
 0x3d0   :  { %v3358_v16 = vadd.f32 %v3248_v32, %v2563_v44  ;;  %v4697_v44 = vsel %vm4680_vm6, %v4688_v61, %v4696_v23 }
 0x3d1   :  { %v2564_v38 = vadd.f32 %v2456_v55, %v1774_v62  ;;  %v4175_v32 = vsel %vm3382_vm4, %v4173_v39, %v4174_v24  ;;  %v14387_v39 = vunpack.c.l.b16 %v11087_v34 }
 0x3d2   :  { %v11122_v8 = vadd.f32 %v3756_v58, %v3358_v16  ;;  %v2458_v21 = vpop.f32.mrf.mxu3  ;;  %v9223_v16 = vpack.i.bf16 %v8781_v22, %v8780_v1  ;;  %v14385_v58 = vld [vmem:[#allocation26_spill] sm:$0xff]  ;;  %v4702_v1 = vshll.u32 %v11129_v30, 16  ;;  %v4701_v22 = vrot.slane %v4699_v52, 2 }
 0x3d3   :  { %v3759_v3 = vpop.f32.mrf.mxu1 }
 0x3d4   :  { %14384 = vst [vmem:[#allocation25_spill] sm:$0xff] %v11122_v8  ;;  %9224 = vperm.xlu0 %9222, %v9223_v16  }
 0x3d6   :  { %v1668_v62 = vpop.f32.mrf.mxu2  ;;  %8333 = vmatmul.msk.bf16.gmra.mxu1 %vm642_vm2, %v3462_v0 }
 0x3d7   :  { %v3251_v55 = vpop.f32.mrf.mxu0  ;;  %v1775_v43 = vadd.f32 %v1668_v62, %v14385_v58  ;;  %8533 = vmatmul.msk.bf16.vlgmr.msra.gmra.mxu3 %vm642_vm2, %v4697_v44  ;;  %v4704_v44 = vrot.slane %v4702_v1, 3  ;;  %v14388_v58 = vld [vmem:[#allocation27_spill] sm:$0xff] }
 0x3d8   :  { %v3359_v7 = vadd.f32 %v3251_v55, %v2564_v38  ;;  %v5473_v38 = vunpack.c.l.b16 %v5469_v2 }
 0x3d9   :  { %v2565_v0 = vadd.f32 %v2458_v21, %v1775_v43  ;;  %v9141_v21 = vld [vmem:[%s13967_s5 + $0x8] sm:$0xff]  }
 0x3da   :  { %v11140_v61 = vadd.f32 %v3759_v3, %v3359_v7  ;;  %8291 = vmatmul.msk.bf16.gmra.mxu0 %vm642_vm2, %v11094_v25  ;;  %v2461_v33 = vpop.f32.mrf.mxu3  ;;  %v5474_v55 = vpack.c.b16 %v14387_v39, %v5473_v38  ;;  %v4705_v7 = vor.u32 %v4704_v44, %v4701_v22  ;;  %v8785_v25 = vunpack.c.h.bf16 %v9141_v21  ;;  %v11159_v22 = vld [vmem:[%s13965_s0 + $0x28] sm:$0xff]  ;;  %v14390_v44 = vld [vmem:[#allocation28_spill] sm:$0xff] }
 0x3db   :  { %8491 = vmatmul.msk.bf16.vlgmr.msra.gmra.mxu2 %vm642_vm2, %v4175_v32  ;;  %v3761_v15 = vpop.f32.mrf.mxu1  ;;  %v8784_v32 = vunpack.c.l.bf16 %v9141_v21  ;;  %v4711_v39 = vshll.u32 %v11159_v22, 16 }
 0x3dc   :  { %14386 = vst [vmem:[#allocation26_spill] sm:$0xff] %v11140_v61  ;;  %v5476_v1 = vrot.slane %v5474_v55, 3  ;;  %v5477_v61 = vrot.slane %v11100_v46, 3  ;;  %v4706_v38 = vsel %vm4680_vm6, %v4696_v23, %v4705_v7  ;;  %v14391_v46 = vld [vmem:[#allocation29_spill] sm:$0xff] }
 0x3dd   :  { %v9228_v34 = vpack.i.bf16 %v8785_v25, %v8784_v32 }
 0x3de   :  { %v1671_v16 = vpop.f32.mrf.mxu2 }
 0x3df   :  { %v3253_v62 = vpop.f32.mrf.mxu0  ;;  %v1776_v8 = vadd.f32 %v1671_v16, %v14388_v58  ;;  %9229 = vperm.xlu0 %9222, %v9228_v34  }
 0x3e0   :  { %v3360_v3 = vadd.f32 %v3253_v62, %v2565_v0  ;;  %v4176_v0 = vrot.slane %v11129_v30, 2  ;;  %v4708_v62 = vshrl.u32 %v11159_v22, 16 }
 0x3e1   :  { %v2566_v2 = vadd.f32 %v2461_v33, %v1776_v8 }
 0x3e2   :  { %v11151_v43 = vadd.f32 %v3761_v15, %v3360_v3  ;;  %v2463_v52 = vpop.f32.mrf.mxu3  ;;  %v5478_v15 = vsel %vm5475_vm7, %v5476_v1, %v5477_v61  ;;  %v4177_v23 = vsel %vm3382_vm4, %v4174_v24, %v4176_v0  ;;  %v4710_v32 = vrot.slane %v4708_v62, 2 }
 0x3e3   :  { %v3764_v20 = vpop.f32.mrf.mxu1  ;;  %v4713_v1 = vrot.slane %v4711_v39, 3 }
 0x3e4   :  { %14389 = vst [vmem:[#allocation27_spill] sm:$0xff] %v11151_v43 }
 0x3e6   :  { %v1673_v8 = vpop.f32.mrf.mxu2  ;;  %8616 = vmatmul.msk.bf16.vlgmr.msra.gmra.mxu1 %vm642_vm2, %v14390_v44 }
 0x3e7   :  { %v3256_v33 = vpop.f32.mrf.mxu0  ;;  %v1777_v16 = vadd.f32 %v1673_v8, %v14391_v46  ;;  %8534 = vmatmul.msk.bf16.gmra.mxu3 %vm642_vm2, %v4706_v38  ;;  %v14393_v38 = vld [vmem:[#allocation30_spill] sm:$0xff] }
 0x3e8   :  { %v3361_v25 = vadd.f32 %v3256_v33, %v2566_v2  ;;  %v4714_v33 = vor.u32 %v4713_v1, %v4710_v32  ;;  %v14395_v1 = vld [vmem:[#allocation31_spill] sm:$0xff] }
 0x3e9   :  { %v2567_v58 = vadd.f32 %v2463_v52, %v1777_v16 }
 0x3ea   :  { %v11169_v55 = vadd.f32 %v3764_v20, %v3361_v25  ;;  %8575 = vmatmul.msk.bf16.vlgmr.msra.gmra.mxu0 %vm642_vm2, %v5478_v15  ;;  %v2466_v3 = vpop.f32.mrf.mxu3  ;;  %v9142_v20 = vld [vmem:[%s13967_s5 + $0x10] sm:$0xff]   ;;  %v5479_v25 = vrot.slane %v11129_v30, 3  ;;  %v4715_v39 = vsel %vm4680_vm6, %v4705_v7, %v4714_v33 }
 0x3eb   :  { %8492 = vmatmul.msk.bf16.gmra.mxu2 %vm642_vm2, %v4177_v23  ;;  %v3766_v21 = vpop.f32.mrf.mxu1  ;;  %v8788_v52 = vunpack.c.l.bf16 %v9142_v20  ;;  %v8789_v46 = vunpack.c.h.bf16 %v9142_v20  ;;  %v14396_v30 = vld [vmem:[#allocation32_spill] sm:$0xff] }
 0x3ec   :  { %14392 = vst [vmem:[#allocation28_spill] sm:$0xff] %v11169_v55 }
 0x3ed   :  { %v9234_v62 = vpack.i.bf16 %v8789_v46, %v8788_v52 }
 0x3ee   :  { %v1676_v2 = vpop.f32.mrf.mxu2 }
 0x3ef   :  { %v3258_v34 = vpop.f32.mrf.mxu0  ;;  %v1778_v8 = vadd.f32 %v1676_v2, %v14393_v38  ;;  %v4178_v2 = vrot.slane %v11159_v22, 2  ;;  %9235 = vperm.xlu1 %9233, %v9234_v62  }
 0x3f0   :  { %v3362_v24 = vadd.f32 %v3258_v34, %v2567_v58  ;;  %v11185_v58 = vld [vmem:[%s13965_s0 + $0x30] sm:$0xff] }
 0x3f1   :  { %v2568_v15 = vadd.f32 %v2466_v3, %v1778_v8  ;;  %v5480_v3 = vsel %vm5475_vm7, %v5477_v61, %v5479_v25  ;;  %v4179_v7 = vsel %vm3382_vm4, %v4176_v0, %v4178_v2  ;;  %v4717_v8 = vshrl.u32 %v11185_v58, 16 }
 0x3f2   :  { %v11177_v44 = vadd.f32 %v3766_v21, %v3362_v24  ;;  %v2468_v16 = vpop.f32.mrf.mxu3  ;;  %v4720_v24 = vshll.u32 %v11185_v58, 16 }
 0x3f3   :  { %v3769_v23 = vpop.f32.mrf.mxu1  ;;  %v4719_v62 = vrot.slane %v4717_v8, 2 }
 0x3f4   :  { %14394 = vst [vmem:[#allocation29_spill] sm:$0xff] %v11177_v44 }
 0x3f6   :  { %v1678_v21 = vpop.f32.mrf.mxu2  ;;  %8617 = vmatmul.msk.bf16.gmra.mxu1 %vm642_vm2, %v14395_v1 }
 0x3f7   :  { %v3261_v32 = vpop.f32.mrf.mxu0  ;;  %v1779_v34 = vadd.f32 %v1678_v21, %v14396_v30  ;;  %8535 = vmatmul.msk.bf16.gmra.mxu3 %vm642_vm2, %v4715_v39  ;;  %v4722_v21 = vrot.slane %v4720_v24, 3  ;;  %v14398_v39 = vld [vmem:[#allocation33_spill] sm:$0xff] }
 0x3f8   :  { %v3363_v38 = vadd.f32 %v3261_v32, %v2568_v15 }
 0x3f9   :  { %v2569_v52 = vadd.f32 %v2468_v16, %v1779_v34  ;;  %v4723_v30 = vor.u32 %v4722_v21, %v4719_v62  ;;  %v14400_v21 = vld [vmem:[#allocation34_spill] sm:$0xff] }
 0x3fa   :  { %v11195_v20 = vadd.f32 %v3769_v23, %v3363_v38  ;;  %8576 = vmatmul.msk.bf16.gmra.mxu0 %vm642_vm2, %v5480_v3  ;;  %v2471_v61 = vpop.f32.mrf.mxu3  ;;  %v9143_v23 = vld [vmem:[%s13967_s5 + $0x18] sm:$0xff]  }
 0x3fb   :  { %8493 = vmatmul.msk.bf16.gmra.mxu2 %vm642_vm2, %v4179_v7  ;;  %v3771_v46 = vpop.f32.mrf.mxu1  ;;  %v8792_v16 = vunpack.c.l.bf16 %v9143_v23  ;;  %v8793_v34 = vunpack.c.h.bf16 %v9143_v23  ;;  %v5481_v7 = vrot.slane %v11159_v22, 3  ;;  %v4724_v44 = vsel %vm4680_vm6, %v4714_v33, %v4723_v30  ;;  %v14401_v22 = vld [vmem:[#allocation35_spill] sm:$0xff] }
 0x3fc   :  { %14397 = vst [vmem:[#allocation30_spill] sm:$0xff] %v11195_v20 }
 0x3fd   :  { %v9239_v24 = vpack.i.bf16 %v8793_v34, %v8792_v16 }
 0x3fe   :  { %v1681_v15 = vpop.f32.mrf.mxu2 }
 0x3ff   :  { %v3263_v32 = vpop.f32.mrf.mxu0  ;;  %v1780_v1 = vadd.f32 %v1681_v15, %v14398_v39  ;;  %v4180_v15 = vrot.slane %v11185_v58, 2  ;;  %9240 = vperm.xlu1 %9233, %v9239_v24  }
 0x400   :  { %v3364_v0 = vadd.f32 %v3263_v32, %v2569_v52  ;;  %v11211_v52 = vld [vmem:[%s13965_s0 + $0x38] sm:$0xff] }
 0x401   :  { %v2570_v3 = vadd.f32 %v2471_v61, %v1780_v1  ;;  %v5482_v61 = vsel %vm5475_vm7, %v5479_v25, %v5481_v7  ;;  %v4181_v33 = vsel %vm3382_vm4, %v4178_v2, %v4180_v15  ;;  %v4726_v1 = vshrl.u32 %v11211_v52, 16 }
 0x402   :  { %v11203_v38 = vadd.f32 %v3771_v46, %v3364_v0  ;;  %v2473_v20 = vpop.f32.mrf.mxu3  ;;  %v4729_v0 = vshll.u32 %v11211_v52, 16 }
 0x403   :  { %v3774_v8 = vpop.f32.mrf.mxu1  ;;  %v4728_v24 = vrot.slane %v4726_v1, 2 }
 0x404   :  { %14399 = vst [vmem:[#allocation31_spill] sm:$0xff] %v11203_v38 }
 0x406   :  { %v1683_v46 = vpop.f32.mrf.mxu2  ;;  %8618 = vmatmul.msk.bf16.gmra.mxu1 %vm642_vm2, %v14400_v21 }
 0x407   :  { %v3266_v62 = vpop.f32.mrf.mxu0  ;;  %v1781_v32 = vadd.f32 %v1683_v46, %v14401_v22  ;;  %8536 = vmatmul.msk.bf16.gmra.mxu3 %vm642_vm2, %v4724_v44  ;;  %v4731_v46 = vrot.slane %v4729_v0, 3  ;;  %v14403_v44 = vld [vmem:[#allocation36_spill] sm:$0xff] }
 0x408   :  { %v3365_v39 = vadd.f32 %v3266_v62, %v2570_v3 }
 0x409   :  { %v2571_v16 = vadd.f32 %v2473_v20, %v1781_v32  ;;  %v4732_v22 = vor.u32 %v4731_v46, %v4728_v24  ;;  %v4182_v32 = vrot.slane %v11211_v52, 2 }
 0x40a   :  { %v11221_v23 = vadd.f32 %v3774_v8, %v3365_v39  ;;  %8577 = vmatmul.msk.bf16.gmra.mxu0 %vm642_vm2, %v5482_v61  ;;  %v2476_v25 = vpop.f32.mrf.mxu3  ;;  %v5483_v39 = vrot.slane %v11185_v58, 3 }
 0x40b   :  { %8494 = vmatmul.msk.bf16.gmra.mxu2 %vm642_vm2, %v4181_v33  ;;  %v3776_v34 = vpop.f32.mrf.mxu1  ;;  %v4733_v20 = vsel %vm4680_vm6, %v4723_v30, %v4732_v22  ;;  %v11234_v33 = vld [vmem:[%s13965_s0 + $0x40] sm:$0xff]  ;;  %v4183_v30 = vsel %vm3382_vm4, %v4180_v15, %v4182_v32 }
 0x40c   :  { %14402 = vst [vmem:[#allocation32_spill] sm:$0xff] %v11221_v23  ;;  %v4735_v46 = vshrl.u32 %v11234_v33, 16 }
 0x40e   :  { %v1686_v3 = vpop.f32.mrf.mxu2 }
 0x40f   :  { %v3268_v62 = vpop.f32.mrf.mxu0  ;;  %v1782_v21 = vadd.f32 %v1686_v3, %v14403_v44  ;;  %v4738_v3 = vshll.u32 %v11234_v33, 16 }
 0x410   :  { %v3366_v2 = vadd.f32 %v3268_v62, %v2571_v16  ;;  %v5484_v16 = vsel %vm5475_vm7, %v5481_v7, %v5483_v39 }
 0x411   :  { %v2572_v55 = vadd.f32 %v2476_v25, %v1782_v21  ;;  %v14406_v25 = vld [vmem:[#allocation38_spill] sm:$0xff] }
 0x412   :  { %v11226_v38 = vadd.f32 %v3776_v34, %v3366_v2  ;;  %v2478_v8 = vpop.f32.mrf.mxu3  ;;  %v14405_v34 = vld [vmem:[#allocation37_spill] sm:$0xff]  ;;  %v4737_v2 = vrot.slane %v4735_v46, 2 }
 0x413   :  { %v3779_v61 = vpop.f32.mrf.mxu1 }
 0x414   :  { %14404 = vst [vmem:[#allocation33_spill] sm:$0xff] %v11226_v38 }
 0x416   :  { %v1688_v1 = vpop.f32.mrf.mxu2  ;;  %8619 = vmatmul.msk.bf16.gmra.mxu1 %vm642_vm2, %v14405_v34 }
 0x417   :  { %v3271_v0 = vpop.f32.mrf.mxu0  ;;  %v1783_v24 = vadd.f32 %v1688_v1, %v14406_v25  ;;  %8537 = vmatmul.msk.bf16.gmra.mxu3 %vm642_vm2, %v4733_v20  ;;  %v4740_v1 = vrot.slane %v4738_v3, 3  ;;  %v14408_v20 = vld [vmem:[#allocation39_spill] sm:$0xff] }
 0x418   :  { %v3367_v58 = vadd.f32 %v3271_v0, %v2572_v55 }
 0x419   :  { %v2573_v44 = vadd.f32 %v2478_v8, %v1783_v24  ;;  %v4741_v25 = vor.u32 %v4740_v1, %v4737_v2  ;;  %v4184_v24 = vrot.slane %v11234_v33, 2 }
 0x41a   :  { %v11244_v62 = vadd.f32 %v3779_v61, %v3367_v58  ;;  %8578 = vmatmul.msk.bf16.gmra.mxu0 %vm642_vm2, %v5484_v16  ;;  %v2481_v7 = vpop.f32.mrf.mxu3  ;;  %v5485_v58 = vrot.slane %v11211_v52, 3 }
 0x41b   :  { %8495 = vmatmul.msk.bf16.gmra.mxu2 %vm642_vm2, %v4183_v30  ;;  %v3781_v21 = vpop.f32.mrf.mxu1  ;;  %v4742_v8 = vsel %vm4680_vm6, %v4732_v22, %v4741_v25  ;;  %v11257_v30 = vld [vmem:[%s13965_s0 + $0x48] sm:$0xff]  ;;  %v4185_v22 = vsel %vm3382_vm4, %v4182_v32, %v4184_v24 }
 0x41c   :  { %14407 = vst [vmem:[#allocation34_spill] sm:$0xff] %v11244_v62  ;;  %v4744_v1 = vshrl.u32 %v11257_v30, 16 }
 0x41e   :  { %v1691_v55 = vpop.f32.mrf.mxu2  ;;  %v4746_v32 = vrot.slane %v4744_v1, 2  ;;  %v5487_v1 = vrot.slane %v11234_v33, 3  ;;  %v14416_v33 = vld [vmem:[#allocation44_spill] sm:$0xff] }
 0x41f   :  { %v3273_v0 = vpop.f32.mrf.mxu0  ;;  %v1784_v34 = vadd.f32 %v1691_v55, %v14408_v20  ;;  %v4747_v55 = vshll.u32 %v11257_v30, 16 }
 0x420   :  { %v3368_v15 = vadd.f32 %v3273_v0, %v2573_v44  ;;  %v5486_v44 = vsel %vm5475_vm7, %v5483_v39, %v5485_v58  ;;  %v9144_v0 = vld [vmem:[%s13967_s5 + $0x20] sm:$0xff]  }
 0x421   :  { %v2574_v23 = vadd.f32 %v2481_v7, %v1784_v34  ;;  %v14411_v7 = vld [vmem:[#allocation41_spill] sm:$0xff] }
 0x422   :  { %v11249_v38 = vadd.f32 %v3781_v21, %v3368_v15  ;;  %v2483_v61 = vpop.f32.mrf.mxu3  ;;  %v14410_v21 = vld [vmem:[#allocation40_spill] sm:$0xff]  ;;  %v8796_v15 = vunpack.c.l.bf16 %v9144_v0 }
 0x423   :  { %v3784_v16 = vpop.f32.mrf.mxu1 }
 0x424   :  { %14409 = vst [vmem:[#allocation35_spill] sm:$0xff] %v11249_v38  ;;  %v14413_v38 = vld [vmem:[#allocation42_spill] sm:$0xff] }
 0x426   :  { %v1693_v46 = vpop.f32.mrf.mxu2  ;;  %8620 = vmatmul.msk.bf16.gmra.mxu1 %vm642_vm2, %v14410_v21 }
 0x427   :  { %v3276_v3 = vpop.f32.mrf.mxu0  ;;  %v1785_v2 = vadd.f32 %v1693_v46, %v14411_v7  ;;  %8538 = vmatmul.msk.bf16.gmra.mxu3 %vm642_vm2, %v4742_v8  ;;  %v4749_v46 = vrot.slane %v4747_v55, 3 }
 0x428   :  { %v3369_v52 = vadd.f32 %v3276_v3, %v2574_v23  ;;  %v8797_v23 = vunpack.c.h.bf16 %v9144_v0 }
 0x429   :  { %v2575_v39 = vadd.f32 %v2483_v61, %v1785_v2  ;;  %v9146_v61 = vld [vmem:[%s13967_s5 + $0x30] sm:$0xff]  }
 0x42a   :  { %v11270_v20 = vadd.f32 %v3784_v16, %v3369_v52  ;;  %8579 = vmatmul.msk.bf16.gmra.mxu0 %vm642_vm2, %v5486_v44  ;;  %v2486_v34 = vpop.f32.mrf.mxu3  ;;  %v9245_v3 = vpack.i.bf16 %v8797_v23, %v8796_v15  ;;  %v4750_v16 = vor.u32 %v4749_v46, %v4746_v32  ;;  %v8804_v52 = vunpack.c.l.bf16 %v9146_v61 }
 0x42b   :  { %8496 = vmatmul.msk.bf16.gmra.mxu2 %vm642_vm2, %v4185_v22  ;;  %v3786_v8 = vpop.f32.mrf.mxu1  ;;  %v8805_v22 = vunpack.c.h.bf16 %v9146_v61 }
 0x42c   :  { %14412 = vst [vmem:[#allocation36_spill] sm:$0xff] %v11270_v20  ;;  %9246 = vperm.xlu2 %9244, %v9245_v3   ;;  %v4751_v23 = vsel %vm4680_vm6, %v4741_v25, %v4750_v16 }
 0x42d   :  { %v9255_v15 = vpack.i.bf16 %v8805_v22, %v8804_v52 }
 0x42e   :  { %v1696_v21 = vpop.f32.mrf.mxu2 }
 0x42f   :  { %v3278_v7 = vpop.f32.mrf.mxu0  ;;  %v1786_v62 = vadd.f32 %v1696_v21, %v14413_v38  ;;  %v4186_v38 = vrot.slane %v11257_v30, 2  ;;  %9256 = vperm.xlu0 %9222, %v9255_v15  }
 0x430   :  { %v3370_v43 = vadd.f32 %v3278_v7, %v2575_v39  ;;  %v11286_v39 = vld [vmem:[%s13965_s0 + $0x50] sm:$0xff]  ;;  %v9145_v7 = vld [vmem:[%s13967_s5 + $0x28] sm:$0xff]  }
 0x431   :  { %v2576_v2 = vadd.f32 %v2486_v34, %v1786_v62  ;;  %v5488_v62 = vsel %vm5475_vm7, %v5485_v58, %v5487_v1  ;;  %v14415_v34 = vld [vmem:[#allocation43_spill] sm:$0xff]  ;;  %v4187_v25 = vsel %vm3382_vm4, %v4184_v24, %v4186_v38  ;;  %v4753_v3 = vshrl.u32 %v11286_v39, 16 }
 0x432   :  { %v11278_v44 = vadd.f32 %v3786_v8, %v3370_v43  ;;  %v2488_v0 = vpop.f32.mrf.mxu3  ;;  %v4756_v21 = vshll.u32 %v11286_v39, 16  ;;  %v8800_v22 = vunpack.c.l.bf16 %v9145_v7 }
 0x433   :  { %v3789_v55 = vpop.f32.mrf.mxu1  ;;  %v4755_v24 = vrot.slane %v4753_v3, 2  ;;  %v5489_v3 = vrot.slane %v11257_v30, 3  ;;  %v14421_v30 = vld [vmem:[#allocation47_spill] sm:$0xff] }
 0x434   :  { %14414 = vst [vmem:[#allocation37_spill] sm:$0xff] %v11278_v44 }
 0x436   :  { %v1698_v43 = vpop.f32.mrf.mxu2  ;;  %8621 = vmatmul.msk.bf16.gmra.mxu1 %vm642_vm2, %v14415_v34 }
 0x437   :  { %v3281_v8 = vpop.f32.mrf.mxu0  ;;  %v1787_v32 = vadd.f32 %v1698_v43, %v14416_v33  ;;  %8539 = vmatmul.msk.bf16.gmra.mxu3 %vm642_vm2, %v4751_v23  ;;  %v4758_v23 = vrot.slane %v4756_v21, 3  ;;  %v14418_v33 = vld [vmem:[#allocation45_spill] sm:$0xff] }
 0x438   :  { %v3371_v46 = vadd.f32 %v3281_v8, %v2576_v2  ;;  %v8801_v2 = vunpack.c.h.bf16 %v9145_v7 }
 0x439   :  { %v2577_v58 = vadd.f32 %v2488_v0, %v1787_v32  ;;  %v4759_v0 = vor.u32 %v4758_v23, %v4755_v24 }
 0x43a   :  { %v11299_v61 = vadd.f32 %v3789_v55, %v3371_v46  ;;  %8580 = vmatmul.msk.bf16.gmra.mxu0 %vm642_vm2, %v5488_v62  ;;  %v2491_v52 = vpop.f32.mrf.mxu3  ;;  %v9250_v43 = vpack.i.bf16 %v8801_v2, %v8800_v22  ;;  %v9147_v55 = vld [vmem:[%s13967_s5 + $0x38] sm:$0xff]  }
 0x43b   :  { %8497 = vmatmul.msk.bf16.gmra.mxu2 %vm642_vm2, %v4187_v25  ;;  %v3791_v15 = vpop.f32.mrf.mxu1  ;;  %v8808_v62 = vunpack.c.l.bf16 %v9147_v55  ;;  %v8809_v32 = vunpack.c.h.bf16 %v9147_v55  ;;  %v4760_v2 = vsel %vm4680_vm6, %v4750_v16, %v4759_v0 }
 0x43c   :  { %14417 = vst [vmem:[#allocation38_spill] sm:$0xff] %v11299_v61  ;;  %9251 = vperm.xlu2 %9244, %v9250_v43   ;;  %v4188_v43 = vrot.slane %v11286_v39, 2 }
 0x43d   :  { %v9260_v21 = vpack.i.bf16 %v8809_v32, %v8808_v62 }
 0x43e   :  { %v1701_v8 = vpop.f32.mrf.mxu2  ;;  %v4189_v16 = vsel %vm3382_vm4, %v4186_v38, %v4188_v43 }
 0x43f   :  { %v3283_v34 = vpop.f32.mrf.mxu0  ;;  %v1788_v44 = vadd.f32 %v1701_v8, %v14418_v33  ;;  %9261 = vperm.xlu1 %9233, %v9260_v21  }
 0x440   :  { %v3372_v20 = vadd.f32 %v3283_v34, %v2577_v58  ;;  %v11315_v58 = vld [vmem:[%s13965_s0 + $0x58] sm:$0xff] }
 0x441   :  { %v2578_v25 = vadd.f32 %v2491_v52, %v1788_v44  ;;  %v14420_v44 = vld [vmem:[#allocation46_spill] sm:$0xff]  ;;  %v4762_v8 = vshrl.u32 %v11315_v58, 16  ;;  %v4765_v34 = vshll.u32 %v11315_v58, 16 }
 0x442   :  { %v11307_v46 = vadd.f32 %v3791_v15, %v3372_v20  ;;  %v2493_v7 = vpop.f32.mrf.mxu3  ;;  %v5490_v20 = vsel %vm5475_vm7, %v5487_v1, %v5489_v3 }
 0x443   :  { %v3794_v22 = vpop.f32.mrf.mxu1  ;;  %v4764_v32 = vrot.slane %v4762_v8, 2  ;;  %v4767_v21 = vrot.slane %v4765_v34, 3 }
 0x444   :  { %14419 = vst [vmem:[#allocation39_spill] sm:$0xff] %v11307_v46 }
 0x446   :  { %v1703_v24 = vpop.f32.mrf.mxu2  ;;  %8622 = vmatmul.msk.bf16.gmra.mxu1 %vm642_vm2, %v14420_v44  ;;  %v4768_v44 = vor.u32 %v4767_v21, %v4764_v32 }
 0x447   :  { %v3286_v23 = vpop.f32.mrf.mxu0  ;;  %v1789_v52 = vadd.f32 %v1703_v24, %v14421_v30  ;;  %8540 = vmatmul.msk.bf16.gmra.mxu3 %vm642_vm2, %v4760_v2  ;;  %v14423_v2 = vld [vmem:[#allocation48_spill] sm:$0xff] }
 0x448   :  { %v3373_v15 = vadd.f32 %v3286_v23, %v2578_v25 }
 0x449   :  { %v2579_v55 = vadd.f32 %v2493_v7, %v1789_v52  ;;  %v4769_v7 = vsel %vm4680_vm6, %v4759_v0, %v4768_v44  ;;  %v4190_v52 = vrot.slane %v11315_v58, 2 }
 0x44a   :  { %v11325_v33 = vadd.f32 %v3794_v22, %v3373_v15  ;;  %8581 = vmatmul.msk.bf16.gmra.mxu0 %vm642_vm2, %v5490_v20  ;;  %v2496_v1 = vpop.f32.mrf.mxu3  ;;  %v5491_v15 = vrot.slane %v11286_v39, 3 }
 0x44b   :  { %8498 = vmatmul.msk.bf16.gmra.mxu2 %vm642_vm2, %v4189_v16  ;;  %v3796_v62 = vpop.f32.mrf.mxu1  ;;  %v11338_v16 = vld [vmem:[%s13965_s0 + $0x60] sm:$0xff]  ;;  %v4191_v39 = vsel %vm3382_vm4, %v4188_v43, %v4190_v52  ;;  %v9149_v43 = vld [vmem:[%s13967_s5 + $0x48] sm:$0xff]  }
 0x44c   :  { %14422 = vst [vmem:[#allocation40_spill] sm:$0xff] %v11325_v33  ;;  %v4771_v0 = vshrl.u32 %v11338_v16, 16  ;;  %v4774_v32 = vshll.u32 %v11338_v16, 16 }
 0x44e   :  { %v1706_v25 = vpop.f32.mrf.mxu2 }
 0x44f   :  { %v3288_v24 = vpop.f32.mrf.mxu0  ;;  %v1790_v23 = vadd.f32 %v1706_v25, %v14423_v2  ;;  %v4776_v2 = vrot.slane %v4774_v32, 3  ;;  %v11361_v32 = vld [vmem:[%s13965_s0 + $0x68] sm:$0xff] }
 0x450   :  { %v3374_v38 = vadd.f32 %v3288_v24, %v2579_v55  ;;  %v5492_v55 = vsel %vm5475_vm7, %v5489_v3, %v5491_v15  ;;  %v4773_v24 = vrot.slane %v4771_v0, 2  ;;  %v4192_v0 = vrot.slane %v11338_v16, 2 }
 0x451   :  { %v2580_v46 = vadd.f32 %v2496_v1, %v1790_v23 }
 0x452   :  { %v11330_v30 = vadd.f32 %v3796_v62, %v3374_v38  ;;  %v2498_v22 = vpop.f32.mrf.mxu3  ;;  %v14425_v62 = vld [vmem:[#allocation49_spill] sm:$0xff] }
 0x453   :  { %v3799_v20 = vpop.f32.mrf.mxu1  ;;  %v14427_v38 = vld [vmem:[#allocation53_spill] sm:$0xff] }
 0x454   :  { %14424 = vst [vmem:[#allocation41_spill] sm:$0xff] %v11330_v30  ;;  %v14486_v30 = vld [vmem:[#allocation75_spill] sm:$0xff] }
 0x456   :  { %v1708_v8 = vpop.f32.mrf.mxu2  ;;  %8623 = vmatmul.msk.bf16.gmra.mxu1 %vm642_vm2, %v14425_v62 }
 0x457   :  { %v3291_v34 = vpop.f32.mrf.mxu0  ;;  %8541 = vmatmul.msk.bf16.gmra.mxu3 %vm642_vm2, %v4769_v7  ;;  %v4777_v7 = vor.u32 %v4776_v2, %v4773_v24  ;;  %v14428_v2 = vld [vmem:[#allocation52_spill] sm:$0xff] }
 0x458   :  { %v3375_v1 = vadd.f32 %v3291_v34, %v2580_v46  ;;  %v8817_v34 = vunpack.c.h.bf16 %v9149_v43 }
 0x45a   :  { %v11347_v21 = vadd.f32 %v3799_v20, %v3375_v1  ;;  %8582 = vmatmul.msk.bf16.gmra.mxu0 %vm642_vm2, %v5492_v55  ;;  %v5184_v25 = vpop.f32.mrf.mxu3  ;;  %v8816_v20 = vunpack.c.l.bf16 %v9149_v43  ;;  %v5493_v55 = vrot.slane %v11315_v58, 3 }
 0x45b   :  { %8499 = vmatmul.msk.bf16.gmra.mxu2 %vm642_vm2, %v4191_v39  ;;  %v3801_v3 = vpop.f32.mrf.mxu1  ;;  %v4778_v39 = vsel %vm4680_vm6, %v4768_v44, %v4777_v7  ;;  %v4193_v44 = vsel %vm3382_vm4, %v4190_v52, %v4192_v0 }
 0x45c   :  { %14426 = vst [vmem:[#allocation42_spill] sm:$0xff] %v11347_v21  ;;  %v9270_v1 = vpack.i.bf16 %v8817_v34, %v8816_v20 }
 0x45e   :  { %v4389_v46 = vpop.f32.mrf.mxu2  ;;  %9271 = vperm.xlu0 %9222, %v9270_v1  }
 0x45f   :  { %v3293_v23 = vpop.f32.mrf.mxu0  ;;  %v4593_v22 = vadd.f32 %v4389_v46, %v14427_v38  ;;  %v4780_v46 = vshrl.u32 %v11361_v32, 16  ;;  %v4783_v38 = vshll.u32 %v11361_v32, 16 }
 0x461   :  { %v5388_v8 = vadd.f32 %v5184_v25, %v4593_v22  ;;  %v5494_v25 = vsel %vm5475_vm7, %v5491_v15, %v5493_v55  ;;  %v9148_v22 = vld [vmem:[%s13967_s5 + $0x40] sm:$0xff]   ;;  %v4785_v34 = vrot.slane %v4783_v38, 3 }
 0x462   :  { %v5186_v62 = vpop.f32.mrf.mxu3  ;;  %v8812_v20 = vunpack.c.l.bf16 %v9148_v22 }
 0x466   :  { %v4391_v3 = vpop.f32.mrf.mxu2  ;;  %8624 = vmatmul.msk.bf16.gmra.mxu1 %vm642_vm2, %v14428_v2 }
 0x467   :  { %v5692_v24 = vpop.f32.mrf.mxu0  ;;  %v4594_v58 = vadd.f32 %v4391_v3, %v10212_v40  ;;  %8542 = vmatmul.msk.bf16.gmra.mxu3 %vm642_vm2, %v4778_v39  ;;  %v8813_v40 = vunpack.c.h.bf16 %v9148_v22 }
 0x468   :  { %v11367_v23 = vadd.f32 %v5692_v24, %v5388_v8  ;;  %v4782_v8 = vrot.slane %v4780_v46, 2 }
 0x469   :  { %v5389_v15 = vadd.f32 %v5186_v62, %v4594_v58  ;;  %v9265_v1 = vpack.i.bf16 %v8813_v40, %v8812_v20  ;;  %v9150_v62 = vld [vmem:[%s13967_s5 + $0x50] sm:$0xff]   ;;  %v4194_v20 = vrot.slane %v11361_v32, 2 }
 0x46a   :  { %14429 = vst [vmem:[#allocation43_spill] sm:$0xff] %v11367_v23  ;;  %8583 = vmatmul.msk.bf16.gmra.mxu0 %vm642_vm2, %v5494_v25  ;;  %v5189_v43 = vpop.f32.mrf.mxu3  ;;  %v4786_v2 = vor.u32 %v4785_v34, %v4782_v8  ;;  %v8820_v58 = vunpack.c.l.bf16 %v9150_v62  ;;  %v8821_v22 = vunpack.c.h.bf16 %v9150_v62  ;;  %v14431_v8 = vld [vmem:[#allocation54_spill] sm:$0xff] }
 0x46b   :  { %8500 = vmatmul.msk.bf16.gmra.mxu2 %vm642_vm2, %v4193_v44  ;;  %9266 = vperm.xlu2 %9244, %v9265_v1   ;;  %v5495_v44 = vrot.slane %v11338_v16, 3 }
 0x46c   :  { %v9275_v46 = vpack.i.bf16 %v8821_v22, %v8820_v58  ;;  %v4787_v38 = vsel %vm4680_vm6, %v4777_v7, %v4786_v2  ;;  %v4195_v7 = vsel %vm3382_vm4, %v4192_v0, %v4194_v20 }
 0x46e   :  { %v4394_v52 = vpop.f32.mrf.mxu2  ;;  %9276 = vperm.xlu1 %9233, %v9275_v46  }
 0x46f   :  { %v5694_v39 = vpop.f32.mrf.mxu0  ;;  %v4595_v3 = vadd.f32 %v4394_v52, %v10226_v59  ;;  %v11390_v59 = vld [vmem:[%s13965_s0 + $0x70] sm:$0xff] }
 0x470   :  { %v11379_v24 = vadd.f32 %v5694_v39, %v5389_v15  ;;  %v4789_v1 = vshrl.u32 %v11390_v59, 16  ;;  %v4792_v52 = vshll.u32 %v11390_v59, 16 }
 0x471   :  { %v5390_v25 = vadd.f32 %v5189_v43, %v4595_v3  ;;  %v5496_v43 = vsel %vm5475_vm7, %v5493_v55, %v5495_v44 }
 0x472   :  { %14430 = vst [vmem:[#allocation44_spill] sm:$0xff] %v11379_v24  ;;  %v5191_v21 = vpop.f32.mrf.mxu3  ;;  %v4791_v55 = vrot.slane %v4789_v1, 2  ;;  %v4794_v62 = vrot.slane %v4792_v52, 3 }
 0x474   :  { %v4795_v46 = vor.u32 %v4794_v62, %v4791_v55 }
 0x476   :  { %v4396_v15 = vpop.f32.mrf.mxu2  ;;  %8625 = vmatmul.msk.bf16.gmra.mxu1 %vm642_vm2, %v14431_v8 }
 0x477   :  { %v5697_v40 = vpop.f32.mrf.mxu0  ;;  %v4596_v16 = vadd.f32 %v4396_v15, %v10241_v19  ;;  %8543 = vmatmul.msk.bf16.gmra.mxu3 %vm642_vm2, %v4787_v38  ;;  %v5497_v15 = vrot.slane %v11361_v32, 3 }
 0x478   :  { %v11396_v34 = vadd.f32 %v5697_v40, %v5390_v25  ;;  %v4796_v40 = vsel %vm4680_vm6, %v4786_v2, %v4795_v46 }
 0x479   :  { %v5391_v39 = vadd.f32 %v5191_v21, %v4596_v16  ;;  %v4196_v21 = vrot.slane %v11390_v59, 2 }
 0x47a   :  { %14432 = vst [vmem:[#allocation45_spill] sm:$0xff] %v11396_v34  ;;  %8584 = vmatmul.msk.bf16.gmra.mxu0 %vm642_vm2, %v5496_v43  ;;  %v5194_v3 = vpop.f32.mrf.mxu3  ;;  %v11413_v43 = vld [vmem:[%s13965_s0 + $0x78] sm:$0xff] }
 0x47b   :  { %8501 = vmatmul.msk.bf16.gmra.mxu2 %vm642_vm2, %v4195_v7  ;;  %v14434_v7 = vld [vmem:[#allocation55_spill] sm:$0xff]  ;;  %v4197_v32 = vsel %vm3382_vm4, %v4194_v20, %v4196_v21  ;;  %v4798_v2 = vshrl.u32 %v11413_v43, 16  ;;  %v9152_v20 = vld [vmem:[%s13967_s5 + $0x60] sm:$0xff]  }
 0x47e   :  { %v4399_v58 = vpop.f32.mrf.mxu2 }
 0x47f   :  { %v5699_v19 = vpop.f32.mrf.mxu0  ;;  %v4597_v25 = vadd.f32 %v4399_v58, %v10255_v53  ;;  %v5498_v53 = vsel %vm5475_vm7, %v5495_v44, %v5497_v15  ;;  %v4800_v44 = vrot.slane %v4798_v2, 2 }
 0x480   :  { %v11405_v22 = vadd.f32 %v5699_v19, %v5391_v39  ;;  %v4801_v39 = vshll.u32 %v11413_v43, 16 }
 0x481   :  { %v5392_v0 = vadd.f32 %v5194_v3, %v4597_v25 }
 0x482   :  { %14433 = vst [vmem:[#allocation46_spill] sm:$0xff] %v11405_v22  ;;  %v5196_v38 = vpop.f32.mrf.mxu3  ;;  %v4803_v62 = vrot.slane %v4801_v39, 3 }
 0x486   :  { %v4401_v8 = vpop.f32.mrf.mxu2  ;;  %8626 = vmatmul.msk.bf16.gmra.mxu1 %vm642_vm2, %v14434_v7 }
 0x487   :  { %v5702_v16 = vpop.f32.mrf.mxu0  ;;  %v4598_v1 = vadd.f32 %v4401_v8, %v10270_v28  ;;  %8544 = vmatmul.msk.bf16.gmra.mxu3 %vm642_vm2, %v4796_v40  ;;  %v8828_v8 = vunpack.c.l.bf16 %v9152_v20 }
 0x488   :  { %v11419_v52 = vadd.f32 %v5702_v16, %v5392_v0  ;;  %v4804_v0 = vor.u32 %v4803_v62, %v4800_v44  ;;  %v8829_v16 = vunpack.c.h.bf16 %v9152_v20 }
 0x489   :  { %v5393_v3 = vadd.f32 %v5196_v38, %v4598_v1 }
 0x48a   :  { %14435 = vst [vmem:[#allocation47_spill] sm:$0xff] %v11419_v52  ;;  %8585 = vmatmul.msk.bf16.gmra.mxu0 %vm642_vm2, %v5498_v53  ;;  %v5199_v55 = vpop.f32.mrf.mxu3  ;;  %v5499_v53 = vrot.slane %v11390_v59, 3  ;;  %v9285_v7 = vpack.i.bf16 %v8829_v16, %v8828_v8  ;;  %v4805_v1 = vsel %vm4680_vm6, %v4795_v46, %v4804_v0 }
 0x48b   :  { %8502 = vmatmul.msk.bf16.gmra.mxu2 %vm642_vm2, %v4197_v32  ;;  %v4198_v32 = vrot.slane %v11413_v43, 2 }
 0x48c   :  { %9286 = vperm.xlu0 %9222, %v9285_v7  }
 0x48d   :  { %v4199_v46 = vsel %vm3382_vm4, %v4196_v21, %v4198_v32 }
 0x48e   :  { %v4404_v58 = vpop.f32.mrf.mxu2 }
 0x48f   :  { %v5704_v28 = vpop.f32.mrf.mxu0  ;;  %v4599_v19 = vadd.f32 %v4404_v58, %v10284_v50  ;;  %v11439_v50 = vld [vmem:[%s13965_s0 + $0x80] sm:$0xff] }
 0x490   :  { %v11428_v25 = vadd.f32 %v5704_v28, %v5393_v3  ;;  %v5500_v3 = vsel %vm5475_vm7, %v5497_v15, %v5499_v53  ;;  %v4807_v62 = vshrl.u32 %v11439_v50, 16  ;;  %v4810_v58 = vshll.u32 %v11439_v50, 16  ;;  %v9151_v28 = vld [vmem:[%s13967_s5 + $0x58] sm:$0xff]  }
 0x491   :  { %v5394_v40 = vadd.f32 %v5199_v55, %v4599_v19  ;;  %v14437_v55 = vld [vmem:[#allocation56_spill] sm:$0xff]  ;;  %v8824_v20 = vunpack.c.l.bf16 %v9151_v28 }
 0x492   :  { %14436 = vst [vmem:[#allocation48_spill] sm:$0xff] %v11428_v25  ;;  %v5201_v38 = vpop.f32.mrf.mxu3  ;;  %v4812_v8 = vrot.slane %v4810_v58, 3 }
 0x496   :  { %v4406_v2 = vpop.f32.mrf.mxu2  ;;  %8627 = vmatmul.msk.bf16.gmra.mxu1 %vm642_vm2, %v14437_v55 }
 0x497   :  { %v5707_v39 = vpop.f32.mrf.mxu0  ;;  %v4600_v59 = vadd.f32 %v4406_v2, %v10299_v63  ;;  %8545 = vmatmul.msk.bf16.gmra.mxu3 %vm642_vm2, %v4805_v1  ;;  %v8825_v63 = vunpack.c.h.bf16 %v9151_v28 }
 0x498   :  { %v11445_v44 = vadd.f32 %v5707_v39, %v5394_v40  ;;  %v4809_v40 = vrot.slane %v4807_v62, 2  ;;  %v5501_v62 = vrot.slane %v11413_v43, 3 }
 0x499   :  { %v5395_v15 = vadd.f32 %v5201_v38, %v4600_v59  ;;  %v9280_v16 = vpack.i.bf16 %v8825_v63, %v8824_v20  ;;  %v9153_v38 = vld [vmem:[%s13967_s5 + $0x68] sm:$0xff]   ;;  %v4200_v20 = vrot.slane %v11439_v50, 2 }
 0x49a   :  { %14438 = vst [vmem:[#allocation49_spill] sm:$0xff] %v11445_v44  ;;  %8586 = vmatmul.msk.bf16.gmra.mxu0 %vm642_vm2, %v5500_v3  ;;  %v5204_v19 = vpop.f32.mrf.mxu3  ;;  %v4813_v39 = vor.u32 %v4812_v8, %v4809_v40  ;;  %v8832_v55 = vunpack.c.l.bf16 %v9153_v38  ;;  %v8833_v59 = vunpack.c.h.bf16 %v9153_v38 }
 0x49b   :  { %8503 = vmatmul.msk.bf16.gmra.mxu2 %vm642_vm2, %v4199_v46  ;;  %9281 = vperm.xlu2 %9244, %v9280_v16   ;;  %v4201_v43 = vsel %vm3382_vm4, %v4198_v32, %v4200_v20 }
 0x49c   :  { %v9290_v58 = vpack.i.bf16 %v8833_v59, %v8832_v55  ;;  %v4814_v28 = vsel %vm4680_vm6, %v4804_v0, %v4813_v39 }
 0x49e   :  { %v4409_v21 = vpop.f32.mrf.mxu2  ;;  %9291 = vperm.xlu1 %9233, %v9290_v58  }
 0x49f   :  { %v5709_v7 = vpop.f32.mrf.mxu0  ;;  %v4601_v1 = vadd.f32 %v4409_v21, %v10313_v29  ;;  %v11468_v29 = vld [vmem:[%s13965_s0 + $0x88] sm:$0xff] }
 0x4a0   :  { %v11457_v2 = vadd.f32 %v5709_v7, %v5395_v15  ;;  %v4816_v0 = vshrl.u32 %v11468_v29, 16  ;;  %v4819_v16 = vshll.u32 %v11468_v29, 16 }
 0x4a1   :  { %v5396_v3 = vadd.f32 %v5204_v19, %v4601_v1  ;;  %v5502_v19 = vsel %vm5475_vm7, %v5499_v53, %v5501_v62 }
 0x4a2   :  { %v5206_v46 = vpop.f32.mrf.mxu3  ;;  %v4818_v1 = vrot.slane %v4816_v0, 2  ;;  %v4821_v53 = vrot.slane %v4819_v16, 3 }
 0x4a4   :  { %v4822_v59 = vor.u32 %v4821_v53, %v4818_v1 }
 0x4a6   :  { %v4411_v15 = vpop.f32.mrf.mxu2 }
 0x4a7   :  { %v5712_v63 = vpop.f32.mrf.mxu0  ;;  %v4602_v40 = vadd.f32 %v4411_v15, %v10332_v45  ;;  %8546 = vmatmul.msk.bf16.gmra.mxu3 %vm642_vm2, %v4814_v28  ;;  %v5503_v28 = vrot.slane %v11439_v50, 3  ;;  %v4823_v15 = vsel %vm4680_vm6, %v4813_v39, %v4822_v59 }
 0x4a8   :  { %v11472_v8 = vadd.f32 %v5712_v63, %v5396_v3  ;;  %v11489_v63 = vld [vmem:[%s13965_s0 + $0x90] sm:$0xff] }
 0x4a9   :  { %v5397_v21 = vadd.f32 %v5206_v46, %v4602_v40  ;;  %v4202_v46 = vrot.slane %v11468_v29, 2  ;;  %v4825_v39 = vshrl.u32 %v11489_v63, 16  ;;  %v4828_v16 = vshll.u32 %v11489_v63, 16 }
 0x4aa   :  { %14439 = vst [vmem:[#allocation53_spill] sm:$0xff] %v11472_v8  ;;  %8587 = vmatmul.msk.bf16.gmra.mxu0 %vm642_vm2, %v5502_v19  ;;  %v5209_v7 = vpop.f32.mrf.mxu3 }
 0x4ab   :  { %8504 = vmatmul.msk.bf16.gmra.mxu2 %vm642_vm2, %v4201_v43  ;;  %v4203_v50 = vsel %vm3382_vm4, %v4200_v20, %v4202_v46  ;;  %v4827_v1 = vrot.slane %v4825_v39, 2  ;;  %v9155_v20 = vld [vmem:[%s13967_s5 + $0x78] sm:$0xff]  }
 0x4ae   :  { %v4414_v38 = vpop.f32.mrf.mxu2 }
 0x4af   :  { %v5714_v45 = vpop.f32.mrf.mxu0  ;;  %v4603_v3 = vadd.f32 %v4414_v38, %v10346_v31  ;;  %v5504_v31 = vsel %vm5475_vm7, %v5501_v62, %v5503_v28  ;;  %v4830_v62 = vrot.slane %v4828_v16, 3 }
 0x4b0   :  { %v11481_v55 = vadd.f32 %v5714_v45, %v5397_v21 }
 0x4b1   :  { %v5398_v32 = vadd.f32 %v5209_v7, %v4603_v3  ;;  %v4831_v3 = vor.u32 %v4830_v62, %v4827_v1 }
 0x4b2   :  { %v5211_v58 = vpop.f32.mrf.mxu3 }
 0x4b6   :  { %v4416_v19 = vpop.f32.mrf.mxu2 }
 0x4b7   :  { %v5717_v40 = vpop.f32.mrf.mxu0  ;;  %v4604_v43 = vadd.f32 %v4416_v19, %v10361_v13  ;;  %8547 = vmatmul.msk.bf16.gmra.mxu3 %vm642_vm2, %v4823_v15  ;;  %v8840_v15 = vunpack.c.l.bf16 %v9155_v20  ;;  %v8841_v19 = vunpack.c.h.bf16 %v9155_v20 }
 0x4b8   :  { %v11493_v0 = vadd.f32 %v5717_v40, %v5398_v32  ;;  %v5505_v40 = vrot.slane %v11468_v29, 3 }
 0x4b9   :  { %v5399_v21 = vadd.f32 %v5211_v58, %v4604_v43  ;;  %v4832_v43 = vsel %vm4680_vm6, %v4822_v59, %v4831_v3 }
 0x4ba   :  { %14440 = vst [vmem:[#allocation52_spill] sm:$0xff] %v11493_v0  ;;  %8588 = vmatmul.msk.bf16.gmra.mxu0 %vm642_vm2, %v5504_v31  ;;  %v5214_v7 = vpop.f32.mrf.mxu3  ;;  %v9300_v31 = vpack.i.bf16 %v8841_v19, %v8840_v15 }
 0x4bb   :  { %8505 = vmatmul.msk.bf16.gmra.mxu2 %vm642_vm2, %v4203_v50  ;;  %v4204_v50 = vrot.slane %v11489_v63, 2 }
 0x4bc   :  { %9301 = vperm.xlu0 %9222, %v9300_v31  }
 0x4bd   :  { %v4205_v29 = vsel %vm3382_vm4, %v4202_v46, %v4204_v50 }
 0x4be   :  { %v4419_v53 = vpop.f32.mrf.mxu2 }
 0x4bf   :  { %v5719_v13 = vpop.f32.mrf.mxu0  ;;  %v4605_v38 = vadd.f32 %v4419_v53, %v10375_v5  ;;  %v11513_v5 = vld [vmem:[%s13965_s0 + $0x98] sm:$0xff]  ;;  %v9154_v53 = vld [vmem:[%s13967_s5 + $0x70] sm:$0xff]  }
 0x4c0   :  { %v11502_v45 = vadd.f32 %v5719_v13, %v5399_v21  ;;  %v5506_v21 = vsel %vm5475_vm7, %v5503_v28, %v5505_v40  ;;  %v4834_v59 = vshrl.u32 %v11513_v5, 16  ;;  %v4837_v62 = vshll.u32 %v11513_v5, 16 }
 0x4c1   :  { %v5400_v32 = vadd.f32 %v5214_v7, %v4605_v38  ;;  %v8836_v38 = vunpack.c.l.bf16 %v9154_v53 }
 0x4c2   :  { %v5216_v58 = vpop.f32.mrf.mxu3  ;;  %v4836_v20 = vrot.slane %v4834_v59, 2  ;;  %v5507_v59 = vrot.slane %v11489_v63, 3 }
 0x4c6   :  { %v4421_v39 = vpop.f32.mrf.mxu2 }
 0x4c7   :  { %v5722_v16 = vpop.f32.mrf.mxu0  ;;  %v4606_v7 = vadd.f32 %v4421_v39, %v10390_v37  ;;  %8548 = vmatmul.msk.bf16.gmra.mxu3 %vm642_vm2, %v4832_v43  ;;  %v8837_v37 = vunpack.c.h.bf16 %v9154_v53 }
 0x4c8   :  { %v11517_v1 = vadd.f32 %v5722_v16, %v5400_v32  ;;  %v4839_v32 = vrot.slane %v4837_v62, 3 }
 0x4c9   :  { %v5401_v13 = vadd.f32 %v5216_v58, %v4606_v7  ;;  %v9295_v15 = vpack.i.bf16 %v8837_v37, %v8836_v38  ;;  %v9156_v58 = vld [vmem:[%s13967_s5 + $0x80] sm:$0xff]   ;;  %v4206_v38 = vrot.slane %v11513_v5, 2 }
 0x4ca   :  { %14441 = vst [vmem:[#allocation54_spill] sm:$0xff] %v11517_v1  ;;  %8589 = vmatmul.msk.bf16.gmra.mxu0 %vm642_vm2, %v5506_v21  ;;  %v5219_v28 = vpop.f32.mrf.mxu3  ;;  %v4840_v39 = vor.u32 %v4839_v32, %v4836_v20  ;;  %v8844_v21 = vunpack.c.l.bf16 %v9156_v58  ;;  %v8845_v7 = vunpack.c.h.bf16 %v9156_v58 }
 0x4cb   :  { %8506 = vmatmul.msk.bf16.gmra.mxu2 %vm642_vm2, %v4205_v29  ;;  %9296 = vperm.xlu2 %9244, %v9295_v15   ;;  %v4207_v63 = vsel %vm3382_vm4, %v4204_v50, %v4206_v38 }
 0x4cc   :  { %v9305_v62 = vpack.i.bf16 %v8845_v7, %v8844_v21  ;;  %v4841_v53 = vsel %vm4680_vm6, %v4831_v3, %v4840_v39 }
 0x4ce   :  { %v4424_v46 = vpop.f32.mrf.mxu2  ;;  %9306 = vperm.xlu1 %9233, %v9305_v62  }
 0x4cf   :  { %v5724_v19 = vpop.f32.mrf.mxu0  ;;  %v4607_v31 = vadd.f32 %v4424_v46, %v10404_v27  ;;  %v11540_v27 = vld [vmem:[%s13965_s0 + $0xa0] sm:$0xff] }
 0x4d0   :  { %v11529_v43 = vadd.f32 %v5724_v19, %v5401_v13  ;;  %v4843_v3 = vshrl.u32 %v11540_v27, 16  ;;  %v4846_v15 = vshll.u32 %v11540_v27, 16 }
 0x4d1   :  { %v5402_v16 = vadd.f32 %v5219_v28, %v4607_v31  ;;  %v5508_v28 = vsel %vm5475_vm7, %v5505_v40, %v5507_v59 }
 0x4d2   :  { %v5221_v29 = vpop.f32.mrf.mxu3  ;;  %v4845_v31 = vrot.slane %v4843_v3, 2  ;;  %v4848_v40 = vrot.slane %v4846_v15, 3 }
 0x4d4   :  { %v4849_v7 = vor.u32 %v4848_v40, %v4845_v31 }
 0x4d6   :  { %v4426_v13 = vpop.f32.mrf.mxu2 }
 0x4d7   :  { %v5727_v37 = vpop.f32.mrf.mxu0  ;;  %v4608_v20 = vadd.f32 %v4426_v13, %v10419_v48  ;;  %8549 = vmatmul.msk.bf16.gmra.mxu3 %vm642_vm2, %v4841_v53  ;;  %v5509_v53 = vrot.slane %v11513_v5, 3  ;;  %v4850_v13 = vsel %vm4680_vm6, %v4840_v39, %v4849_v7 }
 0x4d8   :  { %v11544_v32 = vadd.f32 %v5727_v37, %v5402_v16  ;;  %v11561_v37 = vld [vmem:[%s13965_s0 + $0xa8] sm:$0xff] }
 0x4d9   :  { %v5403_v46 = vadd.f32 %v5221_v29, %v4608_v20  ;;  %v4208_v29 = vrot.slane %v11540_v27, 2  ;;  %v4852_v39 = vshrl.u32 %v11561_v37, 16  ;;  %v4855_v15 = vshll.u32 %v11561_v37, 16 }
 0x4da   :  { %14442 = vst [vmem:[#allocation55_spill] sm:$0xff] %v11544_v32  ;;  %8590 = vmatmul.msk.bf16.gmra.mxu0 %vm642_vm2, %v5508_v28  ;;  %v5224_v19 = vpop.f32.mrf.mxu3 }
 0x4db   :  { %8507 = vmatmul.msk.bf16.gmra.mxu2 %vm642_vm2, %v4207_v63  ;;  %v4209_v5 = vsel %vm3382_vm4, %v4206_v38, %v4208_v29  ;;  %v4854_v31 = vrot.slane %v4852_v39, 2  ;;  %v9158_v38 = vld [vmem:[%s13967_s5 + $0x90] sm:$0xff]  }
 0x4de   :  { %v4429_v58 = vpop.f32.mrf.mxu2 }
 0x4df   :  { %v5729_v48 = vpop.f32.mrf.mxu0  ;;  %v4609_v16 = vadd.f32 %v4429_v58, %v10433_v9  ;;  %v5510_v9 = vsel %vm5475_vm7, %v5507_v59, %v5509_v53  ;;  %v4857_v59 = vrot.slane %v4855_v15, 3 }
 0x4e0   :  { %v11553_v21 = vadd.f32 %v5729_v48, %v5403_v46 }
 0x4e1   :  { %v5404_v50 = vadd.f32 %v5224_v19, %v4609_v16  ;;  %v4858_v16 = vor.u32 %v4857_v59, %v4854_v31 }
 0x4e2   :  { %14443 = vst [vmem:[#allocation56_spill] sm:$0xff] %v11553_v21  ;;  %v5226_v62 = vpop.f32.mrf.mxu3 }
 0x4e6   :  { %v4431_v28 = vpop.f32.mrf.mxu2 }
 0x4e7   :  { %v5732_v20 = vpop.f32.mrf.mxu0  ;;  %v4610_v63 = vadd.f32 %v4431_v28, %v10448_v35  ;;  %8550 = vmatmul.msk.bf16.gmra.mxu3 %vm642_vm2, %v4850_v13  ;;  %v8852_v13 = vunpack.c.l.bf16 %v9158_v38  ;;  %v8853_v28 = vunpack.c.h.bf16 %v9158_v38 }
 0x4e8   :  { %v11565_v3 = vadd.f32 %v5732_v20, %v5404_v50  ;;  %v5511_v20 = vrot.slane %v11540_v27, 3 }
 0x4e9   :  { %v5405_v46 = vadd.f32 %v5226_v62, %v4610_v63  ;;  %v4859_v63 = vsel %vm4680_vm6, %v4849_v7, %v4858_v16 }
 0x4ea   :  { %14444 = vst [vmem:[#allocation87_spill] sm:$0xff] %v11565_v3  ;;  %8591 = vmatmul.msk.bf16.gmra.mxu0 %vm642_vm2, %v5510_v9  ;;  %v5229_v19 = vpop.f32.mrf.mxu3  ;;  %v9315_v9 = vpack.i.bf16 %v8853_v28, %v8852_v13 }
 0x4eb   :  { %8508 = vmatmul.msk.bf16.gmra.mxu2 %vm642_vm2, %v4209_v5  ;;  %v4210_v5 = vrot.slane %v11561_v37, 2 }
 0x4ec   :  { %9316 = vperm.xlu0 %9222, %v9315_v9  }
 0x4ed   :  { %v4211_v27 = vsel %vm3382_vm4, %v4208_v29, %v4210_v5 }
 0x4ee   :  { %v4434_v40 = vpop.f32.mrf.mxu2 }
 0x4ef   :  { %v5734_v35 = vpop.f32.mrf.mxu0  ;;  %v4611_v58 = vadd.f32 %v4434_v40, %v10462_v41  ;;  %v11585_v41 = vld [vmem:[%s13965_s0 + $0xb0] sm:$0xff]  ;;  %v9157_v40 = vld [vmem:[%s13967_s5 + $0x88] sm:$0xff]  }
 0x4f0   :  { %v11574_v48 = vadd.f32 %v5734_v35, %v5405_v46  ;;  %v5512_v46 = vsel %vm5475_vm7, %v5509_v53, %v5511_v20  ;;  %v4861_v7 = vshrl.u32 %v11585_v41, 16  ;;  %v4864_v59 = vshll.u32 %v11585_v41, 16 }
 0x4f1   :  { %v5406_v50 = vadd.f32 %v5229_v19, %v4611_v58  ;;  %v8848_v58 = vunpack.c.l.bf16 %v9157_v40 }
 0x4f2   :  { %v5231_v62 = vpop.f32.mrf.mxu3  ;;  %v4863_v38 = vrot.slane %v4861_v7, 2  ;;  %v5513_v7 = vrot.slane %v11561_v37, 3 }
 0x4f6   :  { %v4436_v39 = vpop.f32.mrf.mxu2 }
 0x4f7   :  { %v5737_v15 = vpop.f32.mrf.mxu0  ;;  %v4612_v19 = vadd.f32 %v4436_v39, %v10477_v54  ;;  %8551 = vmatmul.msk.bf16.gmra.mxu3 %vm642_vm2, %v4859_v63  ;;  %v8849_v54 = vunpack.c.h.bf16 %v9157_v40 }
 0x4f8   :  { %v11589_v31 = vadd.f32 %v5737_v15, %v5406_v50  ;;  %v4866_v50 = vrot.slane %v4864_v59, 3 }
 0x4f9   :  { %v5407_v35 = vadd.f32 %v5231_v62, %v4612_v19  ;;  %v9310_v13 = vpack.i.bf16 %v8849_v54, %v8848_v58  ;;  %v9159_v62 = vld [vmem:[%s13967_s5 + $0x98] sm:$0xff]   ;;  %v4212_v58 = vrot.slane %v11585_v41, 2 }
 0x4fa   :  { %14445 = vst [vmem:[#allocation88_spill] sm:$0xff] %v11589_v31  ;;  %8592 = vmatmul.msk.bf16.gmra.mxu0 %vm642_vm2, %v5512_v46  ;;  %v5234_v53 = vpop.f32.mrf.mxu3  ;;  %v4867_v39 = vor.u32 %v4866_v50, %v4863_v38  ;;  %v8856_v46 = vunpack.c.l.bf16 %v9159_v62  ;;  %v8857_v19 = vunpack.c.h.bf16 %v9159_v62 }
 0x4fb   :  { %8509 = vmatmul.msk.bf16.gmra.mxu2 %vm642_vm2, %v4211_v27  ;;  %9311 = vperm.xlu2 %9244, %v9310_v13   ;;  %v4213_v37 = vsel %vm3382_vm4, %v4210_v5, %v4212_v58 }
 0x4fc   :  { %v9320_v59 = vpack.i.bf16 %v8857_v19, %v8856_v46  ;;  %v4868_v40 = vsel %vm4680_vm6, %v4858_v16, %v4867_v39 }
 0x4fe   :  { %v4439_v29 = vpop.f32.mrf.mxu2  ;;  %9321 = vperm.xlu1 %9233, %v9320_v59  }
 0x4ff   :  { %v5739_v28 = vpop.f32.mrf.mxu0  ;;  %v4613_v9 = vadd.f32 %v4439_v29, %v10491_v49  ;;  %v11612_v49 = vld [vmem:[%s13965_s0 + $0xb8] sm:$0xff] }
 0x500   :  { %v11601_v63 = vadd.f32 %v5739_v28, %v5407_v35  ;;  %v4870_v16 = vshrl.u32 %v11612_v49, 16  ;;  %v4873_v13 = vshll.u32 %v11612_v49, 16 }
 0x501   :  { %v5408_v15 = vadd.f32 %v5234_v53, %v4613_v9  ;;  %v5514_v53 = vsel %vm5475_vm7, %v5511_v20, %v5513_v7 }
 0x502   :  { %v5236_v27 = vpop.f32.mrf.mxu3  ;;  %v4872_v9 = vrot.slane %v4870_v16, 2  ;;  %v4875_v20 = vrot.slane %v4873_v13, 3 }
 0x504   :  { %v4876_v19 = vor.u32 %v4875_v20, %v4872_v9 }
 0x506   :  { %v4441_v35 = vpop.f32.mrf.mxu2 }
 0x507   :  { %v5742_v54 = vpop.f32.mrf.mxu0  ;;  %v4614_v38 = vadd.f32 %v4441_v35, %v10506_v47  ;;  %8552 = vmatmul.msk.bf16.gmra.mxu3 %vm642_vm2, %v4868_v40  ;;  %v5515_v40 = vrot.slane %v11585_v41, 3  ;;  %v4877_v35 = vsel %vm4680_vm6, %v4867_v39, %v4876_v19 }
 0x508   :  { %v11616_v50 = vadd.f32 %v5742_v54, %v5408_v15  ;;  %v11633_v54 = vld [vmem:[%s13965_s0 + $0xc0] sm:$0xff] }
 0x509   :  { %v5409_v29 = vadd.f32 %v5236_v27, %v4614_v38  ;;  %v4214_v27 = vrot.slane %v11612_v49, 2  ;;  %v4879_v39 = vshrl.u32 %v11633_v54, 16  ;;  %v4882_v13 = vshll.u32 %v11633_v54, 16 }
 0x50a   :  { %14446 = vst [vmem:[#allocation89_spill] sm:$0xff] %v11616_v50  ;;  %8593 = vmatmul.msk.bf16.gmra.mxu0 %vm642_vm2, %v5514_v53  ;;  %v5239_v28 = vpop.f32.mrf.mxu3 }
 0x50b   :  { %8510 = vmatmul.msk.bf16.gmra.mxu2 %vm642_vm2, %v4213_v37  ;;  %v4215_v41 = vsel %vm3382_vm4, %v4212_v58, %v4214_v27  ;;  %v4881_v9 = vrot.slane %v4879_v39, 2  ;;  %v9161_v58 = vld [vmem:[%s13967_s5 + $0xa8] sm:$0xff]  }
 0x50c   :  { %v11659_v39 = vld [vmem:[%s13965_s0 + $0xc8] sm:$0xff] }
 0x50e   :  { %v4444_v62 = vpop.f32.mrf.mxu2 }
 0x50f   :  { %v5744_v47 = vpop.f32.mrf.mxu0  ;;  %v4615_v15 = vadd.f32 %v4444_v62, %v10520_v11  ;;  %v5516_v11 = vsel %vm5475_vm7, %v5513_v7, %v5515_v40  ;;  %v4884_v7 = vrot.slane %v4882_v13, 3 }
 0x510   :  { %v11625_v46 = vadd.f32 %v5744_v47, %v5409_v29 }
 0x511   :  { %v5410_v5 = vadd.f32 %v5239_v28, %v4615_v15  ;;  %v4885_v15 = vor.u32 %v4884_v7, %v4881_v9  ;;  %v4888_v7 = vshrl.u32 %v11659_v39, 16 }
 0x512   :  { %14447 = vst [vmem:[#allocation90_spill] sm:$0xff] %v11625_v46  ;;  %v5241_v59 = vpop.f32.mrf.mxu3 }
 0x516   :  { %v4446_v53 = vpop.f32.mrf.mxu2 }
 0x517   :  { %v5747_v38 = vpop.f32.mrf.mxu0  ;;  %v4616_v37 = vadd.f32 %v4446_v53, %v10535_v42  ;;  %8553 = vmatmul.msk.bf16.gmra.mxu3 %vm642_vm2, %v4877_v35  ;;  %v8864_v35 = vunpack.c.l.bf16 %v9161_v58  ;;  %v8865_v53 = vunpack.c.h.bf16 %v9161_v58 }
 0x518   :  { %v11637_v16 = vadd.f32 %v5747_v38, %v5410_v5  ;;  %v5517_v38 = vrot.slane %v11612_v49, 3 }
 0x519   :  { %v5411_v29 = vadd.f32 %v5241_v59, %v4616_v37  ;;  %v9330_v37 = vpack.i.bf16 %v8865_v53, %v8864_v35  ;;  %v14453_v35 = vld [vmem:[#allocation57_spill] sm:$0xff] }
 0x51a   :  { %14448 = vst [vmem:[#allocation91_spill] sm:$0xff] %v11637_v16  ;;  %8594 = vmatmul.msk.bf16.gmra.mxu0 %vm642_vm2, %v5516_v11  ;;  %v5244_v28 = vpop.f32.mrf.mxu3  ;;  %v11652_v11 = vpop.f32.mrf.mxu1 }
 0x51b   :  { %8511 = vmatmul.msk.bf16.gmra.mxu2 %vm642_vm2, %v4215_v41  ;;  %14450 = vst [vmem:[#allocation93_spill] sm:$0xff] %v11652_v11  ;;  %v4886_v41 = vsel %vm4680_vm6, %v4876_v19, %v4885_v15  ;;  %9331 = vperm.xlu0 %9222, %v9330_v37  }
 0x51e   :  { %v4449_v20 = vpop.f32.mrf.mxu2 }
 0x51f   :  { %v5749_v42 = vpop.f32.mrf.mxu0  ;;  %v4617_v62 = vadd.f32 %v4449_v20, %v10549_v26  ;;  %v4216_v26 = vrot.slane %v11633_v54, 2  ;;  %v4891_v20 = vshll.u32 %v11659_v39, 16 }
 0x520   :  { %v11646_v47 = vadd.f32 %v5749_v42, %v5411_v29  ;;  %v9160_v42 = vld [vmem:[%s13967_s5 + $0xa0] sm:$0xff]  }
 0x521   :  { %v5412_v5 = vadd.f32 %v5244_v28, %v4617_v62  ;;  %v5518_v28 = vsel %vm5475_vm7, %v5515_v40, %v5517_v38  ;;  %v4217_v19 = vsel %vm3382_vm4, %v4214_v27, %v4216_v26  ;;  %v8860_v58 = vunpack.c.l.bf16 %v9160_v42 }
 0x522   :  { %14449 = vst [vmem:[#allocation92_spill] sm:$0xff] %v11646_v47  ;;  %v5246_v59 = vpop.f32.mrf.mxu3  ;;  %v4890_v27 = vrot.slane %v4888_v7, 2  ;;  %v4893_v53 = vrot.slane %v4891_v20, 3  ;;  %v5519_v7 = vrot.slane %v11633_v54, 3 }
 0x526   :  { %v4451_v13 = vpop.f32.mrf.mxu2 }
 0x527   :  { %v5752_v29 = vpop.f32.mrf.mxu0  ;;  %v4618_v9 = vadd.f32 %v4451_v13, %v10564_v60  ;;  %8554 = vmatmul.msk.bf16.gmra.mxu3 %vm642_vm2, %v4886_v41  ;;  %v11674_v60 = vpop.f32.mrf.mxu1  ;;  %8628 = vmatmul.msk.bf16.gmra.mxu1 %vm642_vm2, %v14453_v35 }
 0x528   :  { %v11663_v49 = vadd.f32 %v5752_v29, %v5412_v5  ;;  %14452 = vst [vmem:[#allocation95_spill] sm:$0xff] %v11674_v60  ;;  %v8861_v5 = vunpack.c.h.bf16 %v9160_v42 }
 0x529   :  { %v5413_v62 = vadd.f32 %v5246_v59, %v4618_v9  ;;  %v4894_v59 = vor.u32 %v4893_v53, %v4890_v27  ;;  %v5520_v27 = vsel %vm5475_vm7, %v5517_v38, %v5519_v7  ;;  %v14458_v38 = vld [vmem:[#allocation58_spill] sm:$0xff] }
 0x52a   :  { %14451 = vst [vmem:[#allocation94_spill] sm:$0xff] %v11663_v49  ;;  %8595 = vmatmul.msk.bf16.gmra.mxu0 %vm642_vm2, %v5518_v28  ;;  %v5249_v40 = vpop.f32.mrf.mxu3  ;;  %v9325_v37 = vpack.i.bf16 %v8861_v5, %v8860_v58  ;;  %v9162_v28 = vld [vmem:[%s13967_s5 + $0xb0] sm:$0xff]  }
 0x52b   :  { %8512 = vmatmul.msk.bf16.gmra.mxu2 %vm642_vm2, %v4217_v19  ;;  %v8868_v19 = vunpack.c.l.bf16 %v9162_v28  ;;  %v8869_v42 = vunpack.c.h.bf16 %v9162_v28  ;;  %v4895_v5 = vsel %vm4680_vm6, %v4885_v15, %v4894_v59 }
 0x52c   :  { %9326 = vperm.xlu2 %9244, %v9325_v37  }
 0x52d   :  { %v9335_v58 = vpack.i.bf16 %v8869_v42, %v8868_v19 }
 0x52e   :  { %v4454_v41 = vpop.f32.mrf.mxu2 }
 0x52f   :  { %v5754_v13 = vpop.f32.mrf.mxu0  ;;  %v4619_v29 = vadd.f32 %v4454_v41, %v10578_v12  ;;  %v11685_v20 = vpop.f32.mrf.mxu1  ;;  %v4218_v12 = vrot.slane %v11659_v39, 2  ;;  %9336 = vperm.xlu1 %9233, %v9335_v58  }
 0x530   :  { %v11679_v11 = vadd.f32 %v5754_v13, %v5413_v62  ;;  %14455 = vst [vmem:[#allocation96_spill] sm:$0xff] %v11685_v20  ;;  %v11692_v62 = vld [vmem:[%s13965_s0 + $0xd0] sm:$0xff] }
 0x531   :  { %v5414_v9 = vadd.f32 %v5249_v40, %v4619_v29  ;;  %v4219_v15 = vsel %vm3382_vm4, %v4216_v26, %v4218_v12  ;;  %v4897_v37 = vshrl.u32 %v11692_v62, 16  ;;  %v4900_v41 = vshll.u32 %v11692_v62, 16 }
 0x532   :  { %14454 = vst [vmem:[#allocation57_spill] sm:$0xff] %v11679_v11  ;;  %v5251_v60 = vpop.f32.mrf.mxu3 }
 0x536   :  { %v4456_v35 = vpop.f32.mrf.mxu2 }
 0x537   :  { %v5757_v40 = vpop.f32.mrf.mxu0  ;;  %v4620_v53 = vadd.f32 %v4456_v35, %v10593_v51  ;;  %8555 = vmatmul.msk.bf16.gmra.mxu3 %vm642_vm2, %v4895_v5  ;;  %v11704_v28 = vpop.f32.mrf.mxu1  ;;  %8629 = vmatmul.msk.bf16.gmra.mxu1 %vm642_vm2, %v14458_v38  ;;  %v4899_v51 = vrot.slane %v4897_v37, 2  ;;  %v11719_v37 = vld [vmem:[%s13965_s0 + $0xd8] sm:$0xff] }
 0x538   :  { %v11696_v54 = vadd.f32 %v5757_v40, %v5414_v9  ;;  %14457 = vst [vmem:[#allocation98_spill] sm:$0xff] %v11704_v28  ;;  %v4902_v9 = vrot.slane %v4900_v41, 3 }
 0x539   :  { %v5415_v13 = vadd.f32 %v5251_v60, %v4620_v53  ;;  %v5521_v60 = vrot.slane %v11659_v39, 3 }
 0x53a   :  { %14456 = vst [vmem:[#allocation97_spill] sm:$0xff] %v11696_v54  ;;  %8596 = vmatmul.msk.bf16.gmra.mxu0 %vm642_vm2, %v5520_v27  ;;  %v5254_v29 = vpop.f32.mrf.mxu3  ;;  %v4903_v5 = vor.u32 %v4902_v9, %v4899_v51  ;;  %v4909_v51 = vshll.u32 %v11719_v37, 16 }
 0x53b   :  { %8513 = vmatmul.msk.bf16.gmra.mxu2 %vm642_vm2, %v4219_v15  ;;  %v4220_v15 = vrot.slane %v11692_v62, 2 }
 0x53c   :  { %v4904_v53 = vsel %vm4680_vm6, %v4894_v59, %v4903_v5  ;;  %v4906_v59 = vshrl.u32 %v11719_v37, 16 }
 0x53d   :  { %v4221_v39 = vsel %vm3382_vm4, %v4218_v12, %v4220_v15 }
 0x53e   :  { %v4459_v19 = vpop.f32.mrf.mxu2 }
 0x53f   :  { %v5759_v42 = vpop.f32.mrf.mxu0  ;;  %v4621_v26 = vadd.f32 %v4459_v19, %v10607_v14  ;;  %v11712_v27 = vpop.f32.mrf.mxu1 }
 0x540   :  { %v11709_v58 = vadd.f32 %v5759_v42, %v5415_v13  ;;  %14460 = vst [vmem:[#allocation99_spill] sm:$0xff] %v11712_v27  ;;  %v5522_v13 = vsel %vm5475_vm7, %v5519_v7, %v5521_v60  ;;  %v14463_v7 = vld [vmem:[#allocation59_spill] sm:$0xff]  ;;  %v5523_v27 = vrot.slane %v11692_v62, 3 }
 0x541   :  { %v5416_v35 = vadd.f32 %v5254_v29, %v4621_v26  ;;  %v4911_v26 = vrot.slane %v4909_v51, 3 }
 0x542   :  { %14459 = vst [vmem:[#allocation58_spill] sm:$0xff] %v11709_v58  ;;  %v5256_v40 = vpop.f32.mrf.mxu3 }
 0x546   :  { %v4461_v41 = vpop.f32.mrf.mxu2 }
 0x547   :  { %v5762_v14 = vpop.f32.mrf.mxu0  ;;  %v4622_v29 = vadd.f32 %v4461_v41, %v10622_v18  ;;  %8556 = vmatmul.msk.bf16.gmra.mxu3 %vm642_vm2, %v4904_v53  ;;  %v11731_v42 = vpop.f32.mrf.mxu1  ;;  %8630 = vmatmul.msk.bf16.gmra.mxu1 %vm642_vm2, %v14463_v7  ;;  %v4908_v18 = vrot.slane %v4906_v59, 2 }
 0x548   :  { %v11723_v38 = vadd.f32 %v5762_v14, %v5416_v35  ;;  %14462 = vst [vmem:[#allocation101_spill] sm:$0xff] %v11731_v42 }
 0x549   :  { %v5417_v9 = vadd.f32 %v5256_v40, %v4622_v29  ;;  %v4912_v14 = vor.u32 %v4911_v26, %v4908_v18  ;;  %v9164_v40 = vld [vmem:[%s13967_s5 + $0xc0] sm:$0xff]   ;;  %v5524_v26 = vsel %vm5475_vm7, %v5521_v60, %v5523_v27 }
 0x54a   :  { %14461 = vst [vmem:[#allocation100_spill] sm:$0xff] %v11723_v38  ;;  %8597 = vmatmul.msk.bf16.gmra.mxu0 %vm642_vm2, %v5522_v13  ;;  %v5259_v19 = vpop.f32.mrf.mxu3  ;;  %v8876_v29 = vunpack.c.l.bf16 %v9164_v40 }
 0x54b   :  { %8514 = vmatmul.msk.bf16.gmra.mxu2 %vm642_vm2, %v4221_v39  ;;  %v8877_v39 = vunpack.c.h.bf16 %v9164_v40  ;;  %v4913_v51 = vsel %vm4680_vm6, %v4903_v5, %v4912_v14  ;;  %v9163_v40 = vld [vmem:[%s13967_s5 + $0xb8] sm:$0xff]  }
 0x54d   :  { %v9345_v59 = vpack.i.bf16 %v8877_v39, %v8876_v29  ;;  %v8872_v39 = vunpack.c.l.bf16 %v9163_v40 }
 0x54e   :  { %v4464_v35 = vpop.f32.mrf.mxu2 }
 0x54f   :  { %v5764_v53 = vpop.f32.mrf.mxu0  ;;  %v4623_v12 = vadd.f32 %v4464_v35, %v10636_v36  ;;  %v11742_v7 = vpop.f32.mrf.mxu1  ;;  %v4222_v36 = vrot.slane %v11719_v37, 2  ;;  %9346 = vperm.xlu0 %9222, %v9345_v59   ;;  %v14468_v59 = vld [vmem:[#allocation60_spill] sm:$0xff] }
 0x550   :  { %v11736_v41 = vadd.f32 %v5764_v53, %v5417_v9  ;;  %14465 = vst [vmem:[#allocation102_spill] sm:$0xff] %v11742_v7  ;;  %v11749_v9 = vld [vmem:[%s13965_s0 + $0xe0] sm:$0xff] }
 0x551   :  { %v5418_v13 = vadd.f32 %v5259_v19, %v4623_v12  ;;  %v4223_v5 = vsel %vm3382_vm4, %v4220_v15, %v4222_v36  ;;  %v4915_v53 = vshrl.u32 %v11749_v9, 16  ;;  %v4918_v12 = vshll.u32 %v11749_v9, 16 }
 0x552   :  { %14464 = vst [vmem:[#allocation59_spill] sm:$0xff] %v11736_v41  ;;  %v5261_v42 = vpop.f32.mrf.mxu3 }
 0x553   :  { %v4917_v15 = vrot.slane %v4915_v53, 2  ;;  %v5525_v53 = vrot.slane %v11719_v37, 3 }
 0x556   :  { %v4466_v18 = vpop.f32.mrf.mxu2 }
 0x557   :  { %v5767_v19 = vpop.f32.mrf.mxu0  ;;  %v4624_v35 = vadd.f32 %v4466_v18, %v10651_v6  ;;  %8557 = vmatmul.msk.bf16.gmra.mxu3 %vm642_vm2, %v4913_v51  ;;  %v11764_v6 = vpop.f32.mrf.mxu1  ;;  %8631 = vmatmul.msk.bf16.gmra.mxu1 %vm642_vm2, %v14468_v59  ;;  %v4920_v51 = vrot.slane %v4918_v12, 3 }
 0x558   :  { %v11753_v62 = vadd.f32 %v5767_v19, %v5418_v13  ;;  %14467 = vst [vmem:[#allocation104_spill] sm:$0xff] %v11764_v6  ;;  %v8873_v13 = vunpack.c.h.bf16 %v9163_v40 }
 0x559   :  { %v5419_v29 = vadd.f32 %v5261_v42, %v4624_v35  ;;  %v4921_v42 = vor.u32 %v4920_v51, %v4917_v15 }
 0x55a   :  { %14466 = vst [vmem:[#allocation103_spill] sm:$0xff] %v11753_v62  ;;  %8598 = vmatmul.msk.bf16.gmra.mxu0 %vm642_vm2, %v5524_v26  ;;  %v5264_v60 = vpop.f32.mrf.mxu3  ;;  %v9340_v18 = vpack.i.bf16 %v8873_v13, %v8872_v39  ;;  %v9165_v26 = vld [vmem:[%s13967_s5 + $0xc8] sm:$0xff]  }
 0x55b   :  { %8515 = vmatmul.msk.bf16.gmra.mxu2 %vm642_vm2, %v4223_v5  ;;  %v8880_v5 = vunpack.c.l.bf16 %v9165_v26  ;;  %v8881_v40 = vunpack.c.h.bf16 %v9165_v26  ;;  %v4922_v13 = vsel %vm4680_vm6, %v4912_v14, %v4921_v42 }
 0x55c   :  { %9341 = vperm.xlu2 %9244, %v9340_v18  }
 0x55d   :  { %v9350_v39 = vpack.i.bf16 %v8881_v40, %v8880_v5 }
 0x55e   :  { %v4469_v19 = vpop.f32.mrf.mxu2 }
 0x55f   :  { %v5769_v7 = vpop.f32.mrf.mxu0  ;;  %v4625_v28 = vadd.f32 %v4469_v19, %v10665_v4  ;;  %v11775_v12 = vpop.f32.mrf.mxu1  ;;  %v4224_v4 = vrot.slane %v11749_v9, 2  ;;  %9351 = vperm.xlu1 %9233, %v9350_v39  }
 0x560   :  { %v11769_v20 = vadd.f32 %v5769_v7, %v5419_v29  ;;  %14470 = vst [vmem:[#allocation105_spill] sm:$0xff] %v11775_v12  ;;  %v11782_v7 = vld [vmem:[%s13965_s0 + $0xe8] sm:$0xff] }
 0x561   :  { %v5420_v35 = vadd.f32 %v5264_v60, %v4625_v28  ;;  %v5526_v60 = vsel %vm5475_vm7, %v5523_v27, %v5525_v53  ;;  %v4225_v14 = vsel %vm3382_vm4, %v4222_v36, %v4224_v4  ;;  %v4924_v15 = vshrl.u32 %v11782_v7, 16  ;;  %v14473_v27 = vld [vmem:[#allocation61_spill] sm:$0xff] }
 0x562   :  { %14469 = vst [vmem:[#allocation60_spill] sm:$0xff] %v11769_v20  ;;  %v5266_v6 = vpop.f32.mrf.mxu3  ;;  %v4927_v51 = vshll.u32 %v11782_v7, 16 }
 0x566   :  { %v4471_v29 = vpop.f32.mrf.mxu2 }
 0x567   :  { %v5772_v28 = vpop.f32.mrf.mxu0  ;;  %v4626_v59 = vadd.f32 %v4471_v29, %v10680_v57  ;;  %8558 = vmatmul.msk.bf16.gmra.mxu3 %vm642_vm2, %v4922_v13  ;;  %v11794_v26 = vpop.f32.mrf.mxu1  ;;  %8632 = vmatmul.msk.bf16.gmra.mxu1 %vm642_vm2, %v14473_v27  ;;  %v4926_v57 = vrot.slane %v4924_v15, 2  ;;  %v11809_v15 = vld [vmem:[%s13965_s0 + $0xf0] sm:$0xff] }
 0x568   :  { %v11786_v37 = vadd.f32 %v5772_v28, %v5420_v35  ;;  %14472 = vst [vmem:[#allocation107_spill] sm:$0xff] %v11794_v26  ;;  %v4929_v35 = vrot.slane %v4927_v51, 3  ;;  %v5529_v26 = vrot.slane %v11782_v7, 3 }
 0x569   :  { %v5421_v18 = vadd.f32 %v5266_v6, %v4626_v59  ;;  %v5527_v6 = vrot.slane %v11749_v9, 3 }
 0x56a   :  { %14471 = vst [vmem:[#allocation106_spill] sm:$0xff] %v11786_v37  ;;  %8599 = vmatmul.msk.bf16.gmra.mxu0 %vm642_vm2, %v5526_v60  ;;  %v5269_v19 = vpop.f32.mrf.mxu3  ;;  %v4930_v13 = vor.u32 %v4929_v35, %v4926_v57  ;;  %v4936_v57 = vshll.u32 %v11809_v15, 16 }
 0x56b   :  { %8516 = vmatmul.msk.bf16.gmra.mxu2 %vm642_vm2, %v4225_v14  ;;  %v4226_v14 = vrot.slane %v11782_v7, 2 }
 0x56c   :  { %v4931_v59 = vsel %vm4680_vm6, %v4921_v42, %v4930_v13  ;;  %v4933_v42 = vshrl.u32 %v11809_v15, 16 }
 0x56d   :  { %v4227_v9 = vsel %vm3382_vm4, %v4224_v4, %v4226_v14  ;;  %v14479_v4 = vld [vmem:[#allocation72_spill] sm:$0xff] }
 0x56e   :  { %v4474_v5 = vpop.f32.mrf.mxu2 }
 0x56f   :  { %v5774_v40 = vpop.f32.mrf.mxu0  ;;  %v4627_v36 = vadd.f32 %v4474_v5, %v10694_v10  ;;  %v11802_v60 = vpop.f32.mrf.mxu1 }
 0x570   :  { %v11799_v39 = vadd.f32 %v5774_v40, %v5421_v18  ;;  %14475 = vst [vmem:[#allocation108_spill] sm:$0xff] %v11802_v60  ;;  %v5528_v18 = vsel %vm5475_vm7, %v5525_v53, %v5527_v6  ;;  %v14478_v53 = vld [vmem:[#allocation62_spill] sm:$0xff] }
 0x571   :  { %v5422_v29 = vadd.f32 %v5269_v19, %v4627_v36  ;;  %v4938_v36 = vrot.slane %v4936_v57, 3 }
 0x572   :  { %14474 = vst [vmem:[#allocation61_spill] sm:$0xff] %v11799_v39  ;;  %v5271_v28 = vpop.f32.mrf.mxu3 }
 0x576   :  { %v4476_v51 = vpop.f32.mrf.mxu2 }
 0x577   :  { %v5777_v10 = vpop.f32.mrf.mxu0  ;;  %v4628_v19 = vadd.f32 %v4476_v51, %v10709_v17  ;;  %8559 = vmatmul.msk.bf16.gmra.mxu3 %vm642_vm2, %v4931_v59  ;;  %v11821_v40 = vpop.f32.mrf.mxu1  ;;  %8633 = vmatmul.msk.bf16.gmra.mxu1 %vm642_vm2, %v14478_v53  ;;  %v4935_v17 = vrot.slane %v4933_v42, 2 }
 0x578   :  { %v11813_v27 = vadd.f32 %v5777_v10, %v5422_v29  ;;  %14477 = vst [vmem:[#allocation110_spill] sm:$0xff] %v11821_v40 }
 0x579   :  { %v5423_v35 = vadd.f32 %v5271_v28, %v4628_v19  ;;  %v4939_v60 = vor.u32 %v4938_v36, %v4935_v17  ;;  %v9167_v28 = vld [vmem:[%s13967_s5 + $0xd8] sm:$0xff]   ;;  %v5530_v36 = vsel %vm5475_vm7, %v5527_v6, %v5529_v26 }
 0x57a   :  { %14476 = vst [vmem:[#allocation109_spill] sm:$0xff] %v11813_v27  ;;  %8600 = vmatmul.msk.bf16.gmra.mxu0 %vm642_vm2, %v5528_v18  ;;  %v5274_v5 = vpop.f32.mrf.mxu3  ;;  %v8888_v19 = vunpack.c.l.bf16 %v9167_v28 }
 0x57b   :  { %8517 = vmatmul.msk.bf16.gmra.mxu2 %vm642_vm2, %v4227_v9  ;;  %v8889_v9 = vunpack.c.h.bf16 %v9167_v28  ;;  %v4940_v57 = vsel %vm4680_vm6, %v4930_v13, %v4939_v60 }
 0x57d   :  { %v9360_v42 = vpack.i.bf16 %v8889_v9, %v8888_v19  ;;  %v9166_v19 = vld [vmem:[%s13967_s5 + $0xd0] sm:$0xff]  }
 0x57e   :  { %v4479_v29 = vpop.f32.mrf.mxu2 }
 0x57f   :  { %v5779_v59 = vpop.f32.mrf.mxu0  ;;  %v4629_v51 = vadd.f32 %v4479_v29, %v14479_v4  ;;  %v11832_v53 = vpop.f32.mrf.mxu1  ;;  %v4228_v29 = vrot.slane %v11809_v15, 2  ;;  %9361 = vperm.xlu0 %9222, %v9360_v42   ;;  %v8884_v42 = vunpack.c.l.bf16 %v9166_v19 }
 0x580   :  { %v11826_v10 = vadd.f32 %v5779_v59, %v5423_v35  ;;  %14481 = vst [vmem:[#allocation72_spill] sm:$0xff] %v11832_v53  ;;  %v11839_v35 = vld [vmem:[%s13965_s0 + $0xf8] sm:$0xff] }
 0x581   :  { %v5424_v18 = vadd.f32 %v5274_v5, %v4629_v51  ;;  %v14482_v59 = vld [vmem:[#allocation73_spill] sm:$0xff]  ;;  %v4229_v13 = vsel %vm3382_vm4, %v4226_v14, %v4228_v29  ;;  %v4942_v51 = vshrl.u32 %v11839_v35, 16  ;;  %v4945_v28 = vshll.u32 %v11839_v35, 16 }
 0x582   :  { %14480 = vst [vmem:[#allocation62_spill] sm:$0xff] %v11826_v10  ;;  %v5276_v40 = vpop.f32.mrf.mxu3 }
 0x583   :  { %v4944_v14 = vrot.slane %v4942_v51, 2  ;;  %v5531_v51 = vrot.slane %v11809_v15, 3 }
 0x586   :  { %v4481_v17 = vpop.f32.mrf.mxu2 }
 0x587   :  { %v5782_v5 = vpop.f32.mrf.mxu0  ;;  %v4630_v4 = vadd.f32 %v4481_v17, %v14482_v59  ;;  %8560 = vmatmul.msk.bf16.gmra.mxu3 %vm642_vm2, %v4940_v57  ;;  %v8885_v57 = vunpack.c.h.bf16 %v9166_v19  ;;  %v14485_v17 = vld [vmem:[#allocation63_spill] sm:$0xff] }
 0x588   :  { %v11843_v7 = vadd.f32 %v5782_v5, %v5424_v18  ;;  %v11854_v18 = vpop.f32.mrf.mxu1  ;;  %8634 = vmatmul.msk.bf16.gmra.mxu1 %vm642_vm2, %v14485_v17  ;;  %v4947_v5 = vrot.slane %v4945_v28, 3  ;;  %v5532_v17 = vsel %vm5475_vm7, %v5529_v26, %v5531_v51 }
 0x589   :  { %v5425_v9 = vadd.f32 %v5276_v40, %v4630_v4  ;;  %14484 = vst [vmem:[#allocation111_spill] sm:$0xff] %v11854_v18  ;;  %v9355_v59 = vpack.i.bf16 %v8885_v57, %v8884_v42 }
 0x58a   :  { %14483 = vst [vmem:[#allocation73_spill] sm:$0xff] %v11843_v7  ;;  %8601 = vmatmul.msk.bf16.gmra.mxu0 %vm642_vm2, %v5530_v36  ;;  %v5279_v6 = vpop.f32.mrf.mxu3  ;;  %v4948_v40 = vor.u32 %v4947_v5, %v4944_v14  ;;  %v9168_v36 = vld [vmem:[%s13967_s5 + $0xe0] sm:$0xff]  }
 0x58b   :  { %8518 = vmatmul.msk.bf16.gmra.mxu2 %vm642_vm2, %v4229_v13  ;;  %9356 = vperm.xlu2 %9244, %v9355_v59   ;;  %v8892_v13 = vunpack.c.l.bf16 %v9168_v36  ;;  %v8893_v19 = vunpack.c.h.bf16 %v9168_v36  ;;  %v14489_v14 = vld [vmem:[#allocation50_spill] sm:$0xff] }
 0x58c   :  { %v4949_v57 = vsel %vm4680_vm6, %v4939_v60, %v4948_v40 }
 0x58d   :  { %v9365_v42 = vpack.i.bf16 %v8893_v19, %v8892_v13 }
 0x58e   :  { %v4484_v53 = vpop.f32.mrf.mxu2 }
 0x58f   :  { %v5784_v12 = vpop.f32.mrf.mxu0  ;;  %v4631_v33 = vadd.f32 %v4484_v53, %v14486_v30  ;;  %v4230_v30 = vrot.slane %v11839_v35, 2  ;;  %9366 = vperm.xlu1 %9233, %v9365_v42  }
 0x590   :  { %v11859_v61 = vadd.f32 %v5784_v12, %v5425_v9  ;;  %v11865_v28 = vpop.f32.mrf.mxu1  ;;  %v11872_v12 = vld [vmem:[%s13965_s0 + $0x100] sm:$0xff] }
 0x591   :  { %v5426_v4 = vadd.f32 %v5279_v6, %v4631_v33  ;;  %14488 = vst [vmem:[#allocation75_spill] sm:$0xff] %v11865_v28  ;;  %v9170_v33 = vld [vmem:[%s13967_s5 + $0xf0] sm:$0xff]   ;;  %v4231_v36 = vsel %vm3382_vm4, %v4228_v29, %v4230_v30  ;;  %v4951_v13 = vshrl.u32 %v11872_v12, 16  ;;  %v4954_v19 = vshll.u32 %v11872_v12, 16  ;;  %v9171_v29 = vld [vmem:[%s13967_s5 + $0xf8] sm:$0xff]  }
 0x592   :  { %14487 = vst [vmem:[#allocation63_spill] sm:$0xff] %v11859_v61  ;;  %v5281_v18 = vpop.f32.mrf.mxu3  ;;  %v8900_v53 = vunpack.c.l.bf16 %v9170_v33  ;;  %v8901_v9 = vunpack.c.h.bf16 %v9170_v33  ;;  %v5533_v61 = vrot.slane %v11839_v35, 3 }
 0x594   :  { %v9375_v59 = vpack.i.bf16 %v8901_v9, %v8900_v53  ;;  %v4956_v53 = vrot.slane %v4954_v19, 3  ;;  %v9173_v9 = vld [vmem:[%s13967_s5 + $0x108] sm:$0xff]  }
 0x596   :  { %v4486_v15 = vpop.f32.mrf.mxu2  ;;  %9376 = vperm.xlu0 %9222, %v9375_v59   ;;  %v14493_v59 = vld [vmem:[#allocation51_spill] sm:$0xff] }
 0x597   :  { %v5787_v6 = vpop.f32.mrf.mxu0  ;;  %v4632_v60 = vadd.f32 %v4486_v15, %v14489_v14  ;;  %8561 = vmatmul.msk.bf16.gmra.mxu3 %vm642_vm2, %v4949_v57  ;;  %v4953_v57 = vrot.slane %v4951_v13, 2  ;;  %v8905_v15 = vunpack.c.h.bf16 %v9171_v29 }
 0x598   :  { %v11879_v5 = vadd.f32 %v5787_v6, %v5426_v4  ;;  %v11887_v26 = vpop.f32.mrf.mxu1  ;;  %v14492_v4 = vld [vmem:[#allocation64_spill] sm:$0xff]  ;;  %v8912_v6 = vunpack.c.l.bf16 %v9173_v9 }
 0x599   :  { %v5427_v42 = vadd.f32 %v5281_v18, %v4632_v60  ;;  %14491 = vst [vmem:[#allocation112_spill] sm:$0xff] %v11887_v26  ;;  %8635 = vmatmul.msk.bf16.gmra.mxu1 %vm642_vm2, %v14492_v4  ;;  %v8904_v18 = vunpack.c.l.bf16 %v9171_v29  ;;  %v4957_v4 = vor.u32 %v4956_v53, %v4953_v57  ;;  %v9176_v57 = vld [vmem:[%s13967_s5 + $0x120] sm:$0xff]  }
 0x59a   :  { %14490 = vst [vmem:[#allocation50_spill] sm:$0xff] %v11879_v5  ;;  %8602 = vmatmul.msk.bf16.gmra.mxu0 %vm642_vm2, %v5532_v17  ;;  %v5284_v33 = vpop.f32.mrf.mxu3  ;;  %v8913_v17 = vunpack.c.h.bf16 %v9173_v9  ;;  %v4232_v9 = vrot.slane %v11872_v12, 2 }
 0x59b   :  { %8519 = vmatmul.msk.bf16.gmra.mxu2 %vm642_vm2, %v4231_v36  ;;  %v9380_v13 = vpack.i.bf16 %v8905_v15, %v8904_v18  ;;  %v4958_v29 = vsel %vm4680_vm6, %v4948_v40, %v4957_v4  ;;  %v8924_v18 = vunpack.c.l.bf16 %v9176_v57  ;;  %v8925_v15 = vunpack.c.h.bf16 %v9176_v57 }
 0x59c   :  { %v9390_v19 = vpack.i.bf16 %v8913_v17, %v8912_v6  ;;  %v5534_v17 = vsel %vm5475_vm7, %v5531_v51, %v5533_v61 }
 0x59d   :  { %9381 = vperm.xlu1 %9233, %v9380_v13   ;;  %v9405_v13 = vpack.i.bf16 %v8925_v15, %v8924_v18 }
 0x59e   :  { %v4489_v14 = vpop.f32.mrf.mxu2  ;;  %9391 = vperm.xlu0 %9222, %v9390_v19   ;;  %v4233_v19 = vsel %vm3382_vm4, %v4230_v30, %v4232_v9  ;;  %v9177_v30 = vld [vmem:[%s13967_s5 + $0x128] sm:$0xff]  }
 0x59f   :  { %v5789_v60 = vpop.f32.mrf.mxu0  ;;  %v4633_v36 = vadd.f32 %v4489_v14, %v14493_v59  ;;  %v14496_v14 = vld [vmem:[#allocation2_spill] sm:$0xff]  ;;  %v8929_v18 = vunpack.c.h.bf16 %v9177_v30 }
 0x5a0   :  { %v11898_v26 = vadd.f32 %v5789_v60, %v5427_v42  ;;  %v11901_v7 = vpop.f32.mrf.mxu1  ;;  %v11908_v42 = vld [vmem:[%s13965_s0 + $0x108] sm:$0xff] }
 0x5a1   :  { %v5428_v28 = vadd.f32 %v5284_v33, %v4633_v36  ;;  %14495 = vst [vmem:[#allocation51_spill] sm:$0xff] %v11901_v7  ;;  %v9174_v33 = vld [vmem:[%s13967_s5 + $0x110] sm:$0xff]   ;;  %v4960_v7 = vshrl.u32 %v11908_v42, 16 }
 0x5a2   :  { %14494 = vst [vmem:[#allocation64_spill] sm:$0xff] %v11898_v26  ;;  %v5286_v5 = vpop.f32.mrf.mxu3  ;;  %v8916_v35 = vunpack.c.l.bf16 %v9174_v33  ;;  %v8917_v53 = vunpack.c.h.bf16 %v9174_v33  ;;  %v4963_v33 = vshll.u32 %v11908_v42, 16 }
 0x5a4   :  { %v9395_v36 = vpack.i.bf16 %v8917_v53, %v8916_v35  ;;  %v4965_v35 = vrot.slane %v4963_v33, 3  ;;  %v8928_v53 = vunpack.c.l.bf16 %v9177_v30 }
 0x5a6   :  { %v4491_v40 = vpop.f32.mrf.mxu2  ;;  %9396 = vperm.xlu1 %9233, %v9395_v36   ;;  %9406 = vperm.xlu0 %9222, %v9405_v13  }
 0x5a7   :  { %v5792_v6 = vpop.f32.mrf.mxu0  ;;  %v4634_v60 = vadd.f32 %v4491_v40, %v14496_v14  ;;  %8562 = vmatmul.msk.bf16.gmra.mxu3 %vm642_vm2, %v4958_v29  ;;  %v4962_v29 = vrot.slane %v4960_v7, 2  ;;  %v14500_v14 = vld [vmem:[#allocation3_spill] sm:$0xff]  ;;  %v9410_v7 = vpack.i.bf16 %v8929_v18, %v8928_v53 }
 0x5a8   :  { %v11918_v59 = vadd.f32 %v5792_v6, %v5428_v28  ;;  %v11926_v51 = vpop.f32.mrf.mxu1  ;;  %v14499_v28 = vld [vmem:[#allocation65_spill] sm:$0xff] }
 0x5a9   :  { %v5429_v57 = vadd.f32 %v5286_v5, %v4634_v60  ;;  %14498 = vst [vmem:[#allocation113_spill] sm:$0xff] %v11926_v51  ;;  %8636 = vmatmul.msk.bf16.gmra.mxu1 %vm642_vm2, %v14499_v28  ;;  %v9179_v5 = vld [vmem:[%s13967_s5 + $0x138] sm:$0xff]   ;;  %v5535_v51 = vrot.slane %v11872_v12, 3  ;;  %v6057_v12 = vld [vmem:[%s13967_s5 + $0x140] sm:$0xf] }
 0x5aa   :  { %14497 = vst [vmem:[#allocation2_spill] sm:$0xff] %v11918_v59  ;;  %8603 = vmatmul.msk.bf16.gmra.mxu0 %vm642_vm2, %v5534_v17  ;;  %v5289_v26 = vpop.f32.mrf.mxu3  ;;  %v8936_v15 = vunpack.c.l.bf16 %v9179_v5  ;;  %v8937_v40 = vunpack.c.h.bf16 %v9179_v5  ;;  %v4234_v5 = vrot.slane %v11908_v42, 2 }
 0x5ab   :  { %8520 = vmatmul.msk.bf16.gmra.mxu2 %vm642_vm2, %v4233_v19  ;;  %v4966_v19 = vor.u32 %v4965_v35, %v4962_v29  ;;  %v14503_v29 = vld [vmem:[#allocation4_spill] sm:$0xff] }
 0x5ac   :  { %v9420_v13 = vpack.i.bf16 %v8937_v40, %v8936_v15  ;;  %v4235_v40 = vsel %vm3382_vm4, %v4232_v9, %v4234_v5  ;;  %v14506_v9 = vld [vmem:[#allocation66_spill] sm:$0xff] }
 0x5ad   :  { %v4967_v30 = vsel %vm4680_vm6, %v4957_v4, %v4966_v19  ;;  %v6138_v4 = vunpack.c.l.bf16 %v6057_v12 }
 0x5ae   :  { %v4494_v6 = vpop.f32.mrf.mxu2  ;;  %9411 = vperm.xlu1 %9233, %v9410_v7   ;;  %9421 = vperm.xlu0 %9222, %v9420_v13  }
 0x5af   :  { %v5794_v17 = vpop.f32.mrf.mxu0  ;;  %v4635_v60 = vadd.f32 %v4494_v6, %v14500_v14 }
 0x5b0   :  { %v11937_v36 = vadd.f32 %v5794_v17, %v5429_v57  ;;  %v11940_v59 = vpop.f32.mrf.mxu1  ;;  %v11947_v57 = vld [vmem:[%s13965_s0 + $0x110] sm:$0xff] }
 0x5b1   :  { %v5430_v33 = vadd.f32 %v5289_v26, %v4635_v60  ;;  %14502 = vst [vmem:[#allocation3_spill] sm:$0xff] %v11940_v59  ;;  %v5536_v26 = vsel %vm5475_vm7, %v5533_v61, %v5535_v51  ;;  %v4969_v6 = vshrl.u32 %v11947_v57, 16  ;;  %v4972_v17 = vshll.u32 %v11947_v57, 16  ;;  %v9169_v61 = vld [vmem:[%s13967_s5 + $0xe8] sm:$0xff]   ;;  %v14507_v59 = vld [vmem:[#allocation5_spill] sm:$0xff] }
 0x5b2   :  { %14501 = vst [vmem:[#allocation65_spill] sm:$0xff] %v11937_v36  ;;  %v5291_v28 = vpop.f32.mrf.mxu3  ;;  %v8896_v60 = vunpack.c.l.bf16 %v9169_v61 }
 0x5b6   :  { %v4496_v53 = vpop.f32.mrf.mxu2  ;;  %6541 = vperm.xlu1 %9233, %v6138_v4  }
 0x5b7   :  { %v5797_v18 = vpop.f32.mrf.mxu0  ;;  %v4636_v35 = vadd.f32 %v4496_v53, %v14503_v29  ;;  %8563 = vmatmul.msk.bf16.gmra.mxu3 %vm642_vm2, %v4967_v30  ;;  %v4971_v30 = vrot.slane %v4969_v6, 2  ;;  %v4974_v53 = vrot.slane %v4972_v17, 3  ;;  %v4236_v6 = vrot.slane %v11947_v57, 2  ;;  %v11980_v17 = vld [vmem:[%s13965_s0 + $0x118] sm:$0xff] }
 0x5b8   :  { %v11954_v15 = vadd.f32 %v5797_v18, %v5430_v33  ;;  %v11965_v13 = vpop.f32.mrf.mxu1  ;;  %v8897_v33 = vunpack.c.h.bf16 %v9169_v61 }
 0x5b9   :  { %v5431_v14 = vadd.f32 %v5291_v28, %v4636_v35  ;;  %14505 = vst [vmem:[#allocation114_spill] sm:$0xff] %v11965_v13  ;;  %8637 = vmatmul.msk.bf16.gmra.mxu1 %vm642_vm2, %v14506_v9  ;;  %v4975_v28 = vor.u32 %v4974_v53, %v4971_v30  ;;  %v4237_v53 = vsel %vm3382_vm4, %v4234_v5, %v4236_v6  ;;  %v9175_v5 = vld [vmem:[%s13967_s5 + $0x118] sm:$0xff]  }
 0x5ba   :  { %14504 = vst [vmem:[#allocation4_spill] sm:$0xff] %v11954_v15  ;;  %8604 = vmatmul.msk.bf16.gmra.mxu0 %vm642_vm2, %v5536_v26  ;;  %v5294_v7 = vpop.f32.mrf.mxu3  ;;  %v9370_v18 = vpack.i.bf16 %v8897_v33, %v8896_v60  ;;  %v14510_v33 = vld [vmem:[#allocation6_spill] sm:$0xff] }
 0x5bb   :  { %8521 = vmatmul.msk.bf16.gmra.mxu2 %vm642_vm2, %v4235_v40  ;;  %v5537_v40 = vrot.slane %v11908_v42, 3  ;;  %v4976_v61 = vsel %vm4680_vm6, %v4966_v19, %v4975_v28 }
 0x5bc   :  { %9371 = vperm.xlu2 %9244, %v9370_v18   ;;  %v4978_v18 = vshrl.u32 %v11980_v17, 16 }
 0x5bd   :  { %v5538_v42 = vsel %vm5475_vm7, %v5535_v51, %v5537_v40 }
 0x5be   :  { %v4499_v12 = vpop.f32.mrf.mxu2 }
 0x5bf   :  { %v5799_v29 = vpop.f32.mrf.mxu0  ;;  %v4637_v15 = vadd.f32 %v4499_v12, %v14507_v59  ;;  %v9172_v59 = vld [vmem:[%s13967_s5 + $0x100] sm:$0xff]   ;;  %v4981_v12 = vshll.u32 %v11980_v17, 16 }
 0x5c0   :  { %v11970_v26 = vadd.f32 %v5799_v29, %v5431_v14  ;;  %v11973_v13 = vpop.f32.mrf.mxu1  ;;  %v8908_v14 = vunpack.c.l.bf16 %v9172_v59 }
 0x5c1   :  { %v5432_v35 = vadd.f32 %v5294_v7, %v4637_v15  ;;  %14509 = vst [vmem:[#allocation5_spill] sm:$0xff] %v11973_v13  ;;  %v8909_v15 = vunpack.c.h.bf16 %v9172_v59 }
 0x5c2   :  { %14508 = vst [vmem:[#allocation66_spill] sm:$0xff] %v11970_v26  ;;  %v5296_v4 = vpop.f32.mrf.mxu3 }
 0x5c3   :  { %v9385_v30 = vpack.i.bf16 %v8909_v15, %v8908_v14  ;;  %v4983_v14 = vrot.slane %v4981_v12, 3  ;;  %v8920_v15 = vunpack.c.l.bf16 %v9175_v5 }
 0x5c5   :  { %9386 = vperm.xlu2 %9244, %v9385_v30  }
 0x5c6   :  { %v4501_v60 = vpop.f32.mrf.mxu2 }
 0x5c7   :  { %v5802_v7 = vpop.f32.mrf.mxu0  ;;  %v4638_v9 = vadd.f32 %v4501_v60, %v14510_v33  ;;  %8564 = vmatmul.msk.bf16.gmra.mxu3 %vm642_vm2, %v4976_v61  ;;  %v4980_v61 = vrot.slane %v4978_v18, 2  ;;  %v8921_v60 = vunpack.c.h.bf16 %v9175_v5  ;;  %v5539_v18 = vrot.slane %v11947_v57, 3  ;;  %v12013_v5 = vld [vmem:[%s13965_s0 + $0x120] sm:$0xff] }
 0x5c8   :  { %v11987_v19 = vadd.f32 %v5802_v7, %v5432_v35  ;;  %v11995_v51 = vpop.f32.mrf.mxu1  ;;  %v14513_v35 = vld [vmem:[#allocation67_spill] sm:$0xff] }
 0x5c9   :  { %v5433_v29 = vadd.f32 %v5296_v4, %v4638_v9  ;;  %14512 = vst [vmem:[#allocation115_spill] sm:$0xff] %v11995_v51  ;;  %8638 = vmatmul.msk.bf16.gmra.mxu1 %vm642_vm2, %v14513_v35  ;;  %v14514_v4 = vld [vmem:[#allocation7_spill] sm:$0xff]  ;;  %v9400_v30 = vpack.i.bf16 %v8921_v60, %v8920_v15  ;;  %v5540_v57 = vsel %vm5475_vm7, %v5537_v40, %v5539_v18  ;;  %v14517_v60 = vld [vmem:[#allocation8_spill] sm:$0xff] }
 0x5ca   :  { %14511 = vst [vmem:[#allocation6_spill] sm:$0xff] %v11987_v19  ;;  %8605 = vmatmul.msk.bf16.gmra.mxu0 %vm642_vm2, %v5538_v42  ;;  %v5299_v59 = vpop.f32.mrf.mxu3  ;;  %v4238_v19 = vrot.slane %v11980_v17, 2 }
 0x5cb   :  { %8522 = vmatmul.msk.bf16.gmra.mxu2 %vm642_vm2, %v4237_v53  ;;  %v4984_v53 = vor.u32 %v4983_v14, %v4980_v61 }
 0x5cd   :  { %9401 = vperm.xlu2 %9244, %v9400_v30   ;;  %v4985_v35 = vsel %vm4680_vm6, %v4975_v28, %v4984_v53  ;;  %v4990_v30 = vshll.u32 %v12013_v5, 16 }
 0x5ce   :  { %v4504_v7 = vpop.f32.mrf.mxu2 }
 0x5cf   :  { %v5804_v42 = vpop.f32.mrf.mxu0  ;;  %v4639_v33 = vadd.f32 %v4504_v7, %v14514_v4  ;;  %v4239_v4 = vsel %vm3382_vm4, %v4236_v6, %v4238_v19 }
 0x5d0   :  { %v12003_v9 = vadd.f32 %v5804_v42, %v5433_v29  ;;  %v12006_v12 = vpop.f32.mrf.mxu1  ;;  %v9178_v29 = vld [vmem:[%s13967_s5 + $0x130] sm:$0xff]  }
 0x5d1   :  { %v5434_v51 = vadd.f32 %v5299_v59, %v4639_v33  ;;  %14516 = vst [vmem:[#allocation7_spill] sm:$0xff] %v12006_v12  ;;  %v8932_v59 = vunpack.c.l.bf16 %v9178_v29  ;;  %v8933_v61 = vunpack.c.h.bf16 %v9178_v29  ;;  %v4987_v33 = vshrl.u32 %v12013_v5, 16 }
 0x5d2   :  { %14515 = vst [vmem:[#allocation67_spill] sm:$0xff] %v12003_v9  ;;  %v5301_v13 = vpop.f32.mrf.mxu3 }
 0x5d3   :  { %v9415_v42 = vpack.i.bf16 %v8933_v61, %v8932_v59  ;;  %v4992_v59 = vrot.slane %v4990_v30, 3 }
 0x5d5   :  { %9416 = vperm.xlu2 %9244, %v9415_v42  }
 0x5d6   :  { %v4506_v14 = vpop.f32.mrf.mxu2 }
 0x5d7   :  { %v5807_v15 = vpop.f32.mrf.mxu0  ;;  %v4640_v7 = vadd.f32 %v4506_v14, %v14517_v60  ;;  %8565 = vmatmul.msk.bf16.gmra.mxu3 %vm642_vm2, %v4985_v35  ;;  %v4989_v35 = vrot.slane %v4987_v33, 2  ;;  %v14521_v14 = vld [vmem:[#allocation9_spill] sm:$0xff]  ;;  %v12043_v33 = vld [vmem:[%s13965_s0 + $0x128] sm:$0xff] }
 0x5d8   :  { %v12020_v28 = vadd.f32 %v5807_v15, %v5434_v51  ;;  %v12028_v40 = vpop.f32.mrf.mxu1  ;;  %v14520_v51 = vld [vmem:[#allocation68_spill] sm:$0xff] }
 0x5d9   :  { %v5435_v29 = vadd.f32 %v5301_v13, %v4640_v7  ;;  %14519 = vst [vmem:[#allocation116_spill] sm:$0xff] %v12028_v40  ;;  %8639 = vmatmul.msk.bf16.gmra.mxu1 %vm642_vm2, %v14520_v51  ;;  %v5541_v7 = vrot.slane %v11980_v17, 3  ;;  %v4240_v40 = vrot.slane %v12013_v5, 2 }
 0x5da   :  { %14518 = vst [vmem:[#allocation8_spill] sm:$0xff] %v12020_v28  ;;  %8606 = vmatmul.msk.bf16.gmra.mxu0 %vm642_vm2, %v5540_v57  ;;  %v5304_v12 = vpop.f32.mrf.mxu3  ;;  %v4993_v28 = vor.u32 %v4992_v59, %v4989_v35  ;;  %v14524_v35 = vld [vmem:[#allocation10_spill] sm:$0xff] }
 0x5db   :  { %8523 = vmatmul.msk.bf16.gmra.mxu2 %vm642_vm2, %v4239_v4  ;;  %v4241_v17 = vsel %vm3382_vm4, %v4238_v19, %v4240_v40  ;;  %v14528_v19 = vld [vmem:[#allocation11_spill] sm:$0xff] }
 0x5dc   :  { %v4994_v4 = vsel %vm4680_vm6, %v4984_v53, %v4993_v28  ;;  %v4996_v53 = vshrl.u32 %v12043_v33, 16 }
 0x5de   :  { %v4509_v61 = vpop.f32.mrf.mxu2 }
 0x5df   :  { %v5809_v6 = vpop.f32.mrf.mxu0  ;;  %v4641_v15 = vadd.f32 %v4509_v61, %v14521_v14  ;;  %v4999_v61 = vshll.u32 %v12043_v33, 16 }
 0x5e0   :  { %v12033_v60 = vadd.f32 %v5809_v6, %v5435_v29  ;;  %v12036_v42 = vpop.f32.mrf.mxu1  ;;  %v5542_v29 = vsel %vm5475_vm7, %v5539_v18, %v5541_v7  ;;  %v14527_v18 = vld [vmem:[#allocation69_spill] sm:$0xff] }
 0x5e1   :  { %v5436_v57 = vadd.f32 %v5304_v12, %v4641_v15  ;;  %14523 = vst [vmem:[#allocation9_spill] sm:$0xff] %v12036_v42 }
 0x5e2   :  { %14522 = vst [vmem:[#allocation68_spill] sm:$0xff] %v12033_v60  ;;  %v5306_v13 = vpop.f32.mrf.mxu3 }
 0x5e6   :  { %v4511_v30 = vpop.f32.mrf.mxu2 }
 0x5e7   :  { %v5812_v51 = vpop.f32.mrf.mxu0  ;;  %v4642_v12 = vadd.f32 %v4511_v30, %v14524_v35  ;;  %8566 = vmatmul.msk.bf16.gmra.mxu3 %vm642_vm2, %v4994_v4  ;;  %v5001_v30 = vrot.slane %v4999_v61, 3 }
 0x5e8   :  { %v12047_v59 = vadd.f32 %v5812_v51, %v5436_v57  ;;  %v12055_v15 = vpop.f32.mrf.mxu1  ;;  %v4998_v57 = vrot.slane %v4996_v53, 2  ;;  %v12070_v53 = vld [vmem:[%s13965_s0 + $0x130] sm:$0xff] }
 0x5e9   :  { %v5437_v6 = vadd.f32 %v5306_v13, %v4642_v12  ;;  %14526 = vst [vmem:[#allocation117_spill] sm:$0xff] %v12055_v15  ;;  %8640 = vmatmul.msk.bf16.gmra.mxu1 %vm642_vm2, %v14527_v18  ;;  %v5543_v13 = vrot.slane %v12013_v5, 3  ;;  %v4242_v15 = vrot.slane %v12043_v33, 2 }
 0x5ea   :  { %14525 = vst [vmem:[#allocation10_spill] sm:$0xff] %v12047_v59  ;;  %8607 = vmatmul.msk.bf16.gmra.mxu0 %vm642_vm2, %v5542_v29  ;;  %v5309_v14 = vpop.f32.mrf.mxu3  ;;  %v5002_v59 = vor.u32 %v5001_v30, %v4998_v57  ;;  %v14531_v57 = vld [vmem:[#allocation12_spill] sm:$0xff] }
 0x5eb   :  { %8524 = vmatmul.msk.bf16.gmra.mxu2 %vm642_vm2, %v4241_v17  ;;  %v4243_v5 = vsel %vm3382_vm4, %v4240_v40, %v4242_v15  ;;  %v14535_v40 = vld [vmem:[#allocation13_spill] sm:$0xff] }
 0x5ec   :  { %v5003_v17 = vsel %vm4680_vm6, %v4993_v28, %v5002_v59  ;;  %v5005_v28 = vshrl.u32 %v12070_v53, 16 }
 0x5ee   :  { %v4514_v4 = vpop.f32.mrf.mxu2 }
 0x5ef   :  { %v5814_v51 = vpop.f32.mrf.mxu0  ;;  %v4643_v35 = vadd.f32 %v4514_v4, %v14528_v19  ;;  %v5008_v4 = vshll.u32 %v12070_v53, 16 }
 0x5f0   :  { %v12060_v42 = vadd.f32 %v5814_v51, %v5437_v6  ;;  %v12063_v12 = vpop.f32.mrf.mxu1  ;;  %v5544_v6 = vsel %vm5475_vm7, %v5541_v7, %v5543_v13  ;;  %v14534_v7 = vld [vmem:[#allocation70_spill] sm:$0xff] }
 0x5f1   :  { %v5438_v60 = vadd.f32 %v5309_v14, %v4643_v35  ;;  %14530 = vst [vmem:[#allocation11_spill] sm:$0xff] %v12063_v12 }
 0x5f2   :  { %14529 = vst [vmem:[#allocation69_spill] sm:$0xff] %v12060_v42  ;;  %v5311_v29 = vpop.f32.mrf.mxu3 }
 0x5f6   :  { %v4516_v61 = vpop.f32.mrf.mxu2 }
 0x5f7   :  { %v5817_v18 = vpop.f32.mrf.mxu0  ;;  %v4644_v14 = vadd.f32 %v4516_v61, %v14531_v57  ;;  %8567 = vmatmul.msk.bf16.gmra.mxu3 %vm642_vm2, %v5003_v17  ;;  %v5010_v61 = vrot.slane %v5008_v4, 3 }
 0x5f8   :  { %v12074_v30 = vadd.f32 %v5817_v18, %v5438_v60  ;;  %v12082_v35 = vpop.f32.mrf.mxu1  ;;  %v5007_v60 = vrot.slane %v5005_v28, 2  ;;  %v12097_v28 = vld [vmem:[%s13965_s0 + $0x138] sm:$0xff] }
 0x5f9   :  { %v5439_v51 = vadd.f32 %v5311_v29, %v4644_v14  ;;  %14533 = vst [vmem:[#allocation118_spill] sm:$0xff] %v12082_v35  ;;  %8641 = vmatmul.msk.bf16.gmra.mxu1 %vm642_vm2, %v14534_v7  ;;  %v5545_v29 = vrot.slane %v12043_v33, 3  ;;  %v4244_v35 = vrot.slane %v12070_v53, 2 }
 0x5fa   :  { %14532 = vst [vmem:[#allocation12_spill] sm:$0xff] %v12074_v30  ;;  %8608 = vmatmul.msk.bf16.gmra.mxu0 %vm642_vm2, %v5544_v6  ;;  %v5314_v19 = vpop.f32.mrf.mxu3  ;;  %v5011_v30 = vor.u32 %v5010_v61, %v5007_v60  ;;  %v14538_v60 = vld [vmem:[#allocation14_spill] sm:$0xff] }
 0x5fb   :  { %8525 = vmatmul.msk.bf16.gmra.mxu2 %vm642_vm2, %v4243_v5  ;;  %v4245_v33 = vsel %vm3382_vm4, %v4242_v15, %v4244_v35  ;;  %v14542_v15 = vld [vmem:[#allocation15_spill] sm:$0xff] }
 0x5fc   :  { %v5012_v5 = vsel %vm4680_vm6, %v5002_v59, %v5011_v30  ;;  %v5014_v59 = vshrl.u32 %v12097_v28, 16 }
 0x5fe   :  { %v4519_v17 = vpop.f32.mrf.mxu2 }
 0x5ff   :  { %v5819_v18 = vpop.f32.mrf.mxu0  ;;  %v4645_v57 = vadd.f32 %v4519_v17, %v14535_v40  ;;  %v5017_v17 = vshll.u32 %v12097_v28, 16 }
 0x600   :  { %v12087_v12 = vadd.f32 %v5819_v18, %v5439_v51  ;;  %v12090_v14 = vpop.f32.mrf.mxu1  ;;  %v5546_v51 = vsel %vm5475_vm7, %v5543_v13, %v5545_v29  ;;  %v14541_v13 = vld [vmem:[#allocation71_spill] sm:$0xff] }
 0x601   :  { %v5440_v42 = vadd.f32 %v5314_v19, %v4645_v57  ;;  %14537 = vst [vmem:[#allocation13_spill] sm:$0xff] %v12090_v14 }
 0x602   :  { %14536 = vst [vmem:[#allocation70_spill] sm:$0xff] %v12087_v12  ;;  %v5316_v6 = vpop.f32.mrf.mxu3 }
 0x606   :  { %v4521_v4 = vpop.f32.mrf.mxu2 }
 0x607   :  { %v5822_v7 = vpop.f32.mrf.mxu0  ;;  %v4646_v19 = vadd.f32 %v4521_v4, %v14538_v60  ;;  %8568 = vmatmul.msk.bf16.gmra.mxu3 %vm642_vm2, %v5012_v5  ;;  %v5019_v4 = vrot.slane %v5017_v17, 3 }
 0x608   :  { %v12101_v61 = vadd.f32 %v5822_v7, %v5440_v42  ;;  %v12109_v57 = vpop.f32.mrf.mxu1  ;;  %v5016_v42 = vrot.slane %v5014_v59, 2  ;;  %v12122_v59 = vld [vmem:[%s13965_s0 + $0x140] sm:$0xff] }
 0x609   :  { %v5441_v18 = vadd.f32 %v5316_v6, %v4646_v19  ;;  %14540 = vst [vmem:[#allocation119_spill] sm:$0xff] %v12109_v57  ;;  %8642 = vmatmul.msk.bf16.gmra.mxu1 %vm642_vm2, %v14541_v13  ;;  %v5547_v6 = vrot.slane %v12070_v53, 3 }
 0x60a   :  { %14539 = vst [vmem:[#allocation14_spill] sm:$0xff] %v12101_v61  ;;  %8609 = vmatmul.msk.bf16.gmra.mxu0 %vm642_vm2, %v5546_v51  ;;  %v5319_v40 = vpop.f32.mrf.mxu3  ;;  %v5020_v61 = vor.u32 %v5019_v4, %v5016_v42  ;;  %v14545_v42 = vld [vmem:[#allocation16_spill] sm:$0xff] }
 0x60b   :  { %8526 = vmatmul.msk.bf16.gmra.mxu2 %vm642_vm2, %v4245_v33  ;;  %v4246_v33 = vrot.slane %v12097_v28, 2 }
 0x60c   :  { %v5021_v19 = vsel %vm4680_vm6, %v5011_v30, %v5020_v61  ;;  %v5023_v30 = vshrl.u32 %v12122_v59, 16 }
 0x60d   :  { %v4247_v53 = vsel %vm3382_vm4, %v4244_v35, %v4246_v33  ;;  %v14549_v35 = vld [vmem:[#allocation17_spill] sm:$0xff] }
 0x60e   :  { %v4524_v5 = vpop.f32.mrf.mxu2 }
 0x60f   :  { %v5824_v7 = vpop.f32.mrf.mxu0  ;;  %v4647_v60 = vadd.f32 %v4524_v5, %v14542_v15 }
 0x610   :  { %v12114_v14 = vadd.f32 %v5824_v7, %v5441_v18  ;;  %v12124_v17 = vpop.f32.mrf.mxu1  ;;  %v5548_v18 = vsel %vm5475_vm7, %v5545_v29, %v5547_v6  ;;  %v5026_v7 = vshll.u32 %v12122_v59, 16 }
 0x611   :  { %v5442_v12 = vadd.f32 %v5319_v40, %v4647_v60  ;;  %14544 = vst [vmem:[#allocation15_spill] sm:$0xff] %v12124_v17  ;;  %v5025_v17 = vrot.slane %v5023_v30, 2  ;;  %v12149_v30 = vld [vmem:[%s13965_s0 + $0x148] sm:$0xff] }
 0x612   :  { %14543 = vst [vmem:[#allocation71_spill] sm:$0xff] %v12114_v14  ;;  %v5321_v51 = vpop.f32.mrf.mxu3  ;;  %v5028_v29 = vrot.slane %v5026_v7, 3 }
 0x616   :  { %v4526_v13 = vpop.f32.mrf.mxu2 }
 0x617   :  { %v5827_v5 = vpop.f32.mrf.mxu0  ;;  %v4648_v40 = vadd.f32 %v4526_v13, %v14545_v42  ;;  %8569 = vmatmul.msk.bf16.gmra.mxu3 %vm642_vm2, %v5021_v19 }
 0x618   :  { %v12128_v4 = vadd.f32 %v5827_v5, %v5442_v12  ;;  %v12136_v57 = vpop.f32.mrf.mxu1  ;;  %v14548_v12 = vld [vmem:[#allocation74_spill] sm:$0xff] }
 0x619   :  { %v5443_v15 = vadd.f32 %v5321_v51, %v4648_v40  ;;  %14547 = vst [vmem:[#allocation120_spill] sm:$0xff] %v12136_v57  ;;  %8643 = vmatmul.msk.bf16.gmra.mxu1 %vm642_vm2, %v14548_v12  ;;  %v5549_v51 = vrot.slane %v12097_v28, 3 }
 0x61a   :  { %14546 = vst [vmem:[#allocation16_spill] sm:$0xff] %v12128_v4  ;;  %8610 = vmatmul.msk.bf16.gmra.mxu0 %vm642_vm2, %v5548_v18  ;;  %v5324_v60 = vpop.f32.mrf.mxu3  ;;  %v5029_v4 = vor.u32 %v5028_v29, %v5025_v17  ;;  %v14552_v17 = vld [vmem:[#allocation18_spill] sm:$0xff] }
 0x61b   :  { %8527 = vmatmul.msk.bf16.gmra.mxu2 %vm642_vm2, %v4247_v53  ;;  %v4248_v53 = vrot.slane %v12122_v59, 2 }
 0x61c   :  { %v5030_v40 = vsel %vm4680_vm6, %v5020_v61, %v5029_v4  ;;  %v5032_v61 = vshrl.u32 %v12149_v30, 16 }
 0x61d   :  { %v4249_v28 = vsel %vm3382_vm4, %v4246_v33, %v4248_v53  ;;  %v3964_v33 = vld [vmem:[%s13965_s0 + $0x150] sm:$0xf] }
 0x61e   :  { %v4529_v19 = vpop.f32.mrf.mxu2 }
 0x61f   :  { %v5829_v13 = vpop.f32.mrf.mxu0  ;;  %v4649_v5 = vadd.f32 %v4529_v19, %v14549_v35 }
 0x620   :  { %v12141_v42 = vadd.f32 %v5829_v13, %v5443_v15  ;;  %v12151_v7 = vpop.f32.mrf.mxu1  ;;  %v5550_v15 = vsel %vm5475_vm7, %v5547_v6, %v5549_v51  ;;  %v5035_v13 = vshll.u32 %v12149_v30, 16 }
 0x621   :  { %v5444_v14 = vadd.f32 %v5324_v60, %v4649_v5  ;;  %14551 = vst [vmem:[#allocation17_spill] sm:$0xff] %v12151_v7  ;;  %v5034_v7 = vrot.slane %v5032_v61, 2 }
 0x622   :  { %14550 = vst [vmem:[#allocation74_spill] sm:$0xff] %v12141_v42  ;;  %v5326_v18 = vpop.f32.mrf.mxu3  ;;  %v5037_v6 = vrot.slane %v5035_v13, 3  ;;  %v4250_v42 = vrot.slane %v12149_v30, 2 }
 0x626   :  { %v4531_v12 = vpop.f32.mrf.mxu2 }
 0x627   :  { %v5832_v19 = vpop.f32.mrf.mxu0  ;;  %v4650_v60 = vadd.f32 %v4531_v12, %v14552_v17  ;;  %8570 = vmatmul.msk.bf16.gmra.mxu3 %vm642_vm2, %v5030_v40  ;;  %v4674_v40 = vld [vmem:[%s13965_s0 + $0x154] sm:$0x7] }
 0x628   :  { %v12155_v29 = vadd.f32 %v5832_v19, %v5444_v14  ;;  %v12163_v57 = vpop.f32.mrf.mxu1  ;;  %v14555_v14 = vld [vmem:[#allocation76_spill] sm:$0xff]  ;;  %v14556_v19 = vld [vmem:[#allocation19_spill] sm:$0xff]  ;;  %v4678_v61 = vunpack.c.l.b16 %v4674_v40 }
 0x629   :  { %v5445_v35 = vadd.f32 %v5326_v18, %v4650_v60  ;;  %14554 = vst [vmem:[#allocation121_spill] sm:$0xff] %v12163_v57  ;;  %8644 = vmatmul.msk.bf16.gmra.mxu1 %vm642_vm2, %v14555_v14  ;;  %v5038_v60 = vor.u32 %v5037_v6, %v5034_v7  ;;  %v5551_v14 = vrot.slane %v12122_v59, 3  ;;  %v4251_v59 = vsel %vm3382_vm4, %v4248_v53, %v4250_v42  ;;  %v3965_v40 = vld [vmem:[%s13965_s0 + $0x154] sm:$0x3]  ;;  %v14561_v53 = vld [vmem:[#allocation77_spill] sm:$0xff] }
 0x62a   :  { %14553 = vst [vmem:[#allocation18_spill] sm:$0xff] %v12155_v29  ;;  %8611 = vmatmul.msk.bf16.gmra.mxu0 %vm642_vm2, %v5550_v15  ;;  %v5329_v5 = vpop.f32.mrf.mxu3 }
 0x62b   :  { %8528 = vmatmul.msk.bf16.gmra.mxu2 %vm642_vm2, %v4249_v28  ;;  %v4130_v28 = vunpack.c.l.b16 %v3964_v33  ;;  %v5039_v29 = vsel %vm4680_vm6, %v5029_v4, %v5038_v60 }
 0x62d   :  { %v12179_v9 = vpack.c.b16 %v4678_v61, %v4130_v28 }
 0x62e   :  { %v4534_v12 = vpop.f32.mrf.mxu2 }
 0x62f   :  { %v5834_v18 = vpop.f32.mrf.mxu0  ;;  %v4651_v15 = vadd.f32 %v4534_v12, %v14556_v19  ;;  %v5041_v4 = vshrl.u32 %v12179_v9, 16  ;;  %v14562_v19 = vld [vmem:[#allocation20_spill] sm:$0xff] }
 0x630   :  { %v12174_v17 = vadd.f32 %v5834_v18, %v5445_v35  ;;  %v12181_v26 = vpop.f32.mrf.mxu1  ;;  %v5552_v35 = vsel %vm5475_vm7, %v5549_v51, %v5551_v14 }
 0x631   :  { %v5446_v13 = vadd.f32 %v5329_v5, %v4651_v15  ;;  %14558 = vst [vmem:[#allocation19_spill] sm:$0xff] %v12181_v26  ;;  %v5044_v5 = vshll.u32 %v12179_v9, 16 }
 0x632   :  { %14557 = vst [vmem:[#allocation76_spill] sm:$0xff] %v12174_v17  ;;  %v5331_v57 = vpop.f32.mrf.mxu3 }
 0x636   :  { %v4536_v36 = vpop.f32.mrf.mxu2 }
 0x637   :  { %v5837_v10 = vpop.f32.mrf.mxu0  ;;  %v4652_v7 = vadd.f32 %v4536_v36, %v11060_v56  ;;  %8571 = vmatmul.msk.bf16.gmra.mxu3 %vm642_vm2, %v5039_v29  ;;  %v5043_v56 = vrot.slane %v5041_v4, 2  ;;  %v4131_v36 = vunpack.c.l.b16 %v3965_v40 }
 0x638   :  { %v12185_v6 = vadd.f32 %v5837_v10, %v5446_v13  ;;  %v5046_v10 = vrot.slane %v5044_v5, 3  ;;  %v12196_v29 = vpop.f32.mrf.mxu1 }
 0x639   :  { %v5447_v33 = vadd.f32 %v5331_v57, %v4652_v7  ;;  %14560 = vst [vmem:[#allocation123_spill] sm:$0xff] %v12196_v29  ;;  %8645 = vmatmul.msk.bf16.gmra.mxu1 %vm642_vm2, %v14561_v53  ;;  %v4172_v13 = vpack.c.b16 %v4131_v36, %v4130_v28 }
 0x63a   :  { %14559 = vst [vmem:[#allocation122_spill] sm:$0xff] %v12185_v6  ;;  %8612 = vmatmul.msk.bf16.gmra.mxu0 %vm642_vm2, %v5552_v35  ;;  %v5334_v51 = vpop.f32.mrf.mxu3  ;;  %v5047_v61 = vor.u32 %v5046_v10, %v5043_v56  ;;  %v14565_v6 = vld [vmem:[#allocation22_spill] sm:$0xff] }
 0x63b   :  { %8529 = vmatmul.msk.bf16.gmra.mxu2 %vm642_vm2, %v4251_v59  ;;  %v5553_v59 = vrot.slane %v12149_v30, 3  ;;  %v4252_v5 = vrot.slane %v4172_v13, 2  ;;  %v14572_v13 = vld [vmem:[#allocation25_spill] sm:$0xff] }
 0x63c   :  { %v5048_v4 = vsel %vm4680_vm6, %v5038_v60, %v5047_v61 }
 0x63d   :  { %v5554_v53 = vsel %vm5475_vm7, %v5551_v14, %v5553_v59  ;;  %v4253_v28 = vsel %vm3382_vm4, %v4250_v42, %v4252_v5  ;;  %v5555_v42 = vrot.slane %v12179_v9, 3 }
 0x63e   :  { %v4539_v12 = vpop.f32.mrf.mxu2 }
 0x63f   :  { %v5839_v18 = vpop.f32.mrf.mxu0  ;;  %v4653_v15 = vadd.f32 %v4539_v12, %v14562_v19 }
 0x640   :  { %v12201_v57 = vadd.f32 %v5839_v18, %v5447_v33  ;;  %v12205_v40 = vpop.f32.mrf.mxu1 }
 0x641   :  { %v5448_v35 = vadd.f32 %v5334_v51, %v4653_v15  ;;  %14564 = vst [vmem:[#allocation20_spill] sm:$0xff] %v12205_v40  ;;  %v14568_v51 = vld [vmem:[#allocation78_spill] sm:$0xff]  ;;  %v5556_v15 = vsel %vm5475_vm7, %v5553_v59, %v5555_v42 }
 0x642   :  { %14563 = vst [vmem:[#allocation77_spill] sm:$0xff] %v12201_v57  ;;  %v5336_v7 = vpop.f32.mrf.mxu3 }
 0x646   :  { %v4541_v29 = vpop.f32.mrf.mxu2 }
 0x647   :  { %v5842_v26 = vpop.f32.mrf.mxu0  ;;  %v4654_v17 = vadd.f32 %v4541_v29, %v14565_v6  ;;  %8572 = vmatmul.msk.bf16.gmra.mxu3 %vm642_vm2, %v5048_v4  ;;  %v14569_v6 = vld [vmem:[#allocation24_spill] sm:$0xff] }
 0x648   :  { %v12209_v12 = vadd.f32 %v5842_v26, %v5448_v35  ;;  %v12215_v60 = vpop.f32.mrf.mxu1 }
 0x649   :  { %v5449_v30 = vadd.f32 %v5336_v7, %v4654_v17  ;;  %14567 = vst [vmem:[#allocation124_spill] sm:$0xff] %v12215_v60  ;;  %8646 = vmatmul.msk.bf16.gmra.mxu1 %vm642_vm2, %v14568_v51  ;;  %v14577_v51 = vld [vmem:[#allocation26_spill] sm:$0xff] }
 0x64a   :  { %14566 = vst [vmem:[#allocation22_spill] sm:$0xff] %v12209_v12  ;;  %8613 = vmatmul.msk.bf16.gmra.mxu0 %vm642_vm2, %v5554_v53  ;;  %v5339_v33 = vpop.f32.mrf.mxu3 }
 0x64b   :  { %8530 = vmatmul.msk.bf16.gmra.mxu2 %vm642_vm2, %v4253_v28  ;;  %v12232_v28 = vpop.permute.xlu0 %9224 }
 0x64c   :  { %14574 = vst [vmem:[#allocation125_spill] sm:$0xff] %v12232_v28 }
 0x64e   :  { %v4544_v14 = vpop.f32.mrf.mxu2 }
 0x64f   :  { %v5844_v56 = vpop.f32.mrf.mxu0  ;;  %v4655_v26 = vadd.f32 %v4544_v14, %v14569_v6 }
 0x650   :  { %v12220_v10 = vadd.f32 %v5844_v56, %v5449_v30  ;;  %v12223_v18 = vpop.f32.mrf.mxu1  ;;  %v14576_v30 = vld [vmem:[#allocation79_spill] sm:$0xff] }
 0x651   :  { %v5450_v36 = vadd.f32 %v5339_v33, %v4655_v26  ;;  %14571 = vst [vmem:[#allocation24_spill] sm:$0xff] %v12223_v18  ;;  %v12241_v26 = vpop.permute.xlu1 %9235 }
 0x652   :  { %14570 = vst [vmem:[#allocation78_spill] sm:$0xff] %v12220_v10  ;;  %v5341_v29 = vpop.f32.mrf.mxu3  ;;  %v14588_v18 = vunpack.i.l.bf16 %v12241_v26 }
 0x654   :  { %v6548_v60 = vmul.f32 %v14588_v18, %v11419_v52 }
 0x656   :  { %v4546_v17 = vpop.f32.mrf.mxu2 }
 0x657   :  { %v5847_v19 = vpop.f32.mrf.mxu0  ;;  %v4656_v35 = vadd.f32 %v4546_v17, %v14572_v13  ;;  %8573 = vmatmul.msk.bf16.gmra.mxu3 %vm642_vm2, %v5047_v61 }
 0x658   :  { %v12227_v7 = vadd.f32 %v5847_v19, %v5450_v36  ;;  %v12234_v9 = vpop.f32.mrf.mxu1  ;;  %v12243_v36 = vpop.permute.xlu0 %9229 }
 0x659   :  { %v5451_v4 = vadd.f32 %v5341_v29, %v4656_v35  ;;  %14575 = vst [vmem:[#allocation126_spill] sm:$0xff] %v12234_v9  ;;  %8647 = vmatmul.msk.bf16.gmra.mxu1 %vm642_vm2, %v14576_v30  ;;  %v14038_v29 = vunpack.i.h.bf16 %v12232_v28  ;;  %v14040_v13 = vunpack.i.l.bf16 %v12243_v36  ;;  %v14581_v35 = vld [vmem:[#allocation27_spill] sm:$0xff] }
 0x65a   :  { %14573 = vst [vmem:[#allocation25_spill] sm:$0xff] %v12227_v7  ;;  %8614 = vmatmul.msk.bf16.gmra.mxu0 %vm642_vm2, %v5556_v15  ;;  %v5344_v53 = vpop.f32.mrf.mxu3  ;;  %v14039_v15 = vunpack.i.l.bf16 %v12232_v28 }
 0x65b   :  { %8531 = vmatmul.msk.bf16.gmra.mxu2 %vm642_vm2, %v4252_v5  ;;  %14579 = vst [vmem:[#allocation26_spill] sm:$0xff] %v12243_v36 }
 0x65e   :  { %v4549_v59 = vpop.f32.mrf.mxu2 }
 0x65f   :  { %v5849_v33 = vpop.f32.mrf.mxu0  ;;  %v4657_v14 = vadd.f32 %v4549_v59, %v14577_v51  ;;  %v14586_v59 = vld [vmem:[#allocation80_spill] sm:$0xff] }
 0x660   :  { %v12239_v56 = vadd.f32 %v5849_v33, %v5451_v4  ;;  %v12245_v5 = vpop.f32.mrf.mxu1 }
 0x661   :  { %v5452_v61 = vadd.f32 %v5344_v53, %v4657_v14  ;;  %14580 = vst [vmem:[#allocation127_spill] sm:$0xff] %v12245_v5  ;;  %v6545_v53 = vmul.f32 %v14038_v29, %v11379_v24  ;;  %v6544_v14 = vmul.f32 %v14039_v15, %v11367_v23  ;;  %v14047_v15 = vunpack.i.h.bf16 %v12241_v26 }
 0x662   :  { %14578 = vst [vmem:[#allocation79_spill] sm:$0xff] %v12239_v56  ;;  %v5346_v6 = vpop.f32.mrf.mxu3 }
 0x666   :  { %v4551_v17 = vpop.f32.mrf.mxu2 }
 0x667   :  { %v5852_v19 = vpop.f32.mrf.mxu0  ;;  %v4658_v30 = vadd.f32 %v4551_v17, %v14581_v35  ;;  %v6546_v17 = vmul.f32 %v14040_v13, %v11396_v34  ;;  %v12267_v35 = vpop.permute.xlu2 %9246 }
 0x668   :  { %v12251_v4 = vadd.f32 %v5852_v19, %v5452_v61  ;;  %v12265_v19 = vpop.permute.xlu1 %9240  ;;  %14584 = vst [vmem:[#allocation129_spill] sm:$0xff] %v12267_v35  ;;  %v12269_v29 = vpop.f32.mrf.mxu1  ;;  %v14051_v18 = vunpack.i.l.bf16 %v12267_v35 }
 0x669   :  { %v5453_v33 = vadd.f32 %v5346_v6, %v4658_v30  ;;  %14583 = vst [vmem:[#allocation128_spill] sm:$0xff] %v12265_v19  ;;  %8648 = vmatmul.msk.bf16.gmra.mxu1 %vm642_vm2, %v14586_v59  ;;  %v14587_v6 = vunpack.i.h.bf16 %v12243_v36  ;;  %v6549_v59 = vmul.f32 %v14047_v15, %v11428_v25 }
 0x66a   :  { %14582 = vst [vmem:[#allocation27_spill] sm:$0xff] %v12251_v4  ;;  %8615 = vmatmul.msk.bf16.gmra.mxu0 %vm642_vm2, %v5555_v42  ;;  %v5349_v51 = vpop.f32.mrf.mxu3  ;;  %v6625_v42 = vadd.f32 %v6545_v53, %v6544_v14  ;;  %v14048_v14 = vunpack.i.h.bf16 %v12265_v19 }
 0x66b   :  { %14585 = vst [vmem:[#allocation130_spill] sm:$0xff] %v12269_v29  ;;  %v6547_v30 = vmul.f32 %v14587_v6, %v11405_v22  ;;  %v14589_v29 = vld [vmem:[#allocation28_spill] sm:$0xff] }
 0x66c   :  { %v6626_v9 = vadd.f32 %v6625_v42, %v6546_v17  ;;  %v14591_v17 = vunpack.i.l.bf16 %v12265_v19 }
 0x66e   :  { %v4554_v5 = vpop.f32.mrf.mxu2  ;;  %v6627_v53 = vadd.f32 %v6626_v9, %v6547_v30  ;;  %v6550_v42 = vmul.f32 %v14591_v17, %v11445_v44  ;;  %v6552_v30 = vmul.f32 %v14051_v18, %v11472_v8 }
 0x66f   :  { %v5854_v61 = vpop.f32.mrf.mxu0  ;;  %v4659_v40 = vadd.f32 %v4554_v5, %v14589_v29  ;;  %v12292_v52 = vpop.permute.xlu2 %9251  ;;  %v6551_v29 = vmul.f32 %v14048_v14, %v11457_v2 }
 0x670   :  { %v12282_v28 = vadd.f32 %v5854_v61, %v5453_v33  ;;  %v6628_v36 = vadd.f32 %v6627_v53, %v6548_v60  ;;  %14592 = vst [vmem:[#allocation28_spill] sm:$0xff] %v12292_v52  ;;  %v12294_v5 = vpop.f32.mrf.mxu1  ;;  %v14052_v33 = vunpack.i.h.bf16 %v12267_v35  ;;  %v14594_v53 = vld [vmem:[#allocation29_spill] sm:$0xff] }
 0x671   :  { %v5454_v6 = vadd.f32 %v5349_v51, %v4659_v40  ;;  %14593 = vst [vmem:[#allocation131_spill] sm:$0xff] %v12294_v5  ;;  %v14057_v40 = vunpack.i.h.bf16 %v12292_v52 }
 0x672   :  { %14590 = vst [vmem:[#allocation80_spill] sm:$0xff] %v12282_v28  ;;  %v5351_v13 = vpop.f32.mrf.mxu3  ;;  %v6629_v9 = vadd.f32 %v6628_v36, %v6549_v59  ;;  %v12307_v36 = vpop.permute.xlu0 %9256  ;;  %v6553_v14 = vmul.f32 %v14052_v33, %v11481_v55 }
 0x673   :  { %14596 = vst [vmem:[#allocation132_spill] sm:$0xff] %v12307_v36 }
 0x674   :  { %v6630_v61 = vadd.f32 %v6629_v9, %v6550_v42  ;;  %v14597_v9 = vunpack.i.l.bf16 %v12292_v52 }
 0x676   :  { %v4556_v60 = vpop.f32.mrf.mxu2  ;;  %v6631_v59 = vadd.f32 %v6630_v61, %v6551_v29  ;;  %v6554_v18 = vmul.f32 %v14597_v9, %v11493_v0  ;;  %v14600_v29 = vld [vmem:[#allocation81_spill] sm:$0xff] }
 0x677   :  { %v5857_v51 = vpop.f32.mrf.mxu0  ;;  %v4660_v17 = vadd.f32 %v4556_v60, %v14594_v53  ;;  %v14060_v60 = vunpack.i.l.bf16 %v12307_v36 }
 0x678   :  { %v12305_v15 = vadd.f32 %v5857_v51, %v5454_v6  ;;  %v6632_v42 = vadd.f32 %v6631_v59, %v6552_v30  ;;  %v12317_v6 = vpop.permute.xlu1 %9261  ;;  %v12319_v51 = vpop.f32.mrf.mxu1  ;;  %v14061_v30 = vunpack.i.h.bf16 %v12307_v36 }
 0x679   :  { %v5455_v5 = vadd.f32 %v5351_v13, %v4660_v17  ;;  %14598 = vst [vmem:[#allocation133_spill] sm:$0xff] %v12317_v6  ;;  %8649 = vmatmul.msk.bf16.gmra.mxu1 %vm642_vm2, %v14600_v29  ;;  %v6555_v13 = vmul.f32 %v14057_v40, %v11502_v45  ;;  %v6556_v33 = vmul.f32 %v14060_v60, %v11517_v1  ;;  %v14066_v40 = vunpack.i.h.bf16 %v12317_v6 }
 0x67a   :  { %14595 = vst [vmem:[#allocation29_spill] sm:$0xff] %v12305_v15  ;;  %v5354_v19 = vpop.f32.mrf.mxu3  ;;  %v6633_v61 = vadd.f32 %v6632_v42, %v6553_v14  ;;  %v12334_v14 = vpop.permute.xlu2 %9266  ;;  %v6557_v29 = vmul.f32 %v14061_v30, %v11529_v43  ;;  %v14607_v30 = vld [vmem:[#allocation31_spill] sm:$0xff] }
 0x67b   :  { %14599 = vst [vmem:[#allocation134_spill] sm:$0xff] %v12319_v51  ;;  %v14601_v51 = vld [vmem:[#allocation30_spill] sm:$0xff] }
 0x67c   :  { %v6634_v9 = vadd.f32 %v6633_v61, %v6554_v18  ;;  %14603 = vst [vmem:[#allocation30_spill] sm:$0xff] %v12334_v14  ;;  %v14604_v61 = vunpack.i.l.bf16 %v12317_v6 }
 0x67e   :  { %v4559_v17 = vpop.f32.mrf.mxu2  ;;  %v6635_v42 = vadd.f32 %v6634_v9, %v6555_v13  ;;  %v6558_v60 = vmul.f32 %v14604_v61, %v11544_v32  ;;  %v14070_v9 = vunpack.i.h.bf16 %v12334_v14 }
 0x67f   :  { %v5859_v59 = vpop.f32.mrf.mxu0  ;;  %v4661_v35 = vadd.f32 %v4559_v17, %v14601_v51  ;;  %v14069_v51 = vunpack.i.l.bf16 %v12334_v14 }
 0x680   :  { %v12332_v0 = vadd.f32 %v5859_v59, %v5455_v5  ;;  %v6636_v18 = vadd.f32 %v6635_v42, %v6556_v33  ;;  %v12344_v5 = vpop.permute.xlu0 %9271  ;;  %v12346_v17 = vpop.f32.mrf.mxu1  ;;  %v6559_v59 = vmul.f32 %v14066_v40, %v11553_v21  ;;  %v6561_v40 = vmul.f32 %v14070_v9, %v11574_v48 }
 0x681   :  { %v5456_v53 = vadd.f32 %v5354_v19, %v4661_v35  ;;  %14605 = vst [vmem:[#allocation135_spill] sm:$0xff] %v12344_v5  ;;  %v6560_v61 = vmul.f32 %v14069_v51, %v11565_v3  ;;  %v14075_v19 = vunpack.i.h.bf16 %v12344_v5 }
 0x682   :  { %14602 = vst [vmem:[#allocation81_spill] sm:$0xff] %v12332_v0  ;;  %v5356_v52 = vpop.f32.mrf.mxu3  ;;  %v6637_v13 = vadd.f32 %v6636_v18, %v6557_v29  ;;  %v12359_v29 = vpop.permute.xlu1 %9276 }
 0x683   :  { %14606 = vst [vmem:[#allocation136_spill] sm:$0xff] %v12346_v17 }
 0x684   :  { %v6638_v42 = vadd.f32 %v6637_v13, %v6558_v60  ;;  %14609 = vst [vmem:[#allocation137_spill] sm:$0xff] %v12359_v29  ;;  %v14610_v13 = vunpack.i.l.bf16 %v12344_v5 }
 0x686   :  { %v4561_v35 = vpop.f32.mrf.mxu2  ;;  %v6639_v18 = vadd.f32 %v6638_v42, %v6559_v59  ;;  %v6562_v51 = vmul.f32 %v14610_v13, %v11589_v31  ;;  %v14613_v59 = vld [vmem:[#allocation82_spill] sm:$0xff] }
 0x687   :  { %v5862_v33 = vpop.f32.mrf.mxu0  ;;  %v4662_v36 = vadd.f32 %v4561_v35, %v14607_v30  ;;  %v14078_v30 = vunpack.i.l.bf16 %v12359_v29 }
 0x688   :  { %v12357_v32 = vadd.f32 %v5862_v33, %v5456_v53  ;;  %v6640_v60 = vadd.f32 %v6639_v18, %v6560_v61  ;;  %v12369_v53 = vpop.permute.xlu2 %9281  ;;  %v12371_v35 = vpop.f32.mrf.mxu1 }
 0x689   :  { %v5457_v17 = vadd.f32 %v5356_v52, %v4662_v36  ;;  %14611 = vst [vmem:[#allocation138_spill] sm:$0xff] %v12369_v53  ;;  %8650 = vmatmul.msk.bf16.gmra.mxu1 %vm642_vm2, %v14613_v59  ;;  %v6563_v52 = vmul.f32 %v14075_v19, %v11601_v63  ;;  %v14079_v36 = vunpack.i.h.bf16 %v12359_v29  ;;  %v6564_v9 = vmul.f32 %v14078_v30, %v11616_v50 }
 0x68a   :  { %14608 = vst [vmem:[#allocation31_spill] sm:$0xff] %v12357_v32  ;;  %v5359_v6 = vpop.f32.mrf.mxu3  ;;  %v6641_v33 = vadd.f32 %v6640_v60, %v6561_v40  ;;  %v12386_v40 = vpop.permute.xlu0 %9286  ;;  %v14084_v19 = vunpack.i.h.bf16 %v12369_v53 }
 0x68b   :  { %14612 = vst [vmem:[#allocation139_spill] sm:$0xff] %v12371_v35  ;;  %v14614_v35 = vld [vmem:[#allocation32_spill] sm:$0xff]  ;;  %v6565_v59 = vmul.f32 %v14079_v36, %v11625_v46  ;;  %v14620_v36 = vld [vmem:[#allocation33_spill] sm:$0xff] }
 0x68c   :  { %v6642_v13 = vadd.f32 %v6641_v33, %v6562_v51  ;;  %14616 = vst [vmem:[#allocation32_spill] sm:$0xff] %v12386_v40  ;;  %v14617_v33 = vunpack.i.l.bf16 %v12369_v53 }
 0x68e   :  { %v4564_v61 = vpop.f32.mrf.mxu2  ;;  %v6643_v60 = vadd.f32 %v6642_v13, %v6563_v52  ;;  %v6566_v30 = vmul.f32 %v14617_v33, %v11637_v16  ;;  %v14088_v13 = vunpack.i.h.bf16 %v12386_v40 }
 0x68f   :  { %v5864_v18 = vpop.f32.mrf.mxu0  ;;  %v4663_v14 = vadd.f32 %v4564_v61, %v14614_v35  ;;  %v14087_v35 = vunpack.i.l.bf16 %v12386_v40 }
 0x690   :  { %v12384_v31 = vadd.f32 %v5864_v18, %v5457_v17  ;;  %v6644_v51 = vadd.f32 %v6643_v60, %v6564_v9  ;;  %v12396_v17 = vpop.permute.xlu1 %9291  ;;  %v12398_v61 = vpop.f32.mrf.mxu1  ;;  %v6567_v18 = vmul.f32 %v14084_v19, %v11646_v47  ;;  %v6569_v19 = vmul.f32 %v14088_v13, %v11679_v11 }
 0x691   :  { %v5458_v42 = vadd.f32 %v5359_v6, %v4663_v14  ;;  %14618 = vst [vmem:[#allocation140_spill] sm:$0xff] %v12396_v17  ;;  %v6568_v33 = vmul.f32 %v14087_v35, %v11663_v49  ;;  %v14093_v6 = vunpack.i.h.bf16 %v12396_v17  ;;  %v14694_v49 = vld [vmem:[#allocation122_spill] sm:$0xff] }
 0x692   :  { %14615 = vst [vmem:[#allocation82_spill] sm:$0xff] %v12384_v31  ;;  %v5361_v5 = vpop.f32.mrf.mxu3  ;;  %v6645_v52 = vadd.f32 %v6644_v51, %v6565_v59  ;;  %v12411_v59 = vpop.permute.xlu2 %9296 }
 0x693   :  { %14619 = vst [vmem:[#allocation141_spill] sm:$0xff] %v12398_v61 }
 0x694   :  { %v6646_v60 = vadd.f32 %v6645_v52, %v6566_v30  ;;  %14622 = vst [vmem:[#allocation142_spill] sm:$0xff] %v12411_v59  ;;  %v14623_v52 = vunpack.i.l.bf16 %v12396_v17 }
 0x696   :  { %v4566_v14 = vpop.f32.mrf.mxu2  ;;  %v6647_v51 = vadd.f32 %v6646_v60, %v6567_v18  ;;  %v6570_v35 = vmul.f32 %v14623_v52, %v11696_v54  ;;  %v14626_v18 = vld [vmem:[#allocation83_spill] sm:$0xff] }
 0x697   :  { %v5867_v9 = vpop.f32.mrf.mxu0  ;;  %v4664_v29 = vadd.f32 %v4566_v14, %v14620_v36  ;;  %v14096_v36 = vunpack.i.l.bf16 %v12411_v59 }
 0x698   :  { %v12409_v16 = vadd.f32 %v5867_v9, %v5458_v42  ;;  %v6648_v30 = vadd.f32 %v6647_v51, %v6568_v33  ;;  %v12421_v42 = vpop.permute.xlu0 %9301  ;;  %v12423_v14 = vpop.f32.mrf.mxu1 }
 0x699   :  { %v5459_v61 = vadd.f32 %v5361_v5, %v4664_v29  ;;  %14624 = vst [vmem:[#allocation143_spill] sm:$0xff] %v12421_v42  ;;  %8651 = vmatmul.msk.bf16.gmra.mxu1 %vm642_vm2, %v14626_v18  ;;  %v6571_v5 = vmul.f32 %v14093_v6, %v11709_v58  ;;  %v14097_v29 = vunpack.i.h.bf16 %v12411_v59  ;;  %v6572_v13 = vmul.f32 %v14096_v36, %v11723_v38 }
 0x69a   :  { %14621 = vst [vmem:[#allocation33_spill] sm:$0xff] %v12409_v16  ;;  %v5364_v53 = vpop.f32.mrf.mxu3  ;;  %v6649_v9 = vadd.f32 %v6648_v30, %v6569_v19  ;;  %v12438_v19 = vpop.permute.xlu1 %9306  ;;  %v14102_v6 = vunpack.i.h.bf16 %v12421_v42 }
 0x69b   :  { %14625 = vst [vmem:[#allocation144_spill] sm:$0xff] %v12423_v14  ;;  %v14627_v14 = vld [vmem:[#allocation34_spill] sm:$0xff]  ;;  %v6573_v18 = vmul.f32 %v14097_v29, %v11736_v41  ;;  %v14633_v29 = vld [vmem:[#allocation35_spill] sm:$0xff] }
 0x69c   :  { %v6650_v52 = vadd.f32 %v6649_v9, %v6570_v35  ;;  %14629 = vst [vmem:[#allocation34_spill] sm:$0xff] %v12438_v19  ;;  %v14630_v9 = vunpack.i.l.bf16 %v12421_v42 }
 0x69e   :  { %v4569_v33 = vpop.f32.mrf.mxu2  ;;  %v6651_v30 = vadd.f32 %v6650_v52, %v6571_v5  ;;  %v6574_v36 = vmul.f32 %v14630_v9, %v11753_v62  ;;  %v14106_v52 = vunpack.i.h.bf16 %v12438_v19 }
 0x69f   :  { %v5869_v51 = vpop.f32.mrf.mxu0  ;;  %v4665_v40 = vadd.f32 %v4569_v33, %v14627_v14  ;;  %v14105_v14 = vunpack.i.l.bf16 %v12438_v19 }
 0x6a0   :  { %v12436_v54 = vadd.f32 %v5869_v51, %v5459_v61  ;;  %v6652_v35 = vadd.f32 %v6651_v30, %v6572_v13  ;;  %v12448_v61 = vpop.permute.xlu2 %9311  ;;  %v12450_v33 = vpop.f32.mrf.mxu1  ;;  %v6575_v51 = vmul.f32 %v14102_v6, %v11769_v20  ;;  %v6577_v6 = vmul.f32 %v14106_v52, %v11799_v39 }
 0x6a1   :  { %v5460_v60 = vadd.f32 %v5364_v53, %v4665_v40  ;;  %14631 = vst [vmem:[#allocation145_spill] sm:$0xff] %v12448_v61  ;;  %v6576_v9 = vmul.f32 %v14105_v14, %v11786_v37  ;;  %v14115_v53 = vunpack.i.h.bf16 %v12448_v61 }
 0x6a2   :  { %14628 = vst [vmem:[#allocation83_spill] sm:$0xff] %v12436_v54  ;;  %v5366_v17 = vpop.f32.mrf.mxu3  ;;  %v6653_v5 = vadd.f32 %v6652_v35, %v6573_v18  ;;  %v12463_v18 = vpop.permute.xlu0 %9316 }
 0x6a3   :  { %14632 = vst [vmem:[#allocation146_spill] sm:$0xff] %v12450_v33  ;;  %v14642_v19 = vunpack.i.l.bf16 %v12463_v18 }
 0x6a4   :  { %v6654_v30 = vadd.f32 %v6653_v5, %v6574_v36  ;;  %14635 = vst [vmem:[#allocation147_spill] sm:$0xff] %v12463_v18  ;;  %v14636_v5 = vunpack.i.l.bf16 %v12448_v61 }
 0x6a6   :  { %v4571_v40 = vpop.f32.mrf.mxu2  ;;  %v6655_v35 = vadd.f32 %v6654_v30, %v6575_v51  ;;  %v6578_v14 = vmul.f32 %v14636_v5, %v11813_v27  ;;  %v14639_v51 = vld [vmem:[#allocation84_spill] sm:$0xff]  ;;  %v14640_v30 = vld [vmem:[#allocation62_spill] sm:$0xff] }
 0x6a7   :  { %v5872_v13 = vpop.f32.mrf.mxu0  ;;  %v4666_v59 = vadd.f32 %v4571_v40, %v14633_v29  ;;  %v14641_v29 = vld [vmem:[#allocation73_spill] sm:$0xff] }
 0x6a8   :  { %v12461_v62 = vadd.f32 %v5872_v13, %v5460_v60  ;;  %v6656_v36 = vadd.f32 %v6655_v35, %v6576_v9  ;;  %v12473_v60 = vpop.permute.xlu1 %9321  ;;  %v12475_v40 = vpop.f32.mrf.mxu1  ;;  %v6580_v27 = vmul.f32 %v14642_v19, %v14641_v29 }
 0x6a9   :  { %v5461_v33 = vadd.f32 %v5366_v17, %v4666_v59  ;;  %14637 = vst [vmem:[#allocation148_spill] sm:$0xff] %v12473_v60  ;;  %8652 = vmatmul.msk.bf16.gmra.mxu1 %vm642_vm2, %v14639_v51  ;;  %v6579_v17 = vmul.f32 %v14115_v53, %v14640_v30  ;;  %v14120_v59 = vunpack.i.h.bf16 %v12463_v18  ;;  %v14646_v51 = vld [vmem:[#allocation63_spill] sm:$0xff]  ;;  %v14123_v9 = vunpack.i.h.bf16 %v12473_v60  ;;  %v14652_v18 = vld [vmem:[#allocation2_spill] sm:$0xff] }
 0x6aa   :  { %14634 = vst [vmem:[#allocation35_spill] sm:$0xff] %v12461_v62  ;;  %v5369_v42 = vpop.f32.mrf.mxu3  ;;  %v6657_v13 = vadd.f32 %v6656_v36, %v6577_v6  ;;  %v12490_v6 = vpop.permute.xlu2 %9326  ;;  %v14648_v20 = vunpack.i.l.bf16 %v12473_v60 }
 0x6ab   :  { %14638 = vst [vmem:[#allocation149_spill] sm:$0xff] %v12475_v40  ;;  %v14643_v40 = vld [vmem:[#allocation36_spill] sm:$0xff]  ;;  %v6581_v53 = vmul.f32 %v14120_v59, %v14646_v51  ;;  %v14129_v59 = vunpack.i.h.bf16 %v12490_v6 }
 0x6ac   :  { %v6658_v52 = vadd.f32 %v6657_v13, %v6578_v14  ;;  %14645 = vst [vmem:[#allocation36_spill] sm:$0xff] %v12490_v6  ;;  %v14647_v13 = vld [vmem:[#allocation50_spill] sm:$0xff] }
 0x6ad   :  { %v6582_v19 = vmul.f32 %v14648_v20, %v14647_v13  ;;  %v14653_v13 = vld [vmem:[#allocation37_spill] sm:$0xff] }
 0x6ae   :  { %v4574_v35 = vpop.f32.mrf.mxu2  ;;  %v6659_v36 = vadd.f32 %v6658_v52, %v6579_v17  ;;  %v14651_v17 = vld [vmem:[#allocation64_spill] sm:$0xff] }
 0x6af   :  { %v5874_v5 = vpop.f32.mrf.mxu0  ;;  %v4667_v39 = vadd.f32 %v4574_v35, %v14643_v40  ;;  %v14128_v40 = vunpack.i.l.bf16 %v12490_v6 }
 0x6b0   :  { %v12488_v37 = vadd.f32 %v5874_v5, %v5461_v33  ;;  %v6660_v14 = vadd.f32 %v6659_v36, %v6580_v27  ;;  %v12500_v33 = vpop.permute.xlu0 %9331  ;;  %v12502_v35 = vpop.f32.mrf.mxu1  ;;  %v6583_v5 = vmul.f32 %v14123_v9, %v14651_v17 }
 0x6b1   :  { %v5462_v61 = vadd.f32 %v5369_v42, %v4667_v39  ;;  %14649 = vst [vmem:[#allocation150_spill] sm:$0xff] %v12500_v33  ;;  %v6584_v20 = vmul.f32 %v14128_v40, %v14652_v18  ;;  %v14132_v39 = vunpack.i.h.bf16 %v12500_v33  ;;  %v14658_v41 = vunpack.i.l.bf16 %v12500_v33 }
 0x6b2   :  { %14644 = vst [vmem:[#allocation84_spill] sm:$0xff] %v12488_v37  ;;  %v5371_v30 = vpop.f32.mrf.mxu3  ;;  %v6661_v52 = vadd.f32 %v6660_v14, %v6581_v53  ;;  %v12515_v53 = vpop.permute.xlu1 %9336 }
 0x6b3   :  { %14650 = vst [vmem:[#allocation151_spill] sm:$0xff] %v12502_v35  ;;  %v14656_v35 = vld [vmem:[#allocation65_spill] sm:$0xff]  ;;  %v14664_v6 = vunpack.i.l.bf16 %v12515_v53 }
 0x6b4   :  { %v6662_v36 = vadd.f32 %v6661_v52, %v6582_v19  ;;  %14655 = vst [vmem:[#allocation152_spill] sm:$0xff] %v12515_v53  ;;  %v6585_v9 = vmul.f32 %v14129_v59, %v14656_v35  ;;  %v14657_v52 = vld [vmem:[#allocation4_spill] sm:$0xff] }
 0x6b5   :  { %v6586_v40 = vmul.f32 %v14658_v41, %v14657_v52 }
 0x6b6   :  { %v4576_v27 = vpop.f32.mrf.mxu2  ;;  %v6663_v14 = vadd.f32 %v6662_v36, %v6583_v5  ;;  %v14661_v5 = vld [vmem:[#allocation85_spill] sm:$0xff]  ;;  %v14662_v36 = vld [vmem:[#allocation66_spill] sm:$0xff] }
 0x6b7   :  { %v5877_v42 = vpop.f32.mrf.mxu0  ;;  %v4668_v51 = vadd.f32 %v4576_v27, %v14653_v13  ;;  %v14663_v13 = vld [vmem:[#allocation6_spill] sm:$0xff] }
 0x6b8   :  { %v12513_v29 = vadd.f32 %v5877_v42, %v5462_v61  ;;  %v6664_v19 = vadd.f32 %v6663_v14, %v6584_v20  ;;  %v12525_v61 = vpop.permute.xlu2 %9341  ;;  %v12527_v27 = vpop.f32.mrf.mxu1  ;;  %v6588_v52 = vmul.f32 %v14664_v6, %v14663_v13 }
 0x6b9   :  { %v5463_v60 = vadd.f32 %v5371_v30, %v4668_v51  ;;  %14659 = vst [vmem:[#allocation153_spill] sm:$0xff] %v12525_v61  ;;  %8653 = vmatmul.msk.bf16.gmra.mxu1 %vm642_vm2, %v14661_v5  ;;  %v6587_v30 = vmul.f32 %v14132_v39, %v14662_v36  ;;  %v14137_v51 = vunpack.i.h.bf16 %v12515_v53  ;;  %v14668_v5 = vld [vmem:[#allocation67_spill] sm:$0xff]  ;;  %v14142_v20 = vunpack.i.h.bf16 %v12525_v61 }
 0x6ba   :  { %14654 = vst [vmem:[#allocation37_spill] sm:$0xff] %v12513_v29  ;;  %v5374_v17 = vpop.f32.mrf.mxu3  ;;  %v6665_v42 = vadd.f32 %v6664_v19, %v6585_v9  ;;  %v12542_v9 = vpop.permute.xlu0 %9346  ;;  %v14670_v38 = vunpack.i.l.bf16 %v12525_v61  ;;  %v14674_v53 = vld [vmem:[#allocation39_spill] sm:$0xff]  ;;  %v14677_v61 = vld [vmem:[#allocation69_spill] sm:$0xff] }
 0x6bb   :  { %14660 = vst [vmem:[#allocation154_spill] sm:$0xff] %v12527_v27  ;;  %v14665_v27 = vld [vmem:[#allocation38_spill] sm:$0xff]  ;;  %v6589_v39 = vmul.f32 %v14137_v51, %v14668_v5 }
 0x6bc   :  { %v6666_v59 = vadd.f32 %v6665_v42, %v6586_v40  ;;  %14667 = vst [vmem:[#allocation38_spill] sm:$0xff] %v12542_v9  ;;  %v14669_v42 = vld [vmem:[#allocation8_spill] sm:$0xff] }
 0x6bd   :  { %v6590_v6 = vmul.f32 %v14670_v38, %v14669_v42 }
 0x6be   :  { %v4579_v14 = vpop.f32.mrf.mxu2  ;;  %v6667_v19 = vadd.f32 %v6666_v59, %v6587_v30  ;;  %v14146_v30 = vunpack.i.h.bf16 %v12542_v9 }
 0x6bf   :  { %v5879_v41 = vpop.f32.mrf.mxu0  ;;  %v4669_v35 = vadd.f32 %v4579_v14, %v14665_v27  ;;  %v14145_v27 = vunpack.i.l.bf16 %v12542_v9  ;;  %v14683_v9 = vld [vmem:[#allocation40_spill] sm:$0xff] }
 0x6c0   :  { %v12540_v18 = vadd.f32 %v5879_v41, %v5463_v60  ;;  %v6668_v40 = vadd.f32 %v6667_v19, %v6588_v52  ;;  %v12552_v60 = vpop.permute.xlu1 %9351  ;;  %v14672_v41 = vld [vmem:[#allocation68_spill] sm:$0xff]  ;;  %v14673_v19 = vld [vmem:[#allocation10_spill] sm:$0xff] }
 0x6c1   :  { %v5464_v33 = vadd.f32 %v5374_v17, %v4669_v35  ;;  %14671 = vst [vmem:[#allocation155_spill] sm:$0xff] %v12552_v60  ;;  %v6591_v59 = vmul.f32 %v14142_v20, %v14672_v41  ;;  %v6592_v38 = vmul.f32 %v14145_v27, %v14673_v19  ;;  %v6593_v20 = vmul.f32 %v14146_v30, %v14677_v61 }
 0x6c2   :  { %14666 = vst [vmem:[#allocation85_spill] sm:$0xff] %v12540_v18  ;;  %v5376_v36 = vpop.f32.mrf.mxu3  ;;  %v6669_v14 = vadd.f32 %v6668_v40, %v6589_v39  ;;  %v12565_v39 = vpop.permute.xlu2 %9356  ;;  %v14151_v51 = vunpack.i.h.bf16 %v12552_v60  ;;  %v14679_v58 = vunpack.i.l.bf16 %v12552_v60  ;;  %v14685_v60 = vld [vmem:[#allocation71_spill] sm:$0xff] }
 0x6c3   :  { %14676 = vst [vmem:[#allocation156_spill] sm:$0xff] %v12565_v39 }
 0x6c4   :  { %v6670_v52 = vadd.f32 %v6669_v14, %v6590_v6  ;;  %v14678_v14 = vld [vmem:[#allocation12_spill] sm:$0xff] }
 0x6c5   :  { %v6594_v27 = vmul.f32 %v14679_v58, %v14678_v14 }
 0x6c6   :  { %v4581_v35 = vpop.f32.mrf.mxu2  ;;  %v6671_v40 = vadd.f32 %v6670_v52, %v6591_v59  ;;  %v14155_v52 = vunpack.i.h.bf16 %v12565_v39 }
 0x6c7   :  { %v5882_v17 = vpop.f32.mrf.mxu0  ;;  %v4670_v42 = vadd.f32 %v4581_v35, %v14674_v53  ;;  %v14154_v53 = vunpack.i.l.bf16 %v12565_v39  ;;  %v14691_v39 = vld [vmem:[#allocation41_spill] sm:$0xff] }
 0x6c8   :  { %v12563_v5 = vadd.f32 %v5882_v17, %v5464_v33  ;;  %v6672_v6 = vadd.f32 %v6671_v40, %v6592_v38  ;;  %v12575_v33 = vpop.permute.xlu0 %9361  ;;  %v14681_v17 = vld [vmem:[#allocation70_spill] sm:$0xff] }
 0x6c9   :  { %v5465_v41 = vadd.f32 %v5376_v36, %v4670_v42  ;;  %14680 = vst [vmem:[#allocation157_spill] sm:$0xff] %v12575_v33  ;;  %v6595_v59 = vmul.f32 %v14151_v51, %v14681_v17  ;;  %v14682_v40 = vld [vmem:[#allocation14_spill] sm:$0xff]  ;;  %v6597_v51 = vmul.f32 %v14155_v52, %v14685_v60  ;;  %v14158_v30 = vunpack.i.h.bf16 %v12575_v33 }
 0x6ca   :  { %14675 = vst [vmem:[#allocation39_spill] sm:$0xff] %v12563_v5  ;;  %v5379_v13 = vpop.f32.mrf.mxu3  ;;  %v6673_v35 = vadd.f32 %v6672_v6, %v6593_v20  ;;  %v6596_v58 = vmul.f32 %v14154_v53, %v14682_v40  ;;  %v12588_v20 = vpop.permute.xlu1 %9366  ;;  %v14687_v11 = vunpack.i.l.bf16 %v12575_v33 }
 0x6cc   :  { %v6674_v38 = vadd.f32 %v6673_v35, %v6594_v27  ;;  %v14686_v35 = vld [vmem:[#allocation16_spill] sm:$0xff] }
 0x6cd   :  { %v6598_v53 = vmul.f32 %v14687_v11, %v14686_v35 }
 0x6ce   :  { %v4584_v36 = vpop.f32.mrf.mxu2  ;;  %v6675_v6 = vadd.f32 %v6674_v38, %v6595_v59  ;;  %v14165_v38 = vunpack.i.h.bf16 %v12588_v20 }
 0x6cf   :  { %v5884_v42 = vpop.f32.mrf.mxu0  ;;  %v4671_v14 = vadd.f32 %v4584_v36, %v14683_v9  ;;  %v14167_v9 = vunpack.i.l.bf16 %v12588_v20 }
 0x6d0   :  { %v12586_v61 = vadd.f32 %v5884_v42, %v5465_v41  ;;  %v6676_v27 = vadd.f32 %v6675_v6, %v6596_v58  ;;  %v12598_v41 = vpop.permute.xlu2 %9371  ;;  %v14689_v42 = vld [vmem:[#allocation74_spill] sm:$0xff]  ;;  %v12618_v47 = vpop.permute.xlu0 %9376 }
 0x6d1   :  { %v5466_v17 = vadd.f32 %v5379_v13, %v4671_v14  ;;  %14688 = vst [vmem:[#allocation158_spill] sm:$0xff] %v12598_v41  ;;  %v6599_v59 = vmul.f32 %v14158_v30, %v14689_v42  ;;  %v14690_v6 = vld [vmem:[#allocation18_spill] sm:$0xff]  ;;  %v14166_v33 = vunpack.i.h.bf16 %v12598_v41 }
 0x6d2   :  { %14684 = vst [vmem:[#allocation40_spill] sm:$0xff] %v12586_v61  ;;  %v5381_v19 = vpop.f32.mrf.mxu3  ;;  %v6677_v36 = vadd.f32 %v6676_v27, %v6597_v51  ;;  %v6600_v11 = vmul.f32 %v14167_v9, %v14690_v6  ;;  %v14693_v27 = vld [vmem:[#allocation76_spill] sm:$0xff] }
 0x6d3   :  { %v6601_v30 = vmul.f32 %v14165_v38, %v14693_v27  ;;  %v12631_v38 = vpop.permute.xlu1 %9381 }
 0x6d4   :  { %v6678_v58 = vadd.f32 %v6677_v36, %v6598_v53  ;;  %v14695_v53 = vunpack.i.l.bf16 %v12598_v41 }
 0x6d6   :  { %v4586_v13 = vpop.f32.mrf.mxu2  ;;  %v6679_v51 = vadd.f32 %v6678_v58, %v6599_v59  ;;  %v6602_v36 = vmul.f32 %v14695_v53, %v14694_v49  ;;  %v6603_v59 = vmul.f32 %v14166_v33, %v12201_v57 }
 0x6d7   :  { %v5887_v14 = vpop.f32.mrf.mxu0  ;;  %v4672_v35 = vadd.f32 %v4586_v13, %v14691_v39  ;;  %v14176_v39 = vunpack.i.l.bf16 %v12618_v47  ;;  %v14170_v13 = vunpack.i.h.bf16 %v12618_v47 }
 0x6d8   :  { %v12609_v60 = vadd.f32 %v5887_v14, %v5466_v17  ;;  %v6680_v40 = vadd.f32 %v6679_v51, %v6600_v11  ;;  %v14696_v11 = vld [vmem:[#allocation42_spill] sm:$0xff] }
 0x6d9   :  { %v5467_v42 = vadd.f32 %v5381_v19, %v4672_v35  ;;  %v6604_v35 = vmul.f32 %v14176_v39, %v12209_v12  ;;  %v6605_v33 = vmul.f32 %v14170_v13, %v12220_v10 }
 0x6da   :  { %14692 = vst [vmem:[#allocation41_spill] sm:$0xff] %v12609_v60  ;;  %v5384_v52 = vpop.f32.mrf.mxu3  ;;  %v6681_v17 = vadd.f32 %v6680_v40, %v6601_v30  ;;  %v14171_v30 = vunpack.i.l.bf16 %v12631_v38 }
 0x6dc   :  { %v6682_v19 = vadd.f32 %v6681_v17, %v6602_v36  ;;  %v14172_v36 = vunpack.i.h.bf16 %v12631_v38 }
 0x6de   :  { %v4589_v14 = vpop.f32.mrf.mxu2  ;;  %v6683_v40 = vadd.f32 %v6682_v19, %v6603_v59  ;;  %v6607_v59 = vmul.f32 %v14172_v36, %v12239_v56 }
 0x6df   :  { %v5889_v58 = vpop.f32.mrf.mxu0  ;;  %v4673_v51 = vadd.f32 %v4589_v14, %v14696_v11  ;;  %v6606_v14 = vmul.f32 %v14171_v30, %v12227_v7 }
 0x6e0   :  { %v12629_v53 = vadd.f32 %v5889_v58, %v5467_v42  ;;  %v6684_v17 = vadd.f32 %v6683_v40, %v6604_v35  ;;  %v12641_v42 = vpop.permute.xlu2 %9386  ;;  %v12653_v40 = vpop.permute.xlu0 %9391 }
 0x6e1   :  { %v5468_v9 = vadd.f32 %v5384_v52, %v4673_v51  ;;  %v14173_v58 = vunpack.i.l.bf16 %v12641_v42  ;;  %v14174_v52 = vunpack.i.h.bf16 %v12641_v42  ;;  %v14175_v30 = vunpack.i.l.bf16 %v12653_v40 }
 0x6e2   :  { %14697 = vst [vmem:[#allocation42_spill] sm:$0xff] %v12629_v53  ;;  %v5386_v41 = vpop.f32.mrf.mxu3  ;;  %v6685_v11 = vadd.f32 %v6684_v17, %v6605_v33 }
 0x6e3   :  { %v6608_v35 = vmul.f32 %v14173_v58, %v12251_v4  ;;  %v6609_v17 = vmul.f32 %v14174_v52, %v12282_v28 }
 0x6e4   :  { %v6686_v41 = vadd.f32 %v6685_v11, %v6606_v14  ;;  %v6610_v14 = vmul.f32 %v14175_v30, %v12305_v15  ;;  %v12663_v11 = vpop.permute.xlu1 %9396 }
 0x6e5   :  { %14699 = vst [vmem:[#allocation160_spill] sm:$0xff] %v12663_v11  ;;  %v14182_v58 = vunpack.i.h.bf16 %v12663_v11 }
 0x6e6   :  { %v4591_v19 = vpop.f32.mrf.mxu2  ;;  %v6687_v33 = vadd.f32 %v6686_v41, %v6607_v59 }
 0x6e7   :  { %v5892_v13 = vpop.f32.mrf.mxu0  ;;  %v14177_v19 = vunpack.i.h.bf16 %v12653_v40 }
 0x6e8   :  { %v12651_v51 = vadd.f32 %v5892_v13, %v5468_v9  ;;  %v6688_v36 = vadd.f32 %v6687_v33, %v6608_v35  ;;  %v14178_v9 = vunpack.i.l.bf16 %v12663_v11  ;;  %v12673_v33 = vpop.permute.xlu2 %9401 }
 0x6e9   :  { %v6611_v59 = vmul.f32 %v14177_v19, %v12332_v0  ;;  %14700 = vst [vmem:[#allocation161_spill] sm:$0xff] %v12673_v33  ;;  %v14181_v30 = vunpack.i.l.bf16 %v12673_v33 }
 0x6ea   :  { %14698 = vst [vmem:[#allocation159_spill] sm:$0xff] %v12651_v51  ;;  %v6689_v13 = vadd.f32 %v6688_v36, %v6609_v17  ;;  %v6612_v35 = vmul.f32 %v14178_v9, %v12357_v32  ;;  %v6613_v36 = vmul.f32 %v14182_v58, %v12384_v31  ;;  %v14183_v17 = vunpack.i.h.bf16 %v12673_v33 }
 0x6ec   :  { %v6690_v52 = vadd.f32 %v6689_v13, %v6610_v14  ;;  %v6614_v14 = vmul.f32 %v14181_v30, %v12409_v16  ;;  %v12683_v13 = vpop.permute.xlu0 %9406 }
 0x6ed   :  { %14701 = vst [vmem:[#allocation162_spill] sm:$0xff] %v12683_v13 }
 0x6ee   :  { %v6691_v39 = vadd.f32 %v6690_v52, %v6611_v59  ;;  %v6615_v52 = vmul.f32 %v14183_v17, %v12436_v54  ;;  %v14187_v59 = vunpack.i.h.bf16 %v12683_v13 }
 0x6ef   :  { %v5894_v41 = vpop.f32.mrf.mxu0 }
 0x6f0   :  { %v6692_v19 = vadd.f32 %v6691_v39, %v6612_v35  ;;  %v14186_v41 = vunpack.i.l.bf16 %v12683_v13  ;;  %v12693_v35 = vpop.permute.xlu1 %9411 }
 0x6f1   :  { %14702 = vst [vmem:[#allocation163_spill] sm:$0xff] %v12693_v35  ;;  %v14192_v30 = vunpack.i.l.bf16 %v12693_v35  ;;  %v14193_v17 = vunpack.i.h.bf16 %v12693_v35 }
 0x6f2   :  { %v6693_v9 = vadd.f32 %v6692_v19, %v6613_v36  ;;  %v6616_v39 = vmul.f32 %v14186_v41, %v12461_v62  ;;  %v6617_v19 = vmul.f32 %v14187_v59, %v12488_v37  ;;  %v12699_v36 = vpop.permute.xlu2 %9416 }
 0x6f3   :  { %14703 = vst [vmem:[#allocation164_spill] sm:$0xff] %v12699_v36  ;;  %v14197_v59 = vunpack.i.h.bf16 %v12699_v36 }
 0x6f4   :  { %v6694_v11 = vadd.f32 %v6693_v9, %v6614_v14  ;;  %v6618_v9 = vmul.f32 %v14192_v30, %v12513_v29  ;;  %v14196_v14 = vunpack.i.l.bf16 %v12699_v36 }
 0x6f6   :  { %v6695_v58 = vadd.f32 %v6694_v11, %v6615_v52  ;;  %v6619_v11 = vmul.f32 %v14193_v17, %v12540_v18  ;;  %v12709_v52 = vpop.permute.xlu0 %9421 }
 0x6f7   :  { %14704 = vst [vmem:[#allocation165_spill] sm:$0xff] %v12709_v52 }
 0x6f8   :  { %v6696_v33 = vadd.f32 %v6695_v58, %v6616_v39  ;;  %v6620_v58 = vmul.f32 %v14196_v14, %v12563_v5  ;;  %v14204_v39 = vunpack.i.l.bf16 %v12709_v52 }
 0x6fa   :  { %v6697_v41 = vadd.f32 %v6696_v33, %v6617_v19  ;;  %v6621_v33 = vmul.f32 %v14197_v59, %v12586_v61  ;;  %v14207_v19 = vunpack.i.h.bf16 %v12709_v52  ;;  %v6622_v17 = vmul.f32 %v14204_v39, %v12609_v60  ;;  %v14707_v52 = vld [vmem:[#allocation21_spill] sm:$0xff] }
 0x6fc   :  { %v6698_v13 = vadd.f32 %v6697_v41, %v6618_v9  ;;  %v6623_v41 = vmul.f32 %v14207_v19, %v12629_v53  ;;  %v12726_v9 = vpop.permute.xlu1 %6541 }
 0x6fe   :  { %v6699_v37 = vadd.f32 %v6698_v13, %v6619_v11  ;;  %v6624_v13 = vmul.f32 %v12726_v9, %v12651_v51 }
 0x700   :  { %v6700_v30 = vadd.f32 %v6699_v37, %v6620_v58  ;;  %v12730_v58 = vpop.f32.mrf.mxu1 }
 0x701   :  { %14705 = vst [vmem:[#allocation166_spill] sm:$0xff] %v12730_v58 }
 0x702   :  { %v6701_v35 = vadd.f32 %v6700_v30, %v6621_v33 }
 0x704   :  { %v6702_v14 = vadd.f32 %v6701_v35, %v6622_v17 }
 0x706   :  { %v6703_v11 = vadd.f32 %v6702_v14, %v6623_v41  ;;  %v14711_v41 = vld [vmem:[#allocation47_spill] sm:$0xff] }
 0x708   :  { %v6704_v59 = vadd.f32 %v6703_v11, %v6624_v13  ;;  %v12732_v33 = vpop.f32.mrf.mxu1  ;;  %8654 = vmatmul.msk.bf16.gmra.mxu1 %vm642_vm2, %v14707_v52  ;;  %v14712_v11 = vld [vmem:[#allocation26_spill] sm:$0xff] }
 0x709   :  { %14706 = vst [vmem:[#allocation167_spill] sm:$0xff] %v12732_v33 }
 0x70a   :  { %v6705_v36 = vrot.slane %v6704_v59, 4 }
 0x70c   :  { %v6706_v61 = vadd.f32 %v6705_v36, %v6704_v59  ;;  %v14708_v36 = vld [vmem:[#allocation125_spill] sm:$0xff] }
 0x70e   :  { %v6707_v37 = vrot.slane %v6706_v61, 2 }
 0x710   :  { %v6708_v5 = vadd.f32 %v6707_v37, %v6706_v61  ;;  %v14709_v61 = vunpack.i.l.bf16 %v14708_v36  ;;  %v14713_v37 = vunpack.i.l.bf16 %v14712_v11 }
 0x712   :  { %v6709_v39 = vrot.slane %v6708_v5, 1 }
 0x714   :  { %v6710_v30 = vadd.f32 %v6709_v39, %v6708_v5  ;;  %v14710_v5 = vunpack.i.h.bf16 %v14708_v36  ;;  %v14715_v36 = vunpack.i.l.bf16 %v12241_v26 }
 0x716   :  { %v12736_v19 = vmul.f32 0.001953125, %v6710_v30 }
 0x718   :  { %v6712_v17 = vsub.f32 %v11367_v23, %v12736_v19  ;;  %v6713_v35 = vsub.f32 %v11379_v24, %v12736_v19  ;;  %v6714_v59 = vsub.f32 %v11396_v34, %v12736_v19  ;;  %v6715_v52 = vsub.f32 %v11405_v22, %v12736_v19 }
 0x719   :  { %v6716_v13 = vsub.f32 %v14711_v41, %v12736_v19  ;;  %v6717_v34 = vsub.f32 %v11428_v25, %v12736_v19  ;;  %v14714_v24 = vunpack.i.h.bf16 %v14712_v11  ;;  %v6719_v41 = vsub.f32 %v11457_v2, %v12736_v19 }
 0x71a   :  { %v6793_v14 = vmul.f32 %v14709_v61, %v6712_v17  ;;  %v6794_v39 = vmul.f32 %v14710_v5, %v6713_v35  ;;  %v6795_v30 = vmul.f32 %v14713_v37, %v6714_v59  ;;  %v6718_v35 = vsub.f32 %v11445_v44, %v12736_v19 }
 0x71b   :  { %v6796_v17 = vmul.f32 %v14714_v24, %v6715_v52  ;;  %v6797_v61 = vmul.f32 %v14715_v36, %v6716_v13  ;;  %v14716_v59 = vunpack.i.h.bf16 %v12241_v26  ;;  %v6720_v11 = vsub.f32 %v11472_v8, %v12736_v19  ;;  %v14717_v24 = vld [vmem:[#allocation128_spill] sm:$0xff] }
 0x71c   :  { %v6874_v33 = vmul.f32 %v6793_v14, %v6793_v14  ;;  %v6875_v58 = vmul.f32 %v6794_v39, %v6794_v39  ;;  %v6876_v5 = vmul.f32 %v6795_v30, %v6795_v30  ;;  %v14718_v52 = vunpack.i.l.bf16 %v14717_v24 }
 0x71d   :  { %v6798_v14 = vmul.f32 %v14716_v59, %v6717_v34  ;;  %v6877_v39 = vmul.f32 %v6796_v17, %v6796_v17  ;;  %v6878_v44 = vmul.f32 %v6797_v61, %v6797_v61  ;;  %v6721_v13 = vsub.f32 %v11481_v55, %v12736_v19  ;;  %v14720_v34 = vld [vmem:[#allocation52_spill] sm:$0xff] }
 0x71e   :  { %v6955_v22 = vadd.f32 %v6875_v58, %v6874_v33  ;;  %v6799_v25 = vmul.f32 %v14718_v52, %v6718_v35  ;;  %v14719_v58 = vunpack.i.h.bf16 %v14717_v24  ;;  %v6722_v26 = vsub.f32 %v14720_v34, %v12736_v19 }
 0x71f   :  { %v6879_v30 = vmul.f32 %v6798_v14, %v6798_v14  ;;  %v6723_v35 = vsub.f32 %v11502_v45, %v12736_v19 }
 0x720   :  { %v6956_v37 = vadd.f32 %v6955_v22, %v6876_v5  ;;  %v6800_v33 = vmul.f32 %v14719_v58, %v6719_v41  ;;  %v14721_v22 = vld [vmem:[#allocation129_spill] sm:$0xff]  ;;  %v6880_v59 = vmul.f32 %v6799_v25, %v6799_v25  ;;  %v6724_v41 = vsub.f32 %v11517_v1, %v12736_v19 }
 0x721   :  { %v14722_v17 = vunpack.i.l.bf16 %v14721_v22  ;;  %v14723_v61 = vunpack.i.h.bf16 %v14721_v22  ;;  %v6725_v25 = vsub.f32 %v11529_v43, %v12736_v19 }
 0x722   :  { %v6957_v23 = vadd.f32 %v6956_v37, %v6877_v39  ;;  %v6881_v37 = vmul.f32 %v6800_v33, %v6800_v33 }
 0x723   :  { %v6801_v5 = vmul.f32 %v14722_v17, %v6720_v11  ;;  %v6802_v39 = vmul.f32 %v14723_v61, %v6721_v13  ;;  %v14727_v13 = vld [vmem:[#allocation55_spill] sm:$0xff] }
 0x724   :  { %v6958_v36 = vadd.f32 %v6957_v23, %v6878_v44  ;;  %v14724_v23 = vld [vmem:[#allocation28_spill] sm:$0xff]  ;;  %v6726_v33 = vsub.f32 %v14727_v13, %v12736_v19 }
 0x725   :  { %v14725_v44 = vunpack.i.l.bf16 %v14724_v23  ;;  %v6882_v24 = vmul.f32 %v6801_v5, %v6801_v5  ;;  %v14726_v11 = vunpack.i.h.bf16 %v14724_v23 }
 0x726   :  { %v6959_v8 = vadd.f32 %v6958_v36, %v6879_v30  ;;  %v6883_v36 = vmul.f32 %v6802_v39, %v6802_v39  ;;  %v14731_v39 = vld [vmem:[#allocation133_spill] sm:$0xff] }
 0x727   :  { %v6803_v14 = vmul.f32 %v14725_v44, %v6722_v26  ;;  %v6804_v30 = vmul.f32 %v14726_v11, %v6723_v35  ;;  %v6727_v26 = vsub.f32 %v11553_v21, %v12736_v19  ;;  %v6728_v35 = vsub.f32 %v11565_v3, %v12736_v19  ;;  %v12810_v21 = vpop.f32.mrf.mxu1 }
 0x728   :  { %v6960_v52 = vadd.f32 %v6959_v8, %v6880_v59  ;;  %v14728_v8 = vld [vmem:[#allocation132_spill] sm:$0xff]  ;;  %v14732_v23 = vunpack.i.l.bf16 %v14731_v39  ;;  %14737 = vst [vmem:[#allocation21_spill] sm:$0xff] %v12810_v21 }
 0x729   :  { %v14729_v22 = vunpack.i.l.bf16 %v14728_v8  ;;  %v6884_v61 = vmul.f32 %v6803_v14, %v6803_v14  ;;  %v14730_v5 = vunpack.i.h.bf16 %v14728_v8  ;;  %v14733_v14 = vunpack.i.h.bf16 %v14731_v39  ;;  %v14739_v39 = vld [vmem:[#allocation135_spill] sm:$0xff] }
 0x72a   :  { %v6961_v58 = vadd.f32 %v6960_v52, %v6881_v37  ;;  %v6885_v52 = vmul.f32 %v6804_v30, %v6804_v30 }
 0x72b   :  { %v6805_v59 = vmul.f32 %v14729_v22, %v6724_v41  ;;  %v6806_v37 = vmul.f32 %v14730_v5, %v6725_v25  ;;  %v6729_v41 = vsub.f32 %v11574_v48, %v12736_v19  ;;  %v14734_v25 = vld [vmem:[#allocation88_spill] sm:$0xff] }
 0x72c   :  { %v6962_v17 = vadd.f32 %v6961_v58, %v6882_v24  ;;  %v6807_v24 = vmul.f32 %v14732_v23, %v6726_v33  ;;  %v6730_v30 = vsub.f32 %v14734_v25, %v12736_v19  ;;  %v6731_v33 = vsub.f32 %v11601_v63, %v12736_v19 }
 0x72d   :  { %v6886_v58 = vmul.f32 %v6805_v59, %v6805_v59  ;;  %v14740_v23 = vunpack.i.l.bf16 %v14739_v39 }
 0x72e   :  { %v6963_v1 = vadd.f32 %v6962_v17, %v6883_v36  ;;  %v6808_v36 = vmul.f32 %v14733_v14, %v6727_v26  ;;  %v6887_v17 = vmul.f32 %v6806_v37, %v6806_v37  ;;  %v6888_v5 = vmul.f32 %v6807_v24, %v6807_v24 }
 0x72f   :  { %v6732_v37 = vsub.f32 %v11616_v50, %v12736_v19  ;;  %v6733_v24 = vsub.f32 %v11625_v46, %v12736_v19  ;;  %v14741_v14 = vunpack.i.h.bf16 %v14739_v39  ;;  %v12828_v50 = vpop.f32.mrf.mxu1 }
 0x730   :  { %v6964_v44 = vadd.f32 %v6963_v1, %v6884_v61  ;;  %v14735_v1 = vld [vmem:[#allocation30_spill] sm:$0xff]  ;;  %14745 = vst [vmem:[#allocation125_spill] sm:$0xff] %v12828_v50 }
 0x731   :  { %v14736_v8 = vunpack.i.l.bf16 %v14735_v1  ;;  %v14738_v59 = vunpack.i.h.bf16 %v14735_v1 }
 0x732   :  { %v6965_v11 = vadd.f32 %v6964_v44, %v6885_v52  ;;  %v6889_v44 = vmul.f32 %v6808_v36, %v6808_v36 }
 0x733   :  { %v6809_v61 = vmul.f32 %v14736_v8, %v6728_v35  ;;  %v6810_v52 = vmul.f32 %v14738_v59, %v6729_v41  ;;  %v14742_v41 = vld [vmem:[#allocation91_spill] sm:$0xff] }
 0x734   :  { %v6966_v22 = vadd.f32 %v6965_v11, %v6886_v58  ;;  %v6811_v58 = vmul.f32 %v14740_v23, %v6730_v30  ;;  %v6734_v36 = vsub.f32 %v14742_v41, %v12736_v19  ;;  %v14746_v30 = vld [vmem:[#allocation86_spill] sm:$0xff] }
 0x735   :  { %v6890_v11 = vmul.f32 %v6809_v61, %v6809_v61  ;;  %8655 = vmatmul.msk.bf16.gmra.mxu1 %vm642_vm2, %v14746_v30  ;;  %v14747_v61 = vld [vmem:[#allocation92_spill] sm:$0xff]  ;;  %v14749_v23 = vld [vmem:[#allocation94_spill] sm:$0xff] }
 0x736   :  { %v6967_v3 = vadd.f32 %v6966_v22, %v6887_v17  ;;  %v6812_v17 = vmul.f32 %v14741_v14, %v6731_v33  ;;  %v6891_v22 = vmul.f32 %v6810_v52, %v6810_v52  ;;  %v6892_v59 = vmul.f32 %v6811_v58, %v6811_v58 }
 0x737   :  { %v12848_v46 = vpop.f32.mrf.mxu1 }
 0x738   :  { %v6968_v26 = vadd.f32 %v6967_v3, %v6888_v5  ;;  %v14743_v3 = vld [vmem:[#allocation137_spill] sm:$0xff]  ;;  %14757 = vst [vmem:[#allocation26_spill] sm:$0xff] %v12848_v46 }
 0x739   :  { %v14744_v1 = vunpack.i.l.bf16 %v14743_v3  ;;  %v14748_v33 = vunpack.i.h.bf16 %v14743_v3 }
 0x73a   :  { %v6969_v35 = vadd.f32 %v6968_v26, %v6889_v44  ;;  %v6735_v44 = vsub.f32 %v14747_v61, %v12736_v19  ;;  %v6893_v26 = vmul.f32 %v6812_v17, %v6812_v17 }
 0x73b   :  { %v6813_v5 = vmul.f32 %v14744_v1, %v6732_v37  ;;  %v6814_v52 = vmul.f32 %v14748_v33, %v6733_v24  ;;  %v14754_v24 = vld [vmem:[#allocation97_spill] sm:$0xff] }
 0x73c   :  { %v6970_v8 = vadd.f32 %v6969_v35, %v6890_v11  ;;  %v6736_v11 = vsub.f32 %v14749_v23, %v12736_v19  ;;  %v14750_v35 = vld [vmem:[#allocation138_spill] sm:$0xff]  ;;  %v6738_v17 = vsub.f32 %v14754_v24, %v12736_v19 }
 0x73d   :  { %v14751_v37 = vunpack.i.l.bf16 %v14750_v35  ;;  %v6894_v14 = vmul.f32 %v6813_v5, %v6813_v5  ;;  %v14753_v30 = vunpack.i.h.bf16 %v14750_v35  ;;  %v6895_v61 = vmul.f32 %v6814_v52, %v6814_v52  ;;  %v14760_v52 = vld [vmem:[#allocation100_spill] sm:$0xff] }
 0x73e   :  { %v6971_v21 = vadd.f32 %v6970_v8, %v6891_v22  ;;  %v14752_v8 = vld [vmem:[#allocation57_spill] sm:$0xff] }
 0x73f   :  { %v6815_v58 = vmul.f32 %v14751_v37, %v6734_v36  ;;  %v6737_v1 = vsub.f32 %v14752_v8, %v12736_v19  ;;  %v6816_v50 = vmul.f32 %v14753_v30, %v6735_v44  ;;  %v14758_v36 = vld [vmem:[#allocation58_spill] sm:$0xff]  ;;  %v6740_v37 = vsub.f32 %v14760_v52, %v12736_v19  ;;  %v12866_v8 = vpop.f32.mrf.mxu1 }
 0x740   :  { %v6972_v39 = vadd.f32 %v6971_v21, %v6892_v59  ;;  %v14755_v21 = vld [vmem:[#allocation32_spill] sm:$0xff]  ;;  %v6739_v5 = vsub.f32 %v14758_v36, %v12736_v19  ;;  %14768 = vst [vmem:[#allocation128_spill] sm:$0xff] %v12866_v8 }
 0x741   :  { %v14756_v3 = vunpack.i.l.bf16 %v14755_v21  ;;  %v6896_v33 = vmul.f32 %v6815_v58, %v6815_v58  ;;  %v6897_v35 = vmul.f32 %v6816_v50, %v6816_v50 }
 0x742   :  { %v6973_v22 = vadd.f32 %v6972_v39, %v6893_v26  ;;  %v14759_v26 = vunpack.i.h.bf16 %v14755_v21 }
 0x743   :  { %v6817_v59 = vmul.f32 %v14756_v3, %v6736_v11 }
 0x744   :  { %v6974_v41 = vadd.f32 %v6973_v22, %v6894_v14  ;;  %v6818_v39 = vmul.f32 %v14759_v26, %v6737_v1  ;;  %v14761_v14 = vld [vmem:[#allocation140_spill] sm:$0xff]  ;;  %v14765_v1 = vld [vmem:[#allocation103_spill] sm:$0xff] }
 0x745   :  { %v14762_v22 = vunpack.i.l.bf16 %v14761_v14  ;;  %v6898_v24 = vmul.f32 %v6817_v59, %v6817_v59  ;;  %v14764_v58 = vunpack.i.h.bf16 %v14761_v14  ;;  %v6742_v50 = vsub.f32 %v14765_v1, %v12736_v19  ;;  %v14770_v59 = vld [vmem:[#allocation60_spill] sm:$0xff]  ;;  %v14772_v14 = vld [vmem:[#allocation106_spill] sm:$0xff] }
 0x746   :  { %v6975_v23 = vadd.f32 %v6974_v41, %v6895_v61  ;;  %v14763_v41 = vld [vmem:[#allocation59_spill] sm:$0xff]  ;;  %v6899_v46 = vmul.f32 %v6818_v39, %v6818_v39 }
 0x747   :  { %v6819_v30 = vmul.f32 %v14762_v22, %v6738_v17  ;;  %v6741_v61 = vsub.f32 %v14763_v41, %v12736_v19  ;;  %v6820_v3 = vmul.f32 %v14764_v58, %v6739_v5  ;;  %v14769_v17 = vld [vmem:[#allocation23_spill] sm:$0xff]  ;;  %v6744_v22 = vsub.f32 %v14772_v14, %v12736_v19  ;;  %v14775_v58 = vld [vmem:[#allocation61_spill] sm:$0xff] }
 0x748   :  { %v6976_v44 = vadd.f32 %v6975_v23, %v6896_v33  ;;  %v14766_v23 = vld [vmem:[#allocation142_spill] sm:$0xff]  ;;  %8656 = vmatmul.msk.bf16.gmra.mxu1 %vm642_vm2, %v14769_v17 }
 0x749   :  { %v14767_v21 = vunpack.i.l.bf16 %v14766_v23  ;;  %v6900_v26 = vmul.f32 %v6819_v30, %v6819_v30  ;;  %v14771_v5 = vunpack.i.h.bf16 %v14766_v23 }
 0x74a   :  { %v6977_v11 = vadd.f32 %v6976_v44, %v6897_v35  ;;  %v6743_v35 = vsub.f32 %v14770_v59, %v12736_v19 }
 0x74b   :  { %v6821_v33 = vmul.f32 %v14767_v21, %v6740_v37  ;;  %v6822_v39 = vmul.f32 %v14771_v5, %v6741_v61  ;;  %v6745_v21 = vsub.f32 %v14775_v58, %v12736_v19  ;;  %v14777_v61 = vld [vmem:[#allocation109_spill] sm:$0xff] }
 0x74c   :  { %v6978_v36 = vadd.f32 %v6977_v11, %v6898_v24  ;;  %v6901_v24 = vmul.f32 %v6820_v3, %v6820_v3  ;;  %v14773_v11 = vld [vmem:[#allocation143_spill] sm:$0xff]  ;;  %v6746_v3 = vsub.f32 %v14777_v61, %v12736_v19 }
 0x74d   :  { %v14774_v37 = vunpack.i.l.bf16 %v14773_v11  ;;  %v14776_v17 = vunpack.i.h.bf16 %v14773_v11  ;;  %v6903_v59 = vmul.f32 %v6822_v39, %v6822_v39  ;;  %v12890_v11 = vpop.f32.mrf.mxu1 }
 0x74e   :  { %v6979_v52 = vadd.f32 %v6978_v36, %v6899_v46  ;;  %v6902_v46 = vmul.f32 %v6821_v33, %v6821_v33  ;;  %14782 = vst [vmem:[#allocation52_spill] sm:$0xff] %v12890_v11 }
 0x74f   :  { %v6823_v30 = vmul.f32 %v14774_v37, %v6742_v50  ;;  %v6824_v8 = vmul.f32 %v14776_v17, %v6743_v35  ;;  %v14780_v50 = vld [vmem:[#allocation62_spill] sm:$0xff]  ;;  %v14783_v35 = vld [vmem:[#allocation73_spill] sm:$0xff] }
 0x750   :  { %v6980_v44 = vadd.f32 %v6979_v52, %v6900_v26  ;;  %v14778_v52 = vld [vmem:[#allocation34_spill] sm:$0xff]  ;;  %v6747_v33 = vsub.f32 %v14780_v50, %v12736_v19  ;;  %v6748_v39 = vsub.f32 %v14783_v35, %v12736_v19 }
 0x751   :  { %v14779_v23 = vunpack.i.l.bf16 %v14778_v52  ;;  %v6904_v5 = vmul.f32 %v6823_v30, %v6823_v30  ;;  %v6905_v37 = vmul.f32 %v6824_v8, %v6824_v8  ;;  %v14788_v8 = vld [vmem:[#allocation50_spill] sm:$0xff] }
 0x752   :  { %v6981_v36 = vadd.f32 %v6980_v44, %v6901_v24  ;;  %v14781_v24 = vunpack.i.h.bf16 %v14778_v52 }
 0x753   :  { %v6825_v26 = vmul.f32 %v14779_v23, %v6744_v22 }
 0x754   :  { %v6982_v1 = vadd.f32 %v6981_v36, %v6902_v46  ;;  %v6826_v44 = vmul.f32 %v14781_v24, %v6745_v21  ;;  %v14784_v46 = vld [vmem:[#allocation145_spill] sm:$0xff] }
 0x755   :  { %v14785_v36 = vunpack.i.l.bf16 %v14784_v46  ;;  %v6906_v61 = vmul.f32 %v6825_v26, %v6825_v26  ;;  %v14787_v30 = vunpack.i.h.bf16 %v14784_v46  ;;  %v12908_v46 = vpop.f32.mrf.mxu1 }
 0x756   :  { %v6983_v14 = vadd.f32 %v6982_v1, %v6903_v59  ;;  %v14786_v1 = vld [vmem:[#allocation63_spill] sm:$0xff]  ;;  %v6907_v52 = vmul.f32 %v6826_v44, %v6826_v44  ;;  %14793 = vst [vmem:[#allocation129_spill] sm:$0xff] %v12908_v46  ;;  %v14795_v44 = vld [vmem:[#allocation148_spill] sm:$0xff] }
 0x757   :  { %v6827_v17 = vmul.f32 %v14785_v36, %v6746_v3  ;;  %v6749_v59 = vsub.f32 %v14786_v1, %v12736_v19  ;;  %v6828_v23 = vmul.f32 %v14787_v30, %v6747_v33  ;;  %v14791_v3 = vld [vmem:[#allocation64_spill] sm:$0xff] }
 0x758   :  { %v6984_v58 = vadd.f32 %v6983_v14, %v6904_v5  ;;  %v6750_v14 = vsub.f32 %v14788_v8, %v12736_v19  ;;  %v14789_v5 = vld [vmem:[#allocation147_spill] sm:$0xff]  ;;  %v6751_v26 = vsub.f32 %v14791_v3, %v12736_v19 }
 0x759   :  { %v14790_v24 = vunpack.i.l.bf16 %v14789_v5  ;;  %v6908_v35 = vmul.f32 %v6827_v17, %v6827_v17  ;;  %v6909_v36 = vmul.f32 %v6828_v23, %v6828_v23  ;;  %v14797_v17 = vld [vmem:[#allocation65_spill] sm:$0xff]  ;;  %v14800_v23 = vld [vmem:[#allocation36_spill] sm:$0xff] }
 0x75a   :  { %v6985_v22 = vadd.f32 %v6984_v58, %v6905_v37  ;;  %v14792_v58 = vunpack.i.h.bf16 %v14789_v5 }
 0x75b   :  { %v6829_v11 = vmul.f32 %v14790_v24, %v6748_v39 }
 0x75c   :  { %v6986_v21 = vadd.f32 %v6985_v22, %v6906_v61  ;;  %v6830_v37 = vmul.f32 %v14792_v58, %v6749_v59  ;;  %v14794_v61 = vld [vmem:[#allocation2_spill] sm:$0xff]  ;;  %v14796_v22 = vunpack.i.l.bf16 %v14795_v44  ;;  %v14801_v58 = vunpack.i.l.bf16 %v14800_v23 }
 0x75d   :  { %v6752_v33 = vsub.f32 %v14794_v61, %v12736_v19  ;;  %v6910_v8 = vmul.f32 %v6829_v11, %v6829_v11 }
 0x75e   :  { %v6987_v50 = vadd.f32 %v6986_v21, %v6907_v52  ;;  %v6831_v30 = vmul.f32 %v14796_v22, %v6750_v14  ;;  %v6753_v52 = vsub.f32 %v14797_v17, %v12736_v19  ;;  %v14798_v21 = vunpack.i.h.bf16 %v14795_v44  ;;  %v14802_v14 = vld [vmem:[#allocation66_spill] sm:$0xff]  ;;  %v12926_v44 = vpop.f32.mrf.mxu1 }
 0x75f   :  { %v6911_v5 = vmul.f32 %v6830_v37, %v6830_v37  ;;  %v6833_v46 = vmul.f32 %v14801_v58, %v6752_v33  ;;  %v6755_v11 = vsub.f32 %v14802_v14, %v12736_v19  ;;  %14804 = vst [vmem:[#allocation28_spill] sm:$0xff] %v12926_v44  ;;  %v14806_v37 = vld [vmem:[#allocation150_spill] sm:$0xff] }
 0x760   :  { %v6988_v1 = vadd.f32 %v6987_v50, %v6908_v35  ;;  %v6832_v24 = vmul.f32 %v14798_v21, %v6751_v26  ;;  %v14799_v50 = vld [vmem:[#allocation4_spill] sm:$0xff]  ;;  %v6912_v61 = vmul.f32 %v6831_v30, %v6831_v30  ;;  %v14808_v30 = vld [vmem:[#allocation67_spill] sm:$0xff] }
 0x761   :  { %v6754_v35 = vsub.f32 %v14799_v50, %v12736_v19  ;;  %v6914_v50 = vmul.f32 %v6833_v46, %v6833_v46 }
 0x762   :  { %v6989_v39 = vadd.f32 %v6988_v1, %v6909_v36  ;;  %v14803_v1 = vunpack.i.h.bf16 %v14800_v23  ;;  %v6913_v22 = vmul.f32 %v6832_v24, %v6832_v24  ;;  %v14811_v24 = vld [vmem:[#allocation152_spill] sm:$0xff] }
 0x764   :  { %v6990_v59 = vadd.f32 %v6989_v39, %v6910_v8  ;;  %v6834_v36 = vmul.f32 %v14803_v1, %v6753_v52  ;;  %v14805_v8 = vld [vmem:[#allocation6_spill] sm:$0xff]  ;;  %v14807_v39 = vunpack.i.l.bf16 %v14806_v37  ;;  %v14812_v1 = vunpack.i.l.bf16 %v14811_v24 }
 0x765   :  { %v6756_v26 = vsub.f32 %v14805_v8, %v12736_v19 }
 0x766   :  { %v6991_v3 = vadd.f32 %v6990_v59, %v6911_v5  ;;  %v6835_v21 = vmul.f32 %v14807_v39, %v6754_v35  ;;  %v6757_v5 = vsub.f32 %v14808_v30, %v12736_v19  ;;  %v14809_v59 = vunpack.i.h.bf16 %v14806_v37  ;;  %v14813_v35 = vld [vmem:[#allocation68_spill] sm:$0xff]  ;;  %v12944_v37 = vpop.f32.mrf.mxu1 }
 0x767   :  { %v6915_v23 = vmul.f32 %v6834_v36, %v6834_v36  ;;  %v6837_v44 = vmul.f32 %v14812_v1, %v6756_v26  ;;  %v6759_v46 = vsub.f32 %v14813_v35, %v12736_v19  ;;  %14815 = vst [vmem:[#allocation55_spill] sm:$0xff] %v12944_v37  ;;  %v14817_v36 = vld [vmem:[#allocation153_spill] sm:$0xff] }
 0x768   :  { %v6992_v17 = vadd.f32 %v6991_v3, %v6912_v61  ;;  %v6836_v58 = vmul.f32 %v14809_v59, %v6755_v11  ;;  %v14810_v3 = vld [vmem:[#allocation8_spill] sm:$0xff]  ;;  %v6916_v8 = vmul.f32 %v6835_v21, %v6835_v21  ;;  %v14819_v21 = vld [vmem:[#allocation69_spill] sm:$0xff] }
 0x769   :  { %v6758_v61 = vsub.f32 %v14810_v3, %v12736_v19  ;;  %v6918_v3 = vmul.f32 %v6837_v44, %v6837_v44 }
 0x76a   :  { %v6993_v33 = vadd.f32 %v6992_v17, %v6913_v22  ;;  %v14814_v17 = vunpack.i.h.bf16 %v14811_v24  ;;  %v6917_v39 = vmul.f32 %v6836_v58, %v6836_v58  ;;  %v14822_v58 = vld [vmem:[#allocation38_spill] sm:$0xff] }
 0x76c   :  { %v6994_v52 = vadd.f32 %v6993_v33, %v6914_v50  ;;  %v6838_v22 = vmul.f32 %v14814_v17, %v6757_v5  ;;  %v14816_v50 = vld [vmem:[#allocation10_spill] sm:$0xff]  ;;  %v14818_v33 = vunpack.i.l.bf16 %v14817_v36  ;;  %v14823_v17 = vunpack.i.l.bf16 %v14822_v58 }
 0x76d   :  { %v6760_v11 = vsub.f32 %v14816_v50, %v12736_v19 }
 0x76e   :  { %v6995_v14 = vadd.f32 %v6994_v52, %v6915_v23  ;;  %v6839_v59 = vmul.f32 %v14818_v33, %v6758_v61  ;;  %v6761_v23 = vsub.f32 %v14819_v21, %v12736_v19  ;;  %v14820_v52 = vunpack.i.h.bf16 %v14817_v36  ;;  %v14824_v61 = vld [vmem:[#allocation70_spill] sm:$0xff]  ;;  %v12966_v41 = vpop.f32.mrf.mxu1 }
 0x76f   :  { %v6919_v24 = vmul.f32 %v6838_v22, %v6838_v22  ;;  %v6841_v37 = vmul.f32 %v14823_v17, %v6760_v11  ;;  %v6763_v44 = vsub.f32 %v14824_v61, %v12736_v19  ;;  %14829 = vst [vmem:[#allocation132_spill] sm:$0xff] %v12966_v41  ;;  %v14830_v11 = vld [vmem:[#allocation71_spill] sm:$0xff] }
 0x770   :  { %v6996_v30 = vadd.f32 %v6995_v14, %v6916_v8  ;;  %v6840_v1 = vmul.f32 %v14820_v52, %v6759_v46  ;;  %v14821_v14 = vld [vmem:[#allocation12_spill] sm:$0xff]  ;;  %v6920_v50 = vmul.f32 %v6839_v59, %v6839_v59  ;;  %v14826_v46 = vld [vmem:[#allocation14_spill] sm:$0xff]  ;;  %v6765_v59 = vsub.f32 %v14830_v11, %v12736_v19 }
 0x771   :  { %v6762_v8 = vsub.f32 %v14821_v14, %v12736_v19  ;;  %v6764_v22 = vsub.f32 %v14826_v46, %v12736_v19  ;;  %v6922_v52 = vmul.f32 %v6841_v37, %v6841_v37  ;;  %v14835_v37 = vld [vmem:[#allocation74_spill] sm:$0xff] }
 0x772   :  { %v6997_v26 = vadd.f32 %v6996_v30, %v6917_v39  ;;  %v14825_v30 = vunpack.i.h.bf16 %v14822_v58  ;;  %v6921_v33 = vmul.f32 %v6840_v1, %v6840_v1  ;;  %v14833_v1 = vld [vmem:[#allocation156_spill] sm:$0xff] }
 0x773   :  { %v14834_v17 = vunpack.i.l.bf16 %v14833_v1 }
 0x774   :  { %v6998_v5 = vadd.f32 %v6997_v26, %v6918_v3  ;;  %v6842_v39 = vmul.f32 %v14825_v30, %v6761_v23  ;;  %v14827_v3 = vld [vmem:[#allocation155_spill] sm:$0xff] }
 0x775   :  { %v14828_v36 = vunpack.i.l.bf16 %v14827_v3  ;;  %v6845_v30 = vmul.f32 %v14834_v17, %v6764_v22  ;;  %v6769_v22 = vsub.f32 %v14693_v27, %v12736_v19  ;;  %v14931_v27 = vld [vmem:[#allocation14_spill] sm:$0xff] }
 0x776   :  { %v6999_v35 = vadd.f32 %v6998_v5, %v6919_v24  ;;  %v14831_v24 = vunpack.i.h.bf16 %v14827_v3  ;;  %v6923_v58 = vmul.f32 %v6842_v39, %v6842_v39 }
 0x777   :  { %v6843_v26 = vmul.f32 %v14828_v36, %v6762_v8 }
 0x778   :  { %v7000_v21 = vadd.f32 %v6999_v35, %v6920_v50  ;;  %v6844_v5 = vmul.f32 %v14831_v24, %v6763_v44  ;;  %v14832_v35 = vld [vmem:[#allocation16_spill] sm:$0xff]  ;;  %v6768_v44 = vsub.f32 %v14690_v6, %v12736_v19  ;;  %v14932_v6 = vld [vmem:[#allocation71_spill] sm:$0xff] }
 0x779   :  { %v6766_v50 = vsub.f32 %v14832_v35, %v12736_v19  ;;  %v6924_v46 = vmul.f32 %v6843_v26, %v6843_v26  ;;  %v12984_v35 = vpop.f32.mrf.mxu1 }
 0x77a   :  { %v7001_v14 = vadd.f32 %v7000_v21, %v6921_v33  ;;  %v6767_v21 = vsub.f32 %v14835_v37, %v12736_v19  ;;  %v14836_v33 = vunpack.i.h.bf16 %v14833_v1  ;;  %v6925_v41 = vmul.f32 %v6844_v5, %v6844_v5  ;;  %14839 = vst [vmem:[#allocation133_spill] sm:$0xff] %v12984_v35  ;;  %v14918_v35 = vld [vmem:[#allocation50_spill] sm:$0xff] }
 0x77b   :  { %v14841_v5 = vunpack.i.l.bf16 %v12588_v20 }
 0x77c   :  { %v7002_v23 = vadd.f32 %v7001_v14, %v6922_v52  ;;  %v6846_v36 = vmul.f32 %v14836_v33, %v6765_v59  ;;  %v14837_v14 = vld [vmem:[#allocation157_spill] sm:$0xff]  ;;  %v6926_v52 = vmul.f32 %v6845_v30, %v6845_v30 }
 0x77d   :  { %v14838_v39 = vunpack.i.l.bf16 %v14837_v14  ;;  %v14840_v26 = vunpack.i.h.bf16 %v14837_v14  ;;  %v6849_v1 = vmul.f32 %v14841_v5, %v6768_v44  ;;  %v6773_v44 = vsub.f32 %v12220_v10, %v12736_v19  ;;  %v14927_v10 = vld [vmem:[#allocation68_spill] sm:$0xff] }
 0x77e   :  { %v7003_v8 = vadd.f32 %v7002_v23, %v6923_v58  ;;  %v6927_v23 = vmul.f32 %v6846_v36, %v6846_v36  ;;  %v14843_v36 = vld [vmem:[#allocation158_spill] sm:$0xff] }
 0x77f   :  { %v6847_v3 = vmul.f32 %v14838_v39, %v6766_v50  ;;  %v6848_v58 = vmul.f32 %v14840_v26, %v6767_v21  ;;  %v6772_v21 = vsub.f32 %v12209_v12, %v12736_v19  ;;  %v14844_v14 = vunpack.i.l.bf16 %v14843_v36  ;;  %v14928_v12 = vld [vmem:[#allocation10_spill] sm:$0xff] }
 0x780   :  { %v7004_v11 = vadd.f32 %v7003_v8, %v6924_v46  ;;  %v6770_v46 = vsub.f32 %v14694_v49, %v12736_v19  ;;  %v14930_v49 = vld [vmem:[#allocation12_spill] sm:$0xff] }
 0x781   :  { %v6928_v17 = vmul.f32 %v6847_v3, %v6847_v3  ;;  %v6929_v8 = vmul.f32 %v6848_v58, %v6848_v58  ;;  %v13002_v26 = vpop.f32.mrf.mxu1  ;;  %v14846_v3 = vunpack.i.h.bf16 %v14843_v36  ;;  %v6774_v58 = vsub.f32 %v12227_v7, %v12736_v19  ;;  %v14926_v7 = vld [vmem:[#allocation8_spill] sm:$0xff] }
 0x782   :  { %v7005_v24 = vadd.f32 %v7004_v11, %v6925_v41  ;;  %v6771_v41 = vsub.f32 %v12201_v57, %v12736_v19  ;;  %v14842_v11 = vunpack.i.h.bf16 %v12588_v20  ;;  %v6851_v39 = vmul.f32 %v14844_v14, %v6770_v46  ;;  %14845 = vst [vmem:[#allocation88_spill] sm:$0xff] %v13002_v26  ;;  %v14917_v26 = vld [vmem:[#allocation63_spill] sm:$0xff]  ;;  %v14929_v57 = vld [vmem:[#allocation69_spill] sm:$0xff] }
 0x784   :  { %v7006_v59 = vadd.f32 %v7005_v24, %v6926_v52  ;;  %v6850_v30 = vmul.f32 %v14842_v11, %v6769_v22  ;;  %v6930_v52 = vmul.f32 %v6849_v1, %v6849_v1  ;;  %v6775_v1 = vsub.f32 %v12239_v56, %v12736_v19  ;;  %v14925_v56 = vld [vmem:[#allocation67_spill] sm:$0xff] }
 0x786   :  { %v7007_v50 = vadd.f32 %v7006_v59, %v6927_v23  ;;  %v6852_v23 = vmul.f32 %v14846_v3, %v6771_v41  ;;  %v6931_v20 = vmul.f32 %v6850_v30, %v6850_v30  ;;  %v14847_v59 = vunpack.i.l.bf16 %v12618_v47 }
 0x787   :  { %v6776_v41 = vsub.f32 %v12251_v4, %v12736_v19  ;;  %v14849_v30 = vunpack.i.l.bf16 %v12631_v38  ;;  %v14924_v4 = vld [vmem:[#allocation6_spill] sm:$0xff] }
 0x788   :  { %v7008_v33 = vadd.f32 %v7007_v50, %v6928_v17  ;;  %v6853_v5 = vmul.f32 %v14847_v59, %v6772_v21  ;;  %v6932_v17 = vmul.f32 %v6851_v39, %v6851_v39  ;;  %v14848_v50 = vunpack.i.h.bf16 %v12618_v47 }
 0x789   :  { %v6855_v36 = vmul.f32 %v14849_v30, %v6774_v58  ;;  %v6777_v21 = vsub.f32 %v12282_v28, %v12736_v19  ;;  %v14851_v39 = vunpack.i.h.bf16 %v12631_v38  ;;  %v6780_v38 = vsub.f32 %v12357_v32, %v12736_v19  ;;  %v14920_v32 = vld [vmem:[#allocation2_spill] sm:$0xff] }
 0x78a   :  { %v7009_v24 = vadd.f32 %v7008_v33, %v6929_v8  ;;  %v6854_v11 = vmul.f32 %v14848_v50, %v6773_v44  ;;  %v6933_v8 = vmul.f32 %v6852_v23, %v6852_v23  ;;  %v6934_v14 = vmul.f32 %v6853_v5, %v6853_v5  ;;  %v14923_v28 = vld [vmem:[#allocation66_spill] sm:$0xff] }
 0x78b   :  { %v6856_v3 = vmul.f32 %v14851_v39, %v6775_v1  ;;  %v6778_v23 = vsub.f32 %v12305_v15, %v12736_v19  ;;  %v6936_v59 = vmul.f32 %v6855_v36, %v6855_v36  ;;  %v6779_v5 = vsub.f32 %v12332_v0, %v12736_v19  ;;  %v14921_v0 = vld [vmem:[#allocation65_spill] sm:$0xff]  ;;  %v14922_v15 = vld [vmem:[#allocation4_spill] sm:$0xff] }
 0x78c   :  { %v7010_v22 = vadd.f32 %v7009_v24, %v6930_v52  ;;  %v13020_v24 = vpop.f32.mrf.mxu1  ;;  %v6935_v47 = vmul.f32 %v6854_v11, %v6854_v11  ;;  %v14854_v1 = vunpack.i.l.bf16 %v12653_v40  ;;  %v14855_v36 = vunpack.i.h.bf16 %v12653_v40 }
 0x78d   :  { %14850 = vst [vmem:[#allocation30_spill] sm:$0xff] %v13020_v24  ;;  %v6937_v50 = vmul.f32 %v6856_v3, %v6856_v3  ;;  %v14857_v3 = vld [vmem:[#allocation160_spill] sm:$0xff]  ;;  %v14916_v24 = vld [vmem:[#allocation73_spill] sm:$0xff] }
 0x78e   :  { %v7011_v46 = vadd.f32 %v7010_v22, %v6931_v20  ;;  %v14852_v20 = vunpack.i.l.bf16 %v12641_v42  ;;  %v6859_v11 = vmul.f32 %v14854_v1, %v6778_v23 }
 0x790   :  { %v7012_v33 = vadd.f32 %v7011_v46, %v6932_v17  ;;  %v6857_v22 = vmul.f32 %v14852_v20, %v6776_v41  ;;  %v14853_v17 = vunpack.i.h.bf16 %v12641_v42  ;;  %v6781_v41 = vsub.f32 %v12384_v31, %v12736_v19  ;;  %v14919_v31 = vld [vmem:[#allocation64_spill] sm:$0xff] }
 0x791   :  { %v6940_v20 = vmul.f32 %v6859_v11, %v6859_v11 }
 0x792   :  { %v7013_v52 = vadd.f32 %v7012_v33, %v6933_v8  ;;  %v6858_v46 = vmul.f32 %v14853_v17, %v6777_v21  ;;  %v6938_v33 = vmul.f32 %v6857_v22, %v6857_v22  ;;  %v6782_v21 = vsub.f32 %v12409_v16, %v12736_v19  ;;  %v14914_v16 = vld [vmem:[#allocation109_spill] sm:$0xff] }
 0x793   :  { %v6783_v22 = vsub.f32 %v12436_v54, %v12736_v19  ;;  %v6784_v17 = vsub.f32 %v12461_v62, %v12736_v19  ;;  %v14910_v62 = vld [vmem:[#allocation103_spill] sm:$0xff]  ;;  %v14912_v54 = vld [vmem:[#allocation106_spill] sm:$0xff] }
 0x794   :  { %v7014_v44 = vadd.f32 %v7013_v52, %v6934_v14  ;;  %v6860_v14 = vmul.f32 %v14855_v36, %v6779_v5  ;;  %v6939_v52 = vmul.f32 %v6858_v46, %v6858_v46  ;;  %v13042_v42 = vpop.f32.mrf.mxu1  ;;  %v14860_v46 = vld [vmem:[#allocation161_spill] sm:$0xff] }
 0x795   :  { %14856 = vst [vmem:[#allocation135_spill] sm:$0xff] %v13042_v42  ;;  %v14915_v42 = vld [vmem:[#allocation62_spill] sm:$0xff] }
 0x796   :  { %v7015_v58 = vadd.f32 %v7014_v44, %v6935_v47  ;;  %v14858_v47 = vunpack.i.l.bf16 %v14857_v3  ;;  %v6941_v40 = vmul.f32 %v6860_v14, %v6860_v14  ;;  %v14865_v14 = vld [vmem:[#allocation162_spill] sm:$0xff] }
 0x798   :  { %v7016_v8 = vadd.f32 %v7015_v58, %v6936_v59  ;;  %v6861_v44 = vmul.f32 %v14858_v47, %v6780_v38  ;;  %v14859_v59 = vunpack.i.h.bf16 %v14857_v3  ;;  %v14862_v38 = vld [vmem:[#allocation84_spill] sm:$0xff]  ;;  %v14866_v47 = vunpack.i.l.bf16 %v14865_v14 }
 0x799   :  { %v6785_v11 = vsub.f32 %v14862_v38, %v12736_v19  ;;  %v14909_v38 = vld [vmem:[#allocation59_spill] sm:$0xff] }
 0x79a   :  { %v7017_v30 = vadd.f32 %v7016_v8, %v6937_v50  ;;  %v6862_v58 = vmul.f32 %v14859_v59, %v6781_v41  ;;  %v14861_v50 = vunpack.i.l.bf16 %v14860_v46  ;;  %v6942_v1 = vmul.f32 %v6861_v44, %v6861_v44 }
 0x79b   :  { %v6786_v41 = vsub.f32 %v12513_v29, %v12736_v19  ;;  %v6787_v44 = vsub.f32 %v12540_v18, %v12736_v19  ;;  %v14867_v59 = vunpack.i.h.bf16 %v14865_v14 }
 0x79c   :  { %v7018_v39 = vadd.f32 %v7017_v30, %v6938_v33  ;;  %v6863_v8 = vmul.f32 %v14861_v50, %v6782_v21  ;;  %v14863_v30 = vunpack.i.h.bf16 %v14860_v46  ;;  %v13060_v3 = vpop.f32.mrf.mxu1  ;;  %v14869_v50 = vld [vmem:[#allocation163_spill] sm:$0xff] }
 0x79d   :  { %14864 = vst [vmem:[#allocation137_spill] sm:$0xff] %v13060_v3  ;;  %v14913_v3 = vld [vmem:[#allocation61_spill] sm:$0xff] }
 0x79e   :  { %v7019_v23 = vadd.f32 %v7018_v39, %v6939_v52  ;;  %v6864_v36 = vmul.f32 %v14863_v30, %v6783_v22  ;;  %v6943_v52 = vmul.f32 %v6862_v58, %v6862_v58  ;;  %v14868_v58 = vld [vmem:[#allocation39_spill] sm:$0xff] }
 0x79f   :  { %v6788_v46 = vsub.f32 %v14868_v58, %v12736_v19  ;;  %v14907_v58 = vld [vmem:[#allocation58_spill] sm:$0xff] }
 0x7a0   :  { %v7020_v5 = vadd.f32 %v7019_v23, %v6940_v20  ;;  %v6865_v20 = vmul.f32 %v14866_v47, %v6784_v17  ;;  %v6944_v23 = vmul.f32 %v6863_v8, %v6863_v8  ;;  %v14871_v17 = vld [vmem:[#allocation40_spill] sm:$0xff] }
 0x7a1   :  { %v6789_v8 = vsub.f32 %v14871_v17, %v12736_v19 }
 0x7a2   :  { %v7021_v33 = vadd.f32 %v7020_v5, %v6941_v40  ;;  %v6866_v40 = vmul.f32 %v14867_v59, %v6785_v11  ;;  %v6945_v5 = vmul.f32 %v6864_v36, %v6864_v36  ;;  %v6946_v30 = vmul.f32 %v6865_v20, %v6865_v20  ;;  %v14874_v36 = vld [vmem:[#allocation164_spill] sm:$0xff] }
 0x7a3   :  { %v6790_v11 = vsub.f32 %v12609_v60, %v12736_v19  ;;  %v6791_v20 = vsub.f32 %v12629_v53, %v12736_v19 }
 0x7a4   :  { %v7022_v39 = vadd.f32 %v7021_v33, %v6942_v1  ;;  %v14870_v1 = vunpack.i.l.bf16 %v14869_v50  ;;  %v6947_v47 = vmul.f32 %v6866_v40, %v6866_v40  ;;  %v13078_v14 = vpop.f32.mrf.mxu1  ;;  %v14877_v40 = vld [vmem:[#allocation165_spill] sm:$0xff] }
 0x7a5   :  { %14873 = vst [vmem:[#allocation86_spill] sm:$0xff] %v13078_v14  ;;  %v14911_v14 = vld [vmem:[#allocation60_spill] sm:$0xff] }
 0x7a6   :  { %v7023_v21 = vadd.f32 %v7022_v39, %v6943_v52  ;;  %v6867_v33 = vmul.f32 %v14870_v1, %v6786_v41  ;;  %v14872_v52 = vunpack.i.h.bf16 %v14869_v50  ;;  %v14878_v1 = vunpack.i.l.bf16 %v14877_v40 }
 0x7a8   :  { %v7024_v22 = vadd.f32 %v7023_v21, %v6944_v23  ;;  %v6868_v39 = vmul.f32 %v14872_v52, %v6787_v44  ;;  %v14875_v23 = vunpack.i.l.bf16 %v14874_v36  ;;  %v6948_v59 = vmul.f32 %v6867_v33, %v6867_v33 }
 0x7aa   :  { %v7025_v29 = vadd.f32 %v7024_v22, %v6945_v5  ;;  %v6869_v21 = vmul.f32 %v14875_v23, %v6788_v46  ;;  %v14876_v5 = vunpack.i.h.bf16 %v14874_v36  ;;  %v6949_v50 = vmul.f32 %v6868_v39, %v6868_v39 }
 0x7ab   :  { %v14879_v46 = vunpack.i.h.bf16 %v14877_v40 }
 0x7ac   :  { %v7026_v18 = vadd.f32 %v7025_v29, %v6946_v30  ;;  %v6870_v22 = vmul.f32 %v14876_v5, %v6789_v8  ;;  %v6792_v29 = vsub.f32 %v12651_v51, %v12736_v19  ;;  %v6871_v30 = vmul.f32 %v14878_v1, %v6790_v11  ;;  %v13094_v23 = vpop.f32.mrf.mxu1 }
 0x7ad   :  { %v6950_v52 = vmul.f32 %v6869_v21, %v6869_v21  ;;  %v6872_v33 = vmul.f32 %v14879_v46, %v6791_v20  ;;  %14880 = vst [vmem:[#allocation138_spill] sm:$0xff] %v13094_v23  ;;  %v14908_v23 = vld [vmem:[#allocation100_spill] sm:$0xff] }
 0x7ae   :  { %v7027_v41 = vadd.f32 %v7026_v18, %v6947_v47  ;;  %v6951_v18 = vmul.f32 %v6870_v22, %v6870_v22  ;;  %v6873_v36 = vmul.f32 %v6792_v29, %v12726_v9  ;;  %v6952_v8 = vmul.f32 %v6871_v30, %v6871_v30 }
 0x7b0   :  { %v7028_v44 = vadd.f32 %v7027_v41, %v6948_v59  ;;  %v6953_v59 = vmul.f32 %v6872_v33, %v6872_v33  ;;  %v6954_v5 = vmul.f32 %v6873_v36, %v6873_v36 }
 0x7b2   :  { %v7029_v60 = vadd.f32 %v7028_v44, %v6949_v50 }
 0x7b4   :  { %v7030_v47 = vadd.f32 %v7029_v60, %v6950_v52  ;;  %v13097_v11 = vpop.f32.mrf.mxu1 }
 0x7b5   :  { %14881 = vst [vmem:[#allocation32_spill] sm:$0xff] %v13097_v11  ;;  %v14906_v11 = vld [vmem:[#allocation97_spill] sm:$0xff] }
 0x7b6   :  { %v7031_v39 = vadd.f32 %v7030_v47, %v6951_v18 }
 0x7b8   :  { %v7032_v41 = vadd.f32 %v7031_v39, %v6952_v8  ;;  %v7055_v8 = vld [vmem:[%s13969_s4] sm:$0x1] }
 0x7ba   :  { %v7033_v51 = vadd.f32 %v7032_v41, %v6953_v59 }
 0x7bc   :  { %v7034_v53 = vadd.f32 %v7033_v51, %v6954_v5  ;;  %v13099_v22 = vpop.f32.mrf.mxu1  ;;  %v14887_v5 = vld [vmem:[#allocation43_spill] sm:$0xff] }
 0x7bd   :  { %14882 = vst [vmem:[#allocation140_spill] sm:$0xff] %v13099_v22  ;;  %v14905_v22 = vld [vmem:[#allocation57_spill] sm:$0xff] }
 0x7be   :  { %v7035_v17 = vrot.slane %v7034_v53, 4 }
 0x7c0   :  { %v7036_v21 = vadd.f32 %v7035_v17, %v7034_v53  ;;  %v7042_v53 = vld [vmem:[%s13968_s3] sm:$0x1] }
 0x7c2   :  { %v7037_v50 = vrot.slane %v7036_v21, 2 }
 0x7c4   :  { %v7038_v44 = vadd.f32 %v7037_v50, %v7036_v21  ;;  %v13101_v9 = vpop.f32.mrf.mxu1  ;;  %v14888_v50 = vld [vmem:[#allocation44_spill] sm:$0xff] }
 0x7c5   :  { %14883 = vst [vmem:[#allocation142_spill] sm:$0xff] %v13101_v9  ;;  %v14904_v9 = vld [vmem:[#allocation94_spill] sm:$0xff] }
 0x7c6   :  { %v7039_v20 = vrot.slane %v7038_v44, 1 }
 0x7c8   :  { %v7040_v60 = vadd.f32 %v7039_v20, %v7038_v44  ;;  %v14889_v20 = vld [vmem:[#allocation45_spill] sm:$0xff] }
 0x7ca   :  { %v7041_v40 = vmul.f32 0.001953125, %v7040_v60 }
 0x7cc   :  { %v7043_v1 = vadd.f32 1e-05, %v7041_v40  ;;  %v13103_v46 = vpop.f32.mrf.mxu1  ;;  %v14890_v40 = vld [vmem:[#allocation46_spill] sm:$0xff] }
 0x7cd   :  { %14884 = vst [vmem:[#allocation23_spill] sm:$0xff] %v13103_v46  ;;  %v14903_v46 = vld [vmem:[#allocation92_spill] sm:$0xff] }
 0x7ce   :  { %9425 = vrsqrt.f32 %v7043_v1  ;;  %vm7050_vm9 = vweird.f32 %v7043_v1 }
 0x7d4   :  { %v9426_v29 = vpop.eup %9425  ;;  %v13108_v36 = vpop.f32.mrf.mxu1 }
 0x7d5   :  { %v7045_v30 = vmul.f32 %v9426_v29, %v7043_v1  ;;  %vm7051_vm8 = vweird.f32 %v9426_v29  ;;  %14885 = vst [vmem:[#allocation143_spill] sm:$0xff] %v13108_v36  ;;  %v14902_v36 = vld [vmem:[#allocation91_spill] sm:$0xff] }
 0x7d6   :  { %vm7052_vm10 = vmor %vm7050_vm9, %vm7051_vm8 }
 0x7d7   :  { %v7046_v52 = vmul.f32 %v9426_v29, %v7045_v30 }
 0x7d9   :  { %v7047_v51 = vmul.f32 0.5, %v7046_v52  ;;  %v14892_v52 = vld [vmem:[#allocation48_spill] sm:$0xff] }
 0x7db   :  { %v7048_v33 = vsub.f32 1.5, %v7047_v51 }
 0x7dd   :  { %v7049_v17 = vmul.f32 %v9426_v29, %v7048_v33  ;;  %v14894_v33 = vld [vmem:[#allocation49_spill] sm:$0xff] }
 0x7df   :  { %v7053_v18 = vsel %vm7052_vm10, %v9426_v29, %v7049_v17  ;;  %v14891_v29 = vld [vmem:[#allocation47_spill] sm:$0xff] }
 0x7e0   :  { %v7054_v47 = vmul.f32 %v7053_v18, %v7042_v53  ;;  %v14895_v18 = vld [vmem:[#allocation53_spill] sm:$0xff] }
 0x7e2   :  { %v7056_v39 = vmul.f32 %v7054_v47, %v12736_v19  ;;  %v13114_v59 = vperm.slane %v7054_v47, 0 }
 0x7e4   :  { %14886 = vst [vmem:[#allocation34_spill] sm:$0xff] %v13114_v59  ;;  %v7057_v41 = vsub.f32 %v7055_v8, %v7056_v39  ;;  %v7061_v21 = vmul.f32 %v13114_v59, %v14887_v5  ;;  %v7062_v44 = vmul.f32 %v13114_v59, %v14888_v50  ;;  %v7063_v60 = vmul.f32 %v13114_v59, %v14889_v20 }
 0x7e5   :  { %v7064_v1 = vmul.f32 %v13114_v59, %v14890_v40  ;;  %v7065_v30 = vmul.f32 %v13114_v59, %v14891_v29  ;;  %v7066_v19 = vmul.f32 %v13114_v59, %v14892_v52  ;;  %v7067_v53 = vmul.f32 %v13114_v59, %v14894_v33  ;;  %v14897_v40 = vld [vmem:[#allocation56_spill] sm:$0xff]  ;;  %v14898_v52 = vld [vmem:[#allocation87_spill] sm:$0xff]  ;;  %v13152_v33 = vpop.f32.mrf.mxu1 }
 0x7e6   :  { %v13128_v51 = vperm.slane %v7057_v41, 0  ;;  %v7068_v17 = vmul.f32 %v13114_v59, %v11457_v2  ;;  %v7069_v47 = vmul.f32 %v13114_v59, %v14895_v18  ;;  %v7070_v8 = vmul.f32 %v13114_v59, %v11481_v55  ;;  %v14896_v41 = vld [vmem:[#allocation54_spill] sm:$0xff]  ;;  %14899 = vst [vmem:[#allocation147_spill] sm:$0xff] %v13152_v33  ;;  %v14900_v18 = vld [vmem:[#allocation89_spill] sm:$0xff] }
 0x7e7   :  { %v7071_v39 = vmul.f32 %v13114_v59, %v14720_v34  ;;  %v7072_v5 = vmul.f32 %v13114_v59, %v11502_v45  ;;  %v7073_v50 = vmul.f32 %v13114_v59, %v14896_v41  ;;  %v7074_v20 = vmul.f32 %v13114_v59, %v11529_v43  ;;  %v14901_v41 = vld [vmem:[#allocation90_spill] sm:$0xff] }
 0x7e8   :  { %14893 = vst [vmem:[#allocation145_spill] sm:$0xff] %v13128_v51  ;;  %v7075_v2 = vmul.f32 %v13114_v59, %v14727_v13  ;;  %v7076_v29 = vmul.f32 %v13114_v59, %v14897_v40  ;;  %v7077_v55 = vmul.f32 %v13114_v59, %v14898_v52  ;;  %v7078_v45 = vmul.f32 %v13114_v59, %v11574_v48 }
 0x7e9   :  { %v7079_v34 = vmul.f32 %v13114_v59, %v14734_v25  ;;  %v7080_v43 = vmul.f32 %v13114_v59, %v11601_v63  ;;  %v7081_v13 = vmul.f32 %v13114_v59, %v14900_v18  ;;  %v7082_v40 = vmul.f32 %v13114_v59, %v14901_v41 }
 0x7ea   :  { %v7083_v52 = vmul.f32 %v13114_v59, %v14902_v36  ;;  %v7084_v33 = vmul.f32 %v13114_v59, %v14903_v46  ;;  %v7085_v48 = vmul.f32 %v13114_v59, %v14904_v9  ;;  %v7086_v25 = vmul.f32 %v13114_v59, %v14905_v22 }
 0x7eb   :  { %v7087_v63 = vmul.f32 %v13114_v59, %v14906_v11  ;;  %v7088_v18 = vmul.f32 %v13114_v59, %v14907_v58  ;;  %v7089_v41 = vmul.f32 %v13114_v59, %v14908_v23  ;;  %v7090_v36 = vmul.f32 %v13114_v59, %v14909_v38 }
 0x7ec   :  { %v7091_v46 = vmul.f32 %v13114_v59, %v14910_v62  ;;  %v7092_v9 = vmul.f32 %v13114_v59, %v14911_v14  ;;  %v7093_v22 = vmul.f32 %v13114_v59, %v14912_v54  ;;  %v7094_v11 = vmul.f32 %v13114_v59, %v14913_v3 }
 0x7ed   :  { %v7095_v58 = vmul.f32 %v13114_v59, %v14914_v16  ;;  %v7096_v23 = vmul.f32 %v13114_v59, %v14915_v42  ;;  %v7097_v38 = vmul.f32 %v13114_v59, %v14916_v24  ;;  %v7098_v62 = vmul.f32 %v13114_v59, %v14917_v26  ;;  %v13237_v37 = vpop.f32.mrf.mxu1 }
 0x7ee   :  { %v7099_v14 = vmul.f32 %v13114_v59, %v14918_v35  ;;  %v7100_v54 = vmul.f32 %v13114_v59, %v14919_v31  ;;  %v7101_v3 = vmul.f32 %v13114_v59, %v14920_v32  ;;  %v7102_v16 = vmul.f32 %v13114_v59, %v14921_v0  ;;  %14933 = vst [vmem:[#allocation148_spill] sm:$0xff] %v13237_v37 }
 0x7ef   :  { %v7103_v42 = vmul.f32 %v13114_v59, %v14922_v15  ;;  %v7104_v24 = vmul.f32 %v13114_v59, %v14923_v28  ;;  %v7105_v26 = vmul.f32 %v13114_v59, %v14924_v4  ;;  %v7106_v35 = vmul.f32 %v13114_v59, %v14925_v56 }
 0x7f0   :  { %v7107_v31 = vmul.f32 %v13114_v59, %v14926_v7  ;;  %v7108_v32 = vmul.f32 %v13114_v59, %v14927_v10  ;;  %v7109_v0 = vmul.f32 %v13114_v59, %v14928_v12  ;;  %v7110_v15 = vmul.f32 %v13114_v59, %v14929_v57 }
 0x7f1   :  { %v7111_v28 = vmul.f32 %v13114_v59, %v14930_v49  ;;  %v7112_v4 = vmul.f32 %v13114_v59, %v14824_v61  ;;  %v7113_v56 = vmul.f32 %v13114_v59, %v14931_v27  ;;  %v7114_v7 = vmul.f32 %v13114_v59, %v14932_v6 }
 0x7f2   :  { %v13229_v10 = vadd.f32 %v13128_v51, %v7061_v21  ;;  %v13232_v12 = vadd.f32 %v13128_v51, %v7062_v44  ;;  %v13235_v57 = vadd.f32 %v13128_v51, %v7063_v60  ;;  %v13240_v49 = vadd.f32 %v13128_v51, %v7064_v1 }
 0x7f3   :  { %v13243_v61 = vadd.f32 %v13128_v51, %v7065_v30  ;;  %v13246_v27 = vadd.f32 %v13128_v51, %v7066_v19  ;;  %v13249_v6 = vadd.f32 %v13128_v51, %v7067_v53  ;;  %v13252_v21 = vadd.f32 %v13128_v51, %v7068_v17 }
 0x7f4   :  { %v13255_v44 = vadd.f32 %v13128_v51, %v7069_v47  ;;  %v13258_v60 = vadd.f32 %v13128_v51, %v7070_v8  ;;  %v13261_v1 = vadd.f32 %v13128_v51, %v7071_v39  ;;  %v13264_v30 = vadd.f32 %v13128_v51, %v7072_v5 }
 0x7f5   :  { %v13267_v19 = vadd.f32 %v13128_v51, %v7073_v50  ;;  %v13270_v53 = vadd.f32 %v13128_v51, %v7074_v20  ;;  %v13273_v17 = vadd.f32 %v13128_v51, %v7075_v2  ;;  %v13276_v47 = vadd.f32 %v13128_v51, %v7076_v29 }
 0x7f6   :  { %v13279_v8 = vadd.f32 %v13128_v51, %v7077_v55  ;;  %v13282_v39 = vadd.f32 %v13128_v51, %v7078_v45  ;;  %v13285_v5 = vadd.f32 %v13128_v51, %v7079_v34  ;;  %v13288_v50 = vadd.f32 %v13128_v51, %v7080_v43 }
 0x7f7   :  { %v13291_v20 = vadd.f32 %v13128_v51, %v7081_v13  ;;  %v13294_v2 = vadd.f32 %v13128_v51, %v7082_v40  ;;  %v13297_v29 = vadd.f32 %v13128_v51, %v7083_v52  ;;  %v13300_v55 = vadd.f32 %v13128_v51, %v7084_v33 }
 0x7f8   :  { %v13303_v45 = vadd.f32 %v13128_v51, %v7085_v48  ;;  %v13306_v34 = vadd.f32 %v13128_v51, %v7086_v25  ;;  %v13309_v43 = vadd.f32 %v13128_v51, %v7087_v63  ;;  %v13312_v13 = vadd.f32 %v13128_v51, %v7088_v18 }
 0x7f9   :  { %v13315_v40 = vadd.f32 %v13128_v51, %v7089_v41  ;;  %v13318_v52 = vadd.f32 %v13128_v51, %v7090_v36  ;;  %v13321_v33 = vadd.f32 %v13128_v51, %v7091_v46  ;;  %v13324_v48 = vadd.f32 %v13128_v51, %v7092_v9 }
 0x7fa   :  { %v13327_v25 = vadd.f32 %v13128_v51, %v7093_v22  ;;  %v13330_v63 = vadd.f32 %v13128_v51, %v7094_v11  ;;  %v13333_v18 = vadd.f32 %v13128_v51, %v7095_v58  ;;  %v13336_v41 = vadd.f32 %v13128_v51, %v7096_v23  ;;  %v13347_v22 = vpop.f32.mrf.mxu1 }
 0x7fb   :  { %v13339_v36 = vadd.f32 %v13128_v51, %v7097_v38  ;;  %v13342_v46 = vadd.f32 %v13128_v51, %v7098_v62  ;;  %v13345_v9 = vadd.f32 %v13128_v51, %v7099_v14  ;;  %14934 = vst [vmem:[#allocation36_spill] sm:$0xff] %v13347_v22  ;;  %v13350_v11 = vadd.f32 %v13128_v51, %v7100_v54 }
 0x7fc   :  { %v13353_v58 = vadd.f32 %v13128_v51, %v7101_v3  ;;  %v13356_v23 = vadd.f32 %v13128_v51, %v7102_v16  ;;  %v13359_v38 = vadd.f32 %v13128_v51, %v7103_v42  ;;  %v13362_v62 = vadd.f32 %v13128_v51, %v7104_v24 }
 0x7fd   :  { %v13365_v14 = vadd.f32 %v13128_v51, %v7105_v26  ;;  %v13368_v22 = vadd.f32 %v13128_v51, %v7106_v35  ;;  %v13371_v54 = vadd.f32 %v13128_v51, %v7107_v31  ;;  %v13374_v3 = vadd.f32 %v13128_v51, %v7108_v32 }
 0x7fe   :  { %v13377_v16 = vadd.f32 %v13128_v51, %v7109_v0  ;;  %v13380_v42 = vadd.f32 %v13128_v51, %v7110_v15  ;;  %v13383_v24 = vadd.f32 %v13128_v51, %v7111_v28  ;;  %v13386_v26 = vadd.f32 %v13128_v51, %v7112_v4 }
 0x7ff   :  { %v13389_v35 = vadd.f32 %v13128_v51, %v7113_v56  ;;  %v13392_v31 = vadd.f32 %v13128_v51, %v7114_v7  ;;  %v7226_v32 = vmax.f32 %v13229_v10, 0.0  ;;  %v7227_v0 = vmax.f32 %v13232_v12, 0.0 }
 0x800   :  { %v7228_v37 = vmax.f32 %v13235_v57, 0.0  ;;  %v7229_v15 = vmax.f32 %v13240_v49, 0.0  ;;  %v7230_v28 = vmax.f32 %v13243_v61, 0.0  ;;  %v7231_v59 = vmax.f32 %v13246_v27, 0.0 }
 0x801   :  { %14935 = vst [vmem:[#allocation150_spill] sm:$0xff] %v13389_v35  ;;  %v7232_v4 = vmax.f32 %v13249_v6, 0.0  ;;  %v7233_v56 = vmax.f32 %v13252_v21, 0.0  ;;  %v7234_v35 = vmax.f32 %v13255_v44, 0.0  ;;  %v7235_v7 = vmax.f32 %v13258_v60, 0.0 }
 0x802   :  { %v7236_v10 = vmax.f32 %v13261_v1, 0.0  ;;  %v7237_v12 = vmax.f32 %v13264_v30, 0.0  ;;  %v7238_v57 = vmax.f32 %v13267_v19, 0.0  ;;  %v7239_v49 = vmax.f32 %v13270_v53, 0.0  ;;  %v13419_v51 = vpop.f32.mrf.mxu1 }
 0x803   :  { %v7240_v61 = vmax.f32 %v13273_v17, 0.0  ;;  %v7241_v27 = vmax.f32 %v13276_v47, 0.0  ;;  %v7242_v6 = vmax.f32 %v13279_v8, 0.0  ;;  %v7243_v21 = vmax.f32 %v13282_v39, 0.0  ;;  %14936 = vst [vmem:[#allocation152_spill] sm:$0xff] %v13419_v51 }
 0x804   :  { %v7244_v44 = vmax.f32 %v13285_v5, 0.0  ;;  %v7245_v60 = vmax.f32 %v13288_v50, 0.0  ;;  %v7246_v1 = vmax.f32 %v13291_v20, 0.0  ;;  %v7247_v30 = vmax.f32 %v13294_v2, 0.0 }
 0x805   :  { %v7248_v19 = vmax.f32 %v13297_v29, 0.0  ;;  %v7249_v53 = vmax.f32 %v13300_v55, 0.0  ;;  %v7250_v17 = vmax.f32 %v13303_v45, 0.0  ;;  %v7251_v47 = vmax.f32 %v13306_v34, 0.0 }
 0x806   :  { %v7252_v8 = vmax.f32 %v13309_v43, 0.0  ;;  %v7253_v39 = vmax.f32 %v13312_v13, 0.0  ;;  %v7254_v5 = vmax.f32 %v13315_v40, 0.0  ;;  %v7255_v50 = vmax.f32 %v13318_v52, 0.0 }
 0x807   :  { %v7256_v20 = vmax.f32 %v13321_v33, 0.0  ;;  %v7257_v2 = vmax.f32 %v13324_v48, 0.0  ;;  %v7258_v29 = vmax.f32 %v13327_v25, 0.0  ;;  %v7259_v55 = vmax.f32 %v13330_v63, 0.0 }
 0x808   :  { %v7260_v45 = vmax.f32 %v13333_v18, 0.0  ;;  %v7261_v34 = vmax.f32 %v13336_v41, 0.0  ;;  %v7262_v43 = vmax.f32 %v13339_v36, 0.0  ;;  %v7263_v13 = vmax.f32 %v13342_v46, 0.0  ;;  %v14937_v51 = vld [vmem:[#allocation150_spill] sm:$0xff] }
 0x809   :  { %v7264_v40 = vmax.f32 %v13345_v9, 0.0  ;;  %v7265_v52 = vmax.f32 %v13350_v11, 0.0  ;;  %v7266_v33 = vmax.f32 %v13353_v58, 0.0  ;;  %v7267_v48 = vmax.f32 %v13356_v23, 0.0 }
 0x80a   :  { %v7268_v25 = vmax.f32 %v13359_v38, 0.0  ;;  %v7269_v63 = vmax.f32 %v13362_v62, 0.0  ;;  %v7270_v18 = vmax.f32 %v13365_v14, 0.0  ;;  %v7271_v41 = vmax.f32 %v13368_v22, 0.0  ;;  %v14938_v14 = vld [vmem:[#allocation93_spill] sm:$0xff] }
 0x80b   :  { %v7272_v36 = vmax.f32 %v13371_v54, 0.0  ;;  %v7273_v46 = vmax.f32 %v13374_v3, 0.0  ;;  %v7274_v9 = vmax.f32 %v13377_v16, 0.0  ;;  %v7275_v11 = vmax.f32 %v13380_v42, 0.0  ;;  %v14939_v54 = vld [vmem:[#allocation95_spill] sm:$0xff]  ;;  %v14940_v16 = vld [vmem:[#allocation96_spill] sm:$0xff] }
 0x80c   :  { %v7276_v58 = vmax.f32 %v13383_v24, 0.0  ;;  %v7277_v23 = vmax.f32 %v13386_v26, 0.0  ;;  %v7278_v38 = vmax.f32 %v14937_v51, 0.0  ;;  %v7279_v62 = vmax.f32 %v13392_v31, 0.0  ;;  %v14942_v24 = vld [vmem:[#allocation98_spill] sm:$0xff]  ;;  %v14944_v51 = vld [vmem:[#allocation99_spill] sm:$0xff] }
 0x80d   :  { %v7524_v22 = vadd.f32 %v14938_v14, %v7226_v32  ;;  %v7525_v3 = vadd.f32 %v14939_v54, %v7227_v0  ;;  %v13453_v42 = vadd.f32 %v14940_v16, %v7228_v37  ;;  %v13456_v26 = vadd.f32 %v14942_v24, %v7229_v15  ;;  %v14946_v14 = vld [vmem:[#allocation101_spill] sm:$0xff]  ;;  %v14948_v0 = vld [vmem:[#allocation102_spill] sm:$0xff]  ;;  %v14949_v16 = vld [vmem:[#allocation104_spill] sm:$0xff] }
 0x80e   :  { %v13459_v31 = vadd.f32 %v14944_v51, %v7230_v28  ;;  %v13462_v32 = vadd.f32 %v14946_v14, %v7231_v59  ;;  %v13465_v54 = vadd.f32 %v14948_v0, %v7232_v4  ;;  %v13468_v37 = vadd.f32 %v14949_v16, %v7233_v56  ;;  %v14951_v24 = vld [vmem:[#allocation107_spill] sm:$0xff]  ;;  %v14952_v28 = vld [vmem:[#allocation108_spill] sm:$0xff]  ;;  %v14954_v14 = vld [vmem:[#allocation110_spill] sm:$0xff] }
 0x80f   :  { %14941 = vst [vmem:[#allocation153_spill] sm:$0xff] %v13453_v42  ;;  %v14950_v42 = vld [vmem:[#allocation105_spill] sm:$0xff]  ;;  %v13477_v51 = vadd.f32 %v14952_v28, %v7236_v10  ;;  %v13482_v59 = vadd.f32 %v14954_v14, %v7237_v12  ;;  %v14956_v0 = vld [vmem:[#allocation111_spill] sm:$0xff] }
 0x810   :  { %14943 = vst [vmem:[#allocation38_spill] sm:$0xff] %v13456_v26  ;;  %v13471_v15 = vadd.f32 %v14950_v42, %v7234_v35  ;;  %v13474_v26 = vadd.f32 %v14951_v24, %v7235_v7  ;;  %v13488_v56 = vadd.f32 %v14956_v0, %v7239_v49  ;;  %v14957_v16 = vld [vmem:[#allocation75_spill] sm:$0xff]  ;;  %v14958_v42 = vld [vmem:[#allocation112_spill] sm:$0xff]  ;;  %v14960_v28 = vld [vmem:[#allocation113_spill] sm:$0xff] }
 0x811   :  { %14945 = vst [vmem:[#allocation70_spill] sm:$0xff] %v13459_v31  ;;  %v13479_v31 = vpop.f32.mrf.mxu1  ;;  %v13491_v35 = vadd.f32 %v14957_v16, %v7240_v61  ;;  %v13494_v7 = vadd.f32 %v14958_v42, %v7241_v27  ;;  %v14959_v24 = vld [vmem:[#allocation51_spill] sm:$0xff]  ;;  %v14963_v49 = vld [vmem:[#allocation5_spill] sm:$0xff] }
 0x812   :  { %14947 = vst [vmem:[#allocation155_spill] sm:$0xff] %v13462_v32  ;;  %v14955_v32 = vld [vmem:[#allocation72_spill] sm:$0xff]  ;;  %v13497_v10 = vadd.f32 %v14959_v24, %v7242_v6  ;;  %v14961_v12 = vld [vmem:[#allocation3_spill] sm:$0xff]  ;;  %v13509_v0 = vadd.f32 %v14963_v49, %v7246_v1  ;;  %v14970_v1 = vld [vmem:[#allocation118_spill] sm:$0xff] }
 0x813   :  { %14953 = vst [vmem:[#allocation156_spill] sm:$0xff] %v13479_v31  ;;  %v13485_v4 = vadd.f32 %v14955_v32, %v7238_v57  ;;  %v13500_v31 = vadd.f32 %v14960_v28, %v7243_v21  ;;  %v13503_v14 = vadd.f32 %v14961_v12, %v7244_v44  ;;  %v14962_v57 = vld [vmem:[#allocation114_spill] sm:$0xff]  ;;  %v14964_v61 = vld [vmem:[#allocation115_spill] sm:$0xff]  ;;  %v14966_v6 = vld [vmem:[#allocation116_spill] sm:$0xff]  ;;  %v13530_v49 = vadd.f32 %v14970_v1, %v7253_v39 }
 0x814   :  { %v13506_v32 = vadd.f32 %v14962_v57, %v7245_v60  ;;  %v13512_v16 = vadd.f32 %v14964_v61, %v7247_v30  ;;  %v14965_v27 = vld [vmem:[#allocation7_spill] sm:$0xff]  ;;  %v13518_v24 = vadd.f32 %v14966_v6, %v7249_v53  ;;  %v14967_v21 = vld [vmem:[#allocation9_spill] sm:$0xff] }
 0x815   :  { %v13515_v42 = vadd.f32 %v14965_v27, %v7248_v19  ;;  %v13521_v28 = vadd.f32 %v14967_v21, %v7250_v17  ;;  %v14968_v44 = vld [vmem:[#allocation117_spill] sm:$0xff]  ;;  %v14969_v60 = vld [vmem:[#allocation11_spill] sm:$0xff]  ;;  %v14974_v17 = vld [vmem:[#allocation120_spill] sm:$0xff] }
 0x816   :  { %v13524_v12 = vadd.f32 %v14968_v44, %v7251_v47  ;;  %v13527_v57 = vadd.f32 %v14969_v60, %v7252_v8  ;;  %v14971_v30 = vld [vmem:[#allocation13_spill] sm:$0xff]  ;;  %v14972_v19 = vld [vmem:[#allocation119_spill] sm:$0xff]  ;;  %v13542_v21 = vadd.f32 %v14974_v17, %v7257_v2  ;;  %v14981_v2 = vld [vmem:[#allocation24_spill] sm:$0xff] }
 0x817   :  { %v13533_v61 = vadd.f32 %v14971_v30, %v7254_v5  ;;  %v13536_v27 = vadd.f32 %v14972_v19, %v7255_v50  ;;  %v14973_v53 = vld [vmem:[#allocation15_spill] sm:$0xff]  ;;  %v14975_v47 = vld [vmem:[#allocation17_spill] sm:$0xff]  ;;  %v14979_v50 = vld [vmem:[#allocation20_spill] sm:$0xff]  ;;  %v13563_v17 = vadd.f32 %v14981_v2, %v7264_v40 }
 0x818   :  { %v13539_v6 = vadd.f32 %v14973_v53, %v7256_v20  ;;  %v13545_v44 = vadd.f32 %v14975_v47, %v7258_v29  ;;  %v14976_v8 = vld [vmem:[#allocation121_spill] sm:$0xff]  ;;  %v14977_v39 = vld [vmem:[#allocation19_spill] sm:$0xff]  ;;  %v13557_v19 = vadd.f32 %v14979_v50, %v7262_v43  ;;  %v14980_v20 = vld [vmem:[#allocation124_spill] sm:$0xff] }
 0x819   :  { %v13548_v60 = vadd.f32 %v14976_v8, %v7259_v55  ;;  %v13551_v1 = vadd.f32 %v14977_v39, %v7260_v45  ;;  %v14978_v5 = vld [vmem:[#allocation123_spill] sm:$0xff]  ;;  %v13560_v53 = vadd.f32 %v14980_v20, %v7263_v13  ;;  %v14982_v29 = vld [vmem:[#allocation126_spill] sm:$0xff]  ;;  %v14987_v13 = vld [vmem:[#allocation136_spill] sm:$0xff] }
 0x81a   :  { %v13554_v30 = vadd.f32 %v14978_v5, %v7261_v34  ;;  %v13566_v47 = vadd.f32 %v14982_v29, %v7265_v52  ;;  %v14983_v55 = vld [vmem:[#allocation127_spill] sm:$0xff]  ;;  %v14984_v45 = vld [vmem:[#allocation130_spill] sm:$0xff]  ;;  %v13581_v20 = vadd.f32 %v14987_v13, %v7270_v18  ;;  %v14989_v52 = vld [vmem:[#allocation141_spill] sm:$0xff] }
 0x81b   :  { %v13569_v8 = vadd.f32 %v14983_v55, %v7266_v33  ;;  %v13572_v39 = vadd.f32 %v14984_v45, %v7267_v48  ;;  %v14985_v34 = vld [vmem:[#allocation131_spill] sm:$0xff]  ;;  %v14986_v43 = vld [vmem:[#allocation134_spill] sm:$0xff]  ;;  %v13587_v29 = vadd.f32 %v14989_v52, %v7272_v36  ;;  %v13589_v33 = vpop.f32.mrf.mxu1  ;;  %v14992_v55 = vld [vmem:[#allocation144_spill] sm:$0xff]  ;;  %v8941_v52 = vpack.c.bf16 %v7525_v3, %v7524_v22 }
 0x81c   :  { %v13575_v5 = vadd.f32 %v14985_v34, %v7268_v25  ;;  %v13578_v50 = vadd.f32 %v14986_v43, %v7269_v63  ;;  %v14988_v40 = vld [vmem:[#allocation139_spill] sm:$0xff]  ;;  %14991 = vst [vmem:[#allocation158_spill] sm:$0xff] %v13589_v33  ;;  %v13592_v48 = vadd.f32 %v14992_v55, %v7273_v46  ;;  %v14994_v45 = vld [vmem:[#allocation146_spill] sm:$0xff]  ;;  %v14995_v34 = vld [vmem:[#allocation149_spill] sm:$0xff]  ;;  %v8976_v22 = vpack.c.bf16 %v13494_v7, %v13491_v35 }
 0x81d   :  { %v13584_v2 = vadd.f32 %v14988_v40, %v7271_v41  ;;  %14990 = vst [vmem:[#allocation157_spill] sm:$0xff] %v13587_v29  ;;  %v13595_v25 = vadd.f32 %v14994_v45, %v7274_v9  ;;  %v13598_v63 = vadd.f32 %v14995_v34, %v7275_v11  ;;  %v14996_v43 = vld [vmem:[#allocation151_spill] sm:$0xff]  ;;  %v14997_v13 = vld [vmem:[#allocation154_spill] sm:$0xff]  ;;  %v14999_v33 = vld [vmem:[#allocation153_spill] sm:$0xff]  ;;  %v8981_v3 = vpack.c.bf16 %v13500_v31, %v13497_v10 }
 0x81e   :  { %14993 = vst [vmem:[#allocation160_spill] sm:$0xff] %v13592_v48  ;;  %v13601_v18 = vadd.f32 %v14996_v43, %v7276_v58  ;;  %v13604_v41 = vadd.f32 %v14997_v13, %v7277_v23  ;;  %v14998_v40 = vld [vmem:[#allocation166_spill] sm:$0xff]  ;;  %v15001_v55 = vld [vmem:[#allocation167_spill] sm:$0xff]  ;;  %v8956_v58 = vpack.c.bf16 %v13468_v37, %v13465_v54  ;;  %v8961_v23 = vpack.c.bf16 %v13474_v26, %v13471_v15  ;;  %v15010_v43 = vld [vmem:[#allocation76_spill] sm:$0xff] }
 0x81f   :  { %v13607_v36 = vadd.f32 %v14998_v40, %v7278_v38  ;;  %v15000_v29 = vld [vmem:[#allocation38_spill] sm:$0xff]  ;;  %v13612_v48 = vadd.f32 %v15001_v55, %v7279_v62  ;;  %v15003_v45 = vld [vmem:[#allocation155_spill] sm:$0xff]  ;;  %8942 = vst [vmem:[%s13970_s6] sm:$0xff] %v8941_v52   ;;  %v8966_v38 = vpack.c.bf16 %v13482_v59, %v13477_v51  ;;  %v8971_v62 = vpack.c.bf16 %v13488_v56, %v13485_v4 }
 0x820   :  { %v8946_v46 = vpack.c.bf16 %v15000_v29, %v14999_v33  ;;  %v15002_v9 = vld [vmem:[#allocation70_spill] sm:$0xff]  ;;  %v8986_v26 = vpack.c.bf16 %v13506_v32, %v13503_v14  ;;  %v8991_v54 = vpack.c.bf16 %v13512_v16, %v13509_v0  ;;  %v8996_v37 = vpack.c.bf16 %v13518_v24, %v13515_v42  ;;  %9182 = vst [vmem:[%s13970_s6 + $0x18] sm:$0xff] %v8956_v58  }
 0x821   :  { %v8951_v11 = vpack.c.bf16 %v15003_v45, %v15002_v9  ;;  %v9001_v15 = vpack.c.bf16 %v13524_v12, %v13521_v28  ;;  %v9006_v31 = vpack.c.bf16 %v13530_v49, %v13527_v57  ;;  %v9011_v51 = vpack.c.bf16 %v13536_v27, %v13533_v61  ;;  %9183 = vst [vmem:[%s13970_s6 + $0x20] sm:$0xff] %v8961_v23   ;;  %v15006_v57 = vld [vmem:[#allocation16_spill] sm:$0xff]  ;;  %v15007_v49 = vld [vmem:[#allocation34_spill] sm:$0xff] }
 0x822   :  { %9180 = vst [vmem:[%s13970_s6 + $0x8] sm:$0xff] %v8946_v46   ;;  %v9016_v59 = vpack.c.bf16 %v13542_v21, %v13539_v6  ;;  %v9021_v4 = vpack.c.bf16 %v13548_v60, %v13545_v44  ;;  %v9026_v56 = vpack.c.bf16 %v13554_v30, %v13551_v1  ;;  %v9031_v35 = vpack.c.bf16 %v13560_v53, %v13557_v19  ;;  %v15008_v27 = vld [vmem:[#allocation74_spill] sm:$0xff]  ;;  %v15012_v46 = vld [vmem:[#allocation77_spill] sm:$0xff] }
 0x823   :  { %9181 = vst [vmem:[%s13970_s6 + $0x10] sm:$0xff] %v8951_v11   ;;  %v9036_v7 = vpack.c.bf16 %v13566_v47, %v13563_v17  ;;  %v9041_v10 = vpack.c.bf16 %v13572_v39, %v13569_v8  ;;  %v9046_v14 = vpack.c.bf16 %v13578_v50, %v13575_v5  ;;  %v9051_v32 = vpack.c.bf16 %v13584_v2, %v13581_v20  ;;  %v7522_v28 = vpop.f32.mrf.mxu1  ;;  %v15009_v33 = vld [vmem:[#allocation18_spill] sm:$0xff]  ;;  %v15014_v11 = vld [vmem:[#allocation145_spill] sm:$0xff]  ;;  %v15036_v39 = vld [vmem:[#allocation135_spill] sm:$0xff] }
 0x824   :  { %v15004_v0 = vld [vmem:[#allocation157_spill] sm:$0xff]  ;;  %v9061_v24 = vpack.c.bf16 %v13598_v63, %v13595_v25  ;;  %9184 = vst [vmem:[%s13970_s6 + $0x28] sm:$0xff] %v8966_v38   ;;  %v9066_v12 = vpack.c.bf16 %v13604_v41, %v13601_v18  ;;  %v7115_v61 = vmul.f32 %v15007_v49, %v15006_v57  ;;  %v7116_v29 = vmul.f32 %v15007_v49, %v15008_v27  ;;  %v15011_v40 = vld [vmem:[#allocation122_spill] sm:$0xff] }
 0x825   :  { %v15005_v16 = vld [vmem:[#allocation160_spill] sm:$0xff]  ;;  %v7117_v34 = vmul.f32 %v15007_v49, %v15009_v33  ;;  %9185 = vst [vmem:[%s13970_s6 + $0x30] sm:$0xff] %v8971_v62   ;;  %v7118_v13 = vmul.f32 %v15007_v49, %v15010_v43  ;;  %v7119_v52 = vmul.f32 %v15007_v49, %v15011_v40  ;;  %v7120_v55 = vmul.f32 %v15007_v49, %v15012_v46  ;;  %v15013_v9 = vld [vmem:[#allocation22_spill] sm:$0xff]  ;;  %v15016_v46 = vld [vmem:[#allocation21_spill] sm:$0xff] }
 0x826   :  { %v9056_v42 = vpack.c.bf16 %v15005_v16, %v15004_v0  ;;  %v7121_v45 = vmul.f32 %v15007_v49, %v15013_v9  ;;  %9186 = vst [vmem:[%s13970_s6 + $0x38] sm:$0xff] %v8976_v22   ;;  %v7199_v58 = vadd.f32 %v15014_v11, %v7115_v61  ;;  %v7200_v23 = vadd.f32 %v15014_v11, %v7116_v29  ;;  %v15015_v62 = vld [vmem:[#allocation78_spill] sm:$0xff]  ;;  %v15033_v19 = vld [vmem:[#allocation133_spill] sm:$0xff] }
 0x827   :  { %v7201_v38 = vadd.f32 %v15014_v11, %v7117_v34  ;;  %v7122_v28 = vmul.f32 %v15007_v49, %v15015_v62  ;;  %9187 = vst [vmem:[%s13970_s6 + $0x40] sm:$0xff] %v8981_v3   ;;  %v7202_v57 = vadd.f32 %v15014_v11, %v7118_v13  ;;  %v7203_v27 = vadd.f32 %v15014_v11, %v7119_v52  ;;  %v15035_v47 = vld [vmem:[#allocation30_spill] sm:$0xff] }
 0x828   :  { %v7204_v33 = vadd.f32 %v15014_v11, %v7120_v55  ;;  %v7205_v22 = vadd.f32 %v15014_v11, %v7121_v45  ;;  %9188 = vst [vmem:[%s13970_s6 + $0x48] sm:$0xff] %v8986_v26   ;;  %v7280_v61 = vmax.f32 %v7199_v58, 0.0  ;;  %v7281_v29 = vmax.f32 %v7200_v23, 0.0  ;;  %v15017_v26 = vld [vmem:[#allocation125_spill] sm:$0xff]  ;;  %v15018_v45 = vld [vmem:[#allocation26_spill] sm:$0xff] }
 0x829   :  { %v7282_v34 = vmax.f32 %v7201_v38, 0.0  ;;  %v7206_v43 = vadd.f32 %v15014_v11, %v7122_v28  ;;  %9189 = vst [vmem:[%s13970_s6 + $0x50] sm:$0xff] %v8991_v54   ;;  %v7283_v3 = vmax.f32 %v7202_v57, 0.0  ;;  %v7284_v13 = vmax.f32 %v7203_v27, 0.0  ;;  %v15019_v38 = vld [vmem:[#allocation128_spill] sm:$0xff]  ;;  %v15021_v57 = vld [vmem:[#allocation129_spill] sm:$0xff] }
 0x82a   :  { %v7285_v40 = vmax.f32 %v7204_v33, 0.0  ;;  %v7286_v52 = vmax.f32 %v7205_v22, 0.0  ;;  %9190 = vst [vmem:[%s13970_s6 + $0x58] sm:$0xff] %v8996_v37   ;;  %v13723_v55 = vadd.f32 %v15016_v46, %v7280_v61  ;;  %v13726_v9 = vadd.f32 %v15017_v26, %v7281_v29  ;;  %v15020_v37 = vld [vmem:[#allocation52_spill] sm:$0xff]  ;;  %v15023_v61 = vld [vmem:[#allocation25_spill] sm:$0xff]  ;;  %v15043_v0 = vld [vmem:[#allocation138_spill] sm:$0xff] }
 0x82b   :  { %v13729_v58 = vadd.f32 %v15018_v45, %v7282_v34  ;;  %v7287_v23 = vmax.f32 %v7206_v43, 0.0  ;;  %9191 = vst [vmem:[%s13970_s6 + $0x60] sm:$0xff] %v9001_v15   ;;  %v9071_v54 = vpack.c.bf16 %v13612_v48, %v13607_v36  ;;  %v13737_v62 = vadd.f32 %v15019_v38, %v7283_v3  ;;  %v15022_v15 = vld [vmem:[#allocation28_spill] sm:$0xff]  ;;  %v15024_v34 = vld [vmem:[#allocation79_spill] sm:$0xff]  ;;  %v15028_v38 = vld [vmem:[#allocation29_spill] sm:$0xff] }
 0x82c   :  { %v13740_v28 = vadd.f32 %v15020_v37, %v7284_v13  ;;  %v13743_v27 = vadd.f32 %v15021_v57, %v7285_v40  ;;  %9192 = vst [vmem:[%s13970_s6 + $0x68] sm:$0xff] %v9006_v31   ;;  %v9076_v33 = vpack.c.bf16 %v13726_v9, %v13723_v55  ;;  %v13751_v22 = vadd.f32 %v15022_v15, %v7286_v52  ;;  %v15025_v31 = vld [vmem:[#allocation55_spill] sm:$0xff]  ;;  %v15027_v46 = vld [vmem:[#allocation80_spill] sm:$0xff] }
 0x82d   :  { %v7123_v29 = vmul.f32 %v15007_v49, %v15023_v61  ;;  %v7124_v43 = vmul.f32 %v15007_v49, %v15024_v34  ;;  %9193 = vst [vmem:[%s13970_s6 + $0x70] sm:$0xff] %v9011_v51   ;;  %v9081_v3 = vpack.c.bf16 %v13737_v62, %v13729_v58  ;;  %v13763_v13 = vadd.f32 %v15025_v31, %v7287_v23  ;;  %v15026_v40 = vld [vmem:[#allocation27_spill] sm:$0xff]  ;;  %v15032_v31 = vld [vmem:[#allocation132_spill] sm:$0xff] }
 0x82e   :  { %v7125_v52 = vmul.f32 %v15007_v49, %v15026_v40  ;;  %v7126_v26 = vmul.f32 %v15007_v49, %v15027_v46  ;;  %9194 = vst [vmem:[%s13970_s6 + $0x78] sm:$0xff] %v9016_v59   ;;  %v9086_v51 = vpack.c.bf16 %v13743_v27, %v13740_v28  ;;  %v7127_v37 = vmul.f32 %v15007_v49, %v15028_v38  ;;  %v15029_v59 = vld [vmem:[#allocation81_spill] sm:$0xff]  ;;  %v15030_v15 = vld [vmem:[#allocation31_spill] sm:$0xff]  ;;  %v15034_v46 = vld [vmem:[#allocation88_spill] sm:$0xff] }
 0x82f   :  { %v7207_v45 = vadd.f32 %v15014_v11, %v7123_v29  ;;  %v7208_v23 = vadd.f32 %v15014_v11, %v7124_v43  ;;  %9195 = vst [vmem:[%s13970_s6 + $0x80] sm:$0xff] %v9021_v4   ;;  %v7128_v57 = vmul.f32 %v15007_v49, %v15029_v59  ;;  %v7129_v61 = vmul.f32 %v15007_v49, %v15030_v15  ;;  %v15031_v29 = vld [vmem:[#allocation82_spill] sm:$0xff]  ;;  %v15041_v59 = vld [vmem:[#allocation35_spill] sm:$0xff]  ;;  %v15047_v48 = vld [vmem:[#allocation32_spill] sm:$0xff] }
 0x830   :  { %v7209_v6 = vadd.f32 %v15014_v11, %v7125_v52  ;;  %v7210_v21 = vadd.f32 %v15014_v11, %v7126_v26  ;;  %9196 = vst [vmem:[%s13970_s6 + $0x88] sm:$0xff] %v9026_v56   ;;  %v7211_v4 = vadd.f32 %v15014_v11, %v7127_v37  ;;  %v7130_v34 = vmul.f32 %v15007_v49, %v15031_v29  ;;  %v15051_v58 = vld [vmem:[#allocation23_spill] sm:$0xff] }
 0x831   :  { %v7288_v44 = vmax.f32 %v7207_v45, 0.0  ;;  %v7289_v60 = vmax.f32 %v7208_v23, 0.0  ;;  %9197 = vst [vmem:[%s13970_s6 + $0x90] sm:$0xff] %v9031_v35   ;;  %v7212_v30 = vadd.f32 %v15014_v11, %v7128_v57  ;;  %v7213_v56 = vadd.f32 %v15014_v11, %v7129_v61  ;;  %v15042_v57 = vld [vmem:[#allocation84_spill] sm:$0xff]  ;;  %v15044_v61 = vld [vmem:[#allocation37_spill] sm:$0xff]  ;;  %v15054_v27 = vld [vmem:[#allocation147_spill] sm:$0xff] }
 0x832   :  { %v7290_v43 = vmax.f32 %v7209_v6, 0.0  ;;  %v7291_v1 = vmax.f32 %v7210_v21, 0.0  ;;  %9198 = vst [vmem:[%s13970_s6 + $0x98] sm:$0xff] %v9036_v7   ;;  %v7292_v52 = vmax.f32 %v7211_v4, 0.0  ;;  %v7214_v35 = vadd.f32 %v15014_v11, %v7130_v34  ;;  %v15038_v6 = vld [vmem:[#allocation137_spill] sm:$0xff]  ;;  %v15039_v21 = vld [vmem:[#allocation83_spill] sm:$0xff] }
 0x833   :  { %v7586_v40 = vadd.f32 %v15032_v31, %v7288_v44  ;;  %v7587_v53 = vadd.f32 %v15033_v19, %v7289_v60  ;;  %9199 = vst [vmem:[%s13970_s6 + $0xa0] sm:$0xff] %v9041_v10   ;;  %v7293_v45 = vmax.f32 %v7212_v30, 0.0  ;;  %v7294_v7 = vmax.f32 %v7213_v56, 0.0  ;;  %v15037_v10 = vld [vmem:[#allocation33_spill] sm:$0xff]  ;;  %v15049_v31 = vld [vmem:[#allocation140_spill] sm:$0xff]  ;;  %v15050_v19 = vld [vmem:[#allocation142_spill] sm:$0xff] }
 0x834   :  { %v7588_v17 = vadd.f32 %v15034_v46, %v7290_v43  ;;  %v7589_v26 = vadd.f32 %v15035_v47, %v7291_v1  ;;  %9200 = vst [vmem:[%s13970_s6 + $0xa8] sm:$0xff] %v9046_v14   ;;  %v9091_v8 = vpack.c.bf16 %v13763_v13, %v13751_v22  ;;  %v7590_v23 = vadd.f32 %v15036_v39, %v7292_v52  ;;  %v15040_v13 = vld [vmem:[#allocation86_spill] sm:$0xff]  ;;  %v15045_v60 = vld [vmem:[#allocation85_spill] sm:$0xff]  ;;  %v15046_v43 = vld [vmem:[#allocation39_spill] sm:$0xff] }
 0x835   :  { %v7295_v38 = vmax.f32 %v7214_v35, 0.0  ;;  %v7131_v37 = vmul.f32 %v15007_v49, %v15037_v10  ;;  %9201 = vst [vmem:[%s13970_s6 + $0xb0] sm:$0xff] %v9051_v32   ;;  %v9096_v5 = vpack.c.bf16 %v7587_v53, %v7586_v40  ;;  %v7591_v14 = vadd.f32 %v15038_v6, %v7293_v45  ;;  %v15055_v39 = vld [vmem:[#allocation42_spill] sm:$0xff] }
 0x836   :  { %v9101_v50 = vpack.c.bf16 %v7589_v26, %v7588_v17  ;;  %v7132_v22 = vmul.f32 %v15007_v49, %v15039_v21  ;;  %9202 = vst [vmem:[%s13970_s6 + $0xb8] sm:$0xff] %v9056_v42   ;;  %v7592_v20 = vadd.f32 %v15040_v13, %v7294_v7  ;;  %v7133_v32 = vmul.f32 %v15007_v49, %v15041_v59  ;;  %v15053_v17 = vld [vmem:[#allocation143_spill] sm:$0xff] }
 0x837   :  { %v7215_v2 = vadd.f32 %v15014_v11, %v7131_v37  ;;  %v7134_v15 = vmul.f32 %v15007_v49, %v15042_v57  ;;  %9203 = vst [vmem:[%s13970_s6 + $0xc0] sm:$0xff] %v9061_v24   ;;  %v7593_v16 = vadd.f32 %v15043_v0, %v7295_v38  ;;  %v7135_v44 = vmul.f32 %v15007_v49, %v15044_v61  ;;  %v15056_v38 = vld [vmem:[#allocation148_spill] sm:$0xff]  ;;  %v15057_v37 = vld [vmem:[#allocation159_spill] sm:$0xff] }
 0x838   :  { %v7216_v42 = vadd.f32 %v15014_v11, %v7132_v22  ;;  %v7136_v4 = vmul.f32 %v15007_v49, %v15045_v60  ;;  %9204 = vst [vmem:[%s13970_s6 + $0xc8] sm:$0xff] %v9066_v12   ;;  %v9106_v25 = vpack.c.bf16 %v7591_v14, %v7590_v23  ;;  %v7217_v24 = vadd.f32 %v15014_v11, %v7133_v32  ;;  %v15058_v14 = vld [vmem:[#allocation36_spill] sm:$0xff] }
 0x839   :  { %v7296_v63 = vmax.f32 %v7215_v2, 0.0  ;;  %v7218_v29 = vadd.f32 %v15014_v11, %v7134_v15  ;;  %9205 = vst [vmem:[%s13970_s6 + $0xd0] sm:$0xff] %v9071_v54   ;;  %v7219_v18 = vadd.f32 %v15014_v11, %v7135_v44  ;;  %v7137_v12 = vmul.f32 %v15007_v49, %v15046_v43  ;;  %v15048_v54 = vld [vmem:[#allocation40_spill] sm:$0xff] }
 0x83a   :  { %v7297_v34 = vmax.f32 %v7216_v42, 0.0  ;;  %v7220_v41 = vadd.f32 %v15014_v11, %v7136_v4  ;;  %9206 = vst [vmem:[%s13970_s6 + $0xd8] sm:$0xff] %v9076_v33   ;;  %v7298_v1 = vmax.f32 %v7217_v24, 0.0  ;;  %v7138_v56 = vmul.f32 %v15007_v49, %v15048_v54  ;;  %v15060_v57 = vld [vmem:[#allocation156_spill] sm:$0xff] }
 0x83b   :  { %v7594_v36 = vadd.f32 %v15047_v48, %v7296_v63  ;;  %v7299_v30 = vmax.f32 %v7218_v29, 0.0  ;;  %9207 = vst [vmem:[%s13970_s6 + $0xe0] sm:$0xff] %v9081_v3   ;;  %v7300_v9 = vmax.f32 %v7219_v18, 0.0  ;;  %v7221_v33 = vadd.f32 %v15014_v11, %v7137_v12  ;;  %v15052_v3 = vld [vmem:[#allocation41_spill] sm:$0xff] }
 0x83c   :  { %v7595_v55 = vadd.f32 %v15049_v31, %v7297_v34  ;;  %v7301_v40 = vmax.f32 %v7220_v41, 0.0  ;;  %9208 = vst [vmem:[%s13970_s6 + $0xe8] sm:$0xff] %v9086_v51   ;;  %v7596_v53 = vadd.f32 %v15050_v19, %v7298_v1  ;;  %v7222_v52 = vadd.f32 %v15014_v11, %v7138_v56 }
 0x83d   :  { %v7597_v62 = vadd.f32 %v15051_v58, %v7299_v30  ;;  %v7139_v35 = vmul.f32 %v15007_v49, %v15052_v3  ;;  %9209 = vst [vmem:[%s13970_s6 + $0xf0] sm:$0xff] %v9091_v8   ;;  %v9111_v46 = vpack.c.bf16 %v7593_v16, %v7592_v20  ;;  %v7598_v28 = vadd.f32 %v15053_v17, %v7300_v9  ;;  %v15059_v20 = vld [vmem:[#allocation152_spill] sm:$0xff] }
 0x83e   :  { %v7599_v47 = vadd.f32 %v15054_v27, %v7301_v40  ;;  %v7302_v26 = vmax.f32 %v7221_v33, 0.0  ;;  %9210 = vst [vmem:[%s13970_s6 + $0xf8] sm:$0xff] %v9096_v5   ;;  %v9116_v51 = vpack.c.bf16 %v7595_v55, %v7594_v36  ;;  %v7303_v45 = vmax.f32 %v7222_v52, 0.0 }
 0x83f   :  { %v7223_v7 = vadd.f32 %v15014_v11, %v7139_v35  ;;  %v7140_v23 = vmul.f32 %v15007_v49, %v15055_v39  ;;  %9211 = vst [vmem:[%s13970_s6 + $0x100] sm:$0xff] %v9101_v50   ;;  %v9121_v8 = vpack.c.bf16 %v7597_v62, %v7596_v53  ;;  %v7141_v6 = vmul.f32 %v15007_v49, %v15057_v37 }
 0x840   :  { %v7600_v10 = vadd.f32 %v15056_v38, %v7302_v26  ;;  %9212 = vst [vmem:[%s13970_s6 + $0x108] sm:$0xff] %v9106_v25   ;;  %v9126_v5 = vpack.c.bf16 %v7599_v47, %v7598_v28  ;;  %v7601_v21 = vadd.f32 %v15058_v14, %v7303_v45 }
 0x841   :  { %v7304_v22 = vmax.f32 %v7223_v7, 0.0  ;;  %v7224_v13 = vadd.f32 %v15014_v11, %v7140_v23  ;;  %9213 = vst [vmem:[%s13970_s6 + $0x110] sm:$0xff] %v9111_v46   ;;  %v7225_v50 = vadd.f32 %v15014_v11, %v7141_v6  ;;  %v15061_v11 = vld [vmem:[#allocation158_spill] sm:$0xff] }
 0x842   :  { %9214 = vst [vmem:[%s13970_s6 + $0x118] sm:$0xff] %v9116_v51   ;;  %v9131_v49 = vpack.c.bf16 %v7601_v21, %v7600_v10 }
 0x843   :  { %v7602_v2 = vadd.f32 %v15059_v20, %v7304_v22  ;;  %v7305_v59 = vmax.f32 %v7224_v13, 0.0  ;;  %9215 = vst [vmem:[%s13970_s6 + $0x120] sm:$0xff] %v9121_v8   ;;  %v7306_v32 = vmax.f32 %v7225_v50, 0.0 }
 0x844   :  { %9216 = vst [vmem:[%s13970_s6 + $0x128] sm:$0xff] %v9126_v5  }
 0x845   :  { %v7603_v15 = vadd.f32 %v15060_v57, %v7305_v59  ;;  %9217 = vst [vmem:[%s13970_s6 + $0x130] sm:$0xff] %v9131_v49   ;;  %v7604_v0 = vadd.f32 %v15061_v11, %v7306_v32 }
 0x847   :  { %v9136_v16 = vpack.c.bf16 %v7603_v15, %v7602_v2  ;;  %v7685_v42 = vpack.c.bf16 %v7604_v0, %v7604_v0 }
 0x849   :  { %9218 = vst [vmem:[%s13970_s6 + $0x138] sm:$0xff] %v9136_v16  }
 0x84a   :  { %7766 = vst [vmem:[%s13970_s6 + $0x140] sm:$0xf] %v7685_v42 }

</bundles_post_ra>
